<compile_context>
chip_gen: v6e
topology: v6e:2x2x1
jax: 0.10.0
libtpu: 0.0.40
codegen_flags: <defaults>
</compile_context>

<pallas_src>
import jax
import jax.numpy as jnp
from jax.experimental import pallas as pl
from jax.experimental.pallas import tpu as pltpu


def dwconv3d_kernel(x_ref, w_ref, b_ref, o_ref):
    """Depthwise 3x3x3 conv (stride 1, padding 1) over one (batch, channel-block) tile.

    x_ref: (1, H, W, D, TC)  channels-last activations (TC channels on lanes)
    w_ref: (27, TC) f32      per-channel taps, flat index = kh*9 + kw*3 + kd
    b_ref: (1, TC)  f32      bias
    o_ref: (1, H, W, D, TC)
    """
    _, H, W, D, TC = o_ref.shape

    # ---- hoisted, loop-invariant values (broadcasts are NOT CSE'd inside loops) ----
    wv = w_ref[...]                                        # (27, TC) f32
    wts = [wv[t].reshape(1, 1, TC) for t in range(27)]     # 27 small lane vectors, stay in vregs
    bias_b = jnp.broadcast_to(b_ref[...].reshape(1, 1, TC), (W, D, TC))   # f32 row-acc init
    zw = jnp.zeros((1, D, TC), jnp.float32)                # W-halo row
    zd = jnp.zeros((W + 2, 1, TC), jnp.float32)            # D-halo plane (per padded row)

    # Loop over output rows: the per-row f32 accumulator is register-resident across all
    # 27 taps and stored once, so acc never round-trips through VMEM.  H is a static block
    # dim, so a Python loop fully unrolls and the H halo is a static tap skip.
    # TODO(synk): for very large H, add a grid axis tiling H with a 1-row halo (manual DMA
    # via memory_space=pl.ANY or an element-offset index_map) so a block also fits v7x's
    # 64 MiB VMEM and both of its TensorCores get parallel grid steps even at B=1, C=128.
    for h in range(H):
        acc = bias_b                                       # (W, D, TC) f32
        for kh in range(3):
            r = h + kh - 1
            if r < 0 or r >= H:
                continue                                   # zero padding along H
            # Single f32 upcast per row slice (not per tap); all MACs in f32.
            row = x_ref[0, r].astype(jnp.float32)          # (W, D, TC)
            # W halo: outer-dim concat (no sublane/lane movement).
            rowp = jnp.concatenate([zw, row, zw], axis=0)  # (W+2, D, TC)
            # D halo: per-row static sublane slices -- no full-volume shifted slab built.
            row_m = jnp.concatenate([zd, rowp[:, :D - 1, :]], axis=1)   # holds x[.., d-1]
            row_p = jnp.concatenate([rowp[:, 1:, :], zd], axis=1)       # holds x[.., d+1]
            for kd, rv in ((0, row_m), (1, rowp), (2, row_p)):
                base = kh * 9 + kd
                for kw in range(3):
                    # kw shift is a cheap outer-dim slice of the padded row; per-channel
                    # weight broadcasts along sublanes via a replicated layout.
                    acc = acc + rv[kw:kw + W] * wts[base + kw * 3]
        o_ref[0, h] = acc.astype(o_ref.dtype)


def _pick_channel_tile(C, W, D):
    """Largest lane-dense channel tile whose per-row f32 working set stays register-friendly."""
    if C % 128 != 0:
        # Single block: numerically correct, but lanes are not 128-dense (masked stores).
        return C
    # Working set per output row: acc (W*D*TC) + 3 padded row slabs ((W+2)*D*TC), all f32.
    budget = 192 * 1024                                    # ~48 vregs
    for cand in (512, 384, 256):
        if C % cand == 0 and (W * D + 3 * (W + 2) * D) * cand * 4 <= budget:
            return cand
    return 128


def dwconv_forward(x, weight, bias, H, W, D):
    """DWConv.forward: x (B, N, C) with N = H*W*D -> (B, N, C).

    weight: (C, 3, 3, 3)  (PyTorch depthwise Conv3d weight (C,1,3,3,3) squeezed)
    bias:   (C,)
    """
    B, N, C = x.shape
    assert N == H * W * D

    # (B,N,C) -> channels-last (B,H,W,D,C) is an identity-layout reshape.
    x5 = x.reshape(B, H, W, D, C)

    TC = _pick_channel_tile(C, W, D)
    ncb = C // TC

    # Weights/bias stay f32 regardless of the activation dtype.
    w2 = jnp.transpose(weight.reshape(C, 27), (1, 0)).astype(jnp.float32)   # (27, C)
    b2 = bias.reshape(1, C).astype(jnp.float32)

    # VMEM budget: real block footprint with headroom, capped by this generation's
    # physical VMEM (v7x: 64 MiB -> ~48 MiB cap; v5e/v6e: 128 MiB -> 96 MiB cap).
    blk = H * W * D * TC
    row_work = (W * D + 3 * (W + 2) * D) * TC * 4          # acc + padded row slabs (worst case)
    est = (2 * blk * x.dtype.itemsize                      # double-buffered input block
           + 2 * blk * x.dtype.itemsize                    # double-buffered output block
           + row_work
           + 2 * 28 * TC * 4)                              # weights + bias blocks
    try:
        phys_vmem = pltpu.get_tpu_info().vmem_capacity_bytes
    except Exception:
        phys_vmem = 64 * 1024 * 1024                       # conservative (v7x per-core VMEM)
    vmem_limit = int(min(max(int(1.5 * est), 32 * 1024 * 1024), int(0.75 * phys_vmem)))

    out = pl.pallas_call(
        dwconv3d_kernel,
        out_shape=jax.ShapeDtypeStruct((B, H, W, D, C), x.dtype),
        grid_spec=pltpu.PrefetchScalarGridSpec(
            num_scalar_prefetch=0,
            grid=(B, ncb),
            in_specs=[
                pl.BlockSpec((1, H, W, D, TC), lambda b, c: (b, 0, 0, 0, c)),
                pl.BlockSpec((27, TC), lambda b, c: (0, c)),
                pl.BlockSpec((1, TC), lambda b, c: (0, c)),
            ],
            out_specs=pl.BlockSpec((1, H, W, D, TC), lambda b, c: (b, 0, 0, 0, c)),
        ),
        compiler_params=pltpu.CompilerParams(
            dimension_semantics=("parallel", "parallel"),
            vmem_limit_bytes=vmem_limit,
        ),
    )(x5, w2, b2)

    # channels-last (B,H,W,D,C) -> (B,N,C) is again a plain reshape.
    return out.reshape(B, N, C)


def _reference(x, weight, bias, H, W, D):
    # Pure-JAX reference using lax depthwise conv (for verification).
    B, N, C = x.shape
    x5 = jnp.transpose(x, (0, 2, 1)).reshape(B, C, H, W, D)
    out = jax.lax.conv_general_dilated(
        x5, weight.reshape(C, 1, 3, 3, 3),
        window_strides=(1, 1, 1), padding=((1, 1), (1, 1), (1, 1)),
        dimension_numbers=("NCHWD", "OIHWD", "NCHWD"),
        feature_group_count=C,
    ) + bias.reshape(1, C, 1, 1, 1)
    return jnp.transpose(out.reshape(B, C, N), (0, 2, 1))


if __name__ == "__main__":
    B, C, H, W, D = 2, 256, 8, 8, 8     # C multiple of 128 -> lane-dense channel blocks
    N = H * W * D
    key = jax.random.PRNGKey(0)
    kx, kw, kb = jax.random.split(key, 3)
    x = jax.random.normal(kx, (B, N, C), dtype=jnp.float32)
    # Conv3d(C, C, 3, groups=C): weight (C,1,3,3,3) squeezed, bias (C,)
    weight = jax.random.normal(kw, (C, 3, 3, 3), dtype=jnp.float32) * 0.1
    bias = jax.random.normal(kb, (C,), dtype=jnp.float32) * 0.1

    out = jax.block_until_ready(dwconv_forward(x, weight, bias, H, W, D))
    ref = jax.block_until_ready(_reference(x, weight, bias, H, W, D))
    assert out.shape == (B, N, C)
    assert jnp.allclose(out, ref, atol=1e-4, rtol=1e-4)
    print("KERNEL_OK")
</pallas_src>

<mosaic_0001>
module attributes {stable_mosaic.version = 11 : i64} {
  func.func @dwconv3d_kernel(%arg0: i32, %arg1: i32, %arg2: memref<1x8x8x8x128xf32, #tpu.memory_space<vmem>>, %arg3: memref<27x128xf32, #tpu.memory_space<vmem>>, %arg4: memref<1x128xf32, #tpu.memory_space<vmem>>, %arg5: memref<1x8x8x8x128xf32, #tpu.memory_space<vmem>>) attributes {dimension_semantics = [#tpu.dimension_semantics<parallel>, #tpu.dimension_semantics<parallel>], iteration_bounds = array<i64: 2, 2>, scalar_prefetch = 0 : i64, scratch_operands = 0 : i64, tpu.core_type = #tpu.core_type<tc>, window_params = [{transform_indices = @transform_0, window_bounds = array<i64: 1, 8, 8, 8, 128>}, {transform_indices = @transform_1, window_bounds = array<i64: 27, 128>}, {transform_indices = @transform_2, window_bounds = array<i64: 1, 128>}, {transform_indices = @transform_3, window_bounds = array<i64: 1, 8, 8, 8, 128>}]} {
    %c0 = arith.constant 0 : index
    %c0_0 = arith.constant 0 : index
    %0 = vector.load %arg3[%c0, %c0_0] : memref<27x128xf32, #tpu.memory_space<vmem>>, vector<27x128xf32>
    %1 = vector.extract_strided_slice %0 {offsets = [0, 0], sizes = [1, 128], strides = [1, 1]} : vector<27x128xf32> to vector<1x128xf32>
    %2 = vector.shape_cast %1 : vector<1x128xf32> to vector<128xf32>
    %3 = vector.shape_cast %2 : vector<128xf32> to vector<1x1x128xf32>
    %4 = vector.extract_strided_slice %0 {offsets = [1, 0], sizes = [1, 128], strides = [1, 1]} : vector<27x128xf32> to vector<1x128xf32>
    %5 = vector.shape_cast %4 : vector<1x128xf32> to vector<128xf32>
    %6 = vector.shape_cast %5 : vector<128xf32> to vector<1x1x128xf32>
    %7 = vector.extract_strided_slice %0 {offsets = [2, 0], sizes = [1, 128], strides = [1, 1]} : vector<27x128xf32> to vector<1x128xf32>
    %8 = vector.shape_cast %7 : vector<1x128xf32> to vector<128xf32>
    %9 = vector.shape_cast %8 : vector<128xf32> to vector<1x1x128xf32>
    %10 = vector.extract_strided_slice %0 {offsets = [3, 0], sizes = [1, 128], strides = [1, 1]} : vector<27x128xf32> to vector<1x128xf32>
    %11 = vector.shape_cast %10 : vector<1x128xf32> to vector<128xf32>
    %12 = vector.shape_cast %11 : vector<128xf32> to vector<1x1x128xf32>
    %13 = vector.extract_strided_slice %0 {offsets = [4, 0], sizes = [1, 128], strides = [1, 1]} : vector<27x128xf32> to vector<1x128xf32>
    %14 = vector.shape_cast %13 : vector<1x128xf32> to vector<128xf32>
    %15 = vector.shape_cast %14 : vector<128xf32> to vector<1x1x128xf32>
    %16 = vector.extract_strided_slice %0 {offsets = [5, 0], sizes = [1, 128], strides = [1, 1]} : vector<27x128xf32> to vector<1x128xf32>
    %17 = vector.shape_cast %16 : vector<1x128xf32> to vector<128xf32>
    %18 = vector.shape_cast %17 : vector<128xf32> to vector<1x1x128xf32>
    %19 = vector.extract_strided_slice %0 {offsets = [6, 0], sizes = [1, 128], strides = [1, 1]} : vector<27x128xf32> to vector<1x128xf32>
    %20 = vector.shape_cast %19 : vector<1x128xf32> to vector<128xf32>
    %21 = vector.shape_cast %20 : vector<128xf32> to vector<1x1x128xf32>
    %22 = vector.extract_strided_slice %0 {offsets = [7, 0], sizes = [1, 128], strides = [1, 1]} : vector<27x128xf32> to vector<1x128xf32>
    %23 = vector.shape_cast %22 : vector<1x128xf32> to vector<128xf32>
    %24 = vector.shape_cast %23 : vector<128xf32> to vector<1x1x128xf32>
    %25 = vector.extract_strided_slice %0 {offsets = [8, 0], sizes = [1, 128], strides = [1, 1]} : vector<27x128xf32> to vector<1x128xf32>
    %26 = vector.shape_cast %25 : vector<1x128xf32> to vector<128xf32>
    %27 = vector.shape_cast %26 : vector<128xf32> to vector<1x1x128xf32>
    %28 = vector.extract_strided_slice %0 {offsets = [9, 0], sizes = [1, 128], strides = [1, 1]} : vector<27x128xf32> to vector<1x128xf32>
    %29 = vector.shape_cast %28 : vector<1x128xf32> to vector<128xf32>
    %30 = vector.shape_cast %29 : vector<128xf32> to vector<1x1x128xf32>
    %31 = vector.extract_strided_slice %0 {offsets = [10, 0], sizes = [1, 128], strides = [1, 1]} : vector<27x128xf32> to vector<1x128xf32>
    %32 = vector.shape_cast %31 : vector<1x128xf32> to vector<128xf32>
    %33 = vector.shape_cast %32 : vector<128xf32> to vector<1x1x128xf32>
    %34 = vector.extract_strided_slice %0 {offsets = [11, 0], sizes = [1, 128], strides = [1, 1]} : vector<27x128xf32> to vector<1x128xf32>
    %35 = vector.shape_cast %34 : vector<1x128xf32> to vector<128xf32>
    %36 = vector.shape_cast %35 : vector<128xf32> to vector<1x1x128xf32>
    %37 = vector.extract_strided_slice %0 {offsets = [12, 0], sizes = [1, 128], strides = [1, 1]} : vector<27x128xf32> to vector<1x128xf32>
    %38 = vector.shape_cast %37 : vector<1x128xf32> to vector<128xf32>
    %39 = vector.shape_cast %38 : vector<128xf32> to vector<1x1x128xf32>
    %40 = vector.extract_strided_slice %0 {offsets = [13, 0], sizes = [1, 128], strides = [1, 1]} : vector<27x128xf32> to vector<1x128xf32>
    %41 = vector.shape_cast %40 : vector<1x128xf32> to vector<128xf32>
    %42 = vector.shape_cast %41 : vector<128xf32> to vector<1x1x128xf32>
    %43 = vector.extract_strided_slice %0 {offsets = [14, 0], sizes = [1, 128], strides = [1, 1]} : vector<27x128xf32> to vector<1x128xf32>
    %44 = vector.shape_cast %43 : vector<1x128xf32> to vector<128xf32>
    %45 = vector.shape_cast %44 : vector<128xf32> to vector<1x1x128xf32>
    %46 = vector.extract_strided_slice %0 {offsets = [15, 0], sizes = [1, 128], strides = [1, 1]} : vector<27x128xf32> to vector<1x128xf32>
    %47 = vector.shape_cast %46 : vector<1x128xf32> to vector<128xf32>
    %48 = vector.shape_cast %47 : vector<128xf32> to vector<1x1x128xf32>
    %49 = vector.extract_strided_slice %0 {offsets = [16, 0], sizes = [1, 128], strides = [1, 1]} : vector<27x128xf32> to vector<1x128xf32>
    %50 = vector.shape_cast %49 : vector<1x128xf32> to vector<128xf32>
    %51 = vector.shape_cast %50 : vector<128xf32> to vector<1x1x128xf32>
    %52 = vector.extract_strided_slice %0 {offsets = [17, 0], sizes = [1, 128], strides = [1, 1]} : vector<27x128xf32> to vector<1x128xf32>
    %53 = vector.shape_cast %52 : vector<1x128xf32> to vector<128xf32>
    %54 = vector.shape_cast %53 : vector<128xf32> to vector<1x1x128xf32>
    %55 = vector.extract_strided_slice %0 {offsets = [18, 0], sizes = [1, 128], strides = [1, 1]} : vector<27x128xf32> to vector<1x128xf32>
    %56 = vector.shape_cast %55 : vector<1x128xf32> to vector<128xf32>
    %57 = vector.shape_cast %56 : vector<128xf32> to vector<1x1x128xf32>
    %58 = vector.extract_strided_slice %0 {offsets = [19, 0], sizes = [1, 128], strides = [1, 1]} : vector<27x128xf32> to vector<1x128xf32>
    %59 = vector.shape_cast %58 : vector<1x128xf32> to vector<128xf32>
    %60 = vector.shape_cast %59 : vector<128xf32> to vector<1x1x128xf32>
    %61 = vector.extract_strided_slice %0 {offsets = [20, 0], sizes = [1, 128], strides = [1, 1]} : vector<27x128xf32> to vector<1x128xf32>
    %62 = vector.shape_cast %61 : vector<1x128xf32> to vector<128xf32>
    %63 = vector.shape_cast %62 : vector<128xf32> to vector<1x1x128xf32>
    %64 = vector.extract_strided_slice %0 {offsets = [21, 0], sizes = [1, 128], strides = [1, 1]} : vector<27x128xf32> to vector<1x128xf32>
    %65 = vector.shape_cast %64 : vector<1x128xf32> to vector<128xf32>
    %66 = vector.shape_cast %65 : vector<128xf32> to vector<1x1x128xf32>
    %67 = vector.extract_strided_slice %0 {offsets = [22, 0], sizes = [1, 128], strides = [1, 1]} : vector<27x128xf32> to vector<1x128xf32>
    %68 = vector.shape_cast %67 : vector<1x128xf32> to vector<128xf32>
    %69 = vector.shape_cast %68 : vector<128xf32> to vector<1x1x128xf32>
    %70 = vector.extract_strided_slice %0 {offsets = [23, 0], sizes = [1, 128], strides = [1, 1]} : vector<27x128xf32> to vector<1x128xf32>
    %71 = vector.shape_cast %70 : vector<1x128xf32> to vector<128xf32>
    %72 = vector.shape_cast %71 : vector<128xf32> to vector<1x1x128xf32>
    %73 = vector.extract_strided_slice %0 {offsets = [24, 0], sizes = [1, 128], strides = [1, 1]} : vector<27x128xf32> to vector<1x128xf32>
    %74 = vector.shape_cast %73 : vector<1x128xf32> to vector<128xf32>
    %75 = vector.shape_cast %74 : vector<128xf32> to vector<1x1x128xf32>
    %76 = vector.extract_strided_slice %0 {offsets = [25, 0], sizes = [1, 128], strides = [1, 1]} : vector<27x128xf32> to vector<1x128xf32>
    %77 = vector.shape_cast %76 : vector<1x128xf32> to vector<128xf32>
    %78 = vector.shape_cast %77 : vector<128xf32> to vector<1x1x128xf32>
    %79 = vector.extract_strided_slice %0 {offsets = [26, 0], sizes = [1, 128], strides = [1, 1]} : vector<27x128xf32> to vector<1x128xf32>
    %80 = vector.shape_cast %79 : vector<1x128xf32> to vector<128xf32>
    %81 = vector.shape_cast %80 : vector<128xf32> to vector<1x1x128xf32>
    %c0_1 = arith.constant 0 : index
    %c0_2 = arith.constant 0 : index
    %82 = vector.load %arg4[%c0_1, %c0_2] : memref<1x128xf32, #tpu.memory_space<vmem>>, vector<1x128xf32>
    %83 = vector.shape_cast %82 : vector<1x128xf32> to vector<1x1x128xf32>
    %84 = vector.shape_cast %83 : vector<1x1x128xf32> to vector<1x1x128xf32>
    %85 = vector.broadcast %84 : vector<1x1x128xf32> to vector<8x8x128xf32>
    %cst = arith.constant 0.000000e+00 : f32
    %86 = vector.broadcast %cst : f32 to vector<1x8x128xf32>
    %cst_3 = arith.constant 0.000000e+00 : f32
    %87 = vector.broadcast %cst_3 : f32 to vector<10x1x128xf32>
    %c0_4 = arith.constant 0 : index
    %c0_5 = arith.constant 0 : index
    %c0_6 = arith.constant 0 : index
    %c0_7 = arith.constant 0 : index
    %c0_8 = arith.constant 0 : index
    %88 = vector.load %arg2[%c0_4, %c0_5, %c0_6, %c0_7, %c0_8] : memref<1x8x8x8x128xf32, #tpu.memory_space<vmem>>, vector<1x1x8x8x128xf32>
    %89 = vector.shape_cast %88 : vector<1x1x8x8x128xf32> to vector<8x8x128xf32>
    %90 = tpu.concatenate %86, %89, %86 in 0 : vector<1x8x128xf32>, vector<8x8x128xf32>, vector<1x8x128xf32> -> vector<10x8x128xf32>
    %91 = vector.extract_strided_slice %90 {offsets = [0, 0, 0], sizes = [10, 7, 128], strides = [1, 1, 1]} : vector<10x8x128xf32> to vector<10x7x128xf32>
    %92 = tpu.concatenate %87, %91 in 1 : vector<10x1x128xf32>, vector<10x7x128xf32> -> vector<10x8x128xf32>
    %93 = vector.extract_strided_slice %90 {offsets = [0, 1, 0], sizes = [10, 7, 128], strides = [1, 1, 1]} : vector<10x8x128xf32> to vector<10x7x128xf32>
    %94 = tpu.concatenate %93, %87 in 1 : vector<10x7x128xf32>, vector<10x1x128xf32> -> vector<10x8x128xf32>
    %95 = vector.extract_strided_slice %92 {offsets = [0, 0, 0], sizes = [8, 8, 128], strides = [1, 1, 1]} : vector<10x8x128xf32> to vector<8x8x128xf32>
    %96 = vector.broadcast %30 : vector<1x1x128xf32> to vector<8x8x128xf32>
    %97 = arith.mulf %95, %96 : vector<8x8x128xf32>
    %98 = arith.addf %85, %97 : vector<8x8x128xf32>
    %99 = vector.extract_strided_slice %92 {offsets = [1, 0, 0], sizes = [8, 8, 128], strides = [1, 1, 1]} : vector<10x8x128xf32> to vector<8x8x128xf32>
    %100 = vector.broadcast %39 : vector<1x1x128xf32> to vector<8x8x128xf32>
    %101 = arith.mulf %99, %100 : vector<8x8x128xf32>
    %102 = arith.addf %98, %101 : vector<8x8x128xf32>
    %103 = vector.extract_strided_slice %92 {offsets = [2, 0, 0], sizes = [8, 8, 128], strides = [1, 1, 1]} : vector<10x8x128xf32> to vector<8x8x128xf32>
    %104 = vector.broadcast %48 : vector<1x1x128xf32> to vector<8x8x128xf32>
    %105 = arith.mulf %103, %104 : vector<8x8x128xf32>
    %106 = arith.addf %102, %105 : vector<8x8x128xf32>
    %107 = vector.extract_strided_slice %90 {offsets = [0, 0, 0], sizes = [8, 8, 128], strides = [1, 1, 1]} : vector<10x8x128xf32> to vector<8x8x128xf32>
    %108 = vector.broadcast %33 : vector<1x1x128xf32> to vector<8x8x128xf32>
    %109 = arith.mulf %107, %108 : vector<8x8x128xf32>
    %110 = arith.addf %106, %109 : vector<8x8x128xf32>
    %111 = vector.extract_strided_slice %90 {offsets = [1, 0, 0], sizes = [8, 8, 128], strides = [1, 1, 1]} : vector<10x8x128xf32> to vector<8x8x128xf32>
    %112 = vector.broadcast %42 : vector<1x1x128xf32> to vector<8x8x128xf32>
    %113 = arith.mulf %111, %112 : vector<8x8x128xf32>
    %114 = arith.addf %110, %113 : vector<8x8x128xf32>
    %115 = vector.extract_strided_slice %90 {offsets = [2, 0, 0], sizes = [8, 8, 128], strides = [1, 1, 1]} : vector<10x8x128xf32> to vector<8x8x128xf32>
    %116 = vector.broadcast %51 : vector<1x1x128xf32> to vector<8x8x128xf32>
    %117 = arith.mulf %115, %116 : vector<8x8x128xf32>
    %118 = arith.addf %114, %117 : vector<8x8x128xf32>
    %119 = vector.extract_strided_slice %94 {offsets = [0, 0, 0], sizes = [8, 8, 128], strides = [1, 1, 1]} : vector<10x8x128xf32> to vector<8x8x128xf32>
    %120 = vector.broadcast %36 : vector<1x1x128xf32> to vector<8x8x128xf32>
    %121 = arith.mulf %119, %120 : vector<8x8x128xf32>
    %122 = arith.addf %118, %121 : vector<8x8x128xf32>
    %123 = vector.extract_strided_slice %94 {offsets = [1, 0, 0], sizes = [8, 8, 128], strides = [1, 1, 1]} : vector<10x8x128xf32> to vector<8x8x128xf32>
    %124 = vector.broadcast %45 : vector<1x1x128xf32> to vector<8x8x128xf32>
    %125 = arith.mulf %123, %124 : vector<8x8x128xf32>
    %126 = arith.addf %122, %125 : vector<8x8x128xf32>
    %127 = vector.extract_strided_slice %94 {offsets = [2, 0, 0], sizes = [8, 8, 128], strides = [1, 1, 1]} : vector<10x8x128xf32> to vector<8x8x128xf32>
    %128 = vector.broadcast %54 : vector<1x1x128xf32> to vector<8x8x128xf32>
    %129 = arith.mulf %127, %128 : vector<8x8x128xf32>
    %130 = arith.addf %126, %129 : vector<8x8x128xf32>
    %c0_9 = arith.constant 0 : index
    %c1 = arith.constant 1 : index
    %c0_10 = arith.constant 0 : index
    %c0_11 = arith.constant 0 : index
    %c0_12 = arith.constant 0 : index
    %131 = vector.load %arg2[%c0_9, %c1, %c0_10, %c0_11, %c0_12] : memref<1x8x8x8x128xf32, #tpu.memory_space<vmem>>, vector<1x1x8x8x128xf32>
    %132 = vector.shape_cast %131 : vector<1x1x8x8x128xf32> to vector<8x8x128xf32>
    %133 = tpu.concatenate %86, %132, %86 in 0 : vector<1x8x128xf32>, vector<8x8x128xf32>, vector<1x8x128xf32> -> vector<10x8x128xf32>
    %134 = vector.extract_strided_slice %133 {offsets = [0, 0, 0], sizes = [10, 7, 128], strides = [1, 1, 1]} : vector<10x8x128xf32> to vector<10x7x128xf32>
    %135 = tpu.concatenate %87, %134 in 1 : vector<10x1x128xf32>, vector<10x7x128xf32> -> vector<10x8x128xf32>
    %136 = vector.extract_strided_slice %133 {offsets = [0, 1, 0], sizes = [10, 7, 128], strides = [1, 1, 1]} : vector<10x8x128xf32> to vector<10x7x128xf32>
    %137 = tpu.concatenate %136, %87 in 1 : vector<10x7x128xf32>, vector<10x1x128xf32> -> vector<10x8x128xf32>
    %138 = vector.extract_strided_slice %135 {offsets = [0, 0, 0], sizes = [8, 8, 128], strides = [1, 1, 1]} : vector<10x8x128xf32> to vector<8x8x128xf32>
    %139 = vector.broadcast %57 : vector<1x1x128xf32> to vector<8x8x128xf32>
    %140 = arith.mulf %138, %139 : vector<8x8x128xf32>
    %141 = arith.addf %130, %140 : vector<8x8x128xf32>
    %142 = vector.extract_strided_slice %135 {offsets = [1, 0, 0], sizes = [8, 8, 128], strides = [1, 1, 1]} : vector<10x8x128xf32> to vector<8x8x128xf32>
    %143 = vector.broadcast %66 : vector<1x1x128xf32> to vector<8x8x128xf32>
    %144 = arith.mulf %142, %143 : vector<8x8x128xf32>
    %145 = arith.addf %141, %144 : vector<8x8x128xf32>
    %146 = vector.extract_strided_slice %135 {offsets = [2, 0, 0], sizes = [8, 8, 128], strides = [1, 1, 1]} : vector<10x8x128xf32> to vector<8x8x128xf32>
    %147 = vector.broadcast %75 : vector<1x1x128xf32> to vector<8x8x128xf32>
    %148 = arith.mulf %146, %147 : vector<8x8x128xf32>
    %149 = arith.addf %145, %148 : vector<8x8x128xf32>
    %150 = vector.extract_strided_slice %133 {offsets = [0, 0, 0], sizes = [8, 8, 128], strides = [1, 1, 1]} : vector<10x8x128xf32> to vector<8x8x128xf32>
    %151 = vector.broadcast %60 : vector<1x1x128xf32> to vector<8x8x128xf32>
    %152 = arith.mulf %150, %151 : vector<8x8x128xf32>
    %153 = arith.addf %149, %152 : vector<8x8x128xf32>
    %154 = vector.extract_strided_slice %133 {offsets = [1, 0, 0], sizes = [8, 8, 128], strides = [1, 1, 1]} : vector<10x8x128xf32> to vector<8x8x128xf32>
    %155 = vector.broadcast %69 : vector<1x1x128xf32> to vector<8x8x128xf32>
    %156 = arith.mulf %154, %155 : vector<8x8x128xf32>
    %157 = arith.addf %153, %156 : vector<8x8x128xf32>
    %158 = vector.extract_strided_slice %133 {offsets = [2, 0, 0], sizes = [8, 8, 128], strides = [1, 1, 1]} : vector<10x8x128xf32> to vector<8x8x128xf32>
    %159 = vector.broadcast %78 : vector<1x1x128xf32> to vector<8x8x128xf32>
    %160 = arith.mulf %158, %159 : vector<8x8x128xf32>
    %161 = arith.addf %157, %160 : vector<8x8x128xf32>
    %162 = vector.extract_strided_slice %137 {offsets = [0, 0, 0], sizes = [8, 8, 128], strides = [1, 1, 1]} : vector<10x8x128xf32> to vector<8x8x128xf32>
    %163 = vector.broadcast %63 : vector<1x1x128xf32> to vector<8x8x128xf32>
    %164 = arith.mulf %162, %163 : vector<8x8x128xf32>
    %165 = arith.addf %161, %164 : vector<8x8x128xf32>
    %166 = vector.extract_strided_slice %137 {offsets = [1, 0, 0], sizes = [8, 8, 128], strides = [1, 1, 1]} : vector<10x8x128xf32> to vector<8x8x128xf32>
    %167 = vector.broadcast %72 : vector<1x1x128xf32> to vector<8x8x128xf32>
    %168 = arith.mulf %166, %167 : vector<8x8x128xf32>
    %169 = arith.addf %165, %168 : vector<8x8x128xf32>
    %170 = vector.extract_strided_slice %137 {offsets = [2, 0, 0], sizes = [8, 8, 128], strides = [1, 1, 1]} : vector<10x8x128xf32> to vector<8x8x128xf32>
    %171 = vector.broadcast %81 : vector<1x1x128xf32> to vector<8x8x128xf32>
    %172 = arith.mulf %170, %171 : vector<8x8x128xf32>
    %173 = arith.addf %169, %172 : vector<8x8x128xf32>
    %c0_13 = arith.constant 0 : index
    %c0_14 = arith.constant 0 : index
    %c0_15 = arith.constant 0 : index
    %c0_16 = arith.constant 0 : index
    %c0_17 = arith.constant 0 : index
    %174 = vector.load %arg5[%c0_13, %c0_14, %c0_15, %c0_16, %c0_17] : memref<1x8x8x8x128xf32, #tpu.memory_space<vmem>>, vector<1x1x8x8x128xf32>
    %175 = vector.shape_cast %174 : vector<1x1x8x8x128xf32> to vector<8x8x128xf32>
    %176 = vector.shape_cast %173 : vector<8x8x128xf32> to vector<1x1x8x8x128xf32>
    tpu.vector_store %arg5[%c0_13, %c0_14, %c0_15, %c0_16, %c0_17], %176 {strides = array<i32>} : memref<1x8x8x8x128xf32, #tpu.memory_space<vmem>>, vector<1x1x8x8x128xf32>,
    %c0_18 = arith.constant 0 : index
    %c0_19 = arith.constant 0 : index
    %c0_20 = arith.constant 0 : index
    %c0_21 = arith.constant 0 : index
    %c0_22 = arith.constant 0 : index
    %177 = vector.load %arg2[%c0_18, %c0_19, %c0_20, %c0_21, %c0_22] : memref<1x8x8x8x128xf32, #tpu.memory_space<vmem>>, vector<1x1x8x8x128xf32>
    %178 = vector.shape_cast %177 : vector<1x1x8x8x128xf32> to vector<8x8x128xf32>
    %179 = tpu.concatenate %86, %178, %86 in 0 : vector<1x8x128xf32>, vector<8x8x128xf32>, vector<1x8x128xf32> -> vector<10x8x128xf32>
    %180 = vector.extract_strided_slice %179 {offsets = [0, 0, 0], sizes = [10, 7, 128], strides = [1, 1, 1]} : vector<10x8x128xf32> to vector<10x7x128xf32>
    %181 = tpu.concatenate %87, %180 in 1 : vector<10x1x128xf32>, vector<10x7x128xf32> -> vector<10x8x128xf32>
    %182 = vector.extract_strided_slice %179 {offsets = [0, 1, 0], sizes = [10, 7, 128], strides = [1, 1, 1]} : vector<10x8x128xf32> to vector<10x7x128xf32>
    %183 = tpu.concatenate %182, %87 in 1 : vector<10x7x128xf32>, vector<10x1x128xf32> -> vector<10x8x128xf32>
    %184 = vector.extract_strided_slice %181 {offsets = [0, 0, 0], sizes = [8, 8, 128], strides = [1, 1, 1]} : vector<10x8x128xf32> to vector<8x8x128xf32>
    %185 = vector.broadcast %3 : vector<1x1x128xf32> to vector<8x8x128xf32>
    %186 = arith.mulf %184, %185 : vector<8x8x128xf32>
    %187 = arith.addf %85, %186 : vector<8x8x128xf32>
    %188 = vector.extract_strided_slice %181 {offsets = [1, 0, 0], sizes = [8, 8, 128], strides = [1, 1, 1]} : vector<10x8x128xf32> to vector<8x8x128xf32>
    %189 = vector.broadcast %12 : vector<1x1x128xf32> to vector<8x8x128xf32>
    %190 = arith.mulf %188, %189 : vector<8x8x128xf32>
    %191 = arith.addf %187, %190 : vector<8x8x128xf32>
    %192 = vector.extract_strided_slice %181 {offsets = [2, 0, 0], sizes = [8, 8, 128], strides = [1, 1, 1]} : vector<10x8x128xf32> to vector<8x8x128xf32>
    %193 = vector.broadcast %21 : vector<1x1x128xf32> to vector<8x8x128xf32>
    %194 = arith.mulf %192, %193 : vector<8x8x128xf32>
    %195 = arith.addf %191, %194 : vector<8x8x128xf32>
    %196 = vector.extract_strided_slice %179 {offsets = [0, 0, 0], sizes = [8, 8, 128], strides = [1, 1, 1]} : vector<10x8x128xf32> to vector<8x8x128xf32>
    %197 = vector.broadcast %6 : vector<1x1x128xf32> to vector<8x8x128xf32>
    %198 = arith.mulf %196, %197 : vector<8x8x128xf32>
    %199 = arith.addf %195, %198 : vector<8x8x128xf32>
    %200 = vector.extract_strided_slice %179 {offsets = [1, 0, 0], sizes = [8, 8, 128], strides = [1, 1, 1]} : vector<10x8x128xf32> to vector<8x8x128xf32>
    %201 = vector.broadcast %15 : vector<1x1x128xf32> to vector<8x8x128xf32>
    %202 = arith.mulf %200, %201 : vector<8x8x128xf32>
    %203 = arith.addf %199, %202 : vector<8x8x128xf32>
    %204 = vector.extract_strided_slice %179 {offsets = [2, 0, 0], sizes = [8, 8, 128], strides = [1, 1, 1]} : vector<10x8x128xf32> to vector<8x8x128xf32>
    %205 = vector.broadcast %24 : vector<1x1x128xf32> to vector<8x8x128xf32>
    %206 = arith.mulf %204, %205 : vector<8x8x128xf32>
    %207 = arith.addf %203, %206 : vector<8x8x128xf32>
    %208 = vector.extract_strided_slice %183 {offsets = [0, 0, 0], sizes = [8, 8, 128], strides = [1, 1, 1]} : vector<10x8x128xf32> to vector<8x8x128xf32>
    %209 = vector.broadcast %9 : vector<1x1x128xf32> to vector<8x8x128xf32>
    %210 = arith.mulf %208, %209 : vector<8x8x128xf32>
    %211 = arith.addf %207, %210 : vector<8x8x128xf32>
    %212 = vector.extract_strided_slice %183 {offsets = [1, 0, 0], sizes = [8, 8, 128], strides = [1, 1, 1]} : vector<10x8x128xf32> to vector<8x8x128xf32>
    %213 = vector.broadcast %18 : vector<1x1x128xf32> to vector<8x8x128xf32>
    %214 = arith.mulf %212, %213 : vector<8x8x128xf32>
    %215 = arith.addf %211, %214 : vector<8x8x128xf32>
    %216 = vector.extract_strided_slice %183 {offsets = [2, 0, 0], sizes = [8, 8, 128], strides = [1, 1, 1]} : vector<10x8x128xf32> to vector<8x8x128xf32>
    %217 = vector.broadcast %27 : vector<1x1x128xf32> to vector<8x8x128xf32>
    %218 = arith.mulf %216, %217 : vector<8x8x128xf32>
    %219 = arith.addf %215, %218 : vector<8x8x128xf32>
    %c0_23 = arith.constant 0 : index
    %c1_24 = arith.constant 1 : index
    %c0_25 = arith.constant 0 : index
    %c0_26 = arith.constant 0 : index
    %c0_27 = arith.constant 0 : index
    %220 = vector.load %arg2[%c0_23, %c1_24, %c0_25, %c0_26, %c0_27] : memref<1x8x8x8x128xf32, #tpu.memory_space<vmem>>, vector<1x1x8x8x128xf32>
    %221 = vector.shape_cast %220 : vector<1x1x8x8x128xf32> to vector<8x8x128xf32>
    %222 = tpu.concatenate %86, %221, %86 in 0 : vector<1x8x128xf32>, vector<8x8x128xf32>, vector<1x8x128xf32> -> vector<10x8x128xf32>
    %223 = vector.extract_strided_slice %222 {offsets = [0, 0, 0], sizes = [10, 7, 128], strides = [1, 1, 1]} : vector<10x8x128xf32> to vector<10x7x128xf32>
    %224 = tpu.concatenate %87, %223 in 1 : vector<10x1x128xf32>, vector<10x7x128xf32> -> vector<10x8x128xf32>
    %225 = vector.extract_strided_slice %222 {offsets = [0, 1, 0], sizes = [10, 7, 128], strides = [1, 1, 1]} : vector<10x8x128xf32> to vector<10x7x128xf32>
    %226 = tpu.concatenate %225, %87 in 1 : vector<10x7x128xf32>, vector<10x1x128xf32> -> vector<10x8x128xf32>
    %227 = vector.extract_strided_slice %224 {offsets = [0, 0, 0], sizes = [8, 8, 128], strides = [1, 1, 1]} : vector<10x8x128xf32> to vector<8x8x128xf32>
    %228 = vector.broadcast %30 : vector<1x1x128xf32> to vector<8x8x128xf32>
    %229 = arith.mulf %227, %228 : vector<8x8x128xf32>
    %230 = arith.addf %219, %229 : vector<8x8x128xf32>
    %231 = vector.extract_strided_slice %224 {offsets = [1, 0, 0], sizes = [8, 8, 128], strides = [1, 1, 1]} : vector<10x8x128xf32> to vector<8x8x128xf32>
    %232 = vector.broadcast %39 : vector<1x1x128xf32> to vector<8x8x128xf32>
    %233 = arith.mulf %231, %232 : vector<8x8x128xf32>
    %234 = arith.addf %230, %233 : vector<8x8x128xf32>
    %235 = vector.extract_strided_slice %224 {offsets = [2, 0, 0], sizes = [8, 8, 128], strides = [1, 1, 1]} : vector<10x8x128xf32> to vector<8x8x128xf32>
    %236 = vector.broadcast %48 : vector<1x1x128xf32> to vector<8x8x128xf32>
    %237 = arith.mulf %235, %236 : vector<8x8x128xf32>
    %238 = arith.addf %234, %237 : vector<8x8x128xf32>
    %239 = vector.extract_strided_slice %222 {offsets = [0, 0, 0], sizes = [8, 8, 128], strides = [1, 1, 1]} : vector<10x8x128xf32> to vector<8x8x128xf32>
    %240 = vector.broadcast %33 : vector<1x1x128xf32> to vector<8x8x128xf32>
    %241 = arith.mulf %239, %240 : vector<8x8x128xf32>
    %242 = arith.addf %238, %241 : vector<8x8x128xf32>
    %243 = vector.extract_strided_slice %222 {offsets = [1, 0, 0], sizes = [8, 8, 128], strides = [1, 1, 1]} : vector<10x8x128xf32> to vector<8x8x128xf32>
    %244 = vector.broadcast %42 : vector<1x1x128xf32> to vector<8x8x128xf32>
    %245 = arith.mulf %243, %244 : vector<8x8x128xf32>
    %246 = arith.addf %242, %245 : vector<8x8x128xf32>
    %247 = vector.extract_strided_slice %222 {offsets = [2, 0, 0], sizes = [8, 8, 128], strides = [1, 1, 1]} : vector<10x8x128xf32> to vector<8x8x128xf32>
    %248 = vector.broadcast %51 : vector<1x1x128xf32> to vector<8x8x128xf32>
    %249 = arith.mulf %247, %248 : vector<8x8x128xf32>
    %250 = arith.addf %246, %249 : vector<8x8x128xf32>
    %251 = vector.extract_strided_slice %226 {offsets = [0, 0, 0], sizes = [8, 8, 128], strides = [1, 1, 1]} : vector<10x8x128xf32> to vector<8x8x128xf32>
    %252 = vector.broadcast %36 : vector<1x1x128xf32> to vector<8x8x128xf32>
    %253 = arith.mulf %251, %252 : vector<8x8x128xf32>
    %254 = arith.addf %250, %253 : vector<8x8x128xf32>
    %255 = vector.extract_strided_slice %226 {offsets = [1, 0, 0], sizes = [8, 8, 128], strides = [1, 1, 1]} : vector<10x8x128xf32> to vector<8x8x128xf32>
    %256 = vector.broadcast %45 : vector<1x1x128xf32> to vector<8x8x128xf32>
    %257 = arith.mulf %255, %256 : vector<8x8x128xf32>
    %258 = arith.addf %254, %257 : vector<8x8x128xf32>
    %259 = vector.extract_strided_slice %226 {offsets = [2, 0, 0], sizes = [8, 8, 128], strides = [1, 1, 1]} : vector<10x8x128xf32> to vector<8x8x128xf32>
    %260 = vector.broadcast %54 : vector<1x1x128xf32> to vector<8x8x128xf32>
    %261 = arith.mulf %259, %260 : vector<8x8x128xf32>
    %262 = arith.addf %258, %261 : vector<8x8x128xf32>
    %c0_28 = arith.constant 0 : index
    %c2 = arith.constant 2 : index
    %c0_29 = arith.constant 0 : index
    %c0_30 = arith.constant 0 : index
    %c0_31 = arith.constant 0 : index
    %263 = vector.load %arg2[%c0_28, %c2, %c0_29, %c0_30, %c0_31] : memref<1x8x8x8x128xf32, #tpu.memory_space<vmem>>, vector<1x1x8x8x128xf32>
    %264 = vector.shape_cast %263 : vector<1x1x8x8x128xf32> to vector<8x8x128xf32>
    %265 = tpu.concatenate %86, %264, %86 in 0 : vector<1x8x128xf32>, vector<8x8x128xf32>, vector<1x8x128xf32> -> vector<10x8x128xf32>
    %266 = vector.extract_strided_slice %265 {offsets = [0, 0, 0], sizes = [10, 7, 128], strides = [1, 1, 1]} : vector<10x8x128xf32> to vector<10x7x128xf32>
    %267 = tpu.concatenate %87, %266 in 1 : vector<10x1x128xf32>, vector<10x7x128xf32> -> vector<10x8x128xf32>
    %268 = vector.extract_strided_slice %265 {offsets = [0, 1, 0], sizes = [10, 7, 128], strides = [1, 1, 1]} : vector<10x8x128xf32> to vector<10x7x128xf32>
    %269 = tpu.concatenate %268, %87 in 1 : vector<10x7x128xf32>, vector<10x1x128xf32> -> vector<10x8x128xf32>
    %270 = vector.extract_strided_slice %267 {offsets = [0, 0, 0], sizes = [8, 8, 128], strides = [1, 1, 1]} : vector<10x8x128xf32> to vector<8x8x128xf32>
    %271 = vector.broadcast %57 : vector<1x1x128xf32> to vector<8x8x128xf32>
    %272 = arith.mulf %270, %271 : vector<8x8x128xf32>
    %273 = arith.addf %262, %272 : vector<8x8x128xf32>
    %274 = vector.extract_strided_slice %267 {offsets = [1, 0, 0], sizes = [8, 8, 128], strides = [1, 1, 1]} : vector<10x8x128xf32> to vector<8x8x128xf32>
    %275 = vector.broadcast %66 : vector<1x1x128xf32> to vector<8x8x128xf32>
    %276 = arith.mulf %274, %275 : vector<8x8x128xf32>
    %277 = arith.addf %273, %276 : vector<8x8x128xf32>
    %278 = vector.extract_strided_slice %267 {offsets = [2, 0, 0], sizes = [8, 8, 128], strides = [1, 1, 1]} : vector<10x8x128xf32> to vector<8x8x128xf32>
    %279 = vector.broadcast %75 : vector<1x1x128xf32> to vector<8x8x128xf32>
    %280 = arith.mulf %278, %279 : vector<8x8x128xf32>
    %281 = arith.addf %277, %280 : vector<8x8x128xf32>
    %282 = vector.extract_strided_slice %265 {offsets = [0, 0, 0], sizes = [8, 8, 128], strides = [1, 1, 1]} : vector<10x8x128xf32> to vector<8x8x128xf32>
    %283 = vector.broadcast %60 : vector<1x1x128xf32> to vector<8x8x128xf32>
    %284 = arith.mulf %282, %283 : vector<8x8x128xf32>
    %285 = arith.addf %281, %284 : vector<8x8x128xf32>
    %286 = vector.extract_strided_slice %265 {offsets = [1, 0, 0], sizes = [8, 8, 128], strides = [1, 1, 1]} : vector<10x8x128xf32> to vector<8x8x128xf32>
    %287 = vector.broadcast %69 : vector<1x1x128xf32> to vector<8x8x128xf32>
    %288 = arith.mulf %286, %287 : vector<8x8x128xf32>
    %289 = arith.addf %285, %288 : vector<8x8x128xf32>
    %290 = vector.extract_strided_slice %265 {offsets = [2, 0, 0], sizes = [8, 8, 128], strides = [1, 1, 1]} : vector<10x8x128xf32> to vector<8x8x128xf32>
    %291 = vector.broadcast %78 : vector<1x1x128xf32> to vector<8x8x128xf32>
    %292 = arith.mulf %290, %291 : vector<8x8x128xf32>
    %293 = arith.addf %289, %292 : vector<8x8x128xf32>
    %294 = vector.extract_strided_slice %269 {offsets = [0, 0, 0], sizes = [8, 8, 128], strides = [1, 1, 1]} : vector<10x8x128xf32> to vector<8x8x128xf32>
    %295 = vector.broadcast %63 : vector<1x1x128xf32> to vector<8x8x128xf32>
    %296 = arith.mulf %294, %295 : vector<8x8x128xf32>
    %297 = arith.addf %293, %296 : vector<8x8x128xf32>
    %298 = vector.extract_strided_slice %269 {offsets = [1, 0, 0], sizes = [8, 8, 128], strides = [1, 1, 1]} : vector<10x8x128xf32> to vector<8x8x128xf32>
    %299 = vector.broadcast %72 : vector<1x1x128xf32> to vector<8x8x128xf32>
    %300 = arith.mulf %298, %299 : vector<8x8x128xf32>
    %301 = arith.addf %297, %300 : vector<8x8x128xf32>
    %302 = vector.extract_strided_slice %269 {offsets = [2, 0, 0], sizes = [8, 8, 128], strides = [1, 1, 1]} : vector<10x8x128xf32> to vector<8x8x128xf32>
    %303 = vector.broadcast %81 : vector<1x1x128xf32> to vector<8x8x128xf32>
    %304 = arith.mulf %302, %303 : vector<8x8x128xf32>
    %305 = arith.addf %301, %304 : vector<8x8x128xf32>
    %c0_32 = arith.constant 0 : index
    %c1_33 = arith.constant 1 : index
    %c0_34 = arith.constant 0 : index
    %c0_35 = arith.constant 0 : index
    %c0_36 = arith.constant 0 : index
    %306 = vector.load %arg5[%c0_32, %c1_33, %c0_34, %c0_35, %c0_36] : memref<1x8x8x8x128xf32, #tpu.memory_space<vmem>>, vector<1x1x8x8x128xf32>
    %307 = vector.shape_cast %306 : vector<1x1x8x8x128xf32> to vector<8x8x128xf32>
    %308 = vector.shape_cast %305 : vector<8x8x128xf32> to vector<1x1x8x8x128xf32>
    tpu.vector_store %arg5[%c0_32, %c1_33, %c0_34, %c0_35, %c0_36], %308 {strides = array<i32>} : memref<1x8x8x8x128xf32, #tpu.memory_space<vmem>>, vector<1x1x8x8x128xf32>,
    %c0_37 = arith.constant 0 : index
    %c1_38 = arith.constant 1 : index
    %c0_39 = arith.constant 0 : index
    %c0_40 = arith.constant 0 : index
    %c0_41 = arith.constant 0 : index
    %309 = vector.load %arg2[%c0_37, %c1_38, %c0_39, %c0_40, %c0_41] : memref<1x8x8x8x128xf32, #tpu.memory_space<vmem>>, vector<1x1x8x8x128xf32>
    %310 = vector.shape_cast %309 : vector<1x1x8x8x128xf32> to vector<8x8x128xf32>
    %311 = tpu.concatenate %86, %310, %86 in 0 : vector<1x8x128xf32>, vector<8x8x128xf32>, vector<1x8x128xf32> -> vector<10x8x128xf32>
    %312 = vector.extract_strided_slice %311 {offsets = [0, 0, 0], sizes = [10, 7, 128], strides = [1, 1, 1]} : vector<10x8x128xf32> to vector<10x7x128xf32>
    %313 = tpu.concatenate %87, %312 in 1 : vector<10x1x128xf32>, vector<10x7x128xf32> -> vector<10x8x128xf32>
    %314 = vector.extract_strided_slice %311 {offsets = [0, 1, 0], sizes = [10, 7, 128], strides = [1, 1, 1]} : vector<10x8x128xf32> to vector<10x7x128xf32>
    %315 = tpu.concatenate %314, %87 in 1 : vector<10x7x128xf32>, vector<10x1x128xf32> -> vector<10x8x128xf32>
    %316 = vector.extract_strided_slice %313 {offsets = [0, 0, 0], sizes = [8, 8, 128], strides = [1, 1, 1]} : vector<10x8x128xf32> to vector<8x8x128xf32>
    %317 = vector.broadcast %3 : vector<1x1x128xf32> to vector<8x8x128xf32>
    %318 = arith.mulf %316, %317 : vector<8x8x128xf32>
    %319 = arith.addf %85, %318 : vector<8x8x128xf32>
    %320 = vector.extract_strided_slice %313 {offsets = [1, 0, 0], sizes = [8, 8, 128], strides = [1, 1, 1]} : vector<10x8x128xf32> to vector<8x8x128xf32>
    %321 = vector.broadcast %12 : vector<1x1x128xf32> to vector<8x8x128xf32>
    %322 = arith.mulf %320, %321 : vector<8x8x128xf32>
    %323 = arith.addf %319, %322 : vector<8x8x128xf32>
    %324 = vector.extract_strided_slice %313 {offsets = [2, 0, 0], sizes = [8, 8, 128], strides = [1, 1, 1]} : vector<10x8x128xf32> to vector<8x8x128xf32>
    %325 = vector.broadcast %21 : vector<1x1x128xf32> to vector<8x8x128xf32>
    %326 = arith.mulf %324, %325 : vector<8x8x128xf32>
    %327 = arith.addf %323, %326 : vector<8x8x128xf32>
    %328 = vector.extract_strided_slice %311 {offsets = [0, 0, 0], sizes = [8, 8, 128], strides = [1, 1, 1]} : vector<10x8x128xf32> to vector<8x8x128xf32>
    %329 = vector.broadcast %6 : vector<1x1x128xf32> to vector<8x8x128xf32>
    %330 = arith.mulf %328, %329 : vector<8x8x128xf32>
    %331 = arith.addf %327, %330 : vector<8x8x128xf32>
    %332 = vector.extract_strided_slice %311 {offsets = [1, 0, 0], sizes = [8, 8, 128], strides = [1, 1, 1]} : vector<10x8x128xf32> to vector<8x8x128xf32>
    %333 = vector.broadcast %15 : vector<1x1x128xf32> to vector<8x8x128xf32>
    %334 = arith.mulf %332, %333 : vector<8x8x128xf32>
    %335 = arith.addf %331, %334 : vector<8x8x128xf32>
    %336 = vector.extract_strided_slice %311 {offsets = [2, 0, 0], sizes = [8, 8, 128], strides = [1, 1, 1]} : vector<10x8x128xf32> to vector<8x8x128xf32>
    %337 = vector.broadcast %24 : vector<1x1x128xf32> to vector<8x8x128xf32>
    %338 = arith.mulf %336, %337 : vector<8x8x128xf32>
    %339 = arith.addf %335, %338 : vector<8x8x128xf32>
    %340 = vector.extract_strided_slice %315 {offsets = [0, 0, 0], sizes = [8, 8, 128], strides = [1, 1, 1]} : vector<10x8x128xf32> to vector<8x8x128xf32>
    %341 = vector.broadcast %9 : vector<1x1x128xf32> to vector<8x8x128xf32>
    %342 = arith.mulf %340, %341 : vector<8x8x128xf32>
    %343 = arith.addf %339, %342 : vector<8x8x128xf32>
    %344 = vector.extract_strided_slice %315 {offsets = [1, 0, 0], sizes = [8, 8, 128], strides = [1, 1, 1]} : vector<10x8x128xf32> to vector<8x8x128xf32>
    %345 = vector.broadcast %18 : vector<1x1x128xf32> to vector<8x8x128xf32>
    %346 = arith.mulf %344, %345 : vector<8x8x128xf32>
    %347 = arith.addf %343, %346 : vector<8x8x128xf32>
    %348 = vector.extract_strided_slice %315 {offsets = [2, 0, 0], sizes = [8, 8, 128], strides = [1, 1, 1]} : vector<10x8x128xf32> to vector<8x8x128xf32>
    %349 = vector.broadcast %27 : vector<1x1x128xf32> to vector<8x8x128xf32>
    %350 = arith.mulf %348, %349 : vector<8x8x128xf32>
    %351 = arith.addf %347, %350 : vector<8x8x128xf32>
    %c0_42 = arith.constant 0 : index
    %c2_43 = arith.constant 2 : index
    %c0_44 = arith.constant 0 : index
    %c0_45 = arith.constant 0 : index
    %c0_46 = arith.constant 0 : index
    %352 = vector.load %arg2[%c0_42, %c2_43, %c0_44, %c0_45, %c0_46] : memref<1x8x8x8x128xf32, #tpu.memory_space<vmem>>, vector<1x1x8x8x128xf32>
    %353 = vector.shape_cast %352 : vector<1x1x8x8x128xf32> to vector<8x8x128xf32>
    %354 = tpu.concatenate %86, %353, %86 in 0 : vector<1x8x128xf32>, vector<8x8x128xf32>, vector<1x8x128xf32> -> vector<10x8x128xf32>
    %355 = vector.extract_strided_slice %354 {offsets = [0, 0, 0], sizes = [10, 7, 128], strides = [1, 1, 1]} : vector<10x8x128xf32> to vector<10x7x128xf32>
    %356 = tpu.concatenate %87, %355 in 1 : vector<10x1x128xf32>, vector<10x7x128xf32> -> vector<10x8x128xf32>
    %357 = vector.extract_strided_slice %354 {offsets = [0, 1, 0], sizes = [10, 7, 128], strides = [1, 1, 1]} : vector<10x8x128xf32> to vector<10x7x128xf32>
    %358 = tpu.concatenate %357, %87 in 1 : vector<10x7x128xf32>, vector<10x1x128xf32> -> vector<10x8x128xf32>
    %359 = vector.extract_strided_slice %356 {offsets = [0, 0, 0], sizes = [8, 8, 128], strides = [1, 1, 1]} : vector<10x8x128xf32> to vector<8x8x128xf32>
    %360 = vector.broadcast %30 : vector<1x1x128xf32> to vector<8x8x128xf32>
    %361 = arith.mulf %359, %360 : vector<8x8x128xf32>
    %362 = arith.addf %351, %361 : vector<8x8x128xf32>
    %363 = vector.extract_strided_slice %356 {offsets = [1, 0, 0], sizes = [8, 8, 128], strides = [1, 1, 1]} : vector<10x8x128xf32> to vector<8x8x128xf32>
    %364 = vector.broadcast %39 : vector<1x1x128xf32> to vector<8x8x128xf32>
    %365 = arith.mulf %363, %364 : vector<8x8x128xf32>
    %366 = arith.addf %362, %365 : vector<8x8x128xf32>
    %367 = vector.extract_strided_slice %356 {offsets = [2, 0, 0], sizes = [8, 8, 128], strides = [1, 1, 1]} : vector<10x8x128xf32> to vector<8x8x128xf32>
    %368 = vector.broadcast %48 : vector<1x1x128xf32> to vector<8x8x128xf32>
    %369 = arith.mulf %367, %368 : vector<8x8x128xf32>
    %370 = arith.addf %366, %369 : vector<8x8x128xf32>
    %371 = vector.extract_strided_slice %354 {offsets = [0, 0, 0], sizes = [8, 8, 128], strides = [1, 1, 1]} : vector<10x8x128xf32> to vector<8x8x128xf32>
    %372 = vector.broadcast %33 : vector<1x1x128xf32> to vector<8x8x128xf32>
    %373 = arith.mulf %371, %372 : vector<8x8x128xf32>
    %374 = arith.addf %370, %373 : vector<8x8x128xf32>
    %375 = vector.extract_strided_slice %354 {offsets = [1, 0, 0], sizes = [8, 8, 128], strides = [1, 1, 1]} : vector<10x8x128xf32> to vector<8x8x128xf32>
    %376 = vector.broadcast %42 : vector<1x1x128xf32> to vector<8x8x128xf32>
    %377 = arith.mulf %375, %376 : vector<8x8x128xf32>
    %378 = arith.addf %374, %377 : vector<8x8x128xf32>
    %379 = vector.extract_strided_slice %354 {offsets = [2, 0, 0], sizes = [8, 8, 128], strides = [1, 1, 1]} : vector<10x8x128xf32> to vector<8x8x128xf32>
    %380 = vector.broadcast %51 : vector<1x1x128xf32> to vector<8x8x128xf32>
    %381 = arith.mulf %379, %380 : vector<8x8x128xf32>
    %382 = arith.addf %378, %381 : vector<8x8x128xf32>
    %383 = vector.extract_strided_slice %358 {offsets = [0, 0, 0], sizes = [8, 8, 128], strides = [1, 1, 1]} : vector<10x8x128xf32> to vector<8x8x128xf32>
    %384 = vector.broadcast %36 : vector<1x1x128xf32> to vector<8x8x128xf32>
    %385 = arith.mulf %383, %384 : vector<8x8x128xf32>
    %386 = arith.addf %382, %385 : vector<8x8x128xf32>
    %387 = vector.extract_strided_slice %358 {offsets = [1, 0, 0], sizes = [8, 8, 128], strides = [1, 1, 1]} : vector<10x8x128xf32> to vector<8x8x128xf32>
    %388 = vector.broadcast %45 : vector<1x1x128xf32> to vector<8x8x128xf32>
    %389 = arith.mulf %387, %388 : vector<8x8x128xf32>
    %390 = arith.addf %386, %389 : vector<8x8x128xf32>
    %391 = vector.extract_strided_slice %358 {offsets = [2, 0, 0], sizes = [8, 8, 128], strides = [1, 1, 1]} : vector<10x8x128xf32> to vector<8x8x128xf32>
    %392 = vector.broadcast %54 : vector<1x1x128xf32> to vector<8x8x128xf32>
    %393 = arith.mulf %391, %392 : vector<8x8x128xf32>
    %394 = arith.addf %390, %393 : vector<8x8x128xf32>
    %c0_47 = arith.constant 0 : index
    %c3 = arith.constant 3 : index
    %c0_48 = arith.constant 0 : index
    %c0_49 = arith.constant 0 : index
    %c0_50 = arith.constant 0 : index
    %395 = vector.load %arg2[%c0_47, %c3, %c0_48, %c0_49, %c0_50] : memref<1x8x8x8x128xf32, #tpu.memory_space<vmem>>, vector<1x1x8x8x128xf32>
    %396 = vector.shape_cast %395 : vector<1x1x8x8x128xf32> to vector<8x8x128xf32>
    %397 = tpu.concatenate %86, %396, %86 in 0 : vector<1x8x128xf32>, vector<8x8x128xf32>, vector<1x8x128xf32> -> vector<10x8x128xf32>
    %398 = vector.extract_strided_slice %397 {offsets = [0, 0, 0], sizes = [10, 7, 128], strides = [1, 1, 1]} : vector<10x8x128xf32> to vector<10x7x128xf32>
    %399 = tpu.concatenate %87, %398 in 1 : vector<10x1x128xf32>, vector<10x7x128xf32> -> vector<10x8x128xf32>
    %400 = vector.extract_strided_slice %397 {offsets = [0, 1, 0], sizes = [10, 7, 128], strides = [1, 1, 1]} : vector<10x8x128xf32> to vector<10x7x128xf32>
    %401 = tpu.concatenate %400, %87 in 1 : vector<10x7x128xf32>, vector<10x1x128xf32> -> vector<10x8x128xf32>
    %402 = vector.extract_strided_slice %399 {offsets = [0, 0, 0], sizes = [8, 8, 128], strides = [1, 1, 1]} : vector<10x8x128xf32> to vector<8x8x128xf32>
    %403 = vector.broadcast %57 : vector<1x1x128xf32> to vector<8x8x128xf32>
    %404 = arith.mulf %402, %403 : vector<8x8x128xf32>
    %405 = arith.addf %394, %404 : vector<8x8x128xf32>
    %406 = vector.extract_strided_slice %399 {offsets = [1, 0, 0], sizes = [8, 8, 128], strides = [1, 1, 1]} : vector<10x8x128xf32> to vector<8x8x128xf32>
    %407 = vector.broadcast %66 : vector<1x1x128xf32> to vector<8x8x128xf32>
    %408 = arith.mulf %406, %407 : vector<8x8x128xf32>
    %409 = arith.addf %405, %408 : vector<8x8x128xf32>
    %410 = vector.extract_strided_slice %399 {offsets = [2, 0, 0], sizes = [8, 8, 128], strides = [1, 1, 1]} : vector<10x8x128xf32> to vector<8x8x128xf32>
    %411 = vector.broadcast %75 : vector<1x1x128xf32> to vector<8x8x128xf32>
    %412 = arith.mulf %410, %411 : vector<8x8x128xf32>
    %413 = arith.addf %409, %412 : vector<8x8x128xf32>
    %414 = vector.extract_strided_slice %397 {offsets = [0, 0, 0], sizes = [8, 8, 128], strides = [1, 1, 1]} : vector<10x8x128xf32> to vector<8x8x128xf32>
    %415 = vector.broadcast %60 : vector<1x1x128xf32> to vector<8x8x128xf32>
    %416 = arith.mulf %414, %415 : vector<8x8x128xf32>
    %417 = arith.addf %413, %416 : vector<8x8x128xf32>
    %418 = vector.extract_strided_slice %397 {offsets = [1, 0, 0], sizes = [8, 8, 128], strides = [1, 1, 1]} : vector<10x8x128xf32> to vector<8x8x128xf32>
    %419 = vector.broadcast %69 : vector<1x1x128xf32> to vector<8x8x128xf32>
    %420 = arith.mulf %418, %419 : vector<8x8x128xf32>
    %421 = arith.addf %417, %420 : vector<8x8x128xf32>
    %422 = vector.extract_strided_slice %397 {offsets = [2, 0, 0], sizes = [8, 8, 128], strides = [1, 1, 1]} : vector<10x8x128xf32> to vector<8x8x128xf32>
    %423 = vector.broadcast %78 : vector<1x1x128xf32> to vector<8x8x128xf32>
    %424 = arith.mulf %422, %423 : vector<8x8x128xf32>
    %425 = arith.addf %421, %424 : vector<8x8x128xf32>
    %426 = vector.extract_strided_slice %401 {offsets = [0, 0, 0], sizes = [8, 8, 128], strides = [1, 1, 1]} : vector<10x8x128xf32> to vector<8x8x128xf32>
    %427 = vector.broadcast %63 : vector<1x1x128xf32> to vector<8x8x128xf32>
    %428 = arith.mulf %426, %427 : vector<8x8x128xf32>
    %429 = arith.addf %425, %428 : vector<8x8x128xf32>
    %430 = vector.extract_strided_slice %401 {offsets = [1, 0, 0], sizes = [8, 8, 128], strides = [1, 1, 1]} : vector<10x8x128xf32> to vector<8x8x128xf32>
    %431 = vector.broadcast %72 : vector<1x1x128xf32> to vector<8x8x128xf32>
    %432 = arith.mulf %430, %431 : vector<8x8x128xf32>
    %433 = arith.addf %429, %432 : vector<8x8x128xf32>
    %434 = vector.extract_strided_slice %401 {offsets = [2, 0, 0], sizes = [8, 8, 128], strides = [1, 1, 1]} : vector<10x8x128xf32> to vector<8x8x128xf32>
    %435 = vector.broadcast %81 : vector<1x1x128xf32> to vector<8x8x128xf32>
    %436 = arith.mulf %434, %435 : vector<8x8x128xf32>
    %437 = arith.addf %433, %436 : vector<8x8x128xf32>
    %c0_51 = arith.constant 0 : index
    %c2_52 = arith.constant 2 : index
    %c0_53 = arith.constant 0 : index
    %c0_54 = arith.constant 0 : index
    %c0_55 = arith.constant 0 : index
    %438 = vector.load %arg5[%c0_51, %c2_52, %c0_53, %c0_54, %c0_55] : memref<1x8x8x8x128xf32, #tpu.memory_space<vmem>>, vector<1x1x8x8x128xf32>
    %439 = vector.shape_cast %438 : vector<1x1x8x8x128xf32> to vector<8x8x128xf32>
    %440 = vector.shape_cast %437 : vector<8x8x128xf32> to vector<1x1x8x8x128xf32>
    tpu.vector_store %arg5[%c0_51, %c2_52, %c0_53, %c0_54, %c0_55], %440 {strides = array<i32>} : memref<1x8x8x8x128xf32, #tpu.memory_space<vmem>>, vector<1x1x8x8x128xf32>,
    %c0_56 = arith.constant 0 : index
    %c2_57 = arith.constant 2 : index
    %c0_58 = arith.constant 0 : index
    %c0_59 = arith.constant 0 : index
    %c0_60 = arith.constant 0 : index
    %441 = vector.load %arg2[%c0_56, %c2_57, %c0_58, %c0_59, %c0_60] : memref<1x8x8x8x128xf32, #tpu.memory_space<vmem>>, vector<1x1x8x8x128xf32>
    %442 = vector.shape_cast %441 : vector<1x1x8x8x128xf32> to vector<8x8x128xf32>
    %443 = tpu.concatenate %86, %442, %86 in 0 : vector<1x8x128xf32>, vector<8x8x128xf32>, vector<1x8x128xf32> -> vector<10x8x128xf32>
    %444 = vector.extract_strided_slice %443 {offsets = [0, 0, 0], sizes = [10, 7, 128], strides = [1, 1, 1]} : vector<10x8x128xf32> to vector<10x7x128xf32>
    %445 = tpu.concatenate %87, %444 in 1 : vector<10x1x128xf32>, vector<10x7x128xf32> -> vector<10x8x128xf32>
    %446 = vector.extract_strided_slice %443 {offsets = [0, 1, 0], sizes = [10, 7, 128], strides = [1, 1, 1]} : vector<10x8x128xf32> to vector<10x7x128xf32>
    %447 = tpu.concatenate %446, %87 in 1 : vector<10x7x128xf32>, vector<10x1x128xf32> -> vector<10x8x128xf32>
    %448 = vector.extract_strided_slice %445 {offsets = [0, 0, 0], sizes = [8, 8, 128], strides = [1, 1, 1]} : vector<10x8x128xf32> to vector<8x8x128xf32>
    %449 = vector.broadcast %3 : vector<1x1x128xf32> to vector<8x8x128xf32>
    %450 = arith.mulf %448, %449 : vector<8x8x128xf32>
    %451 = arith.addf %85, %450 : vector<8x8x128xf32>
    %452 = vector.extract_strided_slice %445 {offsets = [1, 0, 0], sizes = [8, 8, 128], strides = [1, 1, 1]} : vector<10x8x128xf32> to vector<8x8x128xf32>
    %453 = vector.broadcast %12 : vector<1x1x128xf32> to vector<8x8x128xf32>
    %454 = arith.mulf %452, %453 : vector<8x8x128xf32>
    %455 = arith.addf %451, %454 : vector<8x8x128xf32>
    %456 = vector.extract_strided_slice %445 {offsets = [2, 0, 0], sizes = [8, 8, 128], strides = [1, 1, 1]} : vector<10x8x128xf32> to vector<8x8x128xf32>
    %457 = vector.broadcast %21 : vector<1x1x128xf32> to vector<8x8x128xf32>
    %458 = arith.mulf %456, %457 : vector<8x8x128xf32>
    %459 = arith.addf %455, %458 : vector<8x8x128xf32>
    %460 = vector.extract_strided_slice %443 {offsets = [0, 0, 0], sizes = [8, 8, 128], strides = [1, 1, 1]} : vector<10x8x128xf32> to vector<8x8x128xf32>
    %461 = vector.broadcast %6 : vector<1x1x128xf32> to vector<8x8x128xf32>
    %462 = arith.mulf %460, %461 : vector<8x8x128xf32>
    %463 = arith.addf %459, %462 : vector<8x8x128xf32>
    %464 = vector.extract_strided_slice %443 {offsets = [1, 0, 0], sizes = [8, 8, 128], strides = [1, 1, 1]} : vector<10x8x128xf32> to vector<8x8x128xf32>
    %465 = vector.broadcast %15 : vector<1x1x128xf32> to vector<8x8x128xf32>
    %466 = arith.mulf %464, %465 : vector<8x8x128xf32>
    %467 = arith.addf %463, %466 : vector<8x8x128xf32>
    %468 = vector.extract_strided_slice %443 {offsets = [2, 0, 0], sizes = [8, 8, 128], strides = [1, 1, 1]} : vector<10x8x128xf32> to vector<8x8x128xf32>
    %469 = vector.broadcast %24 : vector<1x1x128xf32> to vector<8x8x128xf32>
    %470 = arith.mulf %468, %469 : vector<8x8x128xf32>
    %471 = arith.addf %467, %470 : vector<8x8x128xf32>
    %472 = vector.extract_strided_slice %447 {offsets = [0, 0, 0], sizes = [8, 8, 128], strides = [1, 1, 1]} : vector<10x8x128xf32> to vector<8x8x128xf32>
    %473 = vector.broadcast %9 : vector<1x1x128xf32> to vector<8x8x128xf32>
    %474 = arith.mulf %472, %473 : vector<8x8x128xf32>
    %475 = arith.addf %471, %474 : vector<8x8x128xf32>
    %476 = vector.extract_strided_slice %447 {offsets = [1, 0, 0], sizes = [8, 8, 128], strides = [1, 1, 1]} : vector<10x8x128xf32> to vector<8x8x128xf32>
    %477 = vector.broadcast %18 : vector<1x1x128xf32> to vector<8x8x128xf32>
    %478 = arith.mulf %476, %477 : vector<8x8x128xf32>
    %479 = arith.addf %475, %478 : vector<8x8x128xf32>
    %480 = vector.extract_strided_slice %447 {offsets = [2, 0, 0], sizes = [8, 8, 128], strides = [1, 1, 1]} : vector<10x8x128xf32> to vector<8x8x128xf32>
    %481 = vector.broadcast %27 : vector<1x1x128xf32> to vector<8x8x128xf32>
    %482 = arith.mulf %480, %481 : vector<8x8x128xf32>
    %483 = arith.addf %479, %482 : vector<8x8x128xf32>
    %c0_61 = arith.constant 0 : index
    %c3_62 = arith.constant 3 : index
    %c0_63 = arith.constant 0 : index
    %c0_64 = arith.constant 0 : index
    %c0_65 = arith.constant 0 : index
    %484 = vector.load %arg2[%c0_61, %c3_62, %c0_63, %c0_64, %c0_65] : memref<1x8x8x8x128xf32, #tpu.memory_space<vmem>>, vector<1x1x8x8x128xf32>
    %485 = vector.shape_cast %484 : vector<1x1x8x8x128xf32> to vector<8x8x128xf32>
    %486 = tpu.concatenate %86, %485, %86 in 0 : vector<1x8x128xf32>, vector<8x8x128xf32>, vector<1x8x128xf32> -> vector<10x8x128xf32>
    %487 = vector.extract_strided_slice %486 {offsets = [0, 0, 0], sizes = [10, 7, 128], strides = [1, 1, 1]} : vector<10x8x128xf32> to vector<10x7x128xf32>
    %488 = tpu.concatenate %87, %487 in 1 : vector<10x1x128xf32>, vector<10x7x128xf32> -> vector<10x8x128xf32>
    %489 = vector.extract_strided_slice %486 {offsets = [0, 1, 0], sizes = [10, 7, 128], strides = [1, 1, 1]} : vector<10x8x128xf32> to vector<10x7x128xf32>
    %490 = tpu.concatenate %489, %87 in 1 : vector<10x7x128xf32>, vector<10x1x128xf32> -> vector<10x8x128xf32>
    %491 = vector.extract_strided_slice %488 {offsets = [0, 0, 0], sizes = [8, 8, 128], strides = [1, 1, 1]} : vector<10x8x128xf32> to vector<8x8x128xf32>
    %492 = vector.broadcast %30 : vector<1x1x128xf32> to vector<8x8x128xf32>
    %493 = arith.mulf %491, %492 : vector<8x8x128xf32>
    %494 = arith.addf %483, %493 : vector<8x8x128xf32>
    %495 = vector.extract_strided_slice %488 {offsets = [1, 0, 0], sizes = [8, 8, 128], strides = [1, 1, 1]} : vector<10x8x128xf32> to vector<8x8x128xf32>
    %496 = vector.broadcast %39 : vector<1x1x128xf32> to vector<8x8x128xf32>
    %497 = arith.mulf %495, %496 : vector<8x8x128xf32>
    %498 = arith.addf %494, %497 : vector<8x8x128xf32>
    %499 = vector.extract_strided_slice %488 {offsets = [2, 0, 0], sizes = [8, 8, 128], strides = [1, 1, 1]} : vector<10x8x128xf32> to vector<8x8x128xf32>
    %500 = vector.broadcast %48 : vector<1x1x128xf32> to vector<8x8x128xf32>
    %501 = arith.mulf %499, %500 : vector<8x8x128xf32>
    %502 = arith.addf %498, %501 : vector<8x8x128xf32>
    %503 = vector.extract_strided_slice %486 {offsets = [0, 0, 0], sizes = [8, 8, 128], strides = [1, 1, 1]} : vector<10x8x128xf32> to vector<8x8x128xf32>
    %504 = vector.broadcast %33 : vector<1x1x128xf32> to vector<8x8x128xf32>
    %505 = arith.mulf %503, %504 : vector<8x8x128xf32>
    %506 = arith.addf %502, %505 : vector<8x8x128xf32>
    %507 = vector.extract_strided_slice %486 {offsets = [1, 0, 0], sizes = [8, 8, 128], strides = [1, 1, 1]} : vector<10x8x128xf32> to vector<8x8x128xf32>
    %508 = vector.broadcast %42 : vector<1x1x128xf32> to vector<8x8x128xf32>
    %509 = arith.mulf %507, %508 : vector<8x8x128xf32>
    %510 = arith.addf %506, %509 : vector<8x8x128xf32>
    %511 = vector.extract_strided_slice %486 {offsets = [2, 0, 0], sizes = [8, 8, 128], strides = [1, 1, 1]} : vector<10x8x128xf32> to vector<8x8x128xf32>
    %512 = vector.broadcast %51 : vector<1x1x128xf32> to vector<8x8x128xf32>
    %513 = arith.mulf %511, %512 : vector<8x8x128xf32>
    %514 = arith.addf %510, %513 : vector<8x8x128xf32>
    %515 = vector.extract_strided_slice %490 {offsets = [0, 0, 0], sizes = [8, 8, 128], strides = [1, 1, 1]} : vector<10x8x128xf32> to vector<8x8x128xf32>
    %516 = vector.broadcast %36 : vector<1x1x128xf32> to vector<8x8x128xf32>
    %517 = arith.mulf %515, %516 : vector<8x8x128xf32>
    %518 = arith.addf %514, %517 : vector<8x8x128xf32>
    %519 = vector.extract_strided_slice %490 {offsets = [1, 0, 0], sizes = [8, 8, 128], strides = [1, 1, 1]} : vector<10x8x128xf32> to vector<8x8x128xf32>
    %520 = vector.broadcast %45 : vector<1x1x128xf32> to vector<8x8x128xf32>
    %521 = arith.mulf %519, %520 : vector<8x8x128xf32>
    %522 = arith.addf %518, %521 : vector<8x8x128xf32>
    %523 = vector.extract_strided_slice %490 {offsets = [2, 0, 0], sizes = [8, 8, 128], strides = [1, 1, 1]} : vector<10x8x128xf32> to vector<8x8x128xf32>
    %524 = vector.broadcast %54 : vector<1x1x128xf32> to vector<8x8x128xf32>
    %525 = arith.mulf %523, %524 : vector<8x8x128xf32>
    %526 = arith.addf %522, %525 : vector<8x8x128xf32>
    %c0_66 = arith.constant 0 : index
    %c4 = arith.constant 4 : index
    %c0_67 = arith.constant 0 : index
    %c0_68 = arith.constant 0 : index
    %c0_69 = arith.constant 0 : index
    %527 = vector.load %arg2[%c0_66, %c4, %c0_67, %c0_68, %c0_69] : memref<1x8x8x8x128xf32, #tpu.memory_space<vmem>>, vector<1x1x8x8x128xf32>
    %528 = vector.shape_cast %527 : vector<1x1x8x8x128xf32> to vector<8x8x128xf32>
    %529 = tpu.concatenate %86, %528, %86 in 0 : vector<1x8x128xf32>, vector<8x8x128xf32>, vector<1x8x128xf32> -> vector<10x8x128xf32>
    %530 = vector.extract_strided_slice %529 {offsets = [0, 0, 0], sizes = [10, 7, 128], strides = [1, 1, 1]} : vector<10x8x128xf32> to vector<10x7x128xf32>
    %531 = tpu.concatenate %87, %530 in 1 : vector<10x1x128xf32>, vector<10x7x128xf32> -> vector<10x8x128xf32>
    %532 = vector.extract_strided_slice %529 {offsets = [0, 1, 0], sizes = [10, 7, 128], strides = [1, 1, 1]} : vector<10x8x128xf32> to vector<10x7x128xf32>
    %533 = tpu.concatenate %532, %87 in 1 : vector<10x7x128xf32>, vector<10x1x128xf32> -> vector<10x8x128xf32>
    %534 = vector.extract_strided_slice %531 {offsets = [0, 0, 0], sizes = [8, 8, 128], strides = [1, 1, 1]} : vector<10x8x128xf32> to vector<8x8x128xf32>
    %535 = vector.broadcast %57 : vector<1x1x128xf32> to vector<8x8x128xf32>
    %536 = arith.mulf %534, %535 : vector<8x8x128xf32>
    %537 = arith.addf %526, %536 : vector<8x8x128xf32>
    %538 = vector.extract_strided_slice %531 {offsets = [1, 0, 0], sizes = [8, 8, 128], strides = [1, 1, 1]} : vector<10x8x128xf32> to vector<8x8x128xf32>
    %539 = vector.broadcast %66 : vector<1x1x128xf32> to vector<8x8x128xf32>
    %540 = arith.mulf %538, %539 : vector<8x8x128xf32>
    %541 = arith.addf %537, %540 : vector<8x8x128xf32>
    %542 = vector.extract_strided_slice %531 {offsets = [2, 0, 0], sizes = [8, 8, 128], strides = [1, 1, 1]} : vector<10x8x128xf32> to vector<8x8x128xf32>
    %543 = vector.broadcast %75 : vector<1x1x128xf32> to vector<8x8x128xf32>
    %544 = arith.mulf %542, %543 : vector<8x8x128xf32>
    %545 = arith.addf %541, %544 : vector<8x8x128xf32>
    %546 = vector.extract_strided_slice %529 {offsets = [0, 0, 0], sizes = [8, 8, 128], strides = [1, 1, 1]} : vector<10x8x128xf32> to vector<8x8x128xf32>
    %547 = vector.broadcast %60 : vector<1x1x128xf32> to vector<8x8x128xf32>
    %548 = arith.mulf %546, %547 : vector<8x8x128xf32>
    %549 = arith.addf %545, %548 : vector<8x8x128xf32>
    %550 = vector.extract_strided_slice %529 {offsets = [1, 0, 0], sizes = [8, 8, 128], strides = [1, 1, 1]} : vector<10x8x128xf32> to vector<8x8x128xf32>
    %551 = vector.broadcast %69 : vector<1x1x128xf32> to vector<8x8x128xf32>
    %552 = arith.mulf %550, %551 : vector<8x8x128xf32>
    %553 = arith.addf %549, %552 : vector<8x8x128xf32>
    %554 = vector.extract_strided_slice %529 {offsets = [2, 0, 0], sizes = [8, 8, 128], strides = [1, 1, 1]} : vector<10x8x128xf32> to vector<8x8x128xf32>
    %555 = vector.broadcast %78 : vector<1x1x128xf32> to vector<8x8x128xf32>
    %556 = arith.mulf %554, %555 : vector<8x8x128xf32>
    %557 = arith.addf %553, %556 : vector<8x8x128xf32>
    %558 = vector.extract_strided_slice %533 {offsets = [0, 0, 0], sizes = [8, 8, 128], strides = [1, 1, 1]} : vector<10x8x128xf32> to vector<8x8x128xf32>
    %559 = vector.broadcast %63 : vector<1x1x128xf32> to vector<8x8x128xf32>
    %560 = arith.mulf %558, %559 : vector<8x8x128xf32>
    %561 = arith.addf %557, %560 : vector<8x8x128xf32>
    %562 = vector.extract_strided_slice %533 {offsets = [1, 0, 0], sizes = [8, 8, 128], strides = [1, 1, 1]} : vector<10x8x128xf32> to vector<8x8x128xf32>
    %563 = vector.broadcast %72 : vector<1x1x128xf32> to vector<8x8x128xf32>
    %564 = arith.mulf %562, %563 : vector<8x8x128xf32>
    %565 = arith.addf %561, %564 : vector<8x8x128xf32>
    %566 = vector.extract_strided_slice %533 {offsets = [2, 0, 0], sizes = [8, 8, 128], strides = [1, 1, 1]} : vector<10x8x128xf32> to vector<8x8x128xf32>
    %567 = vector.broadcast %81 : vector<1x1x128xf32> to vector<8x8x128xf32>
    %568 = arith.mulf %566, %567 : vector<8x8x128xf32>
    %569 = arith.addf %565, %568 : vector<8x8x128xf32>
    %c0_70 = arith.constant 0 : index
    %c3_71 = arith.constant 3 : index
    %c0_72 = arith.constant 0 : index
    %c0_73 = arith.constant 0 : index
    %c0_74 = arith.constant 0 : index
    %570 = vector.load %arg5[%c0_70, %c3_71, %c0_72, %c0_73, %c0_74] : memref<1x8x8x8x128xf32, #tpu.memory_space<vmem>>, vector<1x1x8x8x128xf32>
    %571 = vector.shape_cast %570 : vector<1x1x8x8x128xf32> to vector<8x8x128xf32>
    %572 = vector.shape_cast %569 : vector<8x8x128xf32> to vector<1x1x8x8x128xf32>
    tpu.vector_store %arg5[%c0_70, %c3_71, %c0_72, %c0_73, %c0_74], %572 {strides = array<i32>} : memref<1x8x8x8x128xf32, #tpu.memory_space<vmem>>, vector<1x1x8x8x128xf32>,
    %c0_75 = arith.constant 0 : index
    %c3_76 = arith.constant 3 : index
    %c0_77 = arith.constant 0 : index
    %c0_78 = arith.constant 0 : index
    %c0_79 = arith.constant 0 : index
    %573 = vector.load %arg2[%c0_75, %c3_76, %c0_77, %c0_78, %c0_79] : memref<1x8x8x8x128xf32, #tpu.memory_space<vmem>>, vector<1x1x8x8x128xf32>
    %574 = vector.shape_cast %573 : vector<1x1x8x8x128xf32> to vector<8x8x128xf32>
    %575 = tpu.concatenate %86, %574, %86 in 0 : vector<1x8x128xf32>, vector<8x8x128xf32>, vector<1x8x128xf32> -> vector<10x8x128xf32>
    %576 = vector.extract_strided_slice %575 {offsets = [0, 0, 0], sizes = [10, 7, 128], strides = [1, 1, 1]} : vector<10x8x128xf32> to vector<10x7x128xf32>
    %577 = tpu.concatenate %87, %576 in 1 : vector<10x1x128xf32>, vector<10x7x128xf32> -> vector<10x8x128xf32>
    %578 = vector.extract_strided_slice %575 {offsets = [0, 1, 0], sizes = [10, 7, 128], strides = [1, 1, 1]} : vector<10x8x128xf32> to vector<10x7x128xf32>
    %579 = tpu.concatenate %578, %87 in 1 : vector<10x7x128xf32>, vector<10x1x128xf32> -> vector<10x8x128xf32>
    %580 = vector.extract_strided_slice %577 {offsets = [0, 0, 0], sizes = [8, 8, 128], strides = [1, 1, 1]} : vector<10x8x128xf32> to vector<8x8x128xf32>
    %581 = vector.broadcast %3 : vector<1x1x128xf32> to vector<8x8x128xf32>
    %582 = arith.mulf %580, %581 : vector<8x8x128xf32>
    %583 = arith.addf %85, %582 : vector<8x8x128xf32>
    %584 = vector.extract_strided_slice %577 {offsets = [1, 0, 0], sizes = [8, 8, 128], strides = [1, 1, 1]} : vector<10x8x128xf32> to vector<8x8x128xf32>
    %585 = vector.broadcast %12 : vector<1x1x128xf32> to vector<8x8x128xf32>
    %586 = arith.mulf %584, %585 : vector<8x8x128xf32>
    %587 = arith.addf %583, %586 : vector<8x8x128xf32>
    %588 = vector.extract_strided_slice %577 {offsets = [2, 0, 0], sizes = [8, 8, 128], strides = [1, 1, 1]} : vector<10x8x128xf32> to vector<8x8x128xf32>
    %589 = vector.broadcast %21 : vector<1x1x128xf32> to vector<8x8x128xf32>
    %590 = arith.mulf %588, %589 : vector<8x8x128xf32>
    %591 = arith.addf %587, %590 : vector<8x8x128xf32>
    %592 = vector.extract_strided_slice %575 {offsets = [0, 0, 0], sizes = [8, 8, 128], strides = [1, 1, 1]} : vector<10x8x128xf32> to vector<8x8x128xf32>
    %593 = vector.broadcast %6 : vector<1x1x128xf32> to vector<8x8x128xf32>
    %594 = arith.mulf %592, %593 : vector<8x8x128xf32>
    %595 = arith.addf %591, %594 : vector<8x8x128xf32>
    %596 = vector.extract_strided_slice %575 {offsets = [1, 0, 0], sizes = [8, 8, 128], strides = [1, 1, 1]} : vector<10x8x128xf32> to vector<8x8x128xf32>
    %597 = vector.broadcast %15 : vector<1x1x128xf32> to vector<8x8x128xf32>
    %598 = arith.mulf %596, %597 : vector<8x8x128xf32>
    %599 = arith.addf %595, %598 : vector<8x8x128xf32>
    %600 = vector.extract_strided_slice %575 {offsets = [2, 0, 0], sizes = [8, 8, 128], strides = [1, 1, 1]} : vector<10x8x128xf32> to vector<8x8x128xf32>
    %601 = vector.broadcast %24 : vector<1x1x128xf32> to vector<8x8x128xf32>
    %602 = arith.mulf %600, %601 : vector<8x8x128xf32>
    %603 = arith.addf %599, %602 : vector<8x8x128xf32>
    %604 = vector.extract_strided_slice %579 {offsets = [0, 0, 0], sizes = [8, 8, 128], strides = [1, 1, 1]} : vector<10x8x128xf32> to vector<8x8x128xf32>
    %605 = vector.broadcast %9 : vector<1x1x128xf32> to vector<8x8x128xf32>
    %606 = arith.mulf %604, %605 : vector<8x8x128xf32>
    %607 = arith.addf %603, %606 : vector<8x8x128xf32>
    %608 = vector.extract_strided_slice %579 {offsets = [1, 0, 0], sizes = [8, 8, 128], strides = [1, 1, 1]} : vector<10x8x128xf32> to vector<8x8x128xf32>
    %609 = vector.broadcast %18 : vector<1x1x128xf32> to vector<8x8x128xf32>
    %610 = arith.mulf %608, %609 : vector<8x8x128xf32>
    %611 = arith.addf %607, %610 : vector<8x8x128xf32>
    %612 = vector.extract_strided_slice %579 {offsets = [2, 0, 0], sizes = [8, 8, 128], strides = [1, 1, 1]} : vector<10x8x128xf32> to vector<8x8x128xf32>
    %613 = vector.broadcast %27 : vector<1x1x128xf32> to vector<8x8x128xf32>
    %614 = arith.mulf %612, %613 : vector<8x8x128xf32>
    %615 = arith.addf %611, %614 : vector<8x8x128xf32>
    %c0_80 = arith.constant 0 : index
    %c4_81 = arith.constant 4 : index
    %c0_82 = arith.constant 0 : index
    %c0_83 = arith.constant 0 : index
    %c0_84 = arith.constant 0 : index
    %616 = vector.load %arg2[%c0_80, %c4_81, %c0_82, %c0_83, %c0_84] : memref<1x8x8x8x128xf32, #tpu.memory_space<vmem>>, vector<1x1x8x8x128xf32>
    %617 = vector.shape_cast %616 : vector<1x1x8x8x128xf32> to vector<8x8x128xf32>
    %618 = tpu.concatenate %86, %617, %86 in 0 : vector<1x8x128xf32>, vector<8x8x128xf32>, vector<1x8x128xf32> -> vector<10x8x128xf32>
    %619 = vector.extract_strided_slice %618 {offsets = [0, 0, 0], sizes = [10, 7, 128], strides = [1, 1, 1]} : vector<10x8x128xf32> to vector<10x7x128xf32>
    %620 = tpu.concatenate %87, %619 in 1 : vector<10x1x128xf32>, vector<10x7x128xf32> -> vector<10x8x128xf32>
    %621 = vector.extract_strided_slice %618 {offsets = [0, 1, 0], sizes = [10, 7, 128], strides = [1, 1, 1]} : vector<10x8x128xf32> to vector<10x7x128xf32>
    %622 = tpu.concatenate %621, %87 in 1 : vector<10x7x128xf32>, vector<10x1x128xf32> -> vector<10x8x128xf32>
    %623 = vector.extract_strided_slice %620 {offsets = [0, 0, 0], sizes = [8, 8, 128], strides = [1, 1, 1]} : vector<10x8x128xf32> to vector<8x8x128xf32>
    %624 = vector.broadcast %30 : vector<1x1x128xf32> to vector<8x8x128xf32>
    %625 = arith.mulf %623, %624 : vector<8x8x128xf32>
    %626 = arith.addf %615, %625 : vector<8x8x128xf32>
    %627 = vector.extract_strided_slice %620 {offsets = [1, 0, 0], sizes = [8, 8, 128], strides = [1, 1, 1]} : vector<10x8x128xf32> to vector<8x8x128xf32>
    %628 = vector.broadcast %39 : vector<1x1x128xf32> to vector<8x8x128xf32>
    %629 = arith.mulf %627, %628 : vector<8x8x128xf32>
    %630 = arith.addf %626, %629 : vector<8x8x128xf32>
    %631 = vector.extract_strided_slice %620 {offsets = [2, 0, 0], sizes = [8, 8, 128], strides = [1, 1, 1]} : vector<10x8x128xf32> to vector<8x8x128xf32>
    %632 = vector.broadcast %48 : vector<1x1x128xf32> to vector<8x8x128xf32>
    %633 = arith.mulf %631, %632 : vector<8x8x128xf32>
    %634 = arith.addf %630, %633 : vector<8x8x128xf32>
    %635 = vector.extract_strided_slice %618 {offsets = [0, 0, 0], sizes = [8, 8, 128], strides = [1, 1, 1]} : vector<10x8x128xf32> to vector<8x8x128xf32>
    %636 = vector.broadcast %33 : vector<1x1x128xf32> to vector<8x8x128xf32>
    %637 = arith.mulf %635, %636 : vector<8x8x128xf32>
    %638 = arith.addf %634, %637 : vector<8x8x128xf32>
    %639 = vector.extract_strided_slice %618 {offsets = [1, 0, 0], sizes = [8, 8, 128], strides = [1, 1, 1]} : vector<10x8x128xf32> to vector<8x8x128xf32>
    %640 = vector.broadcast %42 : vector<1x1x128xf32> to vector<8x8x128xf32>
    %641 = arith.mulf %639, %640 : vector<8x8x128xf32>
    %642 = arith.addf %638, %641 : vector<8x8x128xf32>
    %643 = vector.extract_strided_slice %618 {offsets = [2, 0, 0], sizes = [8, 8, 128], strides = [1, 1, 1]} : vector<10x8x128xf32> to vector<8x8x128xf32>
    %644 = vector.broadcast %51 : vector<1x1x128xf32> to vector<8x8x128xf32>
    %645 = arith.mulf %643, %644 : vector<8x8x128xf32>
    %646 = arith.addf %642, %645 : vector<8x8x128xf32>
    %647 = vector.extract_strided_slice %622 {offsets = [0, 0, 0], sizes = [8, 8, 128], strides = [1, 1, 1]} : vector<10x8x128xf32> to vector<8x8x128xf32>
    %648 = vector.broadcast %36 : vector<1x1x128xf32> to vector<8x8x128xf32>
    %649 = arith.mulf %647, %648 : vector<8x8x128xf32>
    %650 = arith.addf %646, %649 : vector<8x8x128xf32>
    %651 = vector.extract_strided_slice %622 {offsets = [1, 0, 0], sizes = [8, 8, 128], strides = [1, 1, 1]} : vector<10x8x128xf32> to vector<8x8x128xf32>
    %652 = vector.broadcast %45 : vector<1x1x128xf32> to vector<8x8x128xf32>
    %653 = arith.mulf %651, %652 : vector<8x8x128xf32>
    %654 = arith.addf %650, %653 : vector<8x8x128xf32>
    %655 = vector.extract_strided_slice %622 {offsets = [2, 0, 0], sizes = [8, 8, 128], strides = [1, 1, 1]} : vector<10x8x128xf32> to vector<8x8x128xf32>
    %656 = vector.broadcast %54 : vector<1x1x128xf32> to vector<8x8x128xf32>
    %657 = arith.mulf %655, %656 : vector<8x8x128xf32>
    %658 = arith.addf %654, %657 : vector<8x8x128xf32>
    %c0_85 = arith.constant 0 : index
    %c5 = arith.constant 5 : index
    %c0_86 = arith.constant 0 : index
    %c0_87 = arith.constant 0 : index
    %c0_88 = arith.constant 0 : index
    %659 = vector.load %arg2[%c0_85, %c5, %c0_86, %c0_87, %c0_88] : memref<1x8x8x8x128xf32, #tpu.memory_space<vmem>>, vector<1x1x8x8x128xf32>
    %660 = vector.shape_cast %659 : vector<1x1x8x8x128xf32> to vector<8x8x128xf32>
    %661 = tpu.concatenate %86, %660, %86 in 0 : vector<1x8x128xf32>, vector<8x8x128xf32>, vector<1x8x128xf32> -> vector<10x8x128xf32>
    %662 = vector.extract_strided_slice %661 {offsets = [0, 0, 0], sizes = [10, 7, 128], strides = [1, 1, 1]} : vector<10x8x128xf32> to vector<10x7x128xf32>
    %663 = tpu.concatenate %87, %662 in 1 : vector<10x1x128xf32>, vector<10x7x128xf32> -> vector<10x8x128xf32>
    %664 = vector.extract_strided_slice %661 {offsets = [0, 1, 0], sizes = [10, 7, 128], strides = [1, 1, 1]} : vector<10x8x128xf32> to vector<10x7x128xf32>
    %665 = tpu.concatenate %664, %87 in 1 : vector<10x7x128xf32>, vector<10x1x128xf32> -> vector<10x8x128xf32>
    %666 = vector.extract_strided_slice %663 {offsets = [0, 0, 0], sizes = [8, 8, 128], strides = [1, 1, 1]} : vector<10x8x128xf32> to vector<8x8x128xf32>
    %667 = vector.broadcast %57 : vector<1x1x128xf32> to vector<8x8x128xf32>
    %668 = arith.mulf %666, %667 : vector<8x8x128xf32>
    %669 = arith.addf %658, %668 : vector<8x8x128xf32>
    %670 = vector.extract_strided_slice %663 {offsets = [1, 0, 0], sizes = [8, 8, 128], strides = [1, 1, 1]} : vector<10x8x128xf32> to vector<8x8x128xf32>
    %671 = vector.broadcast %66 : vector<1x1x128xf32> to vector<8x8x128xf32>
    %672 = arith.mulf %670, %671 : vector<8x8x128xf32>
    %673 = arith.addf %669, %672 : vector<8x8x128xf32>
    %674 = vector.extract_strided_slice %663 {offsets = [2, 0, 0], sizes = [8, 8, 128], strides = [1, 1, 1]} : vector<10x8x128xf32> to vector<8x8x128xf32>
    %675 = vector.broadcast %75 : vector<1x1x128xf32> to vector<8x8x128xf32>
    %676 = arith.mulf %674, %675 : vector<8x8x128xf32>
    %677 = arith.addf %673, %676 : vector<8x8x128xf32>
    %678 = vector.extract_strided_slice %661 {offsets = [0, 0, 0], sizes = [8, 8, 128], strides = [1, 1, 1]} : vector<10x8x128xf32> to vector<8x8x128xf32>
    %679 = vector.broadcast %60 : vector<1x1x128xf32> to vector<8x8x128xf32>
    %680 = arith.mulf %678, %679 : vector<8x8x128xf32>
    %681 = arith.addf %677, %680 : vector<8x8x128xf32>
    %682 = vector.extract_strided_slice %661 {offsets = [1, 0, 0], sizes = [8, 8, 128], strides = [1, 1, 1]} : vector<10x8x128xf32> to vector<8x8x128xf32>
    %683 = vector.broadcast %69 : vector<1x1x128xf32> to vector<8x8x128xf32>
    %684 = arith.mulf %682, %683 : vector<8x8x128xf32>
    %685 = arith.addf %681, %684 : vector<8x8x128xf32>
    %686 = vector.extract_strided_slice %661 {offsets = [2, 0, 0], sizes = [8, 8, 128], strides = [1, 1, 1]} : vector<10x8x128xf32> to vector<8x8x128xf32>
    %687 = vector.broadcast %78 : vector<1x1x128xf32> to vector<8x8x128xf32>
    %688 = arith.mulf %686, %687 : vector<8x8x128xf32>
    %689 = arith.addf %685, %688 : vector<8x8x128xf32>
    %690 = vector.extract_strided_slice %665 {offsets = [0, 0, 0], sizes = [8, 8, 128], strides = [1, 1, 1]} : vector<10x8x128xf32> to vector<8x8x128xf32>
    %691 = vector.broadcast %63 : vector<1x1x128xf32> to vector<8x8x128xf32>
    %692 = arith.mulf %690, %691 : vector<8x8x128xf32>
    %693 = arith.addf %689, %692 : vector<8x8x128xf32>
    %694 = vector.extract_strided_slice %665 {offsets = [1, 0, 0], sizes = [8, 8, 128], strides = [1, 1, 1]} : vector<10x8x128xf32> to vector<8x8x128xf32>
    %695 = vector.broadcast %72 : vector<1x1x128xf32> to vector<8x8x128xf32>
    %696 = arith.mulf %694, %695 : vector<8x8x128xf32>
    %697 = arith.addf %693, %696 : vector<8x8x128xf32>
    %698 = vector.extract_strided_slice %665 {offsets = [2, 0, 0], sizes = [8, 8, 128], strides = [1, 1, 1]} : vector<10x8x128xf32> to vector<8x8x128xf32>
    %699 = vector.broadcast %81 : vector<1x1x128xf32> to vector<8x8x128xf32>
    %700 = arith.mulf %698, %699 : vector<8x8x128xf32>
    %701 = arith.addf %697, %700 : vector<8x8x128xf32>
    %c0_89 = arith.constant 0 : index
    %c4_90 = arith.constant 4 : index
    %c0_91 = arith.constant 0 : index
    %c0_92 = arith.constant 0 : index
    %c0_93 = arith.constant 0 : index
    %702 = vector.load %arg5[%c0_89, %c4_90, %c0_91, %c0_92, %c0_93] : memref<1x8x8x8x128xf32, #tpu.memory_space<vmem>>, vector<1x1x8x8x128xf32>
    %703 = vector.shape_cast %702 : vector<1x1x8x8x128xf32> to vector<8x8x128xf32>
    %704 = vector.shape_cast %701 : vector<8x8x128xf32> to vector<1x1x8x8x128xf32>
    tpu.vector_store %arg5[%c0_89, %c4_90, %c0_91, %c0_92, %c0_93], %704 {strides = array<i32>} : memref<1x8x8x8x128xf32, #tpu.memory_space<vmem>>, vector<1x1x8x8x128xf32>,
    %c0_94 = arith.constant 0 : index
    %c4_95 = arith.constant 4 : index
    %c0_96 = arith.constant 0 : index
    %c0_97 = arith.constant 0 : index
    %c0_98 = arith.constant 0 : index
    %705 = vector.load %arg2[%c0_94, %c4_95, %c0_96, %c0_97, %c0_98] : memref<1x8x8x8x128xf32, #tpu.memory_space<vmem>>, vector<1x1x8x8x128xf32>
    %706 = vector.shape_cast %705 : vector<1x1x8x8x128xf32> to vector<8x8x128xf32>
    %707 = tpu.concatenate %86, %706, %86 in 0 : vector<1x8x128xf32>, vector<8x8x128xf32>, vector<1x8x128xf32> -> vector<10x8x128xf32>
    %708 = vector.extract_strided_slice %707 {offsets = [0, 0, 0], sizes = [10, 7, 128], strides = [1, 1, 1]} : vector<10x8x128xf32> to vector<10x7x128xf32>
    %709 = tpu.concatenate %87, %708 in 1 : vector<10x1x128xf32>, vector<10x7x128xf32> -> vector<10x8x128xf32>
    %710 = vector.extract_strided_slice %707 {offsets = [0, 1, 0], sizes = [10, 7, 128], strides = [1, 1, 1]} : vector<10x8x128xf32> to vector<10x7x128xf32>
    %711 = tpu.concatenate %710, %87 in 1 : vector<10x7x128xf32>, vector<10x1x128xf32> -> vector<10x8x128xf32>
    %712 = vector.extract_strided_slice %709 {offsets = [0, 0, 0], sizes = [8, 8, 128], strides = [1, 1, 1]} : vector<10x8x128xf32> to vector<8x8x128xf32>
    %713 = vector.broadcast %3 : vector<1x1x128xf32> to vector<8x8x128xf32>
    %714 = arith.mulf %712, %713 : vector<8x8x128xf32>
    %715 = arith.addf %85, %714 : vector<8x8x128xf32>
    %716 = vector.extract_strided_slice %709 {offsets = [1, 0, 0], sizes = [8, 8, 128], strides = [1, 1, 1]} : vector<10x8x128xf32> to vector<8x8x128xf32>
    %717 = vector.broadcast %12 : vector<1x1x128xf32> to vector<8x8x128xf32>
    %718 = arith.mulf %716, %717 : vector<8x8x128xf32>
    %719 = arith.addf %715, %718 : vector<8x8x128xf32>
    %720 = vector.extract_strided_slice %709 {offsets = [2, 0, 0], sizes = [8, 8, 128], strides = [1, 1, 1]} : vector<10x8x128xf32> to vector<8x8x128xf32>
    %721 = vector.broadcast %21 : vector<1x1x128xf32> to vector<8x8x128xf32>
    %722 = arith.mulf %720, %721 : vector<8x8x128xf32>
    %723 = arith.addf %719, %722 : vector<8x8x128xf32>
    %724 = vector.extract_strided_slice %707 {offsets = [0, 0, 0], sizes = [8, 8, 128], strides = [1, 1, 1]} : vector<10x8x128xf32> to vector<8x8x128xf32>
    %725 = vector.broadcast %6 : vector<1x1x128xf32> to vector<8x8x128xf32>
    %726 = arith.mulf %724, %725 : vector<8x8x128xf32>
    %727 = arith.addf %723, %726 : vector<8x8x128xf32>
    %728 = vector.extract_strided_slice %707 {offsets = [1, 0, 0], sizes = [8, 8, 128], strides = [1, 1, 1]} : vector<10x8x128xf32> to vector<8x8x128xf32>
    %729 = vector.broadcast %15 : vector<1x1x128xf32> to vector<8x8x128xf32>
    %730 = arith.mulf %728, %729 : vector<8x8x128xf32>
    %731 = arith.addf %727, %730 : vector<8x8x128xf32>
    %732 = vector.extract_strided_slice %707 {offsets = [2, 0, 0], sizes = [8, 8, 128], strides = [1, 1, 1]} : vector<10x8x128xf32> to vector<8x8x128xf32>
    %733 = vector.broadcast %24 : vector<1x1x128xf32> to vector<8x8x128xf32>
    %734 = arith.mulf %732, %733 : vector<8x8x128xf32>
    %735 = arith.addf %731, %734 : vector<8x8x128xf32>
    %736 = vector.extract_strided_slice %711 {offsets = [0, 0, 0], sizes = [8, 8, 128], strides = [1, 1, 1]} : vector<10x8x128xf32> to vector<8x8x128xf32>
    %737 = vector.broadcast %9 : vector<1x1x128xf32> to vector<8x8x128xf32>
    %738 = arith.mulf %736, %737 : vector<8x8x128xf32>
    %739 = arith.addf %735, %738 : vector<8x8x128xf32>
    %740 = vector.extract_strided_slice %711 {offsets = [1, 0, 0], sizes = [8, 8, 128], strides = [1, 1, 1]} : vector<10x8x128xf32> to vector<8x8x128xf32>
    %741 = vector.broadcast %18 : vector<1x1x128xf32> to vector<8x8x128xf32>
    %742 = arith.mulf %740, %741 : vector<8x8x128xf32>
    %743 = arith.addf %739, %742 : vector<8x8x128xf32>
    %744 = vector.extract_strided_slice %711 {offsets = [2, 0, 0], sizes = [8, 8, 128], strides = [1, 1, 1]} : vector<10x8x128xf32> to vector<8x8x128xf32>
    %745 = vector.broadcast %27 : vector<1x1x128xf32> to vector<8x8x128xf32>
    %746 = arith.mulf %744, %745 : vector<8x8x128xf32>
    %747 = arith.addf %743, %746 : vector<8x8x128xf32>
    %c0_99 = arith.constant 0 : index
    %c5_100 = arith.constant 5 : index
    %c0_101 = arith.constant 0 : index
    %c0_102 = arith.constant 0 : index
    %c0_103 = arith.constant 0 : index
    %748 = vector.load %arg2[%c0_99, %c5_100, %c0_101, %c0_102, %c0_103] : memref<1x8x8x8x128xf32, #tpu.memory_space<vmem>>, vector<1x1x8x8x128xf32>
    %749 = vector.shape_cast %748 : vector<1x1x8x8x128xf32> to vector<8x8x128xf32>
    %750 = tpu.concatenate %86, %749, %86 in 0 : vector<1x8x128xf32>, vector<8x8x128xf32>, vector<1x8x128xf32> -> vector<10x8x128xf32>
    %751 = vector.extract_strided_slice %750 {offsets = [0, 0, 0], sizes = [10, 7, 128], strides = [1, 1, 1]} : vector<10x8x128xf32> to vector<10x7x128xf32>
    %752 = tpu.concatenate %87, %751 in 1 : vector<10x1x128xf32>, vector<10x7x128xf32> -> vector<10x8x128xf32>
    %753 = vector.extract_strided_slice %750 {offsets = [0, 1, 0], sizes = [10, 7, 128], strides = [1, 1, 1]} : vector<10x8x128xf32> to vector<10x7x128xf32>
    %754 = tpu.concatenate %753, %87 in 1 : vector<10x7x128xf32>, vector<10x1x128xf32> -> vector<10x8x128xf32>
    %755 = vector.extract_strided_slice %752 {offsets = [0, 0, 0], sizes = [8, 8, 128], strides = [1, 1, 1]} : vector<10x8x128xf32> to vector<8x8x128xf32>
    %756 = vector.broadcast %30 : vector<1x1x128xf32> to vector<8x8x128xf32>
    %757 = arith.mulf %755, %756 : vector<8x8x128xf32>
    %758 = arith.addf %747, %757 : vector<8x8x128xf32>
    %759 = vector.extract_strided_slice %752 {offsets = [1, 0, 0], sizes = [8, 8, 128], strides = [1, 1, 1]} : vector<10x8x128xf32> to vector<8x8x128xf32>
    %760 = vector.broadcast %39 : vector<1x1x128xf32> to vector<8x8x128xf32>
    %761 = arith.mulf %759, %760 : vector<8x8x128xf32>
    %762 = arith.addf %758, %761 : vector<8x8x128xf32>
    %763 = vector.extract_strided_slice %752 {offsets = [2, 0, 0], sizes = [8, 8, 128], strides = [1, 1, 1]} : vector<10x8x128xf32> to vector<8x8x128xf32>
    %764 = vector.broadcast %48 : vector<1x1x128xf32> to vector<8x8x128xf32>
    %765 = arith.mulf %763, %764 : vector<8x8x128xf32>
    %766 = arith.addf %762, %765 : vector<8x8x128xf32>
    %767 = vector.extract_strided_slice %750 {offsets = [0, 0, 0], sizes = [8, 8, 128], strides = [1, 1, 1]} : vector<10x8x128xf32> to vector<8x8x128xf32>
    %768 = vector.broadcast %33 : vector<1x1x128xf32> to vector<8x8x128xf32>
    %769 = arith.mulf %767, %768 : vector<8x8x128xf32>
    %770 = arith.addf %766, %769 : vector<8x8x128xf32>
    %771 = vector.extract_strided_slice %750 {offsets = [1, 0, 0], sizes = [8, 8, 128], strides = [1, 1, 1]} : vector<10x8x128xf32> to vector<8x8x128xf32>
    %772 = vector.broadcast %42 : vector<1x1x128xf32> to vector<8x8x128xf32>
    %773 = arith.mulf %771, %772 : vector<8x8x128xf32>
    %774 = arith.addf %770, %773 : vector<8x8x128xf32>
    %775 = vector.extract_strided_slice %750 {offsets = [2, 0, 0], sizes = [8, 8, 128], strides = [1, 1, 1]} : vector<10x8x128xf32> to vector<8x8x128xf32>
    %776 = vector.broadcast %51 : vector<1x1x128xf32> to vector<8x8x128xf32>
    %777 = arith.mulf %775, %776 : vector<8x8x128xf32>
    %778 = arith.addf %774, %777 : vector<8x8x128xf32>
    %779 = vector.extract_strided_slice %754 {offsets = [0, 0, 0], sizes = [8, 8, 128], strides = [1, 1, 1]} : vector<10x8x128xf32> to vector<8x8x128xf32>
    %780 = vector.broadcast %36 : vector<1x1x128xf32> to vector<8x8x128xf32>
    %781 = arith.mulf %779, %780 : vector<8x8x128xf32>
    %782 = arith.addf %778, %781 : vector<8x8x128xf32>
    %783 = vector.extract_strided_slice %754 {offsets = [1, 0, 0], sizes = [8, 8, 128], strides = [1, 1, 1]} : vector<10x8x128xf32> to vector<8x8x128xf32>
    %784 = vector.broadcast %45 : vector<1x1x128xf32> to vector<8x8x128xf32>
    %785 = arith.mulf %783, %784 : vector<8x8x128xf32>
    %786 = arith.addf %782, %785 : vector<8x8x128xf32>
    %787 = vector.extract_strided_slice %754 {offsets = [2, 0, 0], sizes = [8, 8, 128], strides = [1, 1, 1]} : vector<10x8x128xf32> to vector<8x8x128xf32>
    %788 = vector.broadcast %54 : vector<1x1x128xf32> to vector<8x8x128xf32>
    %789 = arith.mulf %787, %788 : vector<8x8x128xf32>
    %790 = arith.addf %786, %789 : vector<8x8x128xf32>
    %c0_104 = arith.constant 0 : index
    %c6 = arith.constant 6 : index
    %c0_105 = arith.constant 0 : index
    %c0_106 = arith.constant 0 : index
    %c0_107 = arith.constant 0 : index
    %791 = vector.load %arg2[%c0_104, %c6, %c0_105, %c0_106, %c0_107] : memref<1x8x8x8x128xf32, #tpu.memory_space<vmem>>, vector<1x1x8x8x128xf32>
    %792 = vector.shape_cast %791 : vector<1x1x8x8x128xf32> to vector<8x8x128xf32>
    %793 = tpu.concatenate %86, %792, %86 in 0 : vector<1x8x128xf32>, vector<8x8x128xf32>, vector<1x8x128xf32> -> vector<10x8x128xf32>
    %794 = vector.extract_strided_slice %793 {offsets = [0, 0, 0], sizes = [10, 7, 128], strides = [1, 1, 1]} : vector<10x8x128xf32> to vector<10x7x128xf32>
    %795 = tpu.concatenate %87, %794 in 1 : vector<10x1x128xf32>, vector<10x7x128xf32> -> vector<10x8x128xf32>
    %796 = vector.extract_strided_slice %793 {offsets = [0, 1, 0], sizes = [10, 7, 128], strides = [1, 1, 1]} : vector<10x8x128xf32> to vector<10x7x128xf32>
    %797 = tpu.concatenate %796, %87 in 1 : vector<10x7x128xf32>, vector<10x1x128xf32> -> vector<10x8x128xf32>
    %798 = vector.extract_strided_slice %795 {offsets = [0, 0, 0], sizes = [8, 8, 128], strides = [1, 1, 1]} : vector<10x8x128xf32> to vector<8x8x128xf32>
    %799 = vector.broadcast %57 : vector<1x1x128xf32> to vector<8x8x128xf32>
    %800 = arith.mulf %798, %799 : vector<8x8x128xf32>
    %801 = arith.addf %790, %800 : vector<8x8x128xf32>
    %802 = vector.extract_strided_slice %795 {offsets = [1, 0, 0], sizes = [8, 8, 128], strides = [1, 1, 1]} : vector<10x8x128xf32> to vector<8x8x128xf32>
    %803 = vector.broadcast %66 : vector<1x1x128xf32> to vector<8x8x128xf32>
    %804 = arith.mulf %802, %803 : vector<8x8x128xf32>
    %805 = arith.addf %801, %804 : vector<8x8x128xf32>
    %806 = vector.extract_strided_slice %795 {offsets = [2, 0, 0], sizes = [8, 8, 128], strides = [1, 1, 1]} : vector<10x8x128xf32> to vector<8x8x128xf32>
    %807 = vector.broadcast %75 : vector<1x1x128xf32> to vector<8x8x128xf32>
    %808 = arith.mulf %806, %807 : vector<8x8x128xf32>
    %809 = arith.addf %805, %808 : vector<8x8x128xf32>
    %810 = vector.extract_strided_slice %793 {offsets = [0, 0, 0], sizes = [8, 8, 128], strides = [1, 1, 1]} : vector<10x8x128xf32> to vector<8x8x128xf32>
    %811 = vector.broadcast %60 : vector<1x1x128xf32> to vector<8x8x128xf32>
    %812 = arith.mulf %810, %811 : vector<8x8x128xf32>
    %813 = arith.addf %809, %812 : vector<8x8x128xf32>
    %814 = vector.extract_strided_slice %793 {offsets = [1, 0, 0], sizes = [8, 8, 128], strides = [1, 1, 1]} : vector<10x8x128xf32> to vector<8x8x128xf32>
    %815 = vector.broadcast %69 : vector<1x1x128xf32> to vector<8x8x128xf32>
    %816 = arith.mulf %814, %815 : vector<8x8x128xf32>
    %817 = arith.addf %813, %816 : vector<8x8x128xf32>
    %818 = vector.extract_strided_slice %793 {offsets = [2, 0, 0], sizes = [8, 8, 128], strides = [1, 1, 1]} : vector<10x8x128xf32> to vector<8x8x128xf32>
    %819 = vector.broadcast %78 : vector<1x1x128xf32> to vector<8x8x128xf32>
    %820 = arith.mulf %818, %819 : vector<8x8x128xf32>
    %821 = arith.addf %817, %820 : vector<8x8x128xf32>
    %822 = vector.extract_strided_slice %797 {offsets = [0, 0, 0], sizes = [8, 8, 128], strides = [1, 1, 1]} : vector<10x8x128xf32> to vector<8x8x128xf32>
    %823 = vector.broadcast %63 : vector<1x1x128xf32> to vector<8x8x128xf32>
    %824 = arith.mulf %822, %823 : vector<8x8x128xf32>
    %825 = arith.addf %821, %824 : vector<8x8x128xf32>
    %826 = vector.extract_strided_slice %797 {offsets = [1, 0, 0], sizes = [8, 8, 128], strides = [1, 1, 1]} : vector<10x8x128xf32> to vector<8x8x128xf32>
    %827 = vector.broadcast %72 : vector<1x1x128xf32> to vector<8x8x128xf32>
    %828 = arith.mulf %826, %827 : vector<8x8x128xf32>
    %829 = arith.addf %825, %828 : vector<8x8x128xf32>
    %830 = vector.extract_strided_slice %797 {offsets = [2, 0, 0], sizes = [8, 8, 128], strides = [1, 1, 1]} : vector<10x8x128xf32> to vector<8x8x128xf32>
    %831 = vector.broadcast %81 : vector<1x1x128xf32> to vector<8x8x128xf32>
    %832 = arith.mulf %830, %831 : vector<8x8x128xf32>
    %833 = arith.addf %829, %832 : vector<8x8x128xf32>
    %c0_108 = arith.constant 0 : index
    %c5_109 = arith.constant 5 : index
    %c0_110 = arith.constant 0 : index
    %c0_111 = arith.constant 0 : index
    %c0_112 = arith.constant 0 : index
    %834 = vector.load %arg5[%c0_108, %c5_109, %c0_110, %c0_111, %c0_112] : memref<1x8x8x8x128xf32, #tpu.memory_space<vmem>>, vector<1x1x8x8x128xf32>
    %835 = vector.shape_cast %834 : vector<1x1x8x8x128xf32> to vector<8x8x128xf32>
    %836 = vector.shape_cast %833 : vector<8x8x128xf32> to vector<1x1x8x8x128xf32>
    tpu.vector_store %arg5[%c0_108, %c5_109, %c0_110, %c0_111, %c0_112], %836 {strides = array<i32>} : memref<1x8x8x8x128xf32, #tpu.memory_space<vmem>>, vector<1x1x8x8x128xf32>,
    %c0_113 = arith.constant 0 : index
    %c5_114 = arith.constant 5 : index
    %c0_115 = arith.constant 0 : index
    %c0_116 = arith.constant 0 : index
    %c0_117 = arith.constant 0 : index
    %837 = vector.load %arg2[%c0_113, %c5_114, %c0_115, %c0_116, %c0_117] : memref<1x8x8x8x128xf32, #tpu.memory_space<vmem>>, vector<1x1x8x8x128xf32>
    %838 = vector.shape_cast %837 : vector<1x1x8x8x128xf32> to vector<8x8x128xf32>
    %839 = tpu.concatenate %86, %838, %86 in 0 : vector<1x8x128xf32>, vector<8x8x128xf32>, vector<1x8x128xf32> -> vector<10x8x128xf32>
    %840 = vector.extract_strided_slice %839 {offsets = [0, 0, 0], sizes = [10, 7, 128], strides = [1, 1, 1]} : vector<10x8x128xf32> to vector<10x7x128xf32>
    %841 = tpu.concatenate %87, %840 in 1 : vector<10x1x128xf32>, vector<10x7x128xf32> -> vector<10x8x128xf32>
    %842 = vector.extract_strided_slice %839 {offsets = [0, 1, 0], sizes = [10, 7, 128], strides = [1, 1, 1]} : vector<10x8x128xf32> to vector<10x7x128xf32>
    %843 = tpu.concatenate %842, %87 in 1 : vector<10x7x128xf32>, vector<10x1x128xf32> -> vector<10x8x128xf32>
    %844 = vector.extract_strided_slice %841 {offsets = [0, 0, 0], sizes = [8, 8, 128], strides = [1, 1, 1]} : vector<10x8x128xf32> to vector<8x8x128xf32>
    %845 = vector.broadcast %3 : vector<1x1x128xf32> to vector<8x8x128xf32>
    %846 = arith.mulf %844, %845 : vector<8x8x128xf32>
    %847 = arith.addf %85, %846 : vector<8x8x128xf32>
    %848 = vector.extract_strided_slice %841 {offsets = [1, 0, 0], sizes = [8, 8, 128], strides = [1, 1, 1]} : vector<10x8x128xf32> to vector<8x8x128xf32>
    %849 = vector.broadcast %12 : vector<1x1x128xf32> to vector<8x8x128xf32>
    %850 = arith.mulf %848, %849 : vector<8x8x128xf32>
    %851 = arith.addf %847, %850 : vector<8x8x128xf32>
    %852 = vector.extract_strided_slice %841 {offsets = [2, 0, 0], sizes = [8, 8, 128], strides = [1, 1, 1]} : vector<10x8x128xf32> to vector<8x8x128xf32>
    %853 = vector.broadcast %21 : vector<1x1x128xf32> to vector<8x8x128xf32>
    %854 = arith.mulf %852, %853 : vector<8x8x128xf32>
    %855 = arith.addf %851, %854 : vector<8x8x128xf32>
    %856 = vector.extract_strided_slice %839 {offsets = [0, 0, 0], sizes = [8, 8, 128], strides = [1, 1, 1]} : vector<10x8x128xf32> to vector<8x8x128xf32>
    %857 = vector.broadcast %6 : vector<1x1x128xf32> to vector<8x8x128xf32>
    %858 = arith.mulf %856, %857 : vector<8x8x128xf32>
    %859 = arith.addf %855, %858 : vector<8x8x128xf32>
    %860 = vector.extract_strided_slice %839 {offsets = [1, 0, 0], sizes = [8, 8, 128], strides = [1, 1, 1]} : vector<10x8x128xf32> to vector<8x8x128xf32>
    %861 = vector.broadcast %15 : vector<1x1x128xf32> to vector<8x8x128xf32>
    %862 = arith.mulf %860, %861 : vector<8x8x128xf32>
    %863 = arith.addf %859, %862 : vector<8x8x128xf32>
    %864 = vector.extract_strided_slice %839 {offsets = [2, 0, 0], sizes = [8, 8, 128], strides = [1, 1, 1]} : vector<10x8x128xf32> to vector<8x8x128xf32>
    %865 = vector.broadcast %24 : vector<1x1x128xf32> to vector<8x8x128xf32>
    %866 = arith.mulf %864, %865 : vector<8x8x128xf32>
    %867 = arith.addf %863, %866 : vector<8x8x128xf32>
    %868 = vector.extract_strided_slice %843 {offsets = [0, 0, 0], sizes = [8, 8, 128], strides = [1, 1, 1]} : vector<10x8x128xf32> to vector<8x8x128xf32>
    %869 = vector.broadcast %9 : vector<1x1x128xf32> to vector<8x8x128xf32>
    %870 = arith.mulf %868, %869 : vector<8x8x128xf32>
    %871 = arith.addf %867, %870 : vector<8x8x128xf32>
    %872 = vector.extract_strided_slice %843 {offsets = [1, 0, 0], sizes = [8, 8, 128], strides = [1, 1, 1]} : vector<10x8x128xf32> to vector<8x8x128xf32>
    %873 = vector.broadcast %18 : vector<1x1x128xf32> to vector<8x8x128xf32>
    %874 = arith.mulf %872, %873 : vector<8x8x128xf32>
    %875 = arith.addf %871, %874 : vector<8x8x128xf32>
    %876 = vector.extract_strided_slice %843 {offsets = [2, 0, 0], sizes = [8, 8, 128], strides = [1, 1, 1]} : vector<10x8x128xf32> to vector<8x8x128xf32>
    %877 = vector.broadcast %27 : vector<1x1x128xf32> to vector<8x8x128xf32>
    %878 = arith.mulf %876, %877 : vector<8x8x128xf32>
    %879 = arith.addf %875, %878 : vector<8x8x128xf32>
    %c0_118 = arith.constant 0 : index
    %c6_119 = arith.constant 6 : index
    %c0_120 = arith.constant 0 : index
    %c0_121 = arith.constant 0 : index
    %c0_122 = arith.constant 0 : index
    %880 = vector.load %arg2[%c0_118, %c6_119, %c0_120, %c0_121, %c0_122] : memref<1x8x8x8x128xf32, #tpu.memory_space<vmem>>, vector<1x1x8x8x128xf32>
    %881 = vector.shape_cast %880 : vector<1x1x8x8x128xf32> to vector<8x8x128xf32>
    %882 = tpu.concatenate %86, %881, %86 in 0 : vector<1x8x128xf32>, vector<8x8x128xf32>, vector<1x8x128xf32> -> vector<10x8x128xf32>
    %883 = vector.extract_strided_slice %882 {offsets = [0, 0, 0], sizes = [10, 7, 128], strides = [1, 1, 1]} : vector<10x8x128xf32> to vector<10x7x128xf32>
    %884 = tpu.concatenate %87, %883 in 1 : vector<10x1x128xf32>, vector<10x7x128xf32> -> vector<10x8x128xf32>
    %885 = vector.extract_strided_slice %882 {offsets = [0, 1, 0], sizes = [10, 7, 128], strides = [1, 1, 1]} : vector<10x8x128xf32> to vector<10x7x128xf32>
    %886 = tpu.concatenate %885, %87 in 1 : vector<10x7x128xf32>, vector<10x1x128xf32> -> vector<10x8x128xf32>
    %887 = vector.extract_strided_slice %884 {offsets = [0, 0, 0], sizes = [8, 8, 128], strides = [1, 1, 1]} : vector<10x8x128xf32> to vector<8x8x128xf32>
    %888 = vector.broadcast %30 : vector<1x1x128xf32> to vector<8x8x128xf32>
    %889 = arith.mulf %887, %888 : vector<8x8x128xf32>
    %890 = arith.addf %879, %889 : vector<8x8x128xf32>
    %891 = vector.extract_strided_slice %884 {offsets = [1, 0, 0], sizes = [8, 8, 128], strides = [1, 1, 1]} : vector<10x8x128xf32> to vector<8x8x128xf32>
    %892 = vector.broadcast %39 : vector<1x1x128xf32> to vector<8x8x128xf32>
    %893 = arith.mulf %891, %892 : vector<8x8x128xf32>
    %894 = arith.addf %890, %893 : vector<8x8x128xf32>
    %895 = vector.extract_strided_slice %884 {offsets = [2, 0, 0], sizes = [8, 8, 128], strides = [1, 1, 1]} : vector<10x8x128xf32> to vector<8x8x128xf32>
    %896 = vector.broadcast %48 : vector<1x1x128xf32> to vector<8x8x128xf32>
    %897 = arith.mulf %895, %896 : vector<8x8x128xf32>
    %898 = arith.addf %894, %897 : vector<8x8x128xf32>
    %899 = vector.extract_strided_slice %882 {offsets = [0, 0, 0], sizes = [8, 8, 128], strides = [1, 1, 1]} : vector<10x8x128xf32> to vector<8x8x128xf32>
    %900 = vector.broadcast %33 : vector<1x1x128xf32> to vector<8x8x128xf32>
    %901 = arith.mulf %899, %900 : vector<8x8x128xf32>
    %902 = arith.addf %898, %901 : vector<8x8x128xf32>
    %903 = vector.extract_strided_slice %882 {offsets = [1, 0, 0], sizes = [8, 8, 128], strides = [1, 1, 1]} : vector<10x8x128xf32> to vector<8x8x128xf32>
    %904 = vector.broadcast %42 : vector<1x1x128xf32> to vector<8x8x128xf32>
    %905 = arith.mulf %903, %904 : vector<8x8x128xf32>
    %906 = arith.addf %902, %905 : vector<8x8x128xf32>
    %907 = vector.extract_strided_slice %882 {offsets = [2, 0, 0], sizes = [8, 8, 128], strides = [1, 1, 1]} : vector<10x8x128xf32> to vector<8x8x128xf32>
    %908 = vector.broadcast %51 : vector<1x1x128xf32> to vector<8x8x128xf32>
    %909 = arith.mulf %907, %908 : vector<8x8x128xf32>
    %910 = arith.addf %906, %909 : vector<8x8x128xf32>
    %911 = vector.extract_strided_slice %886 {offsets = [0, 0, 0], sizes = [8, 8, 128], strides = [1, 1, 1]} : vector<10x8x128xf32> to vector<8x8x128xf32>
    %912 = vector.broadcast %36 : vector<1x1x128xf32> to vector<8x8x128xf32>
    %913 = arith.mulf %911, %912 : vector<8x8x128xf32>
    %914 = arith.addf %910, %913 : vector<8x8x128xf32>
    %915 = vector.extract_strided_slice %886 {offsets = [1, 0, 0], sizes = [8, 8, 128], strides = [1, 1, 1]} : vector<10x8x128xf32> to vector<8x8x128xf32>
    %916 = vector.broadcast %45 : vector<1x1x128xf32> to vector<8x8x128xf32>
    %917 = arith.mulf %915, %916 : vector<8x8x128xf32>
    %918 = arith.addf %914, %917 : vector<8x8x128xf32>
    %919 = vector.extract_strided_slice %886 {offsets = [2, 0, 0], sizes = [8, 8, 128], strides = [1, 1, 1]} : vector<10x8x128xf32> to vector<8x8x128xf32>
    %920 = vector.broadcast %54 : vector<1x1x128xf32> to vector<8x8x128xf32>
    %921 = arith.mulf %919, %920 : vector<8x8x128xf32>
    %922 = arith.addf %918, %921 : vector<8x8x128xf32>
    %c0_123 = arith.constant 0 : index
    %c7 = arith.constant 7 : index
    %c0_124 = arith.constant 0 : index
    %c0_125 = arith.constant 0 : index
    %c0_126 = arith.constant 0 : index
    %923 = vector.load %arg2[%c0_123, %c7, %c0_124, %c0_125, %c0_126] : memref<1x8x8x8x128xf32, #tpu.memory_space<vmem>>, vector<1x1x8x8x128xf32>
    %924 = vector.shape_cast %923 : vector<1x1x8x8x128xf32> to vector<8x8x128xf32>
    %925 = tpu.concatenate %86, %924, %86 in 0 : vector<1x8x128xf32>, vector<8x8x128xf32>, vector<1x8x128xf32> -> vector<10x8x128xf32>
    %926 = vector.extract_strided_slice %925 {offsets = [0, 0, 0], sizes = [10, 7, 128], strides = [1, 1, 1]} : vector<10x8x128xf32> to vector<10x7x128xf32>
    %927 = tpu.concatenate %87, %926 in 1 : vector<10x1x128xf32>, vector<10x7x128xf32> -> vector<10x8x128xf32>
    %928 = vector.extract_strided_slice %925 {offsets = [0, 1, 0], sizes = [10, 7, 128], strides = [1, 1, 1]} : vector<10x8x128xf32> to vector<10x7x128xf32>
    %929 = tpu.concatenate %928, %87 in 1 : vector<10x7x128xf32>, vector<10x1x128xf32> -> vector<10x8x128xf32>
    %930 = vector.extract_strided_slice %927 {offsets = [0, 0, 0], sizes = [8, 8, 128], strides = [1, 1, 1]} : vector<10x8x128xf32> to vector<8x8x128xf32>
    %931 = vector.broadcast %57 : vector<1x1x128xf32> to vector<8x8x128xf32>
    %932 = arith.mulf %930, %931 : vector<8x8x128xf32>
    %933 = arith.addf %922, %932 : vector<8x8x128xf32>
    %934 = vector.extract_strided_slice %927 {offsets = [1, 0, 0], sizes = [8, 8, 128], strides = [1, 1, 1]} : vector<10x8x128xf32> to vector<8x8x128xf32>
    %935 = vector.broadcast %66 : vector<1x1x128xf32> to vector<8x8x128xf32>
    %936 = arith.mulf %934, %935 : vector<8x8x128xf32>
    %937 = arith.addf %933, %936 : vector<8x8x128xf32>
    %938 = vector.extract_strided_slice %927 {offsets = [2, 0, 0], sizes = [8, 8, 128], strides = [1, 1, 1]} : vector<10x8x128xf32> to vector<8x8x128xf32>
    %939 = vector.broadcast %75 : vector<1x1x128xf32> to vector<8x8x128xf32>
    %940 = arith.mulf %938, %939 : vector<8x8x128xf32>
    %941 = arith.addf %937, %940 : vector<8x8x128xf32>
    %942 = vector.extract_strided_slice %925 {offsets = [0, 0, 0], sizes = [8, 8, 128], strides = [1, 1, 1]} : vector<10x8x128xf32> to vector<8x8x128xf32>
    %943 = vector.broadcast %60 : vector<1x1x128xf32> to vector<8x8x128xf32>
    %944 = arith.mulf %942, %943 : vector<8x8x128xf32>
    %945 = arith.addf %941, %944 : vector<8x8x128xf32>
    %946 = vector.extract_strided_slice %925 {offsets = [1, 0, 0], sizes = [8, 8, 128], strides = [1, 1, 1]} : vector<10x8x128xf32> to vector<8x8x128xf32>
    %947 = vector.broadcast %69 : vector<1x1x128xf32> to vector<8x8x128xf32>
    %948 = arith.mulf %946, %947 : vector<8x8x128xf32>
    %949 = arith.addf %945, %948 : vector<8x8x128xf32>
    %950 = vector.extract_strided_slice %925 {offsets = [2, 0, 0], sizes = [8, 8, 128], strides = [1, 1, 1]} : vector<10x8x128xf32> to vector<8x8x128xf32>
    %951 = vector.broadcast %78 : vector<1x1x128xf32> to vector<8x8x128xf32>
    %952 = arith.mulf %950, %951 : vector<8x8x128xf32>
    %953 = arith.addf %949, %952 : vector<8x8x128xf32>
    %954 = vector.extract_strided_slice %929 {offsets = [0, 0, 0], sizes = [8, 8, 128], strides = [1, 1, 1]} : vector<10x8x128xf32> to vector<8x8x128xf32>
    %955 = vector.broadcast %63 : vector<1x1x128xf32> to vector<8x8x128xf32>
    %956 = arith.mulf %954, %955 : vector<8x8x128xf32>
    %957 = arith.addf %953, %956 : vector<8x8x128xf32>
    %958 = vector.extract_strided_slice %929 {offsets = [1, 0, 0], sizes = [8, 8, 128], strides = [1, 1, 1]} : vector<10x8x128xf32> to vector<8x8x128xf32>
    %959 = vector.broadcast %72 : vector<1x1x128xf32> to vector<8x8x128xf32>
    %960 = arith.mulf %958, %959 : vector<8x8x128xf32>
    %961 = arith.addf %957, %960 : vector<8x8x128xf32>
    %962 = vector.extract_strided_slice %929 {offsets = [2, 0, 0], sizes = [8, 8, 128], strides = [1, 1, 1]} : vector<10x8x128xf32> to vector<8x8x128xf32>
    %963 = vector.broadcast %81 : vector<1x1x128xf32> to vector<8x8x128xf32>
    %964 = arith.mulf %962, %963 : vector<8x8x128xf32>
    %965 = arith.addf %961, %964 : vector<8x8x128xf32>
    %c0_127 = arith.constant 0 : index
    %c6_128 = arith.constant 6 : index
    %c0_129 = arith.constant 0 : index
    %c0_130 = arith.constant 0 : index
    %c0_131 = arith.constant 0 : index
    %966 = vector.load %arg5[%c0_127, %c6_128, %c0_129, %c0_130, %c0_131] : memref<1x8x8x8x128xf32, #tpu.memory_space<vmem>>, vector<1x1x8x8x128xf32>
    %967 = vector.shape_cast %966 : vector<1x1x8x8x128xf32> to vector<8x8x128xf32>
    %968 = vector.shape_cast %965 : vector<8x8x128xf32> to vector<1x1x8x8x128xf32>
    tpu.vector_store %arg5[%c0_127, %c6_128, %c0_129, %c0_130, %c0_131], %968 {strides = array<i32>} : memref<1x8x8x8x128xf32, #tpu.memory_space<vmem>>, vector<1x1x8x8x128xf32>,
    %c0_132 = arith.constant 0 : index
    %c6_133 = arith.constant 6 : index
    %c0_134 = arith.constant 0 : index
    %c0_135 = arith.constant 0 : index
    %c0_136 = arith.constant 0 : index
    %969 = vector.load %arg2[%c0_132, %c6_133, %c0_134, %c0_135, %c0_136] : memref<1x8x8x8x128xf32, #tpu.memory_space<vmem>>, vector<1x1x8x8x128xf32>
    %970 = vector.shape_cast %969 : vector<1x1x8x8x128xf32> to vector<8x8x128xf32>
    %971 = tpu.concatenate %86, %970, %86 in 0 : vector<1x8x128xf32>, vector<8x8x128xf32>, vector<1x8x128xf32> -> vector<10x8x128xf32>
    %972 = vector.extract_strided_slice %971 {offsets = [0, 0, 0], sizes = [10, 7, 128], strides = [1, 1, 1]} : vector<10x8x128xf32> to vector<10x7x128xf32>
    %973 = tpu.concatenate %87, %972 in 1 : vector<10x1x128xf32>, vector<10x7x128xf32> -> vector<10x8x128xf32>
    %974 = vector.extract_strided_slice %971 {offsets = [0, 1, 0], sizes = [10, 7, 128], strides = [1, 1, 1]} : vector<10x8x128xf32> to vector<10x7x128xf32>
    %975 = tpu.concatenate %974, %87 in 1 : vector<10x7x128xf32>, vector<10x1x128xf32> -> vector<10x8x128xf32>
    %976 = vector.extract_strided_slice %973 {offsets = [0, 0, 0], sizes = [8, 8, 128], strides = [1, 1, 1]} : vector<10x8x128xf32> to vector<8x8x128xf32>
    %977 = vector.broadcast %3 : vector<1x1x128xf32> to vector<8x8x128xf32>
    %978 = arith.mulf %976, %977 : vector<8x8x128xf32>
    %979 = arith.addf %85, %978 : vector<8x8x128xf32>
    %980 = vector.extract_strided_slice %973 {offsets = [1, 0, 0], sizes = [8, 8, 128], strides = [1, 1, 1]} : vector<10x8x128xf32> to vector<8x8x128xf32>
    %981 = vector.broadcast %12 : vector<1x1x128xf32> to vector<8x8x128xf32>
    %982 = arith.mulf %980, %981 : vector<8x8x128xf32>
    %983 = arith.addf %979, %982 : vector<8x8x128xf32>
    %984 = vector.extract_strided_slice %973 {offsets = [2, 0, 0], sizes = [8, 8, 128], strides = [1, 1, 1]} : vector<10x8x128xf32> to vector<8x8x128xf32>
    %985 = vector.broadcast %21 : vector<1x1x128xf32> to vector<8x8x128xf32>
    %986 = arith.mulf %984, %985 : vector<8x8x128xf32>
    %987 = arith.addf %983, %986 : vector<8x8x128xf32>
    %988 = vector.extract_strided_slice %971 {offsets = [0, 0, 0], sizes = [8, 8, 128], strides = [1, 1, 1]} : vector<10x8x128xf32> to vector<8x8x128xf32>
    %989 = vector.broadcast %6 : vector<1x1x128xf32> to vector<8x8x128xf32>
    %990 = arith.mulf %988, %989 : vector<8x8x128xf32>
    %991 = arith.addf %987, %990 : vector<8x8x128xf32>
    %992 = vector.extract_strided_slice %971 {offsets = [1, 0, 0], sizes = [8, 8, 128], strides = [1, 1, 1]} : vector<10x8x128xf32> to vector<8x8x128xf32>
    %993 = vector.broadcast %15 : vector<1x1x128xf32> to vector<8x8x128xf32>
    %994 = arith.mulf %992, %993 : vector<8x8x128xf32>
    %995 = arith.addf %991, %994 : vector<8x8x128xf32>
    %996 = vector.extract_strided_slice %971 {offsets = [2, 0, 0], sizes = [8, 8, 128], strides = [1, 1, 1]} : vector<10x8x128xf32> to vector<8x8x128xf32>
    %997 = vector.broadcast %24 : vector<1x1x128xf32> to vector<8x8x128xf32>
    %998 = arith.mulf %996, %997 : vector<8x8x128xf32>
    %999 = arith.addf %995, %998 : vector<8x8x128xf32>
    %1000 = vector.extract_strided_slice %975 {offsets = [0, 0, 0], sizes = [8, 8, 128], strides = [1, 1, 1]} : vector<10x8x128xf32> to vector<8x8x128xf32>
    %1001 = vector.broadcast %9 : vector<1x1x128xf32> to vector<8x8x128xf32>
    %1002 = arith.mulf %1000, %1001 : vector<8x8x128xf32>
    %1003 = arith.addf %999, %1002 : vector<8x8x128xf32>
    %1004 = vector.extract_strided_slice %975 {offsets = [1, 0, 0], sizes = [8, 8, 128], strides = [1, 1, 1]} : vector<10x8x128xf32> to vector<8x8x128xf32>
    %1005 = vector.broadcast %18 : vector<1x1x128xf32> to vector<8x8x128xf32>
    %1006 = arith.mulf %1004, %1005 : vector<8x8x128xf32>
    %1007 = arith.addf %1003, %1006 : vector<8x8x128xf32>
    %1008 = vector.extract_strided_slice %975 {offsets = [2, 0, 0], sizes = [8, 8, 128], strides = [1, 1, 1]} : vector<10x8x128xf32> to vector<8x8x128xf32>
    %1009 = vector.broadcast %27 : vector<1x1x128xf32> to vector<8x8x128xf32>
    %1010 = arith.mulf %1008, %1009 : vector<8x8x128xf32>
    %1011 = arith.addf %1007, %1010 : vector<8x8x128xf32>
    %c0_137 = arith.constant 0 : index
    %c7_138 = arith.constant 7 : index
    %c0_139 = arith.constant 0 : index
    %c0_140 = arith.constant 0 : index
    %c0_141 = arith.constant 0 : index
    %1012 = vector.load %arg2[%c0_137, %c7_138, %c0_139, %c0_140, %c0_141] : memref<1x8x8x8x128xf32, #tpu.memory_space<vmem>>, vector<1x1x8x8x128xf32>
    %1013 = vector.shape_cast %1012 : vector<1x1x8x8x128xf32> to vector<8x8x128xf32>
    %1014 = tpu.concatenate %86, %1013, %86 in 0 : vector<1x8x128xf32>, vector<8x8x128xf32>, vector<1x8x128xf32> -> vector<10x8x128xf32>
    %1015 = vector.extract_strided_slice %1014 {offsets = [0, 0, 0], sizes = [10, 7, 128], strides = [1, 1, 1]} : vector<10x8x128xf32> to vector<10x7x128xf32>
    %1016 = tpu.concatenate %87, %1015 in 1 : vector<10x1x128xf32>, vector<10x7x128xf32> -> vector<10x8x128xf32>
    %1017 = vector.extract_strided_slice %1014 {offsets = [0, 1, 0], sizes = [10, 7, 128], strides = [1, 1, 1]} : vector<10x8x128xf32> to vector<10x7x128xf32>
    %1018 = tpu.concatenate %1017, %87 in 1 : vector<10x7x128xf32>, vector<10x1x128xf32> -> vector<10x8x128xf32>
    %1019 = vector.extract_strided_slice %1016 {offsets = [0, 0, 0], sizes = [8, 8, 128], strides = [1, 1, 1]} : vector<10x8x128xf32> to vector<8x8x128xf32>
    %1020 = vector.broadcast %30 : vector<1x1x128xf32> to vector<8x8x128xf32>
    %1021 = arith.mulf %1019, %1020 : vector<8x8x128xf32>
    %1022 = arith.addf %1011, %1021 : vector<8x8x128xf32>
    %1023 = vector.extract_strided_slice %1016 {offsets = [1, 0, 0], sizes = [8, 8, 128], strides = [1, 1, 1]} : vector<10x8x128xf32> to vector<8x8x128xf32>
    %1024 = vector.broadcast %39 : vector<1x1x128xf32> to vector<8x8x128xf32>
    %1025 = arith.mulf %1023, %1024 : vector<8x8x128xf32>
    %1026 = arith.addf %1022, %1025 : vector<8x8x128xf32>
    %1027 = vector.extract_strided_slice %1016 {offsets = [2, 0, 0], sizes = [8, 8, 128], strides = [1, 1, 1]} : vector<10x8x128xf32> to vector<8x8x128xf32>
    %1028 = vector.broadcast %48 : vector<1x1x128xf32> to vector<8x8x128xf32>
    %1029 = arith.mulf %1027, %1028 : vector<8x8x128xf32>
    %1030 = arith.addf %1026, %1029 : vector<8x8x128xf32>
    %1031 = vector.extract_strided_slice %1014 {offsets = [0, 0, 0], sizes = [8, 8, 128], strides = [1, 1, 1]} : vector<10x8x128xf32> to vector<8x8x128xf32>
    %1032 = vector.broadcast %33 : vector<1x1x128xf32> to vector<8x8x128xf32>
    %1033 = arith.mulf %1031, %1032 : vector<8x8x128xf32>
    %1034 = arith.addf %1030, %1033 : vector<8x8x128xf32>
    %1035 = vector.extract_strided_slice %1014 {offsets = [1, 0, 0], sizes = [8, 8, 128], strides = [1, 1, 1]} : vector<10x8x128xf32> to vector<8x8x128xf32>
    %1036 = vector.broadcast %42 : vector<1x1x128xf32> to vector<8x8x128xf32>
    %1037 = arith.mulf %1035, %1036 : vector<8x8x128xf32>
    %1038 = arith.addf %1034, %1037 : vector<8x8x128xf32>
    %1039 = vector.extract_strided_slice %1014 {offsets = [2, 0, 0], sizes = [8, 8, 128], strides = [1, 1, 1]} : vector<10x8x128xf32> to vector<8x8x128xf32>
    %1040 = vector.broadcast %51 : vector<1x1x128xf32> to vector<8x8x128xf32>
    %1041 = arith.mulf %1039, %1040 : vector<8x8x128xf32>
    %1042 = arith.addf %1038, %1041 : vector<8x8x128xf32>
    %1043 = vector.extract_strided_slice %1018 {offsets = [0, 0, 0], sizes = [8, 8, 128], strides = [1, 1, 1]} : vector<10x8x128xf32> to vector<8x8x128xf32>
    %1044 = vector.broadcast %36 : vector<1x1x128xf32> to vector<8x8x128xf32>
    %1045 = arith.mulf %1043, %1044 : vector<8x8x128xf32>
    %1046 = arith.addf %1042, %1045 : vector<8x8x128xf32>
    %1047 = vector.extract_strided_slice %1018 {offsets = [1, 0, 0], sizes = [8, 8, 128], strides = [1, 1, 1]} : vector<10x8x128xf32> to vector<8x8x128xf32>
    %1048 = vector.broadcast %45 : vector<1x1x128xf32> to vector<8x8x128xf32>
    %1049 = arith.mulf %1047, %1048 : vector<8x8x128xf32>
    %1050 = arith.addf %1046, %1049 : vector<8x8x128xf32>
    %1051 = vector.extract_strided_slice %1018 {offsets = [2, 0, 0], sizes = [8, 8, 128], strides = [1, 1, 1]} : vector<10x8x128xf32> to vector<8x8x128xf32>
    %1052 = vector.broadcast %54 : vector<1x1x128xf32> to vector<8x8x128xf32>
    %1053 = arith.mulf %1051, %1052 : vector<8x8x128xf32>
    %1054 = arith.addf %1050, %1053 : vector<8x8x128xf32>
    %c0_142 = arith.constant 0 : index
    %c7_143 = arith.constant 7 : index
    %c0_144 = arith.constant 0 : index
    %c0_145 = arith.constant 0 : index
    %c0_146 = arith.constant 0 : index
    %1055 = vector.load %arg5[%c0_142, %c7_143, %c0_144, %c0_145, %c0_146] : memref<1x8x8x8x128xf32, #tpu.memory_space<vmem>>, vector<1x1x8x8x128xf32>
    %1056 = vector.shape_cast %1055 : vector<1x1x8x8x128xf32> to vector<8x8x128xf32>
    %1057 = vector.shape_cast %1054 : vector<8x8x128xf32> to vector<1x1x8x8x128xf32>
    tpu.vector_store %arg5[%c0_142, %c7_143, %c0_144, %c0_145, %c0_146], %1057 {strides = array<i32>} : memref<1x8x8x8x128xf32, #tpu.memory_space<vmem>>, vector<1x1x8x8x128xf32>,
    return
  }
  func.func @transform_0(%arg0: i32, %arg1: i32) -> (i32, i32, i32, i32, i32) {
    %c0_i32 = arith.constant 0 : i32
    %c0_i32_0 = arith.constant 0 : i32
    %c0_i32_1 = arith.constant 0 : i32
    %c0_i32_2 = arith.constant 0 : i32
    return %arg0, %c0_i32, %c0_i32_0, %c0_i32_1, %arg1 : i32, i32, i32, i32, i32
  }
  func.func @transform_1(%arg0: i32, %arg1: i32) -> (i32, i32) {
    %c0_i32 = arith.constant 0 : i32
    %c0_i32_0 = arith.constant 0 : i32
    return %c0_i32, %arg1 : i32, i32
  }
  func.func @transform_2(%arg0: i32, %arg1: i32) -> (i32, i32) {
    %c0_i32 = arith.constant 0 : i32
    %c0_i32_0 = arith.constant 0 : i32
    return %c0_i32, %arg1 : i32, i32
  }
  func.func @transform_3(%arg0: i32, %arg1: i32) -> (i32, i32, i32, i32, i32) {
    %c0_i32 = arith.constant 0 : i32
    %c0_i32_0 = arith.constant 0 : i32
    %c0_i32_1 = arith.constant 0 : i32
    %c0_i32_2 = arith.constant 0 : i32
    return %arg0, %c0_i32, %c0_i32_0, %c0_i32_1, %arg1 : i32, i32, i32, i32, i32
  }
}

</mosaic_0001>

<bundles_post_ra>
// kernel: tpu_custom_call.1
= control target key start
LH: loop header
LB: loop body
LE: loop exit
PB: predicated region body
PF: predicated region fallthrough
CT: control target
= control target key end

     0   :  { %s12425_s0 = inlined_call_operand.hbm [shape: f32[2,8,8,8,256], index: 0, kind: input, shape index: {}]   ;;  %s12426_s1 = inlined_call_operand.hbm [shape: f32[27,256], index: 1, kind: input, shape index: {}]   ;;  %s12427_s2 = inlined_call_operand.vmem [shape: f32[1,256], index: 2, kind: input, shape index: {}]   ;;  %s12428_s3 = inlined_call_operand.hbm [shape: f32[2,8,8,8,256], index: 3, kind: output, shape index: {}]  }
   0x1   :  { %12982 = sst [smem:[#allocation105_spill]] %s12428_s3 }
   0x2   :  { %8 = vsyncpa [#allocation3], 0 }
   0x3   :  { %10 = vsyncpa [#allocation3 + $0x1], 0 }
   0x4   :  { %11 = vsyncpa [#allocation6], 0 }
   0x5   :  { %13 = vsyncpa [#allocation6 + $0x1], 0 }
   0x6   :  { %14 = vsyncpa [#allocation4], 0 }
   0x7   :  { %16 = vsyncpa [#allocation4 + $0x1], 0  ;;  %s5638_s12 = smov 0   ;;  %s5640_s13 = smov 0  }
   0x8   :  { %s5642_s14 = smov 0   ;;  %s5644_s15 = smov 0  }
   0x9   :  { %s5646_s16 = smov 0   ;;  %s5648_s17 = smov 0  }
   0xa   :  { %s5650_s18 = smov 0   ;;  %s5652_s19 = smov 0  }
   0xb   :  { %s5654_s20 = smov 0   ;;  %s5656_s21 = smov 0  }
   0xc   :  { %s5658_s22 = smov 0  }
   0xd LB: > { %12983 = sst [smem:[#allocation11_spill]] %s5578_s15  ;;  %s5056_s23 = sadd.s32 4294967295, %s5606_s22   ;;  %s5606_s22 = sphi %s5658_s22, %s22_s22   ;;  %s5602_s21 = sphi %s5656_s21, %s14377_s21   ;;  %s5598_s20 = sphi %s5654_s20, %s14376_s20   ;;  %s5594_s19 = sphi %s5652_s19, %s14375_s19   ;;  %s5590_s18 = sphi %s5650_s18, %s14374_s18   ;;  %s5586_s17 = sphi %s5648_s17, %s14373_s17   ;;  %s5582_s16 = sphi %s5646_s16, %s14372_s16   ;;  %s5578_s15 = sphi %s5644_s15, %s14371_s15   ;;  %s5574_s14 = sphi %s5642_s14, %s14370_s14   ;;  %s5570_s13 = sphi %s5640_s13, %s14369_s13   ;;  %s5566_s12 = sphi %s5638_s12, %s14368_s12  }
   0xe   : > { %12984 = sst [smem:[#allocation12_spill]] %s5594_s19  ;;  %s5057_s24 = sadd.s32 4294967294, %s5606_s22  }
   0xf   : > { %s31_s25 = sadd.s32 1, %s5598_s20  ;;  %s34_s26 = sadd.s32 1, %s5602_s21 }
  0x10   : > { %p32_p0 = scmp.ge.s32.totalorder %s31_s25, 2  ;;  %s43_s27 = sadd.s32 1, %s5586_s17 }
  0x11   : > { %p50_p1 = scmp.ne.s32.totalorder %s5586_s17, %s5582_s16  ;;  %p12433_p2 = scmp.eq.s32.totalorder %s5606_s22, 0 }
  0x12   : > { %s14379_s25 = smov (%p32_p0, %s31_s25), 0  ;;  %s14381_s26 = smov (!%p32_p0, %s34_s26), %s5602_s21 }
  0x13   : > { %12985 = sst [smem:[#allocation13_spill]] %s14379_s25  ;;  %s5706_s28 = ssub.s32 %s5598_s20, %s14379_s25 }
  0x14   : > { %p5713_p3 = por %p12433_p2, %p50_p1  ;;  %p36_p4 = scmp.ge.s32.totalorder %s14381_s26, 2 }
  0x15   : > { %p56_p5 = scmp.ne.s32.totalorder %s5582_s16, %s5578_s15  ;;  %p5719_p6 = scmp.eq.s32.totalorder %s5056_s23, 0 }
  0x16   : > { %s14383_s26 = smov (%p36_p4, %s14381_s26), 0  ;;  %p134_p9 = scmp.eq.s32.totalorder %s5056_s23, 3 }
  0x17   : > { %12988 = sst [smem:[#allocation14_spill]] %s14383_s26  ;;  %p5728_p8 = por %p5719_p6, %p56_p5 }
  0x18   : > { %s38_s5 = ssub.s32 %s5602_s21, %s14383_s26  ;;  %p140_p10 = scmp.eq.s32.totalorder %s5057_s24, 3 }
  0x19   : > { %s40_s6 = sor.u32 %s5706_s28, %s38_s5  ;;  %p5738_p11 = por %p134_p9, %p50_p1 }
  0x1a   : > { %p41_p12 = scmp.eq.s32.totalorder %s40_s6, 0  ;;  %p5742_p13 = por %p140_p10, %p56_p5 }
  0x1b   : > { %p5308_p0 = scmp.lt.s32.totalorder %s5606_s22, 4  ;;  %s160_s10 = sand.u32 1, %s5586_s17  }
  0x1c   : > { %s12991_s8 = scalar_select %p5742_p13, 1, 0 }
  0x1d   : > { %s5748_s9 = scalar_select %p41_p12, %s5586_s17, %s43_s27  }
  0x1e   : > { %s5061_s11 = sshll.u32 %s5602_s21, 7  ;;  %s5060_s23 = sshll.u32 %s160_s10, 9 }
  0x1f   : > { %s169_s24 = sadd.s32 %s5598_s20, %s5061_s11  ;;  %s164_s5 = scalar_lea.vmem [#allocation2], %s5060_s23 }
  0x20   : > { %s5062_s26 = sshll.u32 %s169_s24, 7  ;;  %s172_s25 = sshll.u32 %s164_s5, 4  ;;  %s173_s25 = int_to_ptr.vmem [resolvable:$true] %s172_s25 }
  0x21   : > { %s171_s19 = scalar_lea.hbm %s12425_s0, %s5062_s26  ;;  %p5760_p1 = pnand %p5308_p0, %p5713_p3 }
  0x22   : > { %p5065_p4 = scmp.ge.s32.totalorder %s5606_s22, 1  ;;  %s161_s27 = scalar_lea.sflag [#allocation3], %s160_s10 }
  0x23   : > { %p5428_p5 = pneg %p5760_p1  ;;  %s5439_s11 = scalar_lea.vmem %s173_s25, 8192 }
  0x24   : > { %p5440_p9 = scmp.ne.s32.totalorder %s173_s25, %s5439_s11  ;;  %s5608_s23 = smov [#allocation2]  }
  0x25   : > { %s5444_s24 = sshll.u32 %s5608_s23, 4  ;;  %s5445_s24 = int_to_ptr.vmem [resolvable:$false] %s5444_s24 }
  0x26   : > { %p5442_p10 = pnand %p5440_p9, %p5428_p5  ;;  %s5446_s3 = scalar_lea.vmem %s5445_s24, 16384 }
  0x27   : > { %p5447_p2 = scmp.lt.s32.totalorder %s173_s25, %s5445_s24  ;;  %p5448_p7 = scmp.lt.s32.totalorder %s5446_s3, %s5439_s11 }
  0x28   : > { %p5443_p12 = pneg %p5442_p10 }
  0x29   : > { %p5449_p13 = por %p5448_p7, %p5447_p2 }
  0x2b   : > { %p5450_p3 = pnand %p5449_p13, %p5443_p12 }
  0x2d   : > { %5453 = shalt.err (!%p5450_p3)
}
  0x2e   : > { %s12434_s15 = smov 256   ;;  %s12435_s26 = smov 128  }
  0x2f   : > { %s12436_s29 = smov 8   ;;  %p206_p2 = scmp.lt.s32.totalorder %s5606_s22, 5 }
  0x30   : > { %5300 = dma.hbm_to_vmem [thread:$0]  (!%p5760_p1), %s171_s19, 8192, %s173_s25, %s161_s27, %s12434_s15, %s12435_s26, %s12436_s29  }
  0x31   : > { %p5775_p7 = pnand %p5065_p4, %p206_p2  ;;  %s69_s5 = sadd.s32 1, %s5574_s14 }
  0x32   : > { %p76_p13 = scmp.ne.s32.totalorder %s5574_s14, %s5570_s13  ;;  %p12994_p5 = scmp.eq.s32.totalorder %s5706_s28, 0 }
  0x33   : > { %p12995_p9 = scmp.eq.s32.totalorder %s5606_s22, 0  ;;  %p82_p12 = scmp.ne.s32.totalorder %s5570_s13, %s5566_s12 }
  0x34   : > { %s5785_s11 = scalar_select %p12994_p5, %s5574_s14, %s69_s5  }
  0x35   : > { %p78_p10 = por %p76_p13, %p12995_p9  ;;  %s182_s23 = sand.u32 1, %s5574_s14  }
  0x36   : > { %s5064_s6 = sshll.u32 %s5598_s20, 7  ;;  %p5795_p3 = por %p82_p12, %p5719_p6 }
  0x37   : > { %s5063_s19 = sshll.u32 %s182_s23, 5  ;;  %s191_s3 = scalar_lea.hbm %s12426_s1, %s5064_s6 }
  0x38   : > { %p5804_p1 = pnand %p5308_p0, %p78_p10  ;;  %s186_s5 = scalar_lea.vmem [#allocation5], %s5063_s19 }
  0x39   : > { %s192_s12 = sshll.u32 %s186_s5, 4  ;;  %s183_s15 = scalar_lea.sflag [#allocation6], %s182_s23  ;;  %s193_s12 = int_to_ptr.vmem [resolvable:$true] %s192_s12 }
  0x3a   : > { %p5456_p6 = pneg %p5804_p1  ;;  %s5467_s30 = scalar_lea.vmem %s193_s12, 512 }
  0x3b   : > { %p5468_p4 = scmp.ne.s32.totalorder %s193_s12, %s5467_s30  ;;  %s5612_s26 = smov [#allocation5]  }
  0x3c   : > { %s5472_s29 = sshll.u32 %s5612_s26, 4  ;;  %s5473_s29 = int_to_ptr.vmem [resolvable:$false] %s5472_s29 }
  0x3d   : > { %p5470_p2 = pnand %p5468_p4, %p5456_p6  ;;  %s5474_s6 = scalar_lea.vmem %s5473_s29, 1024 }
  0x3e   : > { %p5475_p5 = scmp.lt.s32.totalorder %s193_s12, %s5473_s29  ;;  %p5476_p0 = scmp.lt.s32.totalorder %s5474_s6, %s5467_s30 }
  0x3f   : > { %p5471_p13 = pneg %p5470_p2 }
  0x40   : > { %p5477_p9 = por %p5476_p0, %p5475_p5 }
  0x42   : > { %p5478_p10 = pnand %p5477_p9, %p5471_p13 }
  0x44   : > { %5481 = shalt.err (!%p5478_p10)
}
  0x45   : > { %s12998_s19 = smov 8   ;;  %s12999_s25 = smov 128  }
  0x46   : > { %s13000_s23 = smov 256   ;;  %210 = sbr.rel (%p5775_p7) target bundleno = 1048 (0x418), region = 32 }
  0x47   : > { %5303 = dma.hbm_to_vmem [thread:$0]  (!%p5804_p1), %s191_s3, 512, %s193_s12, %s183_s15, %s13000_s23, %s12999_s25, %s12998_s19  }
  0x4b   : > { %s5818_s27 = sand.u32 1, %s5582_s16  }
  0x4c   : > { %s5066_s26 = sshll.u32 %s5818_s27, 9  ;;  %s213_s29 = scalar_lea.sflag [#allocation3], %s5818_s27 }
  0x4d   : > { %s5824_s5 = scalar_lea.vmem [#allocation2], %s5066_s26 }
  0x4e   : > { %5553 = dma.done.wait (%p5728_p8), %s213_s29, 8192  }
  0x4f   : > { %5555 = vsyncadd (%p5728_p8), %s213_s29, 4294959104  ;;  %s221_s15 = sand.u32 1, %s5570_s13  }
  0x50   : > { %s5067_s10 = sshll.u32 %s221_s15, 5  ;;  %s222_s3 = scalar_lea.sflag [#allocation6], %s221_s15 }
  0x51   : > { %s5831_s28 = scalar_lea.vmem [#allocation5], %s5067_s10 }
  0x52   : > { %5557 = dma.done.wait (%p5795_p3), %s222_s3, 512  }
  0x53   : > { %5559 = vsyncadd (%p5795_p3), %s222_s3, 4294966784  ;;  %p256_p7 = scmp.lt.s32.totalorder %s5590_s18, 1  ;;  %v343_v0 = vlaneseq  ;;  %v5613_v2 = vmov 0.0   ;;  %vm305_vm0 = vcmask 1040384   ;;  %v5844_v6 = vld [vmem:[%s5831_s28 + $0x8] sm:$0xff]  ;;  %v5854_v8 = vld [vmem:[%s5824_s5] sm:$0xff] }
  0x54   : > { %v287_v3 = vrot.slane %v5613_v2, 7  ;;  %13002 = vst [vmem:[#allocation16_spill] sm:$0xff] %v5854_v8  ;;  %v5867_v12 = vld [vmem:[%s5824_s5 + $0x8] sm:$0xff]  ;;  %v288_v13 = vrot.slane %v5854_v8, 7  ;;  %v5889_v20 = vld [vmem:[%s5831_s28 + $0x10] sm:$0xff]  ;;  %v315_v28 = vrot.slane %v5613_v2, 1 }
  0x55   : > { %s257_s4 = scalar_select %p256_p7, %s5590_s18, 1  ;;  %v344_v1 = vshrl.u32 %v343_v0, 7  ;;  %13005 = vst [vmem:[#allocation19_spill] sm:$0xff] %v5867_v12  ;;  %v289_v16 = vrot.slane %v5867_v12, 7  ;;  %vm333_vm1 = vcmask 1046528   ;;  %v316_v31 = vrot.slane %v5854_v8, 1 }
  0x56   : > { %v5871_v14 = vsel %vm305_vm0, 0.0, %v287_v3  ;;  %v5895_v22 = vsel %vm305_vm0, 0.0, %v288_v13  ;;  %v317_v35 = vrot.slane %v5867_v12, 1  ;;  %v5921_v37 = vld [vmem:[%s5824_s5 + $0x40] sm:$0xff]  ;;  %v5930_v41 = vld [vmem:[%s5824_s5 + $0x48] sm:$0xff]  ;;  %v5933_v42 = vsel %vm333_vm1, %v315_v28, 0.0 }
  0x57   : > { %v5839_v4 = vsub.s32 1, %v344_v1  ;;  %v5841_v5 = vsub.s32 4, %v344_v1  ;;  %v5846_v7 = vsub.s32 7, %v344_v1  ;;  %s5851_s30 = scalar_lea.vmem %s12427_s2, %s257_s4  ;;  %v5864_v11 = vsub.s32 2, %v344_v1  ;;  %13006 = vst [vmem:[#allocation20_spill] sm:$0xff] %v5871_v14  ;;  %13015 = vst [vmem:[#allocation29_spill] sm:$0xff] %v5921_v37 }
  0x58   : > { %v5886_v19 = vsub.s32 5, %v344_v1  ;;  %v5892_v21 = vld [vmem:[%s5851_s30] ss:$0 sm:$0xff]  ;;  %v445_v23 = vsub.s32 0, %v344_v1  ;;  %v5898_v24 = vsel %vm305_vm0, 0.0, %v289_v16  ;;  %v5910_v30 = vsub.s32 3, %v344_v1 }
  0x59   : > { %13001 = vst [vmem:[#allocation15_spill] sm:$0xff] %v5846_v7  ;;  %v5858_v9 = vrot.slane %v5844_v6, %v5839_v4  ;;  %v5862_v10 = vrot.slane %v5844_v6, %v5841_v5  ;;  %v5875_v15 = vrot.slane %v5844_v6, %v5846_v7  ;;  %v5884_v18 = vrot.slane %v5844_v6, %v5864_v11  ;;  %v262_v46 = vld [vmem:[%s5831_s28 + $0x18] sm:$0x7]  ;;  %v5983_v63 = vld [vmem:[%s5831_s28] sm:$0xff]  ;;  %v5996_v13 = vld [vmem:[%s5824_s5 + $0x10] sm:$0xff]  ;;  %s6195_s6 = scalar_lea.vmem [#allocation7], %s5066_s26 }
  0x5a   : > { %13010 = vst [vmem:[#allocation24_spill] sm:$0xff] %v5886_v19  ;;  %13011 = vst [vmem:[#allocation25_spill] sm:$0xff] %v5898_v24  ;;  %v5906_v27 = vrot.slane %v5844_v6, %v5886_v19  ;;  %v5917_v34 = vrot.slane %v5889_v20, %v445_v23  ;;  %v485_v36 = vsub.s32 6, %v344_v1  ;;  %v5927_v40 = vrot.slane %v5844_v6, %v5910_v30  ;;  %s14358_s19 = sld [smem:[#allocation12_spill]]  ;;  %s4936_s29 = sshll.u32 %s6195_s6, 4  ;;  %s12361_s29 = int_to_ptr.vmem [resolvable:$true] %s4936_s29 }
  0x5b   : > { %13003 = vst [vmem:[#allocation17_spill] sm:$0xff] %v5858_v9  ;;  %13004 = vst [vmem:[#allocation18_spill] sm:$0xff] %v5862_v10  ;;  %v5880_v17 = vmul.f32 %v5858_v9, %v5871_v14  ;;  %v367_v26 = vmul.f32 %v5862_v10, %v5895_v22  ;;  %v387_v29 = vmul.f32 %v5875_v15, %v5898_v24  ;;  %v5914_v33 = vmul.f32 0.0, %v5884_v18  ;;  %s14362_s10 = sld [smem:[#allocation105_spill]]  ;;  %s5482_s28 = scalar_lea.vmem %s12361_s29, 8192 }
  0x5c   : > { %13007 = vst [vmem:[#allocation21_spill] sm:$0xff] %v5875_v15  ;;  %13009 = vst [vmem:[#allocation23_spill] sm:$0xff] %v5884_v18  ;;  %v427_v39 = vmul.f32 %v5906_v27, %v5854_v8  ;;  %v5937_v43 = vmul.f32 %v5875_v15, %v5871_v14  ;;  %v5940_v44 = vrot.slane %v5844_v6, %v485_v36  ;;  %v5948_v47 = vsel %vm333_vm1, %v316_v31, 0.0  ;;  %p5483_p8 = scmp.ne.s32.totalorder %s12361_s29, %s5482_s28  ;;  %s5614_s4 = smov [#allocation7]  }
  0x5d   : > { %13008 = vst [vmem:[#allocation22_spill] sm:$0xff] %v5880_v17  ;;  %v355_v25 = vadd.f32 %v5892_v21, %v5880_v17  ;;  %13012 = vst [vmem:[#allocation26_spill] sm:$0xff] %v5906_v27  ;;  %v5944_v45 = vrot.slane %v5889_v20, %v5839_v4  ;;  %v447_v49 = vmul.f32 %v5917_v34, %v5867_v12  ;;  %v540_v50 = vrot.slane %v5921_v37, 7  ;;  %s5486_s24 = sshll.u32 %s5614_s4, 4  ;;  %s5487_s24 = int_to_ptr.vmem [resolvable:$false] %s5486_s24 }
  0x5e   : > { %13013 = vst [vmem:[#allocation27_spill] sm:$0xff] %v5914_v33  ;;  %13014 = vst [vmem:[#allocation28_spill] sm:$0xff] %v5917_v34  ;;  %v5955_v51 = vsel %vm333_vm1, %v317_v35, 0.0  ;;  %v541_v52 = vrot.slane %v5930_v41, 7  ;;  %v564_v53 = vrot.slane %v5921_v37, 1  ;;  %v565_v54 = vrot.slane %v5930_v41, 1  ;;  %p5484_p12 = pnand %p5483_p8, %p5738_p11  ;;  %p5489_p1 = scmp.lt.s32.totalorder %s12361_s29, %s5487_s24 }
  0x5f   : > { %v375_v32 = vadd.f32 %v367_v26, %v355_v25  ;;  %13016 = vst [vmem:[#allocation30_spill] sm:$0xff] %v5927_v40  ;;  %13017 = vst [vmem:[#allocation31_spill] sm:$0xff] %v5930_v41  ;;  %v5962_v56 = vmul.f32 %v5927_v40, %v5933_v42  ;;  %v5966_v57 = vrot.slane %v5889_v20, %v5864_v11  ;;  %v5986_v1 = vsel %vm305_vm0, 0.0, %v540_v50  ;;  %s5488_s12 = scalar_lea.vmem %s5487_s24, 16384 }
  0x60   : > { %13018 = vst [vmem:[#allocation32_spill] sm:$0xff] %v5933_v42  ;;  %13019 = vst [vmem:[#allocation33_spill] sm:$0xff] %v5937_v43  ;;  %v5970_v58 = vrot.slane %v5889_v20, %v5886_v19  ;;  %v487_v59 = vmul.f32 %v5940_v44, %v5948_v47  ;;  %v507_v60 = vmul.f32 %v5944_v45, %v5955_v51  ;;  %v5999_v16 = vsel %vm305_vm0, 0.0, %v541_v52  ;;  %s5287_s25 = sshll.u32 %s14358_s19, 7  ;;  %p5485_p3 = pneg %p5484_p12 }
  0x61   : > { %v395_v38 = vadd.f32 %v387_v29, %v375_v32  ;;  %13020 = vst [vmem:[#allocation34_spill] sm:$0xff] %v5940_v44  ;;  %13021 = vst [vmem:[#allocation35_spill] sm:$0xff] %v5944_v45  ;;  %v5978_v61 = vmul.f32 %v5944_v45, %v5933_v42  ;;  %v5980_v62 = vrot.slane %v262_v46, %v445_v23  ;;  %v6002_v25 = vsel %vm333_vm1, %v564_v53, 0.0  ;;  %s4933_s23 = sadd.s32 %s5590_s18, %s5287_s25  ;;  %s4922_s18 = scalar_lea.sflag [#allocation4], %s5818_s27 }
  0x62   : > { %13022 = vst [vmem:[#allocation36_spill] sm:$0xff] %v5948_v47  ;;  %13023 = vst [vmem:[#allocation37_spill] sm:$0xff] %v5955_v51  ;;  %v5990_v2 = vrot.slane %v5889_v20, %v5910_v30  ;;  %v5993_v3 = vrot.slane %v5889_v20, %v485_v36  ;;  %v6005_v26 = vsel %vm333_vm1, %v565_v54, 0.0  ;;  %v6008_v28 = vrot.slane %v262_v46, %v5839_v4  ;;  %s5288_s26 = sshll.u32 %s4933_s23, 7  ;;  %p5490_p6 = scmp.lt.s32.totalorder %s5488_s12, %s5482_s28 }
  0x63   : > { %v415_v48 = vadd.f32 %v5914_v33, %v395_v38  ;;  %13024 = vst [vmem:[#allocation38_spill] sm:$0xff] %v5962_v56  ;;  %13025 = vst [vmem:[#allocation39_spill] sm:$0xff] %v5966_v57  ;;  %v6013_v31 = vmul.f32 %v5966_v57, %v5871_v14  ;;  %v612_v32 = vmul.f32 %v5970_v58, %v5986_v1  ;;  %s12359_s3 = scalar_lea.hbm %s14362_s10, %s5288_s26 }
  0x64   : > { %13026 = vst [vmem:[#allocation40_spill] sm:$0xff] %v5978_v61  ;;  %13027 = vst [vmem:[#allocation41_spill] sm:$0xff] %v5980_v62  ;;  %v6019_v35 = vrot.slane %v5889_v20, %v5841_v5  ;;  %v632_v38 = vmul.f32 %v5980_v62, %v5999_v16  ;;  %v6031_v52 = vmul.f32 0.0, %v5990_v2  ;;  %v672_v53 = vmul.f32 %v5921_v37, %v5993_v3  ;;  %p5491_p4 = por %p5490_p6, %p5489_p1 }
  0x65   : > { %v435_v55 = vadd.f32 %v427_v39, %v415_v48  ;;  %13028 = vst [vmem:[#allocation42_spill] sm:$0xff] %v5983_v63  ;;  %13029 = vst [vmem:[#allocation43_spill] sm:$0xff] %v5986_v1  ;;  %v6024_v39 = vrot.slane %v5983_v63, %v445_v23  ;;  %v6027_v48 = vrot.slane %v5844_v6, %v445_v23 }
  0x66   : > { %13030 = vst [vmem:[#allocation44_spill] sm:$0xff] %v5990_v2  ;;  %13031 = vst [vmem:[#allocation45_spill] sm:$0xff] %v5993_v3  ;;  %v348_v54 = vmul.f32 %v5858_v9, %v5895_v22  ;;  %v368_v23 = vmul.f32 %v5862_v10, %v5898_v24  ;;  %v6056_v17 = vmul.f32 %v6019_v35, %v5933_v42  ;;  %p5492_p2 = pnand %p5491_p4, %p5485_p3 }
  0x67   : > { %v455_v0 = vadd.f32 %v447_v49, %v435_v55  ;;  %13032 = vst [vmem:[#allocation46_spill] sm:$0xff] %v5996_v13  ;;  %13033 = vst [vmem:[#allocation47_spill] sm:$0xff] %v5999_v16  ;;  %v290_v49 = vrot.slane %v5996_v13, 7  ;;  %v692_v55 = vmul.f32 %v5930_v41, %v6008_v28  ;;  %v408_v61 = vmul.f32 %v5884_v18, %v5854_v8  ;;  %v6090_v8 = vld [vmem:[%s5824_s5 + $0x18] sm:$0xff] }
  0x68   : > { %13034 = vst [vmem:[#allocation48_spill] sm:$0xff] %v6002_v25  ;;  %13035 = vst [vmem:[#allocation49_spill] sm:$0xff] %v6005_v26 }
  0x69   : > { %13036 = vst [vmem:[#allocation50_spill] sm:$0xff] %v6008_v28  ;;  %v475_v29 = vadd.f32 %v5962_v56, %v455_v0  ;;  %13037 = vst [vmem:[#allocation51_spill] sm:$0xff] %v6013_v31  ;;  %v6041_v0 = vrot.slane %v5889_v20, %v5846_v7  ;;  %v6044_v6 = vsel %vm305_vm0, 0.0, %v290_v49  ;;  %v356_v56 = vadd.f32 %v5892_v21, %v348_v54 }
  0x6a   : > { %13038 = vst [vmem:[#allocation52_spill] sm:$0xff] %v6019_v35  ;;  %13039 = vst [vmem:[#allocation53_spill] sm:$0xff] %v6024_v39  ;;  %v388_v33 = vmul.f32 %v5875_v15, %v6044_v6  ;;  %v844_v20 = vmul.f32 %v6024_v39, %v5871_v14  ;;  %v6061_v49 = vrot.slane %v5983_v63, %v485_v36 }
  0x6b   : > { %13040 = vst [vmem:[#allocation54_spill] sm:$0xff] %v6027_v48  ;;  %v495_v50 = vadd.f32 %v487_v59, %v475_v29  ;;  %13041 = vst [vmem:[#allocation55_spill] sm:$0xff] %v6031_v52  ;;  %v6049_v29 = vrot.slane %v262_v46, %v5864_v11  ;;  %v6065_v46 = vrot.slane %v5983_v63, %v5864_v11 }
  0x6c   : > { %13042 = vst [vmem:[#allocation56_spill] sm:$0xff] %v6041_v0  ;;  %13043 = vst [vmem:[#allocation57_spill] sm:$0xff] %v6044_v6  ;;  %v376_v54 = vadd.f32 %v368_v23, %v356_v56  ;;  %v732_v19 = vmul.f32 %v6041_v0, %v6002_v25  ;;  %v6075_v36 = vrot.slane %v5983_v63, %v5910_v30 }
  0x6d   : > { %v515_v59 = vadd.f32 %v507_v60, %v495_v50  ;;  %13044 = vst [vmem:[#allocation58_spill] sm:$0xff] %v6049_v29  ;;  %13045 = vst [vmem:[#allocation59_spill] sm:$0xff] %v6056_v17  ;;  %v318_v50 = vrot.slane %v5996_v13, 1  ;;  %v6079_v11 = vrot.slane %v5983_v63, %v5839_v4  ;;  %v752_v56 = vmul.f32 %v6049_v29, %v6005_v26 }
  0x6e   : > { %13046 = vst [vmem:[#allocation60_spill] sm:$0xff] %v6061_v49  ;;  %13047 = vst [vmem:[#allocation61_spill] sm:$0xff] %v6065_v46  ;;  %v396_v23 = vadd.f32 %v388_v33, %v376_v54  ;;  %v428_v39 = vmul.f32 %v5906_v27, %v5867_v12  ;;  %v6093_v30 = vadd.f32 %v5892_v21, %v844_v20  ;;  %v6108_v33 = vld [vmem:[%s5824_s5 + $0x50] sm:$0xff] }
  0x6f   : > { %v600_v60 = vadd.f32 %v6013_v31, %v515_v59  ;;  %13048 = vst [vmem:[#allocation62_spill] sm:$0xff] %v6075_v36  ;;  %13049 = vst [vmem:[#allocation63_spill] sm:$0xff] %v6079_v11  ;;  %v6083_v59 = vrot.slane %v5983_v63, %v5841_v5  ;;  %v6097_v4 = vmul.f32 %v6061_v49, %v5871_v14  ;;  %v6111_v54 = vsel %vm333_vm1, %v318_v50, 0.0 }
  0x70   : > { %13051 = vst [vmem:[#allocation65_spill] sm:$0xff] %v6090_v8  ;;  %13052 = vst [vmem:[#allocation66_spill] sm:$0xff] %v6093_v30  ;;  %v6101_v5 = vmul.f32 %v6065_v46, %v5933_v42  ;;  %v416_v20 = vadd.f32 %v408_v61, %v396_v23  ;;  %v291_v46 = vrot.slane %v6090_v8, 7  ;;  %v488_v61 = vmul.f32 %v5940_v44, %v5955_v51 }
  0x71   : > { %13050 = vst [vmem:[#allocation64_spill] sm:$0xff] %v6083_v59  ;;  %v620_v31 = vadd.f32 %v612_v32, %v600_v60  ;;  %13053 = vst [vmem:[#allocation67_spill] sm:$0xff] %v6097_v4  ;;  %v6105_v32 = vmul.f32 %v6027_v48, %v5933_v42  ;;  %v448_v59 = vmul.f32 %v5917_v34, %v5996_v13  ;;  %v542_v50 = vrot.slane %v6108_v33, 7 }
  0x72   : > { %13054 = vst [vmem:[#allocation68_spill] sm:$0xff] %v6101_v5  ;;  %13056 = vst [vmem:[#allocation70_spill] sm:$0xff] %v6108_v33  ;;  %v468_v4 = vmul.f32 %v5927_v40, %v5948_v47  ;;  %v349_v5 = vmul.f32 %v5858_v9, %v5898_v24  ;;  %v508_v23 = vmul.f32 %v5944_v45, %v6111_v54  ;;  %v566_v48 = vrot.slane %v6108_v33, 1 }
  0x73   : > { %13055 = vst [vmem:[#allocation69_spill] sm:$0xff] %v6105_v32  ;;  %v640_v60 = vadd.f32 %v632_v38, %v620_v31  ;;  %13057 = vst [vmem:[#allocation71_spill] sm:$0xff] %v6111_v54  ;;  %v369_v32 = vmul.f32 %v5862_v10, %v6044_v6  ;;  %v436_v38 = vadd.f32 %v428_v39, %v416_v20  ;;  %v6130_v47 = vsel %vm305_vm0, 0.0, %v291_v46 }
  0x74   : > { %13058 = vst [vmem:[#allocation72_spill] sm:$0xff] %v6130_v47  ;;  %v357_v42 = vadd.f32 %v5892_v21, %v349_v5  ;;  %v593_v39 = vmul.f32 %v5966_v57, %v5986_v1  ;;  %v613_v20 = vmul.f32 %v5970_v58, %v5999_v16  ;;  %v409_v46 = vmul.f32 %v5884_v18, %v5867_v12 }
  0x75   : > { %v660_v31 = vadd.f32 %v6031_v52, %v640_v60  ;;  %v456_v63 = vadd.f32 %v448_v59, %v436_v38  ;;  %v389_v60 = vmul.f32 %v5875_v15, %v6130_v47  ;;  %v653_v52 = vmul.f32 %v5921_v37, %v5990_v2 }
  0x76   : > { %v377_v7 = vadd.f32 %v369_v32, %v357_v42  ;;  %v6144_v59 = vsel %vm305_vm0, 0.0, %v542_v50  ;;  %v6148_v38 = vsel %vm333_vm1, %v566_v48, 0.0  ;;  %v673_v1 = vmul.f32 %v5930_v41, %v5993_v3 }
  0x77   : > { %v680_v14 = vadd.f32 %v672_v53, %v660_v31  ;;  %v476_v53 = vadd.f32 %v468_v4, %v456_v63  ;;  %13059 = vst [vmem:[#allocation73_spill] sm:$0xff] %v6144_v59  ;;  %v319_v31 = vrot.slane %v6090_v8, 1  ;;  %13060 = vst [vmem:[#allocation74_spill] sm:$0xff] %v6148_v38  ;;  %v429_v42 = vmul.f32 %v5906_v27, %v5996_v13  ;;  %v6160_v4 = vld [vmem:[%s5824_s5 + $0x20] sm:$0xff] }
  0x78   : > { %v397_v11 = vadd.f32 %v389_v60, %v377_v7  ;;  %v633_v63 = vmul.f32 %v5980_v62, %v6144_v59  ;;  %13061 = vst [vmem:[#allocation75_spill] sm:$0xff] %v6160_v4  ;;  %v6164_v48 = vmul.f32 %v6019_v35, %v6002_v25  ;;  %v6168_v7 = vmul.f32 %v6041_v0, %v6005_v26  ;;  %v6173_v60 = vld [vmem:[%s5824_s5 + $0x58] sm:$0xff] }
  0x79   : > { %v700_v5 = vadd.f32 %v692_v55, %v680_v14  ;;  %v496_v14 = vadd.f32 %v488_v61, %v476_v53  ;;  %v693_v55 = vmul.f32 %v6108_v33, %v6008_v28  ;;  %v449_v61 = vmul.f32 %v5917_v34, %v6090_v8  ;;  %13062 = vst [vmem:[#allocation76_spill] sm:$0xff] %v6173_v60 }
  0x7a   : > { %v417_v50 = vadd.f32 %v409_v46, %v397_v11  ;;  %v469_v25 = vmul.f32 %v5927_v40, %v5955_v51  ;;  %v489_v12 = vmul.f32 %v5940_v44, %v6111_v54  ;;  %v292_v11 = vrot.slane %v6160_v4, 7 }
  0x7b   : > { %v720_v32 = vadd.f32 %v6056_v17, %v700_v5  ;;  %v516_v53 = vadd.f32 %v508_v23, %v496_v14  ;;  %v6176_v17 = vsel %vm333_vm1, %v319_v31, 0.0  ;;  %v350_v46 = vmul.f32 %v5858_v9, %v6044_v6 }
  0x7c   : > { %13063 = vst [vmem:[#allocation77_spill] sm:$0xff] %v6176_v17  ;;  %v437_v37 = vadd.f32 %v429_v42, %v417_v50  ;;  %v370_v23 = vmul.f32 %v5862_v10, %v6130_v47  ;;  %v6190_v42 = vsel %vm305_vm0, 0.0, %v292_v11  ;;  %v509_v50 = vmul.f32 %v5944_v45, %v6176_v17 }
  0x7d   : > { %v740_v5 = vadd.f32 %v732_v19, %v720_v32  ;;  %v601_v49 = vadd.f32 %v593_v39, %v516_v53  ;;  %v543_v19 = vrot.slane %v6173_v60, 7  ;;  %v567_v32 = vrot.slane %v6173_v60, 1  ;;  %13064 = vst [vmem:[#allocation78_spill] sm:$0xff] %v6190_v42 }
  0x7e   : > { %v457_v31 = vadd.f32 %v449_v61, %v437_v37  ;;  %v358_v14 = vadd.f32 %v5892_v21, %v350_v46  ;;  %v753_v39 = vmul.f32 %v6049_v29, %v6148_v38  ;;  %v390_v37 = vmul.f32 %v5875_v15, %v6190_v42 }
  0x7f   : > { %v760_v30 = vadd.f32 %v752_v56, %v740_v5  ;;  %v621_v56 = vadd.f32 %v613_v20, %v601_v49  ;;  %v594_v5 = vmul.f32 %v5966_v57, %v5999_v16  ;;  %v410_v11 = vmul.f32 %v5884_v18, %v5996_v13  ;;  %v6227_v13 = vld [vmem:[%s5824_s5 + $0x28] sm:$0xff]  ;;  %v6243_v16 = vld [vmem:[%s5824_s5 + $0x60] sm:$0xff] }
  0x80   : > { %v477_v61 = vadd.f32 %v469_v25, %v457_v31  ;;  %v378_v53 = vadd.f32 %v370_v23, %v358_v14  ;;  %v6209_v49 = vsel %vm305_vm0, 0.0, %v543_v19  ;;  %v614_v20 = vmul.f32 %v5970_v58, %v6144_v59  ;;  %13067 = vst [vmem:[#allocation81_spill] sm:$0xff] %v6227_v13  ;;  %13068 = vst [vmem:[#allocation82_spill] sm:$0xff] %v6243_v16 }
  0x81   : > { %768 = vst [vmem:[%s6195_s6] sm:$0xff] %v760_v30  ;;  %v641_v30 = vadd.f32 %v633_v63, %v621_v56  ;;  %13065 = vst [vmem:[#allocation79_spill] sm:$0xff] %v6209_v49  ;;  %v654_v46 = vmul.f32 %v5930_v41, %v5990_v2  ;;  %v6216_v25 = vsel %vm333_vm1, %v567_v32, 0.0  ;;  %v430_v23 = vmul.f32 %v5906_v27, %v6090_v8 }
  0x82   : > { %v497_v6 = vadd.f32 %v489_v12, %v477_v61  ;;  %13066 = vst [vmem:[#allocation80_spill] sm:$0xff] %v6216_v25  ;;  %v398_v31 = vadd.f32 %v390_v37, %v378_v53  ;;  %v634_v63 = vmul.f32 %v5980_v62, %v6209_v49  ;;  %v674_v19 = vmul.f32 %v6108_v33, %v5993_v3 }
  0x83   : > { %v661_v14 = vadd.f32 %v653_v52, %v641_v30  ;;  %v694_v56 = vmul.f32 %v6173_v60, %v6008_v28  ;;  %v714_v32 = vmul.f32 %v6019_v35, %v6005_v26  ;;  %v450_v61 = vmul.f32 %v5917_v34, %v6160_v4 }
  0x84   : > { %v517_v12 = vadd.f32 %v509_v50, %v497_v6  ;;  %v418_v37 = vadd.f32 %v410_v11, %v398_v31  ;;  %v6235_v53 = vmul.f32 %v6041_v0, %v6148_v38  ;;  %v6239_v30 = vmul.f32 %v6049_v29, %v6216_v25 }
  0x85   : > { %v681_v52 = vadd.f32 %v673_v1, %v661_v14  ;;  %v320_v41 = vrot.slane %v6160_v4, 1  ;;  %v470_v11 = vmul.f32 %v5927_v40, %v6111_v54  ;;  %v293_v31 = vrot.slane %v6227_v13, 7 }
  0x86   : > { %v602_v6 = vadd.f32 %v594_v5, %v517_v12  ;;  %v438_v50 = vadd.f32 %v430_v23, %v418_v37  ;;  %v490_v14 = vmul.f32 %v5940_v44, %v6176_v17  ;;  %v351_v26 = vmul.f32 %v5858_v9, %v6130_v47 }
  0x87   : > { %v701_v1 = vadd.f32 %v693_v55, %v681_v52  ;;  %v371_v51 = vmul.f32 %v5862_v10, %v6190_v42  ;;  %v544_v5 = vrot.slane %v6243_v16, 7  ;;  %v6256_v23 = vsel %vm305_vm0, 0.0, %v293_v31 }
  0x88   : > { %v622_v24 = vadd.f32 %v614_v20, %v602_v6  ;;  %v458_v36 = vadd.f32 %v450_v61, %v438_v50  ;;  %13069 = vst [vmem:[#allocation83_spill] sm:$0xff] %v6256_v23  ;;  %v6260_v55 = vsel %vm333_vm1, %v320_v41, 0.0  ;;  %v359_v37 = vadd.f32 %v5892_v21, %v351_v26 }
  0x89   : > { %v721_v12 = vadd.f32 %v6164_v48, %v701_v1  ;;  %13070 = vst [vmem:[#allocation84_spill] sm:$0xff] %v6260_v55  ;;  %v391_v52 = vmul.f32 %v5875_v15, %v6256_v23  ;;  %v510_v20 = vmul.f32 %v5944_v45, %v6260_v55  ;;  %v568_v61 = vrot.slane %v6243_v16, 1 }
  0x8a   : > { %v642_v47 = vadd.f32 %v634_v63, %v622_v24  ;;  %v478_v54 = vadd.f32 %v470_v11, %v458_v36  ;;  %v595_v48 = vmul.f32 %v5966_v57, %v6144_v59  ;;  %v379_v41 = vadd.f32 %v371_v51, %v359_v37  ;;  %v6294_v37 = vld [vmem:[%s5824_s5 + $0x30] sm:$0xff] }
  0x8b   : > { %v741_v6 = vadd.f32 %v6168_v7, %v721_v12  ;;  %v411_v26 = vmul.f32 %v5884_v18, %v6090_v8  ;;  %v6274_v24 = vsel %vm305_vm0, 0.0, %v544_v5  ;;  %v615_v36 = vmul.f32 %v5970_v58, %v6209_v49  ;;  %13073 = vst [vmem:[#allocation87_spill] sm:$0xff] %v6294_v37 }
  0x8c   : > { %v662_v50 = vadd.f32 %v654_v46, %v642_v47  ;;  %v498_v31 = vadd.f32 %v490_v14, %v478_v54  ;;  %13071 = vst [vmem:[#allocation85_spill] sm:$0xff] %v6274_v24  ;;  %v321_v7 = vrot.slane %v6227_v13, 1  ;;  %v399_v11 = vadd.f32 %v391_v52, %v379_v41 }
  0x8d   : > { %v761_v63 = vadd.f32 %v753_v39, %v741_v6  ;;  %v431_v51 = vmul.f32 %v5906_v27, %v6160_v4  ;;  %v6282_v47 = vsel %vm333_vm1, %v568_v61, 0.0  ;;  %v655_v54 = vmul.f32 %v6108_v33, %v5990_v2  ;;  %v6301_v6 = vld [vmem:[%s5824_s5 + $0x68] sm:$0xff] }
  0x8e   : > { %v682_v1 = vadd.f32 %v674_v19, %v662_v50  ;;  %v518_v12 = vadd.f32 %v510_v20, %v498_v31  ;;  %13072 = vst [vmem:[#allocation86_spill] sm:$0xff] %v6282_v47  ;;  %v635_v46 = vmul.f32 %v5980_v62, %v6274_v24  ;;  %v675_v39 = vmul.f32 %v6173_v60, %v5993_v3 }
  0x8f   : > { %769 = vst [vmem:[%s6195_s6 + $0x8] sm:$0xff] %v761_v63  ;;  %v419_v14 = vadd.f32 %v411_v26, %v399_v11  ;;  %v451_v5 = vmul.f32 %v5917_v34, %v6227_v13  ;;  %v695_v20 = vmul.f32 %v6243_v16, %v6008_v28  ;;  %v715_v61 = vmul.f32 %v6019_v35, %v6148_v38 }
  0x90   : > { %v702_v19 = vadd.f32 %v694_v56, %v682_v1  ;;  %v603_v52 = vadd.f32 %v595_v48, %v518_v12  ;;  %13074 = vst [vmem:[#allocation88_spill] sm:$0xff] %v6301_v6  ;;  %v735_v41 = vmul.f32 %v6041_v0, %v6216_v25  ;;  %v6306_v26 = vsel %vm333_vm1, %v321_v7, 0.0 }
  0x91   : > { %13075 = vst [vmem:[#allocation89_spill] sm:$0xff] %v6306_v26  ;;  %v439_v50 = vadd.f32 %v431_v51, %v419_v14  ;;  %v471_v31 = vmul.f32 %v5927_v40, %v6176_v17  ;;  %v491_v63 = vmul.f32 %v5940_v44, %v6260_v55  ;;  %v294_v11 = vrot.slane %v6294_v37, 7 }
  0x92   : > { %v722_v56 = vadd.f32 %v714_v32, %v702_v19  ;;  %v623_v48 = vadd.f32 %v615_v36, %v603_v52  ;;  %v545_v12 = vrot.slane %v6301_v6, 7  ;;  %v352_v8 = vmul.f32 %v5858_v9, %v6190_v42 }
  0x93   : > { %v459_v1 = vadd.f32 %v451_v5, %v439_v50  ;;  %v372_v7 = vmul.f32 %v5862_v10, %v6256_v23  ;;  %v569_v32 = vrot.slane %v6301_v6, 1  ;;  %v6321_v36 = vsel %vm305_vm0, 0.0, %v294_v11 }
  0x94   : > { %v742_v51 = vadd.f32 %v6235_v53, %v722_v56  ;;  %v643_v14 = vadd.f32 %v635_v46, %v623_v48  ;;  %13076 = vst [vmem:[#allocation90_spill] sm:$0xff] %v6321_v36  ;;  %v511_v5 = vmul.f32 %v5944_v45, %v6306_v26  ;;  %v360_v52 = vadd.f32 %v5892_v21, %v352_v8 }
  0x95   : > { %v479_v19 = vadd.f32 %v471_v31, %v459_v1  ;;  %v392_v50 = vmul.f32 %v5875_v15, %v6321_v36  ;;  %v755_v53 = vmul.f32 %v6049_v29, %v6282_v47  ;;  %v596_v46 = vmul.f32 %v5966_v57, %v6209_v49 }
  0x96   : > { %v762_v42 = vadd.f32 %v6239_v30, %v742_v51  ;;  %v663_v17 = vadd.f32 %v655_v54, %v643_v14  ;;  %v6334_v31 = vsel %vm305_vm0, 0.0, %v545_v12  ;;  %v380_v48 = vadd.f32 %v372_v7, %v360_v52 }
  0x97   : > { %v499_v56 = vadd.f32 %v491_v63, %v479_v19  ;;  %13077 = vst [vmem:[#allocation91_spill] sm:$0xff] %v6334_v31  ;;  %v412_v8 = vmul.f32 %v5884_v18, %v6160_v4  ;;  %v6340_v30 = vsel %vm333_vm1, %v569_v32, 0.0  ;;  %v616_v54 = vmul.f32 %v5970_v58, %v6274_v24  ;;  %v6357_v32 = vld [vmem:[%s5824_s5 + $0x38] sm:$0xff] }
  0x98   : > { %770 = vst [vmem:[%s6195_s6 + $0x10] sm:$0xff] %v762_v42  ;;  %v683_v11 = vadd.f32 %v675_v39, %v663_v17  ;;  %13078 = vst [vmem:[#allocation92_spill] sm:$0xff] %v6340_v30  ;;  %v636_v63 = vmul.f32 %v5980_v62, %v6334_v31  ;;  %v656_v12 = vmul.f32 %v6173_v60, %v5990_v2 }
  0x99   : > { %v519_v1 = vadd.f32 %v511_v5, %v499_v56  ;;  %v400_v7 = vadd.f32 %v392_v50, %v380_v48  ;;  %v432_v51 = vmul.f32 %v5906_v27, %v6227_v13  ;;  %v676_v17 = vmul.f32 %v6243_v16, %v5993_v3  ;;  %13079 = vst [vmem:[#allocation93_spill] sm:$0xff] %v6357_v32 }
  0x9a   : > { %v703_v42 = vadd.f32 %v695_v20, %v683_v11  ;;  %v696_v39 = vmul.f32 %v6301_v6, %v6008_v28  ;;  %v716_v14 = vmul.f32 %v6019_v35, %v6216_v25  ;;  %v736_v5 = vmul.f32 %v6041_v0, %v6282_v47  ;;  %v6364_v20 = vld [vmem:[%s5824_s5 + $0x70] sm:$0xff] }
  0x9b   : > { %v604_v19 = vadd.f32 %v596_v46, %v519_v1  ;;  %v420_v52 = vadd.f32 %v412_v8, %v400_v7  ;;  %v452_v50 = vmul.f32 %v5917_v34, %v6294_v37  ;;  %13080 = vst [vmem:[#allocation94_spill] sm:$0xff] %v6364_v20  ;;  %v756_v48 = vmul.f32 %v6049_v29, %v6340_v30 }
  0x9c   : > { %v723_v56 = vadd.f32 %v715_v61, %v703_v42  ;;  %v322_v11 = vrot.slane %v6294_v37, 1  ;;  %v472_v4 = vmul.f32 %v5927_v40, %v6260_v55  ;;  %v492_v1 = vmul.f32 %v5940_v44, %v6306_v26 }
  0x9d   : > { %v624_v25 = vadd.f32 %v616_v54, %v604_v19  ;;  %v440_v46 = vadd.f32 %v432_v51, %v420_v52  ;;  %v295_v8 = vrot.slane %v6357_v32, 7  ;;  %v546_v60 = vrot.slane %v6364_v20, 7 }
  0x9e   : > { %v743_v7 = vadd.f32 %v735_v41, %v723_v56  ;;  %v353_v61 = vmul.f32 %v5858_v9, %v6256_v23  ;;  %v373_v42 = vmul.f32 %v5862_v10, %v6321_v36  ;;  %v570_v54 = vrot.slane %v6364_v20, 1 }
  0x9f   : > { %v644_v49 = vadd.f32 %v636_v63, %v624_v25  ;;  %v460_v38 = vadd.f32 %v452_v50, %v440_v46  ;;  %v6381_v51 = vsel %vm305_vm0, 0.0, %v295_v8  ;;  %v6384_v52 = vsel %vm333_vm1, %v322_v11, 0.0 }
  0xa0   : > { %13081 = vst [vmem:[#allocation95_spill] sm:$0xff] %v6381_v51  ;;  %v763_v19 = vadd.f32 %v755_v53, %v743_v7  ;;  %13082 = vst [vmem:[#allocation96_spill] sm:$0xff] %v6384_v52  ;;  %v361_v41 = vadd.f32 %v5892_v21, %v353_v61  ;;  %v393_v56 = vmul.f32 %v5875_v15, %v6381_v51 }
  0xa1   : > { %v664_v23 = vadd.f32 %v656_v12, %v644_v49  ;;  %v480_v55 = vadd.f32 %v472_v4, %v460_v38  ;;  %v512_v25 = vmul.f32 %v5944_v45, %v6384_v52  ;;  %v597_v63 = vmul.f32 %v5966_v57, %v6274_v24 }
  0xa2   : > { %771 = vst [vmem:[%s6195_s6 + $0x18] sm:$0xff] %v763_v19  ;;  %v617_v53 = vmul.f32 %v5970_v58, %v6334_v31  ;;  %v657_v50 = vmul.f32 %v6243_v16, %v5990_v2  ;;  %v381_v11 = vadd.f32 %v373_v42, %v361_v41  ;;  %v413_v46 = vmul.f32 %v5884_v18, %v6227_v13  ;;  %v6413_v19 = vld [vmem:[%s5824_s5 + $0x78] sm:$0xff] }
  0xa3   : > { %v684_v49 = vadd.f32 %v676_v17, %v664_v23  ;;  %v500_v38 = vadd.f32 %v492_v1, %v480_v55  ;;  %v6401_v4 = vsel %vm305_vm0, 0.0, %v546_v60  ;;  %v6404_v12 = vsel %vm333_vm1, %v570_v54, 0.0  ;;  %13085 = vst [vmem:[#allocation99_spill] sm:$0xff] %v6413_v19 }
  0xa4   : > { %13083 = vst [vmem:[#allocation97_spill] sm:$0xff] %v6401_v4  ;;  %13084 = vst [vmem:[#allocation98_spill] sm:$0xff] %v6404_v12  ;;  %v637_v8 = vmul.f32 %v5980_v62, %v6401_v4  ;;  %v677_v7 = vmul.f32 %v6301_v6, %v5993_v3  ;;  %v401_v61 = vadd.f32 %v393_v56, %v381_v11  ;;  %v323_v17 = vrot.slane %v6357_v32, 1 }
  0xa5   : > { %v433_v42 = vmul.f32 %v5906_v27, %v6294_v37  ;;  %v704_v23 = vadd.f32 %v696_v39, %v684_v49  ;;  %v520_v55 = vadd.f32 %v512_v25, %v500_v38  ;;  %v697_v60 = vmul.f32 %v6364_v20, %v6008_v28 }
  0xa6   : > { %v717_v1 = vmul.f32 %v6019_v35, %v6282_v47  ;;  %v737_v54 = vmul.f32 %v6041_v0, %v6340_v30  ;;  %v421_v41 = vadd.f32 %v413_v46, %v401_v61  ;;  %v453_v56 = vmul.f32 %v5917_v34, %v6357_v32 }
  0xa7   : > { %v724_v11 = vadd.f32 %v716_v14, %v704_v23  ;;  %v605_v13 = vadd.f32 %v597_v63, %v520_v55  ;;  %v6426_v39 = vmul.f32 %v6049_v29, %v6404_v12  ;;  %v547_v25 = vrot.slane %v6413_v19, 7 }
  0xa8   : > { %v441_v49 = vadd.f32 %v433_v42, %v421_v41  ;;  %v473_v38 = vmul.f32 %v5927_v40, %v6306_v26  ;;  %v354_v47 = vmul.f32 %v5858_v9, %v6321_v36  ;;  %v374_v46 = vmul.f32 %v5862_v10, %v6381_v51 }
  0xa9   : > { %v744_v61 = vadd.f32 %v736_v5, %v724_v11  ;;  %v625_v14 = vadd.f32 %v617_v53, %v605_v13  ;;  %v6436_v63 = vsel %vm333_vm1, %v323_v17, 0.0  ;;  %v571_v23 = vrot.slane %v6413_v19, 1 }
  0xaa   : > { %13086 = vst [vmem:[#allocation100_spill] sm:$0xff] %v6436_v63  ;;  %v461_v55 = vadd.f32 %v453_v56, %v441_v49  ;;  %v493_v42 = vmul.f32 %v5940_v44, %v6384_v52  ;;  %v513_v41 = vmul.f32 %v5944_v45, %v6436_v63  ;;  %v362_v36 = vadd.f32 %v5892_v21, %v354_v47 }
  0xab   : > { %v764_v26 = vadd.f32 %v756_v48, %v744_v61  ;;  %v645_v16 = vadd.f32 %v637_v8, %v625_v14  ;;  %v6445_v5 = vsel %vm305_vm0, 0.0, %v547_v25  ;;  %v598_v13 = vmul.f32 %v5966_v57, %v6334_v31  ;;  %v13090_v14 = vld [vmem:[#allocation25_spill] sm:$0xff]  ;;  %v13097_v31 = vld [vmem:[#allocation42_spill] sm:$0xff] }
  0xac   : > { %13087 = vst [vmem:[#allocation101_spill] sm:$0xff] %v6445_v5  ;;  %v481_v53 = vadd.f32 %v473_v38, %v461_v55  ;;  %v618_v17 = vmul.f32 %v5970_v58, %v6401_v4  ;;  %v382_v56 = vadd.f32 %v374_v46, %v362_v36  ;;  %v414_v11 = vmul.f32 %v5884_v18, %v6294_v37 }
  0xad   : > { %772 = vst [vmem:[%s6195_s6 + $0x20] sm:$0xff] %v764_v26  ;;  %v665_v49 = vadd.f32 %v657_v50, %v645_v16  ;;  %v6455_v47 = vsel %vm333_vm1, %v571_v23, 0.0  ;;  %v638_v48 = vmul.f32 %v5980_v62, %v6445_v5  ;;  %v658_v8 = vmul.f32 %v6301_v6, %v5990_v2  ;;  %v13089_v50 = vld [vmem:[#allocation62_spill] sm:$0xff]  ;;  %v13091_v23 = vld [vmem:[#allocation60_spill] sm:$0xff]  ;;  %v13096_v6 = vld [vmem:[#allocation15_spill] sm:$0xff] }
  0xae   : > { %13088 = vst [vmem:[#allocation102_spill] sm:$0xff] %v6455_v47  ;;  %v501_v25 = vadd.f32 %v493_v42, %v481_v53  ;;  %v678_v38 = vmul.f32 %v6364_v20, %v5993_v3  ;;  %v402_v36 = vadd.f32 %v5937_v43, %v382_v56  ;;  %v434_v46 = vmul.f32 %v5906_v27, %v6357_v32  ;;  %v13093_v32 = vld [vmem:[#allocation66_spill] sm:$0xff] }
  0xaf   : > { %v685_v26 = vadd.f32 %v677_v7, %v665_v49  ;;  %v698_v16 = vmul.f32 %v6413_v19, %v6008_v28  ;;  %v864_v61 = vmul.f32 %v13089_v50, %v5895_v22  ;;  %v884_v55 = vmul.f32 %v13091_v23, %v13090_v14  ;;  %v13094_v49 = vld [vmem:[#allocation63_spill] sm:$0xff] }
  0xb0   : > { %v521_v51 = vadd.f32 %v513_v41, %v501_v25  ;;  %v718_v42 = vmul.f32 %v6019_v35, %v6340_v30  ;;  %v422_v53 = vadd.f32 %v414_v11, %v402_v36  ;;  %v6475_v56 = vmul.f32 0.0, %v5917_v34 }
  0xb1   : > { %v705_v43 = vadd.f32 %v697_v60, %v685_v26  ;;  %v872_v7 = vadd.f32 %v864_v61, %v13093_v32  ;;  %v6479_v37 = vmul.f32 0.0, %v13094_v49  ;;  %v6483_v24 = vrot.slane %v13097_v31, %v13096_v6  ;;  %v13099_v61 = vld [vmem:[#allocation16_spill] sm:$0xff] }
  0xb2   : > { %13092 = vst [vmem:[#allocation25_spill] sm:$0xff] %v6475_v56  ;;  %v606_v33 = vadd.f32 %v598_v13, %v521_v51  ;;  %v738_v41 = vmul.f32 %v6041_v0, %v6404_v12  ;;  %v442_v25 = vadd.f32 %v434_v46, %v422_v53  ;;  %v474_v11 = vmul.f32 %v5927_v40, %v6384_v52  ;;  %v13100_v32 = vld [vmem:[#allocation64_spill] sm:$0xff] }
  0xb3   : > { %13095 = vst [vmem:[#allocation103_spill] sm:$0xff] %v6479_v37  ;;  %13098 = vst [vmem:[#allocation15_spill] sm:$0xff] %v6483_v24  ;;  %v725_v36 = vadd.f32 %v717_v1, %v705_v43  ;;  %v758_v60 = vmul.f32 %v6049_v29, %v6455_v47  ;;  %v892_v26 = vadd.f32 %v884_v55, %v872_v7  ;;  %v13101_v1 = vld [vmem:[#allocation19_spill] sm:$0xff]  ;;  %v13102_v55 = vld [vmem:[#allocation24_spill] sm:$0xff] }
  0xb4   : > { %v924_v30 = vmul.f32 %v13100_v32, %v13099_v61  ;;  %v626_v18 = vadd.f32 %v618_v17, %v606_v33  ;;  %v462_v6 = vadd.f32 %v6475_v56, %v442_v25  ;;  %v494_v51 = vmul.f32 %v5940_v44, %v6436_v63  ;;  %v13104_v56 = vld [vmem:[#allocation20_spill] sm:$0xff] }
  0xb5   : > { %v599_v13 = vmul.f32 %v5966_v57, %v6401_v4  ;;  %v745_v46 = vadd.f32 %v737_v54, %v725_v36  ;;  %v912_v43 = vadd.f32 %v6479_v37, %v892_v26  ;;  %v944_v53 = vmul.f32 %v6483_v24, %v13101_v1  ;;  %v13113_v37 = vld [vmem:[#allocation54_spill] sm:$0xff]  ;;  %v13117_v4 = vld [vmem:[#allocation29_spill] sm:$0xff] }
  0xb6   : > { %v6503_v7 = vrot.slane %v13097_v31, %v13102_v55  ;;  %v646_v33 = vadd.f32 %v638_v48, %v626_v18  ;;  %v482_v17 = vadd.f32 %v474_v11, %v462_v6  ;;  %v619_v25 = vmul.f32 %v5970_v58, %v6445_v5  ;;  %v13108_v6 = vld [vmem:[#allocation32_spill] sm:$0xff] }
  0xb7   : > { %v6509_v63 = vmul.f32 %v5980_v62, %v13104_v56  ;;  %v765_v54 = vadd.f32 %v6426_v39, %v745_v46  ;;  %v659_v36 = vmul.f32 %v6364_v20, %v5990_v2  ;;  %v679_v26 = vmul.f32 %v6413_v19, %v5993_v3  ;;  %v13115_v20 = vld [vmem:[#allocation68_spill] sm:$0xff] }
  0xb8   : > { %13103 = vst [vmem:[#allocation42_spill] sm:$0xff] %v6503_v7  ;;  %v932_v31 = vadd.f32 %v924_v30, %v912_v43  ;;  %v666_v18 = vadd.f32 %v658_v8, %v646_v33  ;;  %v502_v48 = vadd.f32 %v494_v51, %v482_v17  ;;  %v6517_v11 = vmul.f32 0.0, %v6008_v28  ;;  %v13110_v30 = vld [vmem:[#allocation36_spill] sm:$0xff]  ;;  %v13112_v17 = vld [vmem:[#allocation37_spill] sm:$0xff] }
  0xb9   : > { %13105 = vst [vmem:[#allocation16_spill] sm:$0xff] %v6509_v63  ;;  %v6521_v56 = vmul.f32 %v6019_v35, %v6404_v12  ;;  %773 = vst [vmem:[%s6195_s6 + $0x28] sm:$0xff] %v765_v54  ;;  %v6526_v39 = vmul.f32 %v6041_v0, %v6455_v47  ;;  %v6530_v46 = vmul.f32 %v6049_v29, %v13108_v6  ;;  %v13111_v43 = vld [vmem:[#allocation40_spill] sm:$0xff]  ;;  %v13114_v54 = vld [vmem:[#allocation43_spill] sm:$0xff] }
  0xba   : > { %13106 = vst [vmem:[#allocation19_spill] sm:$0xff] %v6517_v11  ;;  %v952_v55 = vadd.f32 %v944_v53, %v932_v31  ;;  %v984_v8 = vmul.f32 %v6503_v7, %v13110_v30  ;;  %v686_v51 = vadd.f32 %v678_v38, %v666_v18  ;;  %v522_v33 = vadd.f32 %v13111_v43, %v502_v48  ;;  %v6540_v12 = vld [vmem:[%s5824_s5 + $0x80] sm:$0xff]  ;;  %v6543_v47 = vld [vmem:[%s5824_s5 + $0x88] sm:$0xff]  ;;  %v13120_v35 = vld [vmem:[#allocation53_spill] sm:$0xff] }
  0xbb   : > { %13107 = vst [vmem:[#allocation24_spill] sm:$0xff] %v6526_v39  ;;  %13109 = vst [vmem:[#allocation20_spill] sm:$0xff] %v6530_v46  ;;  %v1004_v19 = vmul.f32 %v13113_v37, %v13112_v17  ;;  %v1099_v5 = vmul.f32 %v13114_v54, %v5862_v10  ;;  %v13116_v53 = vld [vmem:[#allocation47_spill] sm:$0xff]  ;;  %v1145_v38 = vmul.f32 %v13117_v4, %v5906_v27  ;;  %v1263_v40 = vrot.slane %v6540_v12, 1 }
  0xbc   : > { %v972_v6 = vadd.f32 %v13115_v20, %v952_v55  ;;  %v1115_v31 = vmul.f32 %v13116_v53, %v5875_v15  ;;  %v13118_v18 = vld [vmem:[#allocation31_spill] sm:$0xff]  ;;  %v706_v43 = vadd.f32 %v698_v16, %v686_v51  ;;  %v607_v52 = vadd.f32 %v599_v13, %v522_v33 }
  0xbd   : > { %v6552_v48 = vmul.f32 %v13118_v18, %v5917_v34  ;;  %v845_v2 = vmul.f32 %v13120_v35, %v5895_v22  ;;  %v865_v57 = vmul.f32 %v13089_v50, %v13090_v14  ;;  %v1239_v55 = vrot.slane %v6540_v12, 7  ;;  %v13122_v22 = vld [vmem:[#allocation48_spill] sm:$0xff] }
  0xbe   : > { %v992_v46 = vadd.f32 %v984_v8, %v972_v6  ;;  %v1240_v20 = vrot.slane %v6543_v47, 7  ;;  %v726_v39 = vadd.f32 %v718_v42, %v706_v43  ;;  %v627_v27 = vadd.f32 %v619_v25, %v607_v52  ;;  %v13124_v8 = vld [vmem:[#allocation49_spill] sm:$0xff]  ;;  %v13126_v25 = vld [vmem:[#allocation22_spill] sm:$0xff] }
  0xbf   : > { %13119 = vst [vmem:[#allocation32_spill] sm:$0xff] %v6552_v48  ;;  %v853_v34 = vadd.f32 %v5892_v21, %v845_v2  ;;  %v13121_v48 = vld [vmem:[#allocation57_spill] sm:$0xff]  ;;  %v6566_v51 = vmul.f32 %v13122_v22, %v5940_v44  ;;  %v6570_v33 = vmul.f32 %v13124_v8, %v5944_v45  ;;  %v1264_v6 = vrot.slane %v6543_v47, 1 }
  0xc0   : > { %v885_v16 = vmul.f32 %v13091_v23, %v13121_v48  ;;  %v1012_v13 = vadd.f32 %v1004_v19, %v992_v46  ;;  %v746_v50 = vadd.f32 %v738_v41, %v726_v39  ;;  %v647_v52 = vadd.f32 %v6509_v63, %v627_v27  ;;  %v6628_v63 = vld [vmem:[%s5824_s5 + $0x90] sm:$0xff] }
  0xc1   : > { %13123 = vst [vmem:[#allocation36_spill] sm:$0xff] %v6566_v51  ;;  %13125 = vst [vmem:[#allocation37_spill] sm:$0xff] %v6570_v33  ;;  %v873_v42 = vadd.f32 %v865_v57, %v853_v34  ;;  %v905_v2 = vmul.f32 %v13094_v49, %v13099_v61  ;;  %v1255_v46 = vsel %vm305_vm0, 0.0, %v1239_v55  ;;  %v6579_v43 = vsel %vm305_vm0, 0.0, %v1240_v20 }
  0xc2   : > { %v1091_v19 = vadd.f32 %v1012_v13, %v13126_v25  ;;  %v6582_v51 = vsel %vm333_vm1, %v1263_v40, 0.0  ;;  %v766_v33 = vadd.f32 %v758_v60, %v746_v50  ;;  %v667_v45 = vadd.f32 %v659_v36, %v647_v52  ;;  %v13129_v36 = vld [vmem:[#allocation46_spill] sm:$0xff]  ;;  %v13134_v52 = vld [vmem:[#allocation27_spill] sm:$0xff] }
  0xc3   : > { %v893_v41 = vadd.f32 %v885_v16, %v873_v42  ;;  %v925_v27 = vmul.f32 %v13100_v32, %v13101_v1  ;;  %v6587_v57 = vsel %vm333_vm1, %v1264_v6, 0.0  ;;  %v6590_v61 = vmul.f32 %v1255_v46, %v5970_v58 }
  0xc4   : > { %v1107_v34 = vadd.f32 %v1099_v5, %v1091_v19  ;;  %v6594_v20 = vmul.f32 %v6579_v43, %v5980_v62  ;;  %774 = vst [vmem:[%s6195_s6 + $0x30] sm:$0xff] %v766_v33  ;;  %v687_v40 = vadd.f32 %v679_v26, %v667_v45  ;;  %v6599_v50 = vmul.f32 %v6540_v12, %v5993_v3  ;;  %v13133_v33 = vld [vmem:[#allocation61_spill] sm:$0xff] }
  0xc5   : > { %v913_v60 = vadd.f32 %v905_v2, %v893_v41  ;;  %v945_v5 = vmul.f32 %v6483_v24, %v13129_v36  ;;  %v6605_v55 = vmul.f32 %v6543_v47, %v6008_v28  ;;  %v6609_v16 = vmul.f32 %v6582_v51, %v6041_v0  ;;  %v13135_v2 = vld [vmem:[#allocation71_spill] sm:$0xff] }
  0xc6   : > { %13127 = vst [vmem:[#allocation43_spill] sm:$0xff] %v6594_v20  ;;  %13128 = vst [vmem:[#allocation47_spill] sm:$0xff] %v6599_v50  ;;  %v1122_v39 = vadd.f32 %v1115_v31, %v1107_v34  ;;  %v6613_v45 = vmul.f32 %v6587_v57, %v6049_v29  ;;  %v707_v26 = vadd.f32 %v6517_v11, %v687_v40  ;;  %v13141_v50 = vld [vmem:[#allocation24_spill] sm:$0xff]  ;;  %v13144_v20 = vld [vmem:[#allocation30_spill] sm:$0xff] }
  0xc7   : > { %13130 = vst [vmem:[#allocation29_spill] sm:$0xff] %v6605_v55  ;;  %13131 = vst [vmem:[#allocation31_spill] sm:$0xff] %v6609_v16  ;;  %v933_v13 = vadd.f32 %v925_v27, %v913_v60  ;;  %v965_v6 = vmul.f32 %v13133_v33, %v13110_v30  ;;  %v985_v31 = vmul.f32 %v6503_v7, %v13112_v17  ;;  %v13136_v60 = vld [vmem:[#allocation23_spill] sm:$0xff] }
  0xc8   : > { %13132 = vst [vmem:[#allocation48_spill] sm:$0xff] %v6613_v45  ;;  %v1137_v42 = vadd.f32 %v1122_v39, %v13134_v52  ;;  %v1005_v19 = vmul.f32 %v13113_v37, %v13135_v2  ;;  %v1084_v41 = vmul.f32 %v13114_v54, %v5858_v9  ;;  %v1100_v34 = vmul.f32 %v13116_v53, %v5862_v10  ;;  %v13137_v52 = vld [vmem:[#allocation26_spill] sm:$0xff]  ;;  %v13138_v45 = vld [vmem:[#allocation28_spill] sm:$0xff] }
  0xc9   : > { %v727_v27 = vadd.f32 %v6521_v56, %v707_v26  ;;  %v953_v40 = vadd.f32 %v945_v5, %v933_v13  ;;  %v1116_v30 = vmul.f32 %v6144_v59, %v5875_v15  ;;  %v1130_v39 = vmul.f32 %v13117_v4, %v13136_v60  ;;  %v13139_v54 = vld [vmem:[#allocation70_spill] sm:$0xff] }
  0xca   : > { %v1153_v11 = vadd.f32 %v1145_v38, %v1137_v42  ;;  %v1146_v25 = vmul.f32 %v13118_v18, %v13137_v52  ;;  %v6639_v16 = vmul.f32 %v13139_v54, %v13138_v45  ;;  %v846_v55 = vmul.f32 %v13120_v35, %v13090_v14  ;;  %v13142_v13 = vld [vmem:[#allocation62_spill] sm:$0xff]  ;;  %v13143_v38 = vld [vmem:[#allocation32_spill] sm:$0xff] }
  0xcb   : > { %v747_v56 = vadd.f32 %v13141_v50, %v727_v27  ;;  %v973_v5 = vadd.f32 %v965_v6, %v953_v40  ;;  %v1241_v26 = vrot.slane %v6628_v63, 7  ;;  %v866_v4 = vmul.f32 %v13142_v13, %v13121_v48  ;;  %v13146_v45 = vld [vmem:[#allocation72_spill] sm:$0xff]  ;;  %v13149_v13 = vld [vmem:[#allocation38_spill] sm:$0xff] }
  0xcc   : > { %13140 = vst [vmem:[#allocation49_spill] sm:$0xff] %v6639_v16  ;;  %v1168_v42 = vadd.f32 %v13143_v38, %v1153_v11  ;;  %v6650_v52 = vmul.f32 %v13122_v22, %v13144_v20  ;;  %v854_v16 = vadd.f32 %v5892_v21, %v846_v55  ;;  %v886_v14 = vmul.f32 %v13091_v23, %v13146_v45  ;;  %v13147_v35 = vld [vmem:[#allocation20_spill] sm:$0xff]  ;;  %v13150_v38 = vld [vmem:[#allocation35_spill] sm:$0xff]  ;;  %v13151_v48 = vld [vmem:[#allocation74_spill] sm:$0xff] }
  0xcd   : > { %v767_v50 = vadd.f32 %v13147_v35, %v747_v56  ;;  %v993_v27 = vadd.f32 %v985_v31, %v973_v5  ;;  %v6658_v6 = vmul.f32 %v13124_v8, %v5940_v44  ;;  %v1265_v40 = vrot.slane %v6628_v63, 1  ;;  %v13152_v56 = vld [vmem:[#allocation39_spill] sm:$0xff] }
  0xce   : > { %13145 = vst [vmem:[#allocation46_spill] sm:$0xff] %v6650_v52  ;;  %v1183_v11 = vadd.f32 %v1168_v42, %v13149_v13  ;;  %v6664_v22 = vmul.f32 %v13151_v48, %v13150_v38  ;;  %v874_v52 = vadd.f32 %v866_v4, %v854_v16  ;;  %v906_v21 = vmul.f32 %v13094_v49, %v13101_v1  ;;  %v13154_v42 = vld [vmem:[#allocation36_spill] sm:$0xff] }
  0xcf   : > { %13148 = vst [vmem:[#allocation71_spill] sm:$0xff] %v6658_v6  ;;  %775 = vst [vmem:[%s6195_s6 + $0x38] sm:$0xff] %v767_v50  ;;  %v1013_v55 = vadd.f32 %v1005_v19, %v993_v27  ;;  %v6670_v31 = vsel %vm305_vm0, 0.0, %v1241_v26  ;;  %v6673_v5 = vmul.f32 %v1255_v46, %v13152_v56  ;;  %v6677_v35 = vmul.f32 %v6579_v43, %v5970_v58  ;;  %v13155_v6 = vld [vmem:[#allocation44_spill] sm:$0xff]  ;;  %v13159_v27 = vld [vmem:[#allocation37_spill] sm:$0xff] }
  0xd0   : > { %v1199_v13 = vadd.f32 %v13154_v42, %v1183_v11  ;;  %v6682_v16 = vmul.f32 %v6540_v12, %v13155_v6  ;;  %v894_v4 = vadd.f32 %v886_v14, %v874_v52  ;;  %v926_v1 = vmul.f32 %v13100_v32, %v13129_v36  ;;  %v13161_v14 = vld [vmem:[#allocation65_spill] sm:$0xff] }
  0xd1   : > { %13153 = vst [vmem:[#allocation24_spill] sm:$0xff] %v6677_v35  ;;  %v1092_v19 = vadd.f32 %v1084_v41, %v1013_v55  ;;  %v6687_v26 = vsel %vm333_vm1, %v1265_v40, 0.0  ;;  %v6691_v46 = vmul.f32 %v6670_v31, %v5980_v62  ;;  %v6695_v50 = vmul.f32 %v6543_v47, %v5993_v3  ;;  %v13162_v55 = vld [vmem:[#allocation52_spill] sm:$0xff] }
  0xd2   : > { %13156 = vst [vmem:[#allocation32_spill] sm:$0xff] %v6682_v16  ;;  %v1214_v11 = vadd.f32 %v13159_v27, %v1199_v13  ;;  %v6700_v12 = vmul.f32 %v6628_v63, %v6008_v28  ;;  %v914_v52 = vadd.f32 %v906_v21, %v894_v4  ;;  %v946_v41 = vmul.f32 %v6483_v24, %v13161_v14  ;;  %v13166_v27 = vld [vmem:[#allocation51_spill] sm:$0xff]  ;;  %v13171_v35 = vld [vmem:[#allocation76_spill] sm:$0xff] }
  0xd3   : > { %13157 = vst [vmem:[#allocation72_spill] sm:$0xff] %v6691_v46  ;;  %13158 = vst [vmem:[#allocation74_spill] sm:$0xff] %v6695_v50  ;;  %v1108_v40 = vadd.f32 %v1100_v34, %v1092_v19  ;;  %v6706_v42 = vmul.f32 %v6582_v51, %v13162_v55  ;;  %v6710_v16 = vmul.f32 %v6587_v57, %v6041_v0  ;;  %v13167_v51 = vld [vmem:[#allocation77_spill] sm:$0xff] }
  0xd4   : > { %13160 = vst [vmem:[#allocation36_spill] sm:$0xff] %v6700_v12  ;;  %v6714_v13 = vmul.f32 %v6687_v26, %v6049_v29  ;;  %v1294_v12 = vadd.f32 %v1214_v11, %v13166_v27  ;;  %v934_v21 = vadd.f32 %v926_v1, %v914_v52  ;;  %v966_v4 = vmul.f32 %v13133_v33, %v13112_v17  ;;  %v13168_v52 = vld [vmem:[#allocation79_spill] sm:$0xff] }
  0xd5   : > { %13163 = vst [vmem:[#allocation37_spill] sm:$0xff] %v6706_v42  ;;  %13164 = vst [vmem:[#allocation65_spill] sm:$0xff] %v6710_v16  ;;  %v986_v34 = vmul.f32 %v6503_v7, %v13135_v2  ;;  %v1123_v19 = vadd.f32 %v1116_v30, %v1108_v40  ;;  %v1006_v42 = vmul.f32 %v13113_v37, %v13167_v51  ;;  %v6733_v30 = vld [vmem:[%s5824_s5 + $0x98] sm:$0xff] }
  0xd6   : > { %13165 = vst [vmem:[#allocation104_spill] sm:$0xff] %v6714_v13  ;;  %v1085_v16 = vmul.f32 %v13116_v53, %v5858_v9  ;;  %v1101_v50 = vmul.f32 %v6144_v59, %v5862_v10  ;;  %v1310_v11 = vadd.f32 %v6590_v61, %v1294_v12  ;;  %v954_v1 = vadd.f32 %v946_v41, %v934_v21  ;;  %v13169_v13 = vld [vmem:[#allocation26_spill] sm:$0xff]  ;;  %v13170_v53 = vld [vmem:[#allocation28_spill] sm:$0xff]  ;;  %v13173_v10 = vld [vmem:[#allocation57_spill] sm:$0xff] }
  0xd7   : > { %v1117_v17 = vmul.f32 %v13168_v52, %v5875_v15  ;;  %v1131_v27 = vmul.f32 %v13118_v18, %v13136_v60  ;;  %v1138_v40 = vadd.f32 %v1130_v39, %v1123_v19  ;;  %v1147_v46 = vmul.f32 %v13139_v54, %v13169_v13  ;;  %v13174_v59 = vld [vmem:[#allocation53_spill] sm:$0xff]  ;;  %v13175_v12 = vld [vmem:[#allocation43_spill] sm:$0xff]  ;;  %v13177_v18 = vld [vmem:[#allocation62_spill] sm:$0xff] }
  0xd8   : > { %v6739_v9 = vmul.f32 %v13171_v35, %v13170_v53  ;;  %v847_v61 = vmul.f32 %v13174_v59, %v13173_v10  ;;  %v1325_v41 = vadd.f32 %v13175_v12, %v1310_v11  ;;  %v974_v21 = vadd.f32 %v966_v4, %v954_v1  ;;  %v6752_v54 = vld [vmem:[%s5851_s30] ss:$0 sm:$0xff]  ;;  %v13179_v53 = vld [vmem:[#allocation78_spill] sm:$0xff]  ;;  %v13181_v12 = vld [vmem:[#allocation49_spill] sm:$0xff] }
  0xd9   : > { %v6746_v15 = vmul.f32 %v13124_v8, %v13144_v20  ;;  %v867_v39 = vmul.f32 %v13177_v18, %v13146_v45  ;;  %v1154_v19 = vadd.f32 %v1146_v25, %v1138_v40  ;;  %v1242_v13 = vrot.slane %v6733_v30, 7  ;;  %13178 = vst [vmem:[#allocation43_spill] sm:$0xff] %v6752_v54  ;;  %v13180_v59 = vld [vmem:[#allocation55_spill] sm:$0xff]  ;;  %v13182_v40 = vld [vmem:[#allocation80_spill] sm:$0xff] }
  0xda   : > { %13172 = vst [vmem:[#allocation77_spill] sm:$0xff] %v6739_v9  ;;  %v855_v9 = vadd.f32 %v6752_v54, %v847_v61  ;;  %v887_v10 = vmul.f32 %v13091_v23, %v13179_v53  ;;  %v1340_v11 = vadd.f32 %v1325_v41, %v13180_v59  ;;  %v994_v4 = vadd.f32 %v986_v34, %v974_v21  ;;  %v13183_v23 = vld [vmem:[#allocation47_spill] sm:$0xff] }
  0xdb   : > { %13176 = vst [vmem:[#allocation57_spill] sm:$0xff] %v6746_v15  ;;  %v6760_v8 = vmul.f32 %v13151_v48, %v5940_v44  ;;  %v1266_v1 = vrot.slane %v6733_v30, 1  ;;  %v1169_v25 = vadd.f32 %v13181_v12, %v1154_v19  ;;  %v6766_v15 = vmul.f32 %v13182_v40, %v13150_v38  ;;  %v13185_v19 = vld [vmem:[#allocation46_spill] sm:$0xff] }
  0xdc   : > { %v875_v20 = vadd.f32 %v867_v39, %v855_v9  ;;  %v907_v61 = vmul.f32 %v13094_v49, %v13129_v36  ;;  %v1356_v54 = vadd.f32 %v13183_v23, %v1340_v11  ;;  %v1014_v41 = vadd.f32 %v1006_v42, %v994_v4  ;;  %v13186_v39 = vld [vmem:[#allocation29_spill] sm:$0xff]  ;;  %v13188_v4 = vld [vmem:[#allocation71_spill] sm:$0xff] }
  0xdd   : > { %v6773_v34 = vmul.f32 %v6579_v43, %v13152_v56  ;;  %v6777_v21 = vmul.f32 %v6670_v31, %v5970_v58  ;;  %v1184_v12 = vadd.f32 %v13185_v19, %v1169_v25  ;;  %v6781_v59 = vsel %vm305_vm0, 0.0, %v1242_v13  ;;  %v13191_v25 = vld [vmem:[#allocation59_spill] sm:$0xff] }
  0xde   : > { %v895_v9 = vadd.f32 %v887_v10, %v875_v20  ;;  %v927_v36 = vmul.f32 %v13100_v32, %v13161_v14  ;;  %v1371_v23 = vadd.f32 %v13186_v39, %v1356_v54  ;;  %v1093_v42 = vadd.f32 %v1085_v16, %v1014_v41  ;;  %v13190_v10 = vld [vmem:[#allocation75_spill] sm:$0xff] }
  0xdf   : > { %13184 = vst [vmem:[#allocation78_spill] sm:$0xff] %v6777_v21  ;;  %v6787_v11 = vsel %vm333_vm1, %v1266_v1, 0.0  ;;  %v6791_v43 = vmul.f32 %v6543_v47, %v13155_v6  ;;  %v1200_v21 = vadd.f32 %v13188_v4, %v1184_v12  ;;  %v6796_v13 = vmul.f32 %v6781_v59, %v5980_v62  ;;  %v13199_v4 = vld [vmem:[#allocation48_spill] sm:$0xff] }
  0xe0   : > { %v915_v20 = vadd.f32 %v907_v61, %v895_v9  ;;  %v947_v14 = vmul.f32 %v6483_v24, %v13190_v10  ;;  %v1386_v54 = vadd.f32 %v1371_v23, %v13191_v25  ;;  %v1109_v16 = vadd.f32 %v1101_v50, %v1093_v42  ;;  %v13195_v50 = vld [vmem:[#allocation31_spill] sm:$0xff]  ;;  %v13198_v42 = vld [vmem:[#allocation84_spill] sm:$0xff]  ;;  %v13202_v25 = vld [vmem:[#allocation18_spill] sm:$0xff] }
  0xe1   : > { %13187 = vst [vmem:[#allocation49_spill] sm:$0xff] %v6791_v43  ;;  %13189 = vst [vmem:[#allocation80_spill] sm:$0xff] %v6796_v13  ;;  %v6803_v1 = vmul.f32 %v6628_v63, %v5993_v3  ;;  %v6807_v47 = vmul.f32 %v6733_v30, %v6008_v28  ;;  %v1215_v41 = vadd.f32 %v6664_v22, %v1200_v21 }
  0xe2   : > { %v6812_v61 = vmul.f32 %v6587_v57, %v13162_v55  ;;  %v935_v19 = vadd.f32 %v927_v36, %v915_v20  ;;  %v967_v12 = vmul.f32 %v13133_v33, %v13135_v2  ;;  %v1402_v9 = vadd.f32 %v13195_v50, %v1386_v54  ;;  %v13200_v54 = vld [vmem:[#allocation17_spill] sm:$0xff] }
  0xe3   : > { %13192 = vst [vmem:[#allocation47_spill] sm:$0xff] %v6803_v1  ;;  %13193 = vst [vmem:[#allocation46_spill] sm:$0xff] %v6807_v47  ;;  %v1124_v39 = vadd.f32 %v1117_v17, %v1109_v16  ;;  %v6819_v23 = vmul.f32 %v6687_v26, %v6041_v0  ;;  %v6823_v22 = vmul.f32 %v6787_v11, %v6049_v29  ;;  %v13201_v16 = vld [vmem:[#allocation73_spill] sm:$0xff]  ;;  %v13206_v1 = vld [vmem:[#allocation70_spill] sm:$0xff] }
  0xe4   : > { %13194 = vst [vmem:[#allocation29_spill] sm:$0xff] %v6812_v61  ;;  %v1295_v21 = vadd.f32 %v6673_v5, %v1215_v41  ;;  %v955_v57 = vadd.f32 %v947_v14, %v935_v19  ;;  %v987_v36 = vmul.f32 %v6503_v7, %v13167_v51  ;;  %v1007_v2 = vmul.f32 %v13113_v37, %v13198_v42  ;;  %v6836_v61 = vld [vmem:[%s5824_s5 + $0xa0] sm:$0xff]  ;;  %v13204_v41 = vld [vmem:[#allocation21_spill] sm:$0xff] }
  0xe5   : > { %13196 = vst [vmem:[#allocation71_spill] sm:$0xff] %v6819_v23  ;;  %13197 = vst [vmem:[#allocation75_spill] sm:$0xff] %v6823_v22  ;;  %v1417_v17 = vadd.f32 %v13199_v4, %v1402_v9  ;;  %v1139_v20 = vadd.f32 %v1131_v27, %v1124_v39  ;;  %v1086_v50 = vmul.f32 %v13201_v16, %v13200_v54  ;;  %v13203_v22 = vld [vmem:[#allocation24_spill] sm:$0xff]  ;;  %v13205_v19 = vld [vmem:[#allocation85_spill] sm:$0xff] }
  0xe6   : > { %v1102_v23 = vmul.f32 %v13168_v52, %v13202_v25  ;;  %v1311_v5 = vadd.f32 %v13203_v22, %v1295_v21  ;;  %v975_v14 = vadd.f32 %v967_v12, %v955_v57  ;;  %v1118_v47 = vmul.f32 %v13205_v19, %v13204_v41  ;;  %v13207_v27 = vld [vmem:[#allocation26_spill] sm:$0xff]  ;;  %v13208_v4 = vld [vmem:[#allocation28_spill] sm:$0xff]  ;;  %v13210_v25 = vld [vmem:[#allocation53_spill] sm:$0xff] }
  0xe7   : > { %v1132_v43 = vmul.f32 %v13206_v1, %v13136_v60  ;;  %5094 = vst [vmem:[%s6195_s6 + $0x40] sm:$0xff] %v1417_v17  ;;  %v1155_v9 = vadd.f32 %v1147_v46, %v1139_v20  ;;  %v1148_v39 = vmul.f32 %v13171_v35, %v13207_v27  ;;  %v13209_v16 = vld [vmem:[#allocation82_spill] sm:$0xff]  ;;  %v848_v52 = vmul.f32 %v13210_v25, %v13146_v45  ;;  %v13211_v54 = vld [vmem:[#allocation72_spill] sm:$0xff]  ;;  %v13212_v57 = vld [vmem:[#allocation77_spill] sm:$0xff] }
  0xe8   : > { %v1164_v13 = vmul.f32 %v13209_v16, %v13208_v4  ;;  %v1326_v12 = vadd.f32 %v13211_v54, %v1311_v5  ;;  %v995_v22 = vadd.f32 %v987_v36, %v975_v14  ;;  %v1243_v21 = vrot.slane %v6836_v61, 7  ;;  %v13213_v17 = vld [vmem:[#allocation30_spill] sm:$0xff]  ;;  %v13214_v27 = vld [vmem:[#allocation43_spill] sm:$0xff]  ;;  %v13216_v16 = vld [vmem:[#allocation60_spill] sm:$0xff] }
  0xe9   : > { %v868_v1 = vmul.f32 %v13177_v18, %v13179_v53  ;;  %v1170_v46 = vadd.f32 %v13212_v57, %v1155_v9  ;;  %v1178_v20 = vmul.f32 %v13151_v48, %v13213_v17  ;;  %v856_v35 = vadd.f32 %v13214_v27, %v848_v52  ;;  %v13215_v4 = vld [vmem:[#allocation83_spill] sm:$0xff]  ;;  %v13217_v45 = vld [vmem:[#allocation32_spill] sm:$0xff]  ;;  %v13218_v5 = vld [vmem:[#allocation57_spill] sm:$0xff] }
  0xea   : > { %v888_v60 = vmul.f32 %v13216_v16, %v13215_v4  ;;  %v1341_v25 = vadd.f32 %v13217_v45, %v1326_v12  ;;  %v1015_v41 = vadd.f32 %v1007_v2, %v995_v22  ;;  %v6863_v36 = vmul.f32 %v13182_v40, %v5940_v44  ;;  %v13219_v9 = vld [vmem:[#allocation86_spill] sm:$0xff] }
  0xeb   : > { %v1267_v54 = vrot.slane %v6836_v61, 1  ;;  %v1185_v14 = vadd.f32 %v13218_v5, %v1170_v46  ;;  %v6869_v57 = vmul.f32 %v13219_v9, %v13150_v38  ;;  %v876_v48 = vadd.f32 %v868_v1, %v856_v35  ;;  %v5406_v52 = vld [vmem:[%s5824_s5 + $0x18] sm:$0xff]  ;;  %v13221_v5 = vld [vmem:[#allocation36_spill] sm:$0xff] }
  0xec   : > { %v908_v27 = vmul.f32 %v5406_v52, %v13094_v49  ;;  %v13220_v16 = vld [vmem:[#allocation74_spill] sm:$0xff]  ;;  %v1094_v12 = vadd.f32 %v1086_v50, %v1015_v41  ;;  %v6875_v2 = vsel %vm305_vm0, 0.0, %v1243_v21  ;;  %v6879_v22 = vmul.f32 %v6670_v31, %v13152_v56  ;;  %v13223_v21 = vld [vmem:[#allocation81_spill] sm:$0xff] }
  0xed   : > { %v1357_v17 = vadd.f32 %v13220_v16, %v1341_v25  ;;  %v1201_v46 = vadd.f32 %v6760_v8, %v1185_v14  ;;  %v6884_v45 = vmul.f32 %v6781_v59, %v5970_v58  ;;  %v896_v35 = vadd.f32 %v888_v60, %v876_v48  ;;  %v13224_v14 = vld [vmem:[#allocation37_spill] sm:$0xff] }
  0xee   : > { %v928_v1 = vmul.f32 %v13100_v32, %v13190_v10  ;;  %v1110_v50 = vadd.f32 %v1102_v23, %v1094_v12  ;;  %v6890_v41 = vsel %vm333_vm1, %v1267_v54, 0.0  ;;  %v6894_v31 = vmul.f32 %v6875_v2, %v5980_v62 }
  0xef   : > { %v1372_v25 = vadd.f32 %v13221_v5, %v1357_v17  ;;  %v1216_v8 = vadd.f32 %v6766_v15, %v1201_v46  ;;  %v6899_v16 = vmul.f32 %v6628_v63, %v13155_v6  ;;  %v916_v60 = vadd.f32 %v908_v27, %v896_v35  ;;  %v13231_v5 = vld [vmem:[#allocation78_spill] sm:$0xff] }
  0xf0   : > { %v948_v10 = vmul.f32 %v6483_v24, %v13223_v21  ;;  %v1125_v23 = vadd.f32 %v1118_v47, %v1110_v50  ;;  %v6906_v54 = vmul.f32 %v6733_v30, %v5993_v3  ;;  %v6910_v48 = vmul.f32 %v6836_v61, %v6008_v28  ;;  %v13228_v47 = vld [vmem:[#allocation65_spill] sm:$0xff] }
  0xf1   : > { %13222 = vst [vmem:[#allocation31_spill] sm:$0xff] %v6899_v16  ;;  %v1387_v17 = vadd.f32 %v13224_v14, %v1372_v25  ;;  %v1296_v15 = vadd.f32 %v6773_v34, %v1216_v8  ;;  %v6915_v63 = vmul.f32 %v6687_v26, %v13162_v55  ;;  %v936_v27 = vadd.f32 %v928_v1, %v916_v60  ;;  %v13232_v50 = vld [vmem:[#allocation89_spill] sm:$0xff]  ;;  %v13233_v8 = vld [vmem:[#allocation104_spill] sm:$0xff] }
  0xf2   : > { %13225 = vst [vmem:[#allocation84_spill] sm:$0xff] %v6906_v54  ;;  %13226 = vst [vmem:[#allocation48_spill] sm:$0xff] %v6910_v48  ;;  %v968_v52 = vmul.f32 %v13133_v33, %v13167_v51  ;;  %v1140_v46 = vadd.f32 %v1132_v43, %v1125_v23  ;;  %v6922_v35 = vmul.f32 %v6787_v11, %v6041_v0  ;;  %v13234_v14 = vld [vmem:[#allocation17_spill] sm:$0xff]  ;;  %v13240_v54 = vld [vmem:[#allocation23_spill] sm:$0xff] }
  0xf3   : > { %13227 = vst [vmem:[#allocation73_spill] sm:$0xff] %v6915_v63  ;;  %v1403_v12 = vadd.f32 %v13228_v47, %v1387_v17  ;;  %v6926_v34 = vmul.f32 %v6890_v41, %v6049_v29  ;;  %v1312_v25 = vadd.f32 %v13231_v5, %v1296_v15  ;;  %v956_v26 = vadd.f32 %v948_v10, %v936_v27  ;;  %v13235_v17 = vld [vmem:[#allocation79_spill] sm:$0xff]  ;;  %v13236_v47 = vld [vmem:[#allocation18_spill] sm:$0xff]  ;;  %v6939_v63 = vld [vmem:[%s5824_s5 + $0xa8] sm:$0xff] }
  0xf4   : > { %13229 = vst [vmem:[#allocation24_spill] sm:$0xff] %v6922_v35  ;;  %v988_v1 = vmul.f32 %v6503_v7, %v13198_v42  ;;  %v1008_v51 = vmul.f32 %v13113_v37, %v13232_v50  ;;  %v1156_v60 = vadd.f32 %v1148_v39, %v1140_v46  ;;  %v1087_v23 = vmul.f32 %v13235_v17, %v13234_v14  ;;  %v13238_v27 = vld [vmem:[#allocation21_spill] sm:$0xff]  ;;  %v13239_v5 = vld [vmem:[#allocation91_spill] sm:$0xff]  ;;  %v13241_v16 = vld [vmem:[#allocation76_spill] sm:$0xff] }
  0xf5   : > { %13230 = vst [vmem:[#allocation70_spill] sm:$0xff] %v6926_v34  ;;  %v1418_v43 = vadd.f32 %v13233_v8, %v1403_v12  ;;  %v1103_v35 = vmul.f32 %v13205_v19, %v13236_v47  ;;  %v13237_v34 = vld [vmem:[#allocation80_spill] sm:$0xff]  ;;  %v976_v10 = vadd.f32 %v968_v52, %v956_v26  ;;  %v1119_v48 = vmul.f32 %v13239_v5, %v13238_v27  ;;  %v13242_v39 = vld [vmem:[#allocation26_spill] sm:$0xff]  ;;  %v13246_v47 = vld [vmem:[#allocation53_spill] sm:$0xff] }
  0xf6   : > { %v1327_v15 = vadd.f32 %v13237_v34, %v1312_v25  ;;  %v1133_v37 = vmul.f32 %v13241_v16, %v13240_v54  ;;  %v1171_v12 = vadd.f32 %v1164_v13, %v1156_v60  ;;  %v13243_v46 = vld [vmem:[#allocation82_spill] sm:$0xff]  ;;  %v13244_v17 = vld [vmem:[#allocation28_spill] sm:$0xff]  ;;  %v849_v19 = vmul.f32 %v13246_v47, %v13179_v53  ;;  %v13247_v50 = vld [vmem:[#allocation49_spill] sm:$0xff] }
  0xf7   : > { %5095 = vst [vmem:[%s6195_s6 + $0x48] sm:$0xff] %v1418_v43  ;;  %v1149_v8 = vmul.f32 %v13243_v46, %v13242_v39  ;;  %v13245_v14 = vld [vmem:[#allocation88_spill] sm:$0xff]  ;;  %v996_v34 = vadd.f32 %v988_v1, %v976_v10  ;;  %v1244_v25 = vrot.slane %v6939_v63, 7  ;;  %v869_v16 = vmul.f32 %v13177_v18, %v13215_v4  ;;  %v13248_v13 = vld [vmem:[#allocation30_spill] sm:$0xff]  ;;  %v13249_v60 = vld [vmem:[#allocation43_spill] sm:$0xff] }
  0xf8   : > { %v1165_v7 = vmul.f32 %v13245_v14, %v13244_v17  ;;  %v1342_v52 = vadd.f32 %v13247_v50, %v1327_v15  ;;  %v1186_v26 = vadd.f32 %v1178_v20, %v1171_v12  ;;  %v6959_v43 = vmul.f32 %v13182_v40, %v13248_v13  ;;  %v13250_v17 = vld [vmem:[#allocation90_spill] sm:$0xff]  ;;  %v13251_v14 = vld [vmem:[#allocation60_spill] sm:$0xff]  ;;  %v13252_v53 = vld [vmem:[#allocation47_spill] sm:$0xff] }
  0xf9   : > { %v857_v46 = vadd.f32 %v13249_v60, %v849_v19  ;;  %v889_v39 = vmul.f32 %v13251_v14, %v13250_v17  ;;  %v1016_v54 = vadd.f32 %v1008_v51, %v996_v34  ;;  %v6967_v1 = vmul.f32 %v13219_v9, %v5940_v44  ;;  %v13253_v15 = vld [vmem:[#allocation92_spill] sm:$0xff]  ;;  %v5407_v19 = vld [vmem:[%s5824_s5 + $0x20] sm:$0xff]  ;;  %v13254_v14 = vld [vmem:[#allocation46_spill] sm:$0xff] }
  0xfa   : > { %v1358_v47 = vadd.f32 %v13252_v53, %v1342_v52  ;;  %v1268_v50 = vrot.slane %v6939_v63, 1  ;;  %v1202_v20 = vadd.f32 %v6863_v36, %v1186_v26  ;;  %v6973_v40 = vmul.f32 %v13253_v15, %v13150_v38  ;;  %v13255_v53 = vld [vmem:[#allocation29_spill] sm:$0xff] }
  0xfb   : > { %v877_v10 = vadd.f32 %v869_v16, %v857_v46  ;;  %v909_v12 = vmul.f32 %v5407_v19, %v13094_v49  ;;  %v1095_v52 = vadd.f32 %v1087_v23, %v1016_v54  ;;  %v6979_v51 = vsel %vm305_vm0, 0.0, %v1244_v25  ;;  %v13258_v25 = vld [vmem:[#allocation87_spill] sm:$0xff] }
  0xfc   : > { %v1373_v60 = vadd.f32 %v13254_v14, %v1358_v47  ;;  %v6983_v34 = vmul.f32 %v6781_v59, %v13152_v56  ;;  %v1217_v36 = vadd.f32 %v6869_v57, %v1202_v20  ;;  %v6988_v26 = vmul.f32 %v6875_v2, %v5970_v58  ;;  %v13259_v20 = vld [vmem:[#allocation71_spill] sm:$0xff] }
  0xfd   : > { %v897_v16 = vadd.f32 %v889_v39, %v877_v10  ;;  %v929_v46 = vmul.f32 %v13100_v32, %v13223_v21  ;;  %v1111_v54 = vadd.f32 %v1103_v35, %v1095_v52  ;;  %v6994_v23 = vsel %vm333_vm1, %v1268_v50, 0.0 }
  0xfe   : > { %v1388_v14 = vadd.f32 %v13255_v53, %v1373_v60  ;;  %v6998_v59 = vmul.f32 %v6979_v51, %v5980_v62  ;;  %v1297_v57 = vadd.f32 %v6879_v22, %v1217_v36  ;;  %v7003_v47 = vmul.f32 %v6733_v30, %v13155_v6 }
  0xff   : > { %v917_v39 = vadd.f32 %v909_v12, %v897_v16  ;;  %v949_v21 = vmul.f32 %v6483_v24, %v13258_v25  ;;  %v1126_v35 = vadd.f32 %v1119_v48, %v1111_v54  ;;  %v7010_v50 = vmul.f32 %v6836_v61, %v5993_v3  ;;  %v13263_v48 = vld [vmem:[#allocation75_spill] sm:$0xff] }
 0x100   : > { %13256 = vst [vmem:[#allocation72_spill] sm:$0xff] %v6998_v59  ;;  %13257 = vst [vmem:[#allocation77_spill] sm:$0xff] %v7003_v47  ;;  %v1404_v60 = vadd.f32 %v13259_v20, %v1388_v14  ;;  %v7014_v10 = vmul.f32 %v6939_v63, %v6008_v28  ;;  %v1313_v22 = vadd.f32 %v6884_v45, %v1297_v57  ;;  %v13266_v14 = vld [vmem:[#allocation89_spill] sm:$0xff]  ;;  %v13268_v57 = vld [vmem:[#allocation96_spill] sm:$0xff] }
 0x101   : > { %13260 = vst [vmem:[#allocation83_spill] sm:$0xff] %v7010_v50  ;;  %v7019_v30 = vmul.f32 %v6787_v11, %v13162_v55  ;;  %v937_v19 = vadd.f32 %v929_v46, %v917_v39  ;;  %v969_v12 = vmul.f32 %v13133_v33, %v13198_v42  ;;  %v1141_v36 = vadd.f32 %v1133_v37, %v1126_v35  ;;  %v13267_v46 = vld [vmem:[#allocation42_spill] sm:$0xff]  ;;  %v13270_v37 = vld [vmem:[#allocation17_spill] sm:$0xff]  ;;  %v13275_v50 = vld [vmem:[#allocation23_spill] sm:$0xff] }
 0x102   : > { %13261 = vst [vmem:[#allocation32_spill] sm:$0xff] %v7014_v10  ;;  %v1419_v52 = vadd.f32 %v13263_v48, %v1404_v60  ;;  %v7026_v16 = vmul.f32 %v6890_v41, %v6041_v0  ;;  %v7030_v45 = vmul.f32 %v6994_v23, %v6049_v29  ;;  %v1328_v11 = vadd.f32 %v6894_v31, %v1313_v22  ;;  %v13269_v42 = vld [vmem:[#allocation54_spill] sm:$0xff]  ;;  %v13271_v60 = vld [vmem:[#allocation85_spill] sm:$0xff]  ;;  %v13274_v31 = vld [vmem:[#allocation31_spill] sm:$0xff] }
 0x103   : > { %13262 = vst [vmem:[#allocation57_spill] sm:$0xff] %v7019_v30  ;;  %v957_v53 = vadd.f32 %v949_v21, %v937_v19  ;;  %v989_v54 = vmul.f32 %v13267_v46, %v13266_v14  ;;  %v1009_v39 = vmul.f32 %v13269_v42, %v13268_v57  ;;  %v1157_v20 = vadd.f32 %v1149_v8, %v1141_v36  ;;  %v13272_v48 = vld [vmem:[#allocation18_spill] sm:$0xff]  ;;  %v13273_v30 = vld [vmem:[#allocation97_spill] sm:$0xff]  ;;  %v5408_v19 = vld [vmem:[%s5824_s5 + $0x60] sm:$0xff] }
 0x104   : > { %13264 = vst [vmem:[#allocation86_spill] sm:$0xff] %v7026_v16  ;;  %13265 = vst [vmem:[#allocation74_spill] sm:$0xff] %v7030_v45  ;;  %v1088_v35 = vmul.f32 %v13271_v60, %v13270_v37  ;;  %v1104_v16 = vmul.f32 %v13239_v5, %v13272_v48  ;;  %v1120_v45 = vmul.f32 %v13273_v30, %v13238_v27  ;;  %v7045_v10 = vld [vmem:[%s5824_s5 + $0xb0] sm:$0xff]  ;;  %v13276_v59 = vld [vmem:[#allocation26_spill] sm:$0xff] }
 0x105   : > { %5096 = vst [vmem:[%s6195_s6 + $0x50] sm:$0xff] %v1419_v52  ;;  %v1343_v21 = vadd.f32 %v13274_v31, %v1328_v11  ;;  %v977_v22 = vadd.f32 %v969_v12, %v957_v53  ;;  %v1134_v47 = vmul.f32 %v5408_v19, %v13275_v50  ;;  %v13277_v52 = vld [vmem:[#allocation88_spill] sm:$0xff]  ;;  %v1172_v36 = vadd.f32 %v1165_v7, %v1157_v20  ;;  %v13279_v60 = vld [vmem:[#allocation94_spill] sm:$0xff]  ;;  %v13281_v48 = vld [vmem:[#allocation53_spill] sm:$0xff] }
 0x106   : > { %v1150_v8 = vmul.f32 %v13277_v52, %v13276_v59  ;;  %v13278_v42 = vld [vmem:[#allocation28_spill] sm:$0xff]  ;;  %v850_v5 = vmul.f32 %v13281_v48, %v13215_v4  ;;  %v870_v27 = vmul.f32 %v13177_v18, %v13250_v17  ;;  %v7063_v53 = vmul.f32 %v13219_v9, %v13248_v13  ;;  %v13283_v19 = vld [vmem:[#allocation43_spill] sm:$0xff]  ;;  %v13287_v9 = vld [vmem:[#allocation98_spill] sm:$0xff] }
 0x107   : > { %v7054_v37 = vmul.f32 %v13279_v60, %v13278_v42  ;;  %v13282_v30 = vld [vmem:[#allocation84_spill] sm:$0xff]  ;;  %v997_v11 = vadd.f32 %v989_v54, %v977_v22  ;;  %v1245_v7 = vrot.slane %v7045_v10, 7  ;;  %v1187_v20 = vadd.f32 %v6959_v43, %v1172_v36  ;;  %v13284_v4 = vld [vmem:[#allocation95_spill] sm:$0xff] }
 0x108   : > { %v1359_v12 = vadd.f32 %v13282_v30, %v1343_v21  ;;  %v1269_v31 = vrot.slane %v7045_v10, 1  ;;  %v858_v52 = vadd.f32 %v13283_v19, %v850_v5  ;;  %v13286_v18 = vld [vmem:[#allocation48_spill] sm:$0xff]  ;;  %v7074_v30 = vmul.f32 %v13253_v15, %v5940_v44 }
 0x109   : > { %13280 = vst [vmem:[#allocation36_spill] sm:$0xff] %v7054_v37  ;;  %v13285_v37 = vld [vmem:[#allocation60_spill] sm:$0xff]  ;;  %v1017_v42 = vadd.f32 %v1009_v39, %v997_v11  ;;  %v7078_v54 = vmul.f32 %v13287_v9, %v13150_v38  ;;  %v1203_v43 = vadd.f32 %v6967_v1, %v1187_v20  ;;  %v7083_v21 = vmul.f32 %v6875_v2, %v13152_v56 }
 0x10a   : > { %v890_v48 = vmul.f32 %v13285_v37, %v13284_v4  ;;  %v1374_v17 = vadd.f32 %v13286_v18, %v1359_v12  ;;  %v878_v5 = vadd.f32 %v870_v27, %v858_v52  ;;  %v5409_v22 = vld [vmem:[%s5824_s5 + $0x28] sm:$0xff]  ;;  %v13288_v18 = vld [vmem:[#allocation73_spill] sm:$0xff]  ;;  %v7089_v11 = vsel %vm305_vm0, 0.0, %v1245_v7 }
 0x10b   : > { %v910_v36 = vmul.f32 %v5409_v22, %v13094_v49  ;;  %v1096_v12 = vadd.f32 %v1088_v35, %v1017_v42  ;;  %v7093_v37 = vmul.f32 %v6979_v51, %v5970_v58  ;;  %v1218_v1 = vadd.f32 %v6973_v40, %v1203_v43  ;;  %v13289_v52 = vld [vmem:[#allocation24_spill] sm:$0xff]  ;;  %v13293_v43 = vld [vmem:[#allocation70_spill] sm:$0xff] }
 0x10c   : > { %v1389_v39 = vadd.f32 %v13288_v18, %v1374_v17  ;;  %v7097_v20 = vsel %vm333_vm1, %v1269_v31, 0.0  ;;  %v898_v2 = vadd.f32 %v890_v48, %v878_v5  ;;  %v930_v27 = vmul.f32 %v13100_v32, %v13258_v25  ;;  %v13292_v25 = vld [vmem:[#allocation93_spill] sm:$0xff] }
 0x10d   : > { %v1112_v17 = vadd.f32 %v1104_v16, %v1096_v12  ;;  %v7104_v42 = vmul.f32 %v7089_v11, %v5980_v62  ;;  %v7108_v35 = vmul.f32 %v6836_v61, %v13155_v6  ;;  %v1298_v40 = vadd.f32 %v6983_v34, %v1218_v1 }
 0x10e   : > { %v1405_v22 = vadd.f32 %v13289_v52, %v1389_v39  ;;  %v7113_v48 = vmul.f32 %v6939_v63, %v5993_v3  ;;  %v918_v7 = vadd.f32 %v910_v36, %v898_v2  ;;  %v950_v31 = vmul.f32 %v6483_v24, %v13292_v25  ;;  %v13298_v2 = vld [vmem:[#allocation100_spill] sm:$0xff]  ;;  %v13301_v25 = vld [vmem:[#allocation17_spill] sm:$0xff] }
 0x10f   : > { %13290 = vst [vmem:[#allocation81_spill] sm:$0xff] %v7108_v35  ;;  %v1127_v5 = vadd.f32 %v1120_v45, %v1112_v17  ;;  %v7120_v18 = vmul.f32 %v7045_v10, %v6008_v28  ;;  %v7124_v61 = vmul.f32 %v6890_v41, %v13162_v55  ;;  %v1314_v34 = vadd.f32 %v6988_v26, %v1298_v40  ;;  %v13299_v26 = vld [vmem:[#allocation54_spill] sm:$0xff] }
 0x110   : > { %13291 = vst [vmem:[#allocation37_spill] sm:$0xff] %v7113_v48  ;;  %v1420_v16 = vadd.f32 %v13293_v43, %v1405_v22  ;;  %v7129_v36 = vmul.f32 %v6994_v23, %v6041_v0  ;;  %v938_v39 = vadd.f32 %v930_v27, %v918_v7  ;;  %v970_v45 = vmul.f32 %v13133_v33, %v13266_v14  ;;  %v13300_v22 = vld [vmem:[#allocation72_spill] sm:$0xff]  ;;  %v13302_v27 = vld [vmem:[#allocation91_spill] sm:$0xff]  ;;  %v13303_v43 = vld [vmem:[#allocation18_spill] sm:$0xff] }
 0x111   : > { %13294 = vst [vmem:[#allocation65_spill] sm:$0xff] %v7120_v18  ;;  %13295 = vst [vmem:[#allocation78_spill] sm:$0xff] %v7124_v61  ;;  %v1142_v12 = vadd.f32 %v1134_v47, %v1127_v5  ;;  %v7136_v1 = vmul.f32 %v7097_v20, %v6049_v29  ;;  %v990_v41 = vmul.f32 %v13267_v46, %v13268_v57  ;;  %v13304_v14 = vld [vmem:[#allocation97_spill] sm:$0xff]  ;;  %v7148_v47 = vld [vmem:[%s5824_s5 + $0xb8] sm:$0xff] }
 0x112   : > { %13296 = vst [vmem:[#allocation104_spill] sm:$0xff] %v7129_v36  ;;  %5097 = vst [vmem:[%s6195_s6 + $0x58] sm:$0xff] %v1420_v16  ;;  %v1010_v52 = vmul.f32 %v13299_v26, %v13298_v2  ;;  %v1329_v17 = vadd.f32 %v13300_v22, %v1314_v34  ;;  %v958_v40 = vadd.f32 %v950_v31, %v938_v39  ;;  %v13305_v36 = vld [vmem:[#allocation21_spill] sm:$0xff]  ;;  %v5410_v18 = vld [vmem:[%s5824_s5 + $0x68] sm:$0xff] }
 0x113   : > { %13297 = vst [vmem:[#allocation79_spill] sm:$0xff] %v7136_v1  ;;  %v1089_v7 = vmul.f32 %v13302_v27, %v13301_v25  ;;  %v1105_v16 = vmul.f32 %v13304_v14, %v13303_v43  ;;  %v1158_v5 = vadd.f32 %v1150_v8, %v1142_v12  ;;  %v13306_v1 = vld [vmem:[#allocation101_spill] sm:$0xff]  ;;  %v1135_v48 = vmul.f32 %v5410_v18, %v13275_v50  ;;  %v13308_v22 = vld [vmem:[#allocation28_spill] sm:$0xff]  ;;  %v13309_v27 = vld [vmem:[#allocation99_spill] sm:$0xff] }
 0x114   : > { %v1121_v61 = vmul.f32 %v13306_v1, %v13305_v36  ;;  %v1151_v26 = vmul.f32 %v13279_v60, %v13276_v59  ;;  %v13307_v34 = vld [vmem:[#allocation77_spill] sm:$0xff]  ;;  %v978_v39 = vadd.f32 %v970_v45, %v958_v40  ;;  %v7159_v35 = vmul.f32 %v13309_v27, %v13308_v22  ;;  %v13310_v43 = vld [vmem:[#allocation90_spill] sm:$0xff]  ;;  %v13312_v8 = vld [vmem:[#allocation36_spill] sm:$0xff] }
 0x115   : > { %v1344_v31 = vadd.f32 %v13307_v34, %v1329_v17  ;;  %v13311_v14 = vld [vmem:[#allocation53_spill] sm:$0xff]  ;;  %v1173_v12 = vadd.f32 %v13312_v8, %v1158_v5  ;;  %v1246_v36 = vrot.slane %v7148_v47, 7  ;;  %v1270_v18 = vrot.slane %v7148_v47, 1  ;;  %v13313_v50 = vld [vmem:[#allocation62_spill] sm:$0xff]  ;;  %v13314_v59 = vld [vmem:[#allocation83_spill] sm:$0xff] }
 0x116   : > { %v851_v25 = vmul.f32 %v13311_v14, %v13310_v43  ;;  %v871_v60 = vmul.f32 %v13313_v50, %v13284_v4  ;;  %v998_v45 = vadd.f32 %v990_v41, %v978_v39  ;;  %v7171_v40 = vmul.f32 %v13253_v15, %v13248_v13  ;;  %v13315_v27 = vld [vmem:[#allocation102_spill] sm:$0xff]  ;;  %v13316_v15 = vld [vmem:[#allocation32_spill] sm:$0xff] }
 0x117   : > { %v1360_v17 = vadd.f32 %v13314_v59, %v1344_v31  ;;  %v1188_v43 = vadd.f32 %v7063_v53, %v1173_v12  ;;  %v7177_v5 = vmul.f32 %v13287_v9, %v5940_v44  ;;  %v7181_v8 = vmul.f32 %v13315_v27, %v13150_v38  ;;  %v5411_v31 = vld [vmem:[%s5824_s5 + $0x30] sm:$0xff] }
 0x118   : > { %v859_v34 = vadd.f32 %v13283_v19, %v851_v25  ;;  %v7185_v59 = vmul.f32 %v6979_v51, %v13152_v56  ;;  %v1018_v41 = vadd.f32 %v1010_v52, %v998_v45  ;;  %v911_v53 = vmul.f32 %v5411_v31, %v13094_v49  ;;  %v13317_v19 = vld [vmem:[#allocation57_spill] sm:$0xff]  ;;  %v7206_v31 = vld [vmem:[%s5824_s5 + $0x40] sm:$0xff] }
 0x119   : > { %v1375_v4 = vadd.f32 %v13316_v15, %v1360_v17  ;;  %v1204_v39 = vadd.f32 %v7074_v30, %v1188_v43  ;;  %v7192_v12 = vsel %vm305_vm0, 0.0, %v1246_v36  ;;  %v7195_v38 = vsel %vm333_vm1, %v1270_v18, 0.0  ;;  %v13319_v43 = vld [vmem:[#allocation86_spill] sm:$0xff] }
 0x11a   : > { %v879_v25 = vadd.f32 %v871_v60, %v859_v34  ;;  %v7199_v51 = vmul.f32 %v7089_v11, %v5970_v58  ;;  %v1097_v52 = vadd.f32 %v1089_v7, %v1018_v41  ;;  %v13318_v60 = vld [vmem:[#allocation67_spill] sm:$0xff]  ;;  %v5412_v34 = vld [vmem:[%s5824_s5 + $0x38] sm:$0xff]  ;;  %v7211_v36 = vmul.f32 %v7192_v12, %v5980_v62  ;;  %v7222_v7 = vld [vmem:[%s5824_s5 + $0x48] sm:$0xff] }
 0x11b   : > { %v1390_v17 = vadd.f32 %v13317_v19, %v1375_v4  ;;  %v931_v15 = vmul.f32 %v5412_v34, %v13100_v32  ;;  %v1219_v30 = vadd.f32 %v7078_v54, %v1204_v39  ;;  %v7215_v18 = vmul.f32 %v6939_v63, %v13155_v6  ;;  %v13321_v62 = vld [vmem:[#allocation74_spill] sm:$0xff] }
 0x11c   : > { %v899_v45 = vadd.f32 %v13318_v60, %v879_v25  ;;  %v7219_v19 = vmul.f32 %v7045_v10, %v5993_v3  ;;  %v1113_v41 = vadd.f32 %v1105_v16, %v1097_v52  ;;  %v7226_v54 = vmul.f32 0.0, %v6483_v24 }
 0x11d   : > { %v1406_v4 = vadd.f32 %v13319_v43, %v1390_v17  ;;  %v1299_v39 = vadd.f32 %v7083_v21, %v1219_v30  ;;  %v7231_v63 = vmul.f32 %v7148_v47, %v6008_v28  ;;  %v971_v34 = vmul.f32 %v13133_v33, %v13268_v57  ;;  %v13330_v28 = vld [vmem:[#allocation23_spill] sm:$0xff] }
 0x11e   : > { %v919_v25 = vadd.f32 %v911_v53, %v899_v45  ;;  %13320 = vst [vmem:[#allocation80_spill] sm:$0xff] %v7226_v54  ;;  %v1450_v60 = vrot.slane %v7206_v31, 7  ;;  %v1128_v17 = vadd.f32 %v1121_v61, %v1113_v41  ;;  %v1451_v16 = vrot.slane %v7222_v7, 7  ;;  %v13326_v41 = vld [vmem:[#allocation97_spill] sm:$0xff] }
 0x11f   : > { %v1421_v49 = vadd.f32 %v13321_v62, %v1406_v4  ;;  %v1315_v53 = vadd.f32 %v7093_v37, %v1299_v39  ;;  %v7241_v21 = vmul.f32 %v6994_v23, %v13162_v55  ;;  %v991_v52 = vmul.f32 %v13267_v46, %v13298_v2  ;;  %v13325_v4 = vld [vmem:[#allocation17_spill] sm:$0xff]  ;;  %v13327_v39 = vld [vmem:[#allocation66_spill] sm:$0xff] }
 0x120   : > { %v939_v43 = vadd.f32 %v931_v15, %v919_v25  ;;  %v7246_v45 = vsel %vm305_vm0, 0.0, %v1450_v60  ;;  %v1143_v57 = vadd.f32 %v1135_v48, %v1128_v17  ;;  %v7251_v61 = vsel %vm305_vm0, 0.0, %v1451_v16  ;;  %v13329_v16 = vld [vmem:[#allocation18_spill] sm:$0xff] }
 0x121   : > { %5098 = vst [vmem:[%s6195_s6 + $0x60] sm:$0xff] %v1421_v49  ;;  %v1512_v37 = vmul.f32 %v7246_v45, %v13313_v50  ;;  %v1330_v23 = vadd.f32 %v7104_v42, %v1315_v53  ;;  %v7258_v15 = vmul.f32 %v7097_v20, %v6041_v0  ;;  %v7262_v2 = vmul.f32 %v7195_v38, %v6049_v29  ;;  %v13324_v49 = vld [vmem:[#allocation60_spill] sm:$0xff]  ;;  %v13328_v42 = vld [vmem:[#allocation81_spill] sm:$0xff] }
 0x122   : > { %v959_v62 = vadd.f32 %v7226_v54, %v939_v43  ;;  %v1528_v48 = vmul.f32 %v7251_v61, %v13324_v49  ;;  %v1159_v60 = vadd.f32 %v1151_v26, %v1143_v57  ;;  %v1090_v25 = vmul.f32 %v13326_v41, %v13325_v4  ;;  %v5413_v54 = vld [vmem:[%s5824_s5 + $0x70] sm:$0xff] }
 0x123   : > { %13322 = vst [vmem:[#allocation76_spill] sm:$0xff] %v7258_v15  ;;  %13323 = vst [vmem:[#allocation82_spill] sm:$0xff] %v7262_v2  ;;  %v1520_v17 = vadd.f32 %v1512_v37, %v13327_v39  ;;  %v1345_v43 = vadd.f32 %v13328_v42, %v1330_v23  ;;  %v1106_v53 = vmul.f32 %v13306_v1, %v13329_v16  ;;  %v1474_v2 = vrot.slane %v7206_v31, 1  ;;  %v13331_v57 = vld [vmem:[#allocation37_spill] sm:$0xff]  ;;  %v5414_v37 = vld [vmem:[%s5824_s5 + $0x78] sm:$0xff] }
 0x124   : > { %v979_v30 = vadd.f32 %v971_v34, %v959_v62  ;;  %v1136_v29 = vmul.f32 %v5413_v54, %v13330_v28  ;;  %v1174_v33 = vadd.f32 %v7159_v35, %v1159_v60  ;;  %v1558_v34 = vmul.f32 %v7206_v31, %v13100_v32  ;;  %v13332_v23 = vld [vmem:[#allocation26_spill] sm:$0xff]  ;;  %v13335_v42 = vld [vmem:[#allocation65_spill] sm:$0xff] }
 0x125   : > { %v1535_v26 = vadd.f32 %v1528_v48, %v1520_v17  ;;  %v1361_v62 = vadd.f32 %v13331_v57, %v1345_v43  ;;  %v1152_v41 = vmul.f32 %v5414_v37, %v13332_v23  ;;  %v7283_v1 = vmul.f32 %v13287_v9, %v13248_v13  ;;  %v13334_v48 = vld [vmem:[#allocation103_spill] sm:$0xff] }
 0x126   : > { %v999_v15 = vadd.f32 %v991_v52, %v979_v30  ;;  %v1475_v54 = vrot.slane %v7222_v7, 1  ;;  %v1189_v35 = vadd.f32 %v7171_v40, %v1174_v33  ;;  %v13333_v52 = vld [vmem:[#allocation69_spill] sm:$0xff]  ;;  %v1574_v17 = vmul.f32 %v7222_v7, %v6483_v24  ;;  %v7305_v40 = vld [vmem:[%s5824_s5 + $0x80] sm:$0xff] }
 0x127   : > { %v1550_v30 = vadd.f32 %v1535_v26, %v13334_v48  ;;  %v1376_v43 = vadd.f32 %v13335_v42, %v1361_v62  ;;  %v7294_v57 = vmul.f32 %v13315_v27, %v5940_v44  ;;  %v7298_v9 = vmul.f32 %v7089_v11, %v13152_v56  ;;  %v7312_v42 = vld [vmem:[%s5824_s5 + $0x88] sm:$0xff]  ;;  %v13336_v27 = vld [vmem:[#allocation78_spill] sm:$0xff] }
 0x128   : > { %v1019_v60 = vadd.f32 %v13333_v52, %v999_v15  ;;  %v7302_v33 = vmul.f32 %v7192_v12, %v5970_v58  ;;  %v1205_v15 = vadd.f32 %v7177_v5, %v1189_v35  ;;  %v7309_v37 = vsel %vm333_vm1, %v1474_v2, 0.0  ;;  %v13337_v35 = vld [vmem:[#allocation104_spill] sm:$0xff] }
 0x129   : > { %v1566_v62 = vadd.f32 %v1558_v34, %v1550_v30  ;;  %v1391_v48 = vadd.f32 %v13336_v27, %v1376_v43  ;;  %v7317_v11 = vmul.f32 %v7045_v10, %v13155_v6  ;;  %v7320_v12 = vsel %vm333_vm1, %v1475_v54, 0.0  ;;  %v13338_v27 = vld [vmem:[#allocation33_spill] sm:$0xff]  ;;  %v13339_v6 = vld [vmem:[#allocation68_spill] sm:$0xff] }
 0x12a   : > { %v1098_v26 = vadd.f32 %v1090_v25, %v1019_v60  ;;  %v1604_v52 = vmul.f32 %v7309_v37, %v13267_v46  ;;  %v1220_v5 = vadd.f32 %v7181_v8, %v1205_v15  ;;  %v1651_v34 = vrot.slane %v7305_v40, 7  ;;  %v13341_v15 = vld [vmem:[#allocation79_spill] sm:$0xff] }
 0x12b   : > { %v1581_v2 = vadd.f32 %v1574_v17, %v1566_v62  ;;  %v1407_v60 = vadd.f32 %v13337_v35, %v1391_v48  ;;  %v1652_v30 = vrot.slane %v7312_v42, 7  ;;  %v1675_v10 = vrot.slane %v7305_v40, 1 }
 0x12c   : > { %v1114_v25 = vadd.f32 %v1106_v53, %v1098_v26  ;;  %v1676_v54 = vrot.slane %v7312_v42, 1  ;;  %v1300_v43 = vadd.f32 %v7185_v59, %v1220_v5  ;;  %v13340_v53 = vld [vmem:[#allocation54_spill] sm:$0xff]  ;;  %v7338_v48 = vmul.f32 %v7148_v47, %v5993_v3 }
 0x12d   : > { %v1596_v8 = vadd.f32 %v1581_v2, %v13339_v6  ;;  %v1620_v17 = vmul.f32 %v7320_v12, %v13340_v53  ;;  %v1422_v26 = vadd.f32 %v13341_v15, %v1407_v60  ;;  %v7342_v62 = vmul.f32 %v7097_v20, %v13162_v55  ;;  %v7353_v60 = vld [vmem:[%s5824_s5 + $0x50] sm:$0xff] }
 0x12e   : > { %v1129_v39 = vadd.f32 %v1114_v25, %v13338_v27  ;;  %v7346_v59 = vmul.f32 %v7195_v38, %v6041_v0  ;;  %v1316_v5 = vadd.f32 %v7199_v51, %v1300_v43  ;;  %v7350_v35 = vsel %vm305_vm0, 0.0, %v1651_v34  ;;  %13344 = vst [vmem:[#allocation92_spill] sm:$0xff] %v7353_v60  ;;  %v13345_v34 = vld [vmem:[#allocation21_spill] sm:$0xff] }
 0x12f   : > { %13342 = vst [vmem:[#allocation49_spill] sm:$0xff] %v7342_v62  ;;  %v1612_v2 = vadd.f32 %v1604_v52, %v1596_v8  ;;  %5099 = vst [vmem:[%s6195_s6 + $0x68] sm:$0xff] %v1422_v26  ;;  %v7357_v47 = vsel %vm305_vm0, 0.0, %v1652_v30  ;;  %v7360_v20 = vsel %vm333_vm1, %v1675_v10, 0.0  ;;  %v7363_v38 = vsel %vm333_vm1, %v1676_v54, 0.0  ;;  %v7371_v8 = vld [vmem:[%s5824_s5 + $0xc0] sm:$0xff] }
 0x130   : > { %13343 = vst [vmem:[#allocation47_spill] sm:$0xff] %v7346_v59  ;;  %v1144_v25 = vadd.f32 %v1136_v29, %v1129_v39  ;;  %v1714_v51 = vmul.f32 %v7350_v35, %v13329_v16  ;;  %v1331_v29 = vadd.f32 %v7211_v36, %v1316_v5  ;;  %v1730_v43 = vmul.f32 %v7357_v47, %v13345_v34  ;;  %v7374_v30 = vld [vmem:[%s5824_s5 + $0xc8] sm:$0xff]  ;;  %v13347_v5 = vld [vmem:[#allocation22_spill] sm:$0xff] }
 0x131   : > { %v1627_v52 = vadd.f32 %v1620_v17, %v1612_v2  ;;  %v1760_v10 = vmul.f32 %v7305_v40, %v13332_v23  ;;  %v1776_v54 = vmul.f32 %v7312_v42, %v13308_v22  ;;  %v1806_v15 = vmul.f32 %v7360_v20, %v5940_v44  ;;  %v13346_v17 = vld [vmem:[#allocation25_spill] sm:$0xff] }
 0x132   : > { %v1160_v39 = vadd.f32 %v1152_v41, %v1144_v25  ;;  %v1452_v36 = vrot.slane %v7353_v60, 7  ;;  %v1346_v41 = vadd.f32 %v7215_v18, %v1331_v29  ;;  %v1498_v2 = vmul.f32 %v7246_v45, %v13311_v14 }
 0x133   : > { %v1706_v25 = vadd.f32 %v1627_v52, %v13347_v5  ;;  %v1854_v6 = vrot.slane %v7371_v8, 7  ;;  %v1855_v27 = vrot.slane %v7374_v30, 7  ;;  %v1513_v56 = vmul.f32 %v7251_v61, %v13313_v50 }
 0x134   : > { %v1175_v26 = vadd.f32 %v1160_v39, %v13346_v17  ;;  %v7391_v55 = vsel %vm305_vm0, 0.0, %v1452_v36  ;;  %v1362_v59 = vadd.f32 %v7219_v19, %v1346_v41  ;;  %v13349_v39 = vld [vmem:[#allocation43_spill] sm:$0xff]  ;;  %v1878_v5 = vrot.slane %v7371_v8, 1 }
 0x135   : > { %13348 = vst [vmem:[#allocation46_spill] sm:$0xff] %v7391_v55  ;;  %v1722_v29 = vadd.f32 %v1714_v51, %v1706_v25  ;;  %v1505_v52 = vadd.f32 %v13349_v39, %v1498_v2  ;;  %v1879_v45 = vrot.slane %v7374_v30, 1  ;;  %v1529_v17 = vmul.f32 %v7391_v55, %v13324_v49  ;;  %v13350_v36 = vld [vmem:[#allocation63_spill] sm:$0xff] }
 0x136   : > { %v1190_v18 = vadd.f32 %v7283_v1, %v1175_v26  ;;  %v1543_v62 = vmul.f32 %v7206_v31, %v13350_v36  ;;  %v1377_v44 = vadd.f32 %v7231_v63, %v1362_v59  ;;  %v13351_v51 = vld [vmem:[#allocation35_spill] sm:$0xff]  ;;  %v7409_v25 = vsel %vm305_vm0, 0.0, %v1854_v6  ;;  %v13352_v36 = vld [vmem:[#allocation40_spill] sm:$0xff] }
 0x137   : > { %v1737_v41 = vadd.f32 %v1730_v43, %v1722_v29  ;;  %v1521_v1 = vadd.f32 %v1513_v56, %v1505_v52  ;;  %v1822_v26 = vmul.f32 %v7363_v38, %v13351_v51  ;;  %v7412_v2 = vsel %vm305_vm0, 0.0, %v1855_v27  ;;  %v13353_v59 = vld [vmem:[#allocation27_spill] sm:$0xff]  ;;  %v7420_v56 = vld [vmem:[%s5824_s5 + $0x90] sm:$0xff]  ;;  %v13355_v52 = vld [vmem:[#allocation76_spill] sm:$0xff] }
 0x138   : > { %v1206_v19 = vadd.f32 %v7294_v57, %v1190_v18  ;;  %v1559_v49 = vmul.f32 %v7222_v7, %v13100_v32  ;;  %v1392_v31 = vadd.f32 %v7241_v21, %v1377_v44  ;;  %13354 = vst [vmem:[#allocation29_spill] sm:$0xff] %v7420_v56  ;;  %v7423_v18 = vsel %vm333_vm1, %v1878_v5, 0.0  ;;  %v13356_v5 = vld [vmem:[#allocation61_spill] sm:$0xff] }
 0x139   : > { %v1752_v57 = vadd.f32 %v1737_v41, %v13353_v59  ;;  %v1536_v43 = vadd.f32 %v1529_v17, %v1521_v1  ;;  %v7426_v6 = vsel %vm333_vm1, %v1879_v45, 0.0  ;;  %v1476_v27 = vrot.slane %v7353_v60, 1 }
 0x13a   : > { %v1221_v63 = vadd.f32 %v1206_v19, %v13352_v36  ;;  %v1575_v29 = vmul.f32 %v7353_v60, %v6483_v24  ;;  %v1408_v44 = vadd.f32 %v13355_v52, %v1392_v31  ;;  %v1917_v41 = vmul.f32 %v7409_v25, %v5970_v58  ;;  %v13357_v36 = vld [vmem:[#allocation82_spill] sm:$0xff]  ;;  %v13358_v60 = vld [vmem:[#allocation41_spill] sm:$0xff] }
 0x13b   : > { %v1768_v19 = vadd.f32 %v1760_v10, %v1752_v57  ;;  %v1551_v17 = vadd.f32 %v1543_v62, %v1536_v43  ;;  %v1589_v1 = vmul.f32 %v7309_v37, %v13356_v5  ;;  %v1653_v45 = vrot.slane %v7420_v56, 7  ;;  %v13359_v10 = vld [vmem:[#allocation50_spill] sm:$0xff] }
 0x13c   : > { %v1301_v21 = vadd.f32 %v7298_v9, %v1221_v63  ;;  %v1677_v59 = vrot.slane %v7420_v56, 1  ;;  %v1423_v32 = vadd.f32 %v13357_v36, %v1408_v44  ;;  %v1933_v9 = vmul.f32 %v7412_v2, %v13358_v60 }
 0x13d   : > { %v1783_v31 = vadd.f32 %v1776_v54, %v1768_v19  ;;  %v1567_v52 = vadd.f32 %v1559_v49, %v1551_v17  ;;  %v7445_v62 = vmul.f32 %v7371_v8, %v5993_v3  ;;  %v7449_v37 = vmul.f32 %v7374_v30, %v13359_v10  ;;  %v13361_v49 = vld [vmem:[#allocation38_spill] sm:$0xff] }
 0x13e   : > { %v1317_v24 = vadd.f32 %v7302_v33, %v1301_v21  ;;  %v7452_v63 = vsel %vm333_vm1, %v1476_v27, 0.0  ;;  %5100 = vst [vmem:[%s6195_s6 + $0x70] sm:$0xff] %v1423_v32  ;;  %v13360_v33 = vld [vmem:[#allocation16_spill] sm:$0xff]  ;;  %v1605_v43 = vmul.f32 %v7320_v12, %v13267_v46  ;;  %v7461_v44 = vmul.f32 %v7423_v18, %v6041_v0  ;;  %v13362_v21 = vld [vmem:[#allocation58_spill] sm:$0xff] }
 0x13f   : > { %v1798_v36 = vadd.f32 %v1783_v31, %v13361_v49  ;;  %v1582_v57 = vadd.f32 %v1575_v29, %v1567_v52  ;;  %v7465_v19 = vmul.f32 %v7426_v6, %v13362_v21  ;;  %v1621_v27 = vmul.f32 %v7452_v63, %v13340_v53  ;;  %v7477_v52 = vld [vmem:[%s5824_s5 + $0xd0] sm:$0xff]  ;;  %v7480_v49 = vld [vmem:[%s5824_s5 + $0x58] sm:$0xff] }
 0x140   : > { %v1332_v54 = vadd.f32 %v1317_v24, %v13360_v33  ;;  %v7470_v32 = vsel %vm305_vm0, 0.0, %v1653_v45  ;;  %v7474_v31 = vsel %vm333_vm1, %v1677_v59, 0.0  ;;  %v1699_v33 = vmul.f32 %v7350_v35, %v13325_v4 }
 0x141   : > { %13363 = vst [vmem:[#allocation87_spill] sm:$0xff] %v7465_v19  ;;  %13364 = vst [vmem:[#allocation71_spill] sm:$0xff] %v7470_v32  ;;  %v1814_v29 = vadd.f32 %v1806_v15, %v1798_v36  ;;  %v1597_v17 = vadd.f32 %v1589_v1, %v1582_v57  ;;  %v1715_v19 = vmul.f32 %v7357_v47, %v13329_v16  ;;  %v1856_v35 = vrot.slane %v7477_v52, 7 }
 0x142   : > { %v1347_v24 = vadd.f32 %v7317_v11, %v1332_v54  ;;  %v1731_v45 = vmul.f32 %v7470_v32, %v13345_v34  ;;  %v1745_v11 = vmul.f32 %v7305_v40, %v13330_v28  ;;  %v1761_v54 = vmul.f32 %v7312_v42, %v13332_v23  ;;  %v13365_v32 = vld [vmem:[#allocation19_spill] sm:$0xff] }
 0x143   : > { %v1829_v59 = vadd.f32 %v1822_v26, %v1814_v29  ;;  %v1613_v1 = vadd.f32 %v1605_v43, %v1597_v17  ;;  %v1777_v36 = vmul.f32 %v7420_v56, %v13308_v22  ;;  %v1453_v57 = vrot.slane %v7480_v49, 7  ;;  %v13366_v40 = vld [vmem:[#allocation51_spill] sm:$0xff] }
 0x144   : > { %v1363_v15 = vadd.f32 %v7338_v48, %v1347_v24  ;;  %v1499_v34 = vmul.f32 %v7251_v61, %v13311_v14  ;;  %v1514_v26 = vmul.f32 %v7391_v55, %v13313_v50  ;;  %v1791_v43 = vmul.f32 %v7360_v20, %v13248_v13  ;;  %v13367_v24 = vld [vmem:[#allocation34_spill] sm:$0xff]  ;;  %v13368_v14 = vld [vmem:[#allocation49_spill] sm:$0xff]  ;;  %v13370_v50 = vld [vmem:[#allocation63_spill] sm:$0xff] }
 0x145   : > { %v1909_v28 = vadd.f32 %v1829_v59, %v13366_v40  ;;  %v1628_v48 = vadd.f32 %v1621_v27, %v1613_v1  ;;  %v7507_v29 = vmul.f32 %v7363_v38, %v13367_v24  ;;  %v7510_v17 = vsel %vm305_vm0, 0.0, %v1453_v57  ;;  %v13369_v27 = vld [vmem:[#allocation60_spill] sm:$0xff]  ;;  %v13371_v55 = vld [vmem:[#allocation47_spill] sm:$0xff] }
 0x146   : > { %v1378_v16 = vadd.f32 %v1363_v15, %v13365_v32  ;;  %v1506_v61 = vadd.f32 %v13349_v39, %v1499_v34  ;;  %v1530_v1 = vmul.f32 %v7510_v17, %v13369_v27  ;;  %v7518_v40 = vmul.f32 %v7474_v31, %v13351_v51 }
 0x147   : > { %v1925_v32 = vadd.f32 %v1917_v41, %v1909_v28  ;;  %v1707_v59 = vadd.f32 %v1699_v33, %v1628_v48  ;;  %v1880_v20 = vrot.slane %v7477_v52, 1  ;;  %v1544_v57 = vmul.f32 %v7222_v7, %v13370_v50  ;;  %v13376_v50 = vld [vmem:[#allocation20_spill] sm:$0xff] }
 0x148   : > { %v1393_v15 = vadd.f32 %v13368_v14, %v1378_v16  ;;  %v1522_v24 = vadd.f32 %v1514_v26, %v1506_v61  ;;  %v7525_v14 = vsel %vm305_vm0, 0.0, %v1856_v35  ;;  %v13372_v16 = vld [vmem:[#allocation39_spill] sm:$0xff]  ;;  %v7533_v33 = vmul.f32 %v7412_v2, %v5970_v58  ;;  %v13374_v26 = vld [vmem:[#allocation64_spill] sm:$0xff] }
 0x149   : > { %v1940_v39 = vadd.f32 %v1933_v9, %v1925_v32  ;;  %v1723_v28 = vadd.f32 %v1715_v19, %v1707_v59  ;;  %v7529_v41 = vmul.f32 %v7409_v25, %v13372_v16  ;;  %v13375_v61 = vld [vmem:[#allocation92_spill] sm:$0xff]  ;;  %v13377_v9 = vld [vmem:[#allocation55_spill] sm:$0xff]  ;;  %v7544_v59 = vld [vmem:[%s5824_s5 + $0x98] sm:$0xff]  ;;  %v7547_v25 = vsel %vm333_vm1, %v1880_v20, 0.0 }
 0x14a   : > { %v1409_v34 = vadd.f32 %v13371_v55, %v1393_v15  ;;  %13373 = vst [vmem:[#allocation75_spill] sm:$0xff] %v7533_v33  ;;  %v1537_v48 = vadd.f32 %v1530_v1, %v1522_v24  ;;  %v1560_v7 = vmul.f32 %v13375_v61, %v13374_v26  ;;  %v13378_v15 = vld [vmem:[#allocation44_spill] sm:$0xff]  ;;  %v1477_v33 = vrot.slane %v7480_v49, 1  ;;  %v13379_v1 = vld [vmem:[#allocation15_spill] sm:$0xff] }
 0x14b   : > { %v1955_v32 = vadd.f32 %v1940_v39, %v13377_v9  ;;  %v1738_v19 = vadd.f32 %v1731_v45, %v1723_v28  ;;  %v7541_v35 = vmul.f32 %v7371_v8, %v13378_v15  ;;  %v1576_v26 = vmul.f32 %v7480_v49, %v13379_v1 }
 0x14c   : > { %v1424_v55 = vadd.f32 %v1409_v34, %v13376_v50  ;;  %v1552_v24 = vadd.f32 %v1544_v57, %v1537_v48  ;;  %v7556_v45 = vmul.f32 %v7525_v14, %v13358_v60  ;;  %v7560_v8 = vmul.f32 %v7374_v30, %v5993_v3 }
 0x14d   : > { %v1971_v34 = vadd.f32 %v7445_v62, %v1955_v32  ;;  %v1753_v39 = vadd.f32 %v1745_v11, %v1738_v19  ;;  %v1590_v28 = vmul.f32 %v7320_v12, %v13356_v5  ;;  %v1654_v57 = vrot.slane %v7544_v59, 7  ;;  %v13381_v32 = vld [vmem:[#allocation52_spill] sm:$0xff] }
 0x14e   : > { %5101 = vst [vmem:[%s6195_s6 + $0x78] sm:$0xff] %v1424_v55  ;;  %v1568_v20 = vadd.f32 %v1560_v7, %v1552_v24  ;;  %v1678_v48 = vrot.slane %v7544_v59, 1  ;;  %v7569_v11 = vmul.f32 %v7477_v52, %v13359_v10  ;;  %v7573_v19 = vmul.f32 %v7423_v18, %v13381_v32 }
 0x14f   : > { %v1986_v55 = vadd.f32 %v7449_v37, %v1971_v34  ;;  %v1769_v62 = vadd.f32 %v1761_v54, %v1753_v39  ;;  %v7577_v7 = vmul.f32 %v7426_v6, %v6041_v0  ;;  %v7580_v12 = vsel %vm333_vm1, %v1477_v33, 0.0  ;;  %v13384_v54 = vld [vmem:[#allocation59_spill] sm:$0xff] }
 0x150   : > { %13380 = vst [vmem:[#allocation89_spill] sm:$0xff] %v7569_v11  ;;  %13382 = vst [vmem:[#allocation96_spill] sm:$0xff] %v7573_v19  ;;  %v1583_v24 = vadd.f32 %v1576_v26, %v1568_v20  ;;  %v1606_v37 = vmul.f32 %v7452_v63, %v13267_v46  ;;  %v7587_v9 = vmul.f32 %v7547_v25, %v13362_v21  ;;  %v7595_v33 = vsel %vm333_vm1, %v1678_v48, 0.0  ;;  %v7600_v20 = vld [vmem:[%s5824_s5 + $0x60] sm:$0xff]  ;;  %v13390_v19 = vld [vmem:[#allocation21_spill] sm:$0xff] }
 0x151   : > { %13383 = vst [vmem:[#allocation85_spill] sm:$0xff] %v7577_v7  ;;  %v2001_v34 = vadd.f32 %v1986_v55, %v13384_v54  ;;  %v1784_v39 = vadd.f32 %v1777_v36, %v1769_v62  ;;  %v1622_v18 = vmul.f32 %v7580_v12, %v13340_v53  ;;  %v7592_v7 = vsel %vm305_vm0, 0.0, %v1654_v57  ;;  %13387 = vst [vmem:[#allocation94_spill] sm:$0xff] %v7595_v33  ;;  %v13388_v62 = vld [vmem:[#allocation18_spill] sm:$0xff]  ;;  %v13389_v54 = vld [vmem:[#allocation71_spill] sm:$0xff] }
 0x152   : > { %13385 = vst [vmem:[#allocation31_spill] sm:$0xff] %v7587_v9  ;;  %v1598_v50 = vadd.f32 %v1590_v28, %v1583_v24  ;;  %13386 = vst [vmem:[#allocation88_spill] sm:$0xff] %v7592_v7  ;;  %v1700_v26 = vmul.f32 %v7357_v47, %v13325_v4  ;;  %v1716_v9 = vmul.f32 %v13389_v54, %v13388_v62  ;;  %v7608_v57 = vld [vmem:[%s5824_s5 + $0xd8] sm:$0xff]  ;;  %v13391_v48 = vld [vmem:[#allocation23_spill] sm:$0xff] }
 0x153   : > { %v2017_v36 = vadd.f32 %v7461_v44, %v2001_v34  ;;  %v1799_v55 = vadd.f32 %v1791_v43, %v1784_v39  ;;  %v1732_v28 = vmul.f32 %v7592_v7, %v13390_v19  ;;  %v1746_v11 = vmul.f32 %v7312_v42, %v13391_v48  ;;  %v13392_v43 = vld [vmem:[#allocation87_spill] sm:$0xff]  ;;  %v13393_v48 = vld [vmem:[#allocation53_spill] sm:$0xff]  ;;  %v13394_v7 = vld [vmem:[#allocation46_spill] sm:$0xff] }
 0x154   : > { %v1614_v24 = vadd.f32 %v1606_v37, %v1598_v50  ;;  %v1762_v47 = vmul.f32 %v7420_v56, %v13332_v23  ;;  %v1778_v44 = vmul.f32 %v7544_v59, %v13308_v22  ;;  %v7620_v19 = vmul.f32 %v7363_v38, %v13248_v13  ;;  %v13395_v56 = vld [vmem:[#allocation62_spill] sm:$0xff] }
 0x155   : > { %v2032_v34 = vadd.f32 %v13392_v43, %v2017_v36  ;;  %v1815_v39 = vadd.f32 %v7507_v29, %v1799_v55  ;;  %v1454_v50 = vrot.slane %v7600_v20, 7  ;;  %v1857_v42 = vrot.slane %v7608_v57, 7  ;;  %v13396_v43 = vld [vmem:[#allocation34_spill] sm:$0xff] }
 0x156   : > { %v1629_v37 = vadd.f32 %v1622_v18, %v1614_v24  ;;  %v1500_v23 = vmul.f32 %v13394_v7, %v13393_v48  ;;  %v1515_v22 = vmul.f32 %v7510_v17, %v13395_v56  ;;  %v7632_v29 = vmul.f32 %v7474_v31, %v13396_v43  ;;  %v7643_v7 = vld [vmem:[%s5851_s30] ss:$0 sm:$0xff] }
 0x157   : > { %5126 = vst [vmem:[%s6195_s6 + $0x80] sm:$0xff] %v2032_v34  ;;  %v1830_v36 = vadd.f32 %v7518_v40, %v1815_v39  ;;  %v1881_v38 = vrot.slane %v7608_v57, 1  ;;  %v7636_v55 = vsel %vm305_vm0, 0.0, %v1454_v50  ;;  %v7640_v24 = vmul.f32 %v7595_v33, %v13351_v51  ;;  %13399 = vst [vmem:[#allocation48_spill] sm:$0xff] %v7643_v7  ;;  %v13402_v33 = vld [vmem:[#allocation63_spill] sm:$0xff] }
 0x158   : > { %13397 = vst [vmem:[#allocation84_spill] sm:$0xff] %v7636_v55  ;;  %v1708_v18 = vadd.f32 %v1700_v26, %v1629_v37  ;;  %v1507_v34 = vadd.f32 %v7643_v7, %v1500_v23  ;;  %v1531_v40 = vmul.f32 %v7636_v55, %v13369_v27  ;;  %v7651_v43 = vmul.f32 %v7412_v2, %v13372_v16 }
 0x159   : > { %13398 = vst [vmem:[#allocation95_spill] sm:$0xff] %v7640_v24  ;;  %v1910_v39 = vadd.f32 %v7529_v41, %v1830_v36  ;;  %v7655_v26 = vmul.f32 %v7525_v14, %v5970_v58  ;;  %v7659_v50 = vmul.f32 %v7374_v30, %v13378_v15  ;;  %v7662_v23 = vsel %vm305_vm0, 0.0, %v1857_v42  ;;  %v13403_v36 = vld [vmem:[#allocation75_spill] sm:$0xff] }
 0x15a   : > { %v1724_v37 = vadd.f32 %v1716_v9, %v1708_v18  ;;  %v1523_v51 = vadd.f32 %v1515_v22, %v1507_v34  ;;  %v1545_v41 = vmul.f32 %v13375_v61, %v13402_v33  ;;  %v7668_v2 = vsel %vm333_vm1, %v1881_v38, 0.0  ;;  %v13406_v61 = vld [vmem:[#allocation64_spill] sm:$0xff] }
 0x15b   : > { %13400 = vst [vmem:[#allocation98_spill] sm:$0xff] %v7655_v26  ;;  %13401 = vst [vmem:[#allocation73_spill] sm:$0xff] %v7659_v50  ;;  %v1926_v24 = vadd.f32 %v13403_v36, %v1910_v39  ;;  %v7672_v26 = vmul.f32 %v7477_v52, %v5993_v3  ;;  %v1478_v30 = vrot.slane %v7600_v20, 1  ;;  %v7676_v50 = vld [vmem:[%s5824_s5 + $0xa0] sm:$0xff]  ;;  %v7680_v22 = vmul.f32 %v7662_v23, %v13358_v60 }
 0x15c   : > { %13405 = vst [vmem:[#allocation93_spill] sm:$0xff] %v7676_v50  ;;  %v1739_v9 = vadd.f32 %v1732_v28, %v1724_v37  ;;  %v1538_v42 = vadd.f32 %v1531_v40, %v1523_v51  ;;  %v1561_v18 = vmul.f32 %v7480_v49, %v13406_v61  ;;  %v7687_v34 = vmul.f32 %v7608_v57, %v13359_v10 }
 0x15d   : > { %13404 = vst [vmem:[#allocation24_spill] sm:$0xff] %v7672_v26  ;;  %v1941_v38 = vadd.f32 %v7556_v45, %v1926_v24  ;;  %v7691_v39 = vmul.f32 %v7426_v6, %v13381_v32  ;;  %v7695_v28 = vmul.f32 %v7547_v25, %v6041_v0  ;;  %v1577_v40 = vmul.f32 %v7600_v20, %v13379_v1 }
 0x15e   : > { %13407 = vst [vmem:[#allocation70_spill] sm:$0xff] %v7687_v34  ;;  %v1754_v37 = vadd.f32 %v1746_v11, %v1739_v9  ;;  %v1553_v51 = vadd.f32 %v1545_v41, %v1538_v42  ;;  %v1655_v45 = vrot.slane %v7676_v50, 7  ;;  %v7703_v36 = vmul.f32 %v7668_v2, %v13362_v21  ;;  %v13415_v34 = vld [vmem:[#allocation29_spill] sm:$0xff] }
 0x15f   : > { %13408 = vst [vmem:[#allocation100_spill] sm:$0xff] %v7691_v39  ;;  %13409 = vst [vmem:[#allocation72_spill] sm:$0xff] %v7695_v28  ;;  %v1956_v24 = vadd.f32 %v7541_v35, %v1941_v38  ;;  %v7706_v6 = vsel %vm333_vm1, %v1478_v30, 0.0  ;;  %v1679_v39 = vrot.slane %v7676_v50, 1  ;;  %v1591_v41 = vmul.f32 %v7452_v63, %v13356_v5  ;;  %v13412_v38 = vld [vmem:[#allocation88_spill] sm:$0xff] }
 0x160   : > { %13410 = vst [vmem:[#allocation91_spill] sm:$0xff] %v7703_v36  ;;  %13411 = vst [vmem:[#allocation101_spill] sm:$0xff] %v7706_v6  ;;  %v1770_v28 = vadd.f32 %v1762_v47, %v1754_v37  ;;  %v1569_v11 = vadd.f32 %v1561_v18, %v1553_v51  ;;  %v1607_v9 = vmul.f32 %v7580_v12, %v13267_v46  ;;  %v7721_v47 = vld [vmem:[%s5824_s5 + $0x68] sm:$0xff]  ;;  %v7724_v63 = vsel %vm305_vm0, 0.0, %v1655_v45  ;;  %v13414_v51 = vld [vmem:[#allocation23_spill] sm:$0xff] }
 0x161   : > { %v1972_v35 = vadd.f32 %v7560_v8, %v1956_v24  ;;  %v1623_v42 = vmul.f32 %v7706_v6, %v13340_v53  ;;  %v1701_v30 = vmul.f32 %v13389_v54, %v13325_v4  ;;  %v1717_v36 = vmul.f32 %v13412_v38, %v13388_v62  ;;  %13413 = vst [vmem:[#allocation77_spill] sm:$0xff] %v7724_v63  ;;  %v13416_v8 = vld [vmem:[#allocation89_spill] sm:$0xff]  ;;  %v13418_v4 = vld [vmem:[#allocation26_spill] sm:$0xff]  ;;  %v7737_v38 = vld [vmem:[%s5824_s5 + $0xe0] sm:$0xff] }
 0x162   : > { %v1785_v18 = vadd.f32 %v1778_v44, %v1770_v28  ;;  %v1584_v37 = vadd.f32 %v1577_v40, %v1569_v11  ;;  %v1747_v26 = vmul.f32 %v13415_v34, %v13414_v51  ;;  %v7730_v53 = vsel %vm333_vm1, %v1679_v39, 0.0  ;;  %v13417_v6 = vld [vmem:[#allocation21_spill] sm:$0xff]  ;;  %v13419_v40 = vld [vmem:[#allocation28_spill] sm:$0xff] }
 0x163   : > { %v1987_v24 = vadd.f32 %v13416_v8, %v1972_v35  ;;  %v1733_v54 = vmul.f32 %v7724_v63, %v13417_v6  ;;  %v1763_v62 = vmul.f32 %v7544_v59, %v13418_v4  ;;  %v7742_v45 = vmul.f32 %v7676_v50, %v13419_v40  ;;  %v13420_v11 = vld [vmem:[#allocation96_spill] sm:$0xff]  ;;  %v13422_v40 = vld [vmem:[#allocation85_spill] sm:$0xff] }
 0x164   : > { %v1800_v44 = vadd.f32 %v7620_v19, %v1785_v18  ;;  %v1599_v28 = vadd.f32 %v1591_v41, %v1584_v37  ;;  %v1455_v34 = vrot.slane %v7721_v47, 7  ;;  %v7748_v35 = vmul.f32 %v7474_v31, %v13248_v13 }
 0x165   : > { %v2002_v39 = vadd.f32 %v13420_v11, %v1987_v24  ;;  %v1501_v8 = vmul.f32 %v7510_v17, %v13393_v48  ;;  %v1516_v4 = vmul.f32 %v7636_v55, %v13395_v56  ;;  %v1858_v18 = vrot.slane %v7737_v38, 7 }
 0x166   : > { %13421 = vst [vmem:[#allocation99_spill] sm:$0xff] %v7748_v35  ;;  %v1816_v19 = vadd.f32 %v7632_v29, %v1800_v44  ;;  %v1615_v41 = vadd.f32 %v1607_v9, %v1599_v28  ;;  %v7757_v37 = vsel %vm305_vm0, 0.0, %v1455_v34  ;;  %v1882_v31 = vrot.slane %v7737_v38, 1  ;;  %v13423_v35 = vld [vmem:[#allocation95_spill] sm:$0xff]  ;;  %v13424_v29 = vld [vmem:[#allocation34_spill] sm:$0xff] }
 0x167   : > { %v2018_v24 = vadd.f32 %v13422_v40, %v2002_v39  ;;  %v1508_v11 = vadd.f32 %v7643_v7, %v1501_v8  ;;  %v1532_v17 = vmul.f32 %v7757_v37, %v13369_v27  ;;  %v13425_v9 = vld [vmem:[#allocation94_spill] sm:$0xff]  ;;  %v13426_v28 = vld [vmem:[#allocation35_spill] sm:$0xff]  ;;  %v7776_v8 = vmul.f32 %v7525_v14, %v13372_v16 }
 0x168   : > { %v1831_v56 = vadd.f32 %v13423_v35, %v1816_v19  ;;  %v1630_v55 = vadd.f32 %v1623_v42, %v1615_v41  ;;  %v7767_v44 = vmul.f32 %v13425_v9, %v13424_v29  ;;  %v7771_v34 = vmul.f32 %v7730_v53, %v13426_v28  ;;  %v13427_v40 = vld [vmem:[#allocation31_spill] sm:$0xff] }
 0x169   : > { %v2033_v39 = vadd.f32 %v13427_v40, %v2018_v24  ;;  %v1524_v7 = vadd.f32 %v1516_v4, %v1508_v11  ;;  %v1546_v35 = vmul.f32 %v7480_v49, %v13402_v33  ;;  %v7782_v41 = vsel %vm305_vm0, 0.0, %v1858_v18  ;;  %v7799_v49 = vld [vmem:[%s5824_s5 + $0xa8] sm:$0xff] }
 0x16a   : > { %v1911_v42 = vadd.f32 %v7651_v43, %v1831_v56  ;;  %v1709_v19 = vadd.f32 %v1701_v30, %v1630_v55  ;;  %v7786_v28 = vmul.f32 %v7662_v23, %v5970_v58  ;;  %v7790_v24 = vsel %vm333_vm1, %v1882_v31, 0.0  ;;  %v13429_v43 = vld [vmem:[#allocation98_spill] sm:$0xff] }
 0x16b   : > { %5127 = vst [vmem:[%s6195_s6 + $0x88] sm:$0xff] %v2033_v39  ;;  %v7794_v4 = vmul.f32 %v7477_v52, %v13378_v15  ;;  %v1539_v14 = vadd.f32 %v1532_v17, %v1524_v7  ;;  %v1562_v56 = vmul.f32 %v7600_v20, %v13406_v61  ;;  %v7804_v18 = vmul.f32 %v7782_v41, %v13358_v60 }
 0x16c   : > { %v1927_v55 = vadd.f32 %v13429_v43, %v1911_v42  ;;  %v1725_v30 = vadd.f32 %v1717_v36, %v1709_v19  ;;  %v1479_v31 = vrot.slane %v7721_v47, 1  ;;  %v7809_v11 = vmul.f32 %v7608_v57, %v5993_v3 }
 0x16d   : > { %13428 = vst [vmem:[#allocation90_spill] sm:$0xff] %v7794_v4  ;;  %v7813_v52 = vmul.f32 %v7737_v38, %v13359_v10  ;;  %v1554_v7 = vadd.f32 %v1546_v35, %v1539_v14  ;;  %v1578_v17 = vmul.f32 %v7721_v47, %v13379_v1  ;;  %v7820_v39 = vmul.f32 %v7547_v25, %v13381_v32 }
 0x16e   : > { %13430 = vst [vmem:[#allocation36_spill] sm:$0xff] %v7809_v11  ;;  %v1942_v36 = vadd.f32 %v7680_v22, %v1927_v55  ;;  %v1740_v40 = vadd.f32 %v1733_v54, %v1725_v30  ;;  %v1656_v42 = vrot.slane %v7799_v49, 7  ;;  %v7825_v19 = vmul.f32 %v7668_v2, %v6041_v0  ;;  %v13439_v11 = vld [vmem:[#allocation88_spill] sm:$0xff] }
 0x16f   : > { %13431 = vst [vmem:[#allocation83_spill] sm:$0xff] %v7813_v52  ;;  %13432 = vst [vmem:[#allocation102_spill] sm:$0xff] %v7820_v39  ;;  %v1570_v43 = vadd.f32 %v1562_v56, %v1554_v7  ;;  %v1592_v35 = vmul.f32 %v7580_v12, %v13356_v5  ;;  %v1680_v14 = vrot.slane %v7799_v49, 1  ;;  %v13434_v52 = vld [vmem:[#allocation73_spill] sm:$0xff]  ;;  %v7833_v25 = vmul.f32 %v7790_v24, %v13362_v21  ;;  %v13437_v7 = vld [vmem:[#allocation54_spill] sm:$0xff] }
 0x170   : > { %13433 = vst [vmem:[#allocation32_spill] sm:$0xff] %v7825_v19  ;;  %v1957_v22 = vadd.f32 %v13434_v52, %v1942_v36  ;;  %v1755_v54 = vadd.f32 %v1747_v26, %v1740_v40  ;;  %v7836_v55 = vsel %vm333_vm1, %v1479_v31, 0.0  ;;  %v13436_v19 = vld [vmem:[#allocation101_spill] sm:$0xff]  ;;  %v13440_v52 = vld [vmem:[#allocation24_spill] sm:$0xff]  ;;  %v7846_v40 = vsel %vm305_vm0, 0.0, %v1656_v42 }
 0x171   : > { %13435 = vst [vmem:[#allocation57_spill] sm:$0xff] %v7833_v25  ;;  %v1585_v30 = vadd.f32 %v1578_v17, %v1570_v43  ;;  %v1608_v56 = vmul.f32 %v13436_v19, %v13267_v46  ;;  %v1624_v12 = vmul.f32 %v7836_v55, %v13437_v7  ;;  %v13438_v39 = vld [vmem:[#allocation17_spill] sm:$0xff]  ;;  %13441 = vst [vmem:[#allocation86_spill] sm:$0xff] %v7846_v40  ;;  %v13442_v25 = vld [vmem:[#allocation18_spill] sm:$0xff]  ;;  %v7854_v43 = vsel %vm333_vm1, %v1680_v14, 0.0 }
 0x172   : > { %v1702_v4 = vmul.f32 %v13439_v11, %v13438_v39  ;;  %v1973_v26 = vadd.f32 %v13440_v52, %v1957_v22  ;;  %v1771_v36 = vadd.f32 %v1763_v62, %v1755_v54  ;;  %v1718_v31 = vmul.f32 %v7724_v63, %v13442_v25  ;;  %v7851_v21 = vld [vmem:[%s5824_s5 + $0x70] sm:$0xff]  ;;  %v7861_v22 = vld [vmem:[%s5824_s5 + $0xe8] sm:$0xff]  ;;  %v13443_v62 = vld [vmem:[#allocation70_spill] sm:$0xff] }
 0x173   : > { %v1600_v17 = vadd.f32 %v1592_v35, %v1585_v30  ;;  %v1734_v7 = vmul.f32 %v7846_v40, %v13417_v6  ;;  %v1748_v11 = vmul.f32 %v7544_v59, %v13414_v51  ;;  %v13444_v52 = vld [vmem:[#allocation26_spill] sm:$0xff]  ;;  %v13445_v63 = vld [vmem:[#allocation28_spill] sm:$0xff]  ;;  %v7871_v30 = vmul.f32 %v13425_v9, %v13248_v13 }
 0x174   : > { %v1988_v42 = vadd.f32 %v13443_v62, %v1973_v26  ;;  %v1786_v54 = vadd.f32 %v7742_v45, %v1771_v36  ;;  %v1764_v25 = vmul.f32 %v7676_v50, %v13444_v52  ;;  %v1780_v35 = vmul.f32 %v7799_v49, %v13445_v63  ;;  %v13446_v59 = vld [vmem:[#allocation84_spill] sm:$0xff]  ;;  %v13448_v62 = vld [vmem:[#allocation99_spill] sm:$0xff]  ;;  %v13449_v52 = vld [vmem:[#allocation62_spill] sm:$0xff] }
 0x175   : > { %v1616_v14 = vadd.f32 %v1608_v56, %v1600_v17  ;;  %v1456_v6 = vrot.slane %v7851_v21, 7  ;;  %v1502_v51 = vmul.f32 %v13446_v59, %v13393_v48  ;;  %v13447_v40 = vld [vmem:[#allocation100_spill] sm:$0xff]  ;;  %v1859_v36 = vrot.slane %v7861_v22, 7 }
 0x176   : > { %v2003_v26 = vadd.f32 %v13447_v40, %v1988_v42  ;;  %v1801_v45 = vadd.f32 %v13448_v62, %v1786_v54  ;;  %v1517_v50 = vmul.f32 %v7757_v37, %v13449_v52  ;;  %v7883_v56 = vmul.f32 %v7730_v53, %v13424_v29  ;;  %v13450_v17 = vld [vmem:[#allocation48_spill] sm:$0xff]  ;;  %v13453_v29 = vld [vmem:[#allocation91_spill] sm:$0xff] }
 0x177   : > { %v1631_v63 = vadd.f32 %v1624_v12, %v1616_v14  ;;  %v7886_v9 = vsel %vm305_vm0, 0.0, %v1456_v6  ;;  %v1509_v13 = vadd.f32 %v13450_v17, %v1502_v51  ;;  %v13451_v59 = vld [vmem:[#allocation72_spill] sm:$0xff]  ;;  %v1883_v42 = vrot.slane %v7861_v22, 1  ;;  %v13452_v14 = vld [vmem:[#allocation35_spill] sm:$0xff] }
 0x178   : > { %v2019_v48 = vadd.f32 %v13451_v59, %v2003_v26  ;;  %v1817_v40 = vadd.f32 %v7767_v44, %v1801_v45  ;;  %v1533_v54 = vmul.f32 %v7886_v9, %v13369_v27  ;;  %v7896_v62 = vmul.f32 %v7854_v43, %v13452_v14 }
 0x179   : > { %v1710_v12 = vadd.f32 %v1702_v4, %v1631_v63  ;;  %v1525_v6 = vadd.f32 %v1517_v50, %v1509_v13  ;;  %v1547_v51 = vmul.f32 %v7600_v20, %v13402_v33  ;;  %v7903_v44 = vsel %vm305_vm0, 0.0, %v1859_v36 }
 0x17a   : > { %v2034_v26 = vadd.f32 %v13453_v29, %v2019_v48  ;;  %v1832_v59 = vadd.f32 %v7771_v34, %v1817_v40  ;;  %v7907_v45 = vmul.f32 %v7662_v23, %v13372_v16  ;;  %v7911_v4 = vmul.f32 %v7782_v41, %v5970_v58  ;;  %v7929_v34 = vld [vmem:[%s5824_s5 + $0xb0] sm:$0xff] }
 0x17b   : > { %v1726_v63 = vadd.f32 %v1718_v31, %v1710_v12  ;;  %v1540_v13 = vadd.f32 %v1533_v54, %v1525_v6  ;;  %v1563_v20 = vmul.f32 %v7721_v47, %v13406_v61  ;;  %v7918_v50 = vsel %vm333_vm1, %v1883_v42, 0.0 }
 0x17c   : > { %5128 = vst [vmem:[%s6195_s6 + $0x90] sm:$0xff] %v2034_v26  ;;  %v1912_v48 = vadd.f32 %v7776_v8, %v1832_v59  ;;  %v7922_v29 = vmul.f32 %v7903_v44, %v13358_v60  ;;  %v7926_v23 = vmul.f32 %v7608_v57, %v13378_v15  ;;  %v1480_v36 = vrot.slane %v7851_v21, 1 }
 0x17d   : > { %v1741_v31 = vadd.f32 %v1734_v7, %v1726_v63  ;;  %v1555_v40 = vadd.f32 %v1547_v51, %v1540_v13  ;;  %v1579_v8 = vmul.f32 %v7851_v21, %v13379_v1  ;;  %v7937_v54 = vmul.f32 %v7737_v38, %v5993_v3  ;;  %v13458_v63 = vld [vmem:[#allocation58_spill] sm:$0xff] }
 0x17e   : > { %v1928_v42 = vadd.f32 %v7786_v28, %v1912_v48  ;;  %v7941_v12 = vmul.f32 %v7861_v22, %v13359_v10  ;;  %v7945_v57 = vmul.f32 %v7668_v2, %v13381_v32  ;;  %v1593_v51 = vmul.f32 %v13436_v19, %v13356_v5 }
 0x17f   : > { %13454 = vst [vmem:[#allocation74_spill] sm:$0xff] %v7937_v54  ;;  %v1756_v7 = vadd.f32 %v1748_v11, %v1741_v31  ;;  %v1571_v6 = vadd.f32 %v1563_v20, %v1555_v40  ;;  %v1657_v28 = vrot.slane %v7929_v34, 7  ;;  %v7953_v59 = vmul.f32 %v7790_v24, %v6041_v0  ;;  %v13462_v40 = vld [vmem:[#allocation54_spill] sm:$0xff] }
 0x180   : > { %13455 = vst [vmem:[#allocation97_spill] sm:$0xff] %v7941_v12  ;;  %13456 = vst [vmem:[#allocation81_spill] sm:$0xff] %v7945_v57  ;;  %v1943_v26 = vadd.f32 %v7804_v18, %v1928_v42  ;;  %v7957_v13 = vmul.f32 %v7918_v50, %v13458_v63  ;;  %v1681_v2 = vrot.slane %v7929_v34, 1  ;;  %v7961_v20 = vsel %vm333_vm1, %v1480_v36, 0.0  ;;  %v13461_v18 = vld [vmem:[#allocation90_spill] sm:$0xff] }
 0x181   : > { %13457 = vst [vmem:[#allocation37_spill] sm:$0xff] %v7953_v59  ;;  %v1772_v11 = vadd.f32 %v1764_v25, %v1756_v7  ;;  %13460 = vst [vmem:[#allocation78_spill] sm:$0xff] %v7961_v20  ;;  %v1586_v19 = vadd.f32 %v1579_v8, %v1571_v6  ;;  %v1609_v48 = vmul.f32 %v7836_v55, %v13267_v46  ;;  %v13463_v59 = vld [vmem:[#allocation77_spill] sm:$0xff]  ;;  %v13465_v12 = vld [vmem:[#allocation86_spill] sm:$0xff]  ;;  %v7976_v8 = vsel %vm305_vm0, 0.0, %v1657_v28 }
 0x182   : > { %13459 = vst [vmem:[#allocation65_spill] sm:$0xff] %v7957_v13  ;;  %v1958_v31 = vadd.f32 %v13461_v18, %v1943_v26  ;;  %v1625_v42 = vmul.f32 %v7961_v20, %v13462_v40  ;;  %v1703_v57 = vmul.f32 %v13463_v59, %v13438_v39  ;;  %v13464_v13 = vld [vmem:[#allocation18_spill] sm:$0xff]  ;;  %13466 = vst [vmem:[#allocation104_spill] sm:$0xff] %v7976_v8  ;;  %v13467_v6 = vld [vmem:[#allocation23_spill] sm:$0xff]  ;;  %v7982_v40 = vsel %vm333_vm1, %v1681_v2, 0.0 }
 0x183   : > { %v1719_v54 = vmul.f32 %v13465_v12, %v13464_v13  ;;  %v7973_v25 = vld [vmem:[%s5824_s5 + $0x78] sm:$0xff]  ;;  %v1787_v36 = vadd.f32 %v1780_v35, %v1772_v11  ;;  %v1601_v7 = vadd.f32 %v1593_v51, %v1586_v19  ;;  %v13468_v46 = vld [vmem:[#allocation93_spill] sm:$0xff]  ;;  %v13469_v26 = vld [vmem:[#allocation36_spill] sm:$0xff] }
 0x184   : > { %v1749_v63 = vmul.f32 %v13468_v46, %v13467_v6  ;;  %v1974_v18 = vadd.f32 %v13469_v26, %v1958_v31  ;;  %v13470_v20 = vld [vmem:[#allocation21_spill] sm:$0xff]  ;;  %v13471_v39 = vld [vmem:[#allocation26_spill] sm:$0xff]  ;;  %v13472_v28 = vld [vmem:[#allocation28_spill] sm:$0xff]  ;;  %v1457_v46 = vrot.slane %v7973_v25, 7 }
 0x185   : > { %v1735_v59 = vmul.f32 %v7976_v8, %v13470_v20  ;;  %v1765_v13 = vmul.f32 %v7799_v49, %v13471_v39  ;;  %v7989_v12 = vld [vmem:[%s5824_s5 + $0xf0] sm:$0xff]  ;;  %v1802_v35 = vadd.f32 %v7871_v30, %v1787_v36  ;;  %v1617_v51 = vadd.f32 %v1609_v48, %v1601_v7  ;;  %v13473_v19 = vld [vmem:[#allocation83_spill] sm:$0xff]  ;;  %v13474_v2 = vld [vmem:[#allocation30_spill] sm:$0xff] }
 0x186   : > { %v1781_v11 = vmul.f32 %v7929_v34, %v13472_v28  ;;  %v1989_v31 = vadd.f32 %v13473_v19, %v1974_v18  ;;  %v7998_v26 = vmul.f32 %v7730_v53, %v13474_v2  ;;  %v13475_v6 = vld [vmem:[#allocation53_spill] sm:$0xff]  ;;  %v1518_v39 = vmul.f32 %v7886_v9, %v13449_v52  ;;  %v13476_v28 = vld [vmem:[#allocation102_spill] sm:$0xff] }
 0x187   : > { %v1503_v20 = vmul.f32 %v7757_v37, %v13475_v6  ;;  %v1818_v30 = vadd.f32 %v7883_v56, %v1802_v35  ;;  %v1632_v48 = vadd.f32 %v1625_v42, %v1617_v51  ;;  %v1860_v36 = vrot.slane %v7989_v12, 7  ;;  %v13477_v56 = vld [vmem:[#allocation34_spill] sm:$0xff]  ;;  %v13478_v51 = vld [vmem:[#allocation32_spill] sm:$0xff] }
 0x188   : > { %v8007_v7 = vsel %vm305_vm0, 0.0, %v1457_v46  ;;  %v2004_v18 = vadd.f32 %v13476_v28, %v1989_v31  ;;  %v1884_v19 = vrot.slane %v7989_v12, 1  ;;  %v1811_v42 = vmul.f32 %v7854_v43, %v13477_v56 }
 0x189   : > { %v1510_v53 = vadd.f32 %v13450_v17, %v1503_v20  ;;  %v1534_v37 = vmul.f32 %v8007_v7, %v13369_v27  ;;  %v1833_v2 = vadd.f32 %v7896_v62, %v1818_v30  ;;  %v1711_v52 = vadd.f32 %v1703_v57, %v1632_v48 }
 0x18a   : > { %v8019_v35 = vmul.f32 %v7982_v40, %v13452_v14  ;;  %v2020_v28 = vadd.f32 %v13478_v51, %v2004_v18  ;;  %v8024_v46 = vmul.f32 %v7782_v41, %v13372_v16  ;;  %v1548_v62 = vmul.f32 %v7721_v47, %v13402_v33  ;;  %v13479_v18 = vld [vmem:[#allocation57_spill] sm:$0xff]  ;;  %v8043_v47 = vld [vmem:[%s5824_s5 + $0xb8] sm:$0xff] }
 0x18b   : > { %v1526_v20 = vadd.f32 %v1518_v39, %v1510_v53  ;;  %v1913_v57 = vadd.f32 %v7907_v45, %v1833_v2  ;;  %v1727_v31 = vadd.f32 %v1719_v54, %v1711_v52  ;;  %v8030_v30 = vsel %vm305_vm0, 0.0, %v1860_v36 }
 0x18c   : > { %v8034_v48 = vmul.f32 %v7903_v44, %v5970_v58  ;;  %v2035_v51 = vadd.f32 %v13479_v18, %v2020_v28  ;;  %v8038_v41 = vsel %vm333_vm1, %v1884_v19, 0.0  ;;  %v1564_v39 = vmul.f32 %v7851_v21, %v13406_v61 }
 0x18d   : > { %v1541_v27 = vadd.f32 %v1534_v37, %v1526_v20  ;;  %v1929_v52 = vadd.f32 %v7911_v4, %v1913_v57  ;;  %v1742_v45 = vadd.f32 %v1735_v59, %v1727_v31  ;;  %v8048_v54 = vmul.f32 %v7737_v38, %v13378_v15 }
 0x18e   : > { %v1481_v2 = vrot.slane %v7973_v25, 1  ;;  %5129 = vst [vmem:[%s6195_s6 + $0x98] sm:$0xff] %v2035_v51  ;;  %v8054_v36 = vmul.f32 %v8030_v30, %v13358_v60  ;;  %v8058_v19 = vmul.f32 %v7861_v22, %v5993_v3  ;;  %v1580_v4 = vmul.f32 %v7973_v25, %v13379_v1  ;;  %v13485_v51 = vld [vmem:[#allocation58_spill] sm:$0xff] }
 0x18f   : > { %13480 = vst [vmem:[#allocation79_spill] sm:$0xff] %v8048_v54  ;;  %v1556_v53 = vadd.f32 %v1548_v62, %v1541_v27  ;;  %v1944_v59 = vadd.f32 %v7922_v29, %v1929_v52  ;;  %v1757_v37 = vadd.f32 %v1749_v63, %v1742_v45  ;;  %v8065_v38 = vmul.f32 %v7989_v12, %v13359_v10  ;;  %v13487_v52 = vld [vmem:[#allocation42_spill] sm:$0xff] }
 0x190   : > { %13481 = vst [vmem:[#allocation43_spill] sm:$0xff] %v8058_v19  ;;  %v1658_v28 = vrot.slane %v8043_v47, 7  ;;  %v8070_v20 = vmul.f32 %v7790_v24, %v13381_v32  ;;  %v1594_v27 = vmul.f32 %v7836_v55, %v13356_v5  ;;  %v1682_v62 = vrot.slane %v8043_v47, 1  ;;  %v13488_v55 = vld [vmem:[#allocation78_spill] sm:$0xff] }
 0x191   : > { %13482 = vst [vmem:[#allocation76_spill] sm:$0xff] %v8065_v38  ;;  %v1572_v57 = vadd.f32 %v1564_v39, %v1556_v53  ;;  %v1959_v31 = vadd.f32 %v7926_v23, %v1944_v59  ;;  %v1773_v29 = vadd.f32 %v1765_v13, %v1757_v37  ;;  %v8078_v63 = vmul.f32 %v7918_v50, %v6041_v0  ;;  %v13489_v53 = vld [vmem:[#allocation54_spill] sm:$0xff] }
 0x192   : > { %13483 = vst [vmem:[#allocation82_spill] sm:$0xff] %v8070_v20  ;;  %v8081_v18 = vsel %vm333_vm1, %v1481_v2, 0.0  ;;  %v8085_v24 = vmul.f32 %v8038_v41, %v13485_v51  ;;  %v1610_v45 = vmul.f32 %v13488_v55, %v13487_v52  ;;  %v13490_v59 = vld [vmem:[#allocation74_spill] sm:$0xff]  ;;  %v8093_v1 = vsel %vm305_vm0, 0.0, %v1658_v28 }
 0x193   : > { %13484 = vst [vmem:[#allocation49_spill] sm:$0xff] %v8078_v63  ;;  %v1587_v39 = vadd.f32 %v1580_v4, %v1572_v57  ;;  %v1626_v23 = vmul.f32 %v8081_v18, %v13489_v53  ;;  %v1975_v13 = vadd.f32 %v13490_v59, %v1959_v31  ;;  %v1788_v37 = vadd.f32 %v1781_v11, %v1773_v29  ;;  %v13492_v63 = vld [vmem:[#allocation17_spill] sm:$0xff]  ;;  %v13493_v2 = vld [vmem:[#allocation86_spill] sm:$0xff]  ;;  %v13497_v29 = vld [vmem:[#allocation23_spill] sm:$0xff] }
 0x194   : > { %13486 = vst [vmem:[#allocation47_spill] sm:$0xff] %v8085_v24  ;;  %13491 = vst [vmem:[#allocation92_spill] sm:$0xff] %v8093_v1  ;;  %v1704_v20 = vmul.f32 %v13493_v2, %v13492_v63  ;;  %v8098_v19 = vsel %vm333_vm1, %v1682_v62, 0.0  ;;  %v13494_v4 = vld [vmem:[#allocation18_spill] sm:$0xff]  ;;  %v13495_v24 = vld [vmem:[#allocation21_spill] sm:$0xff]  ;;  %v1750_v59 = vmul.f32 %v7799_v49, %v13497_v29 }
 0x195   : > { %v1602_v38 = vadd.f32 %v1594_v27, %v1587_v39  ;;  %v1720_v57 = vmul.f32 %v7976_v8, %v13494_v4  ;;  %v1736_v54 = vmul.f32 %v8093_v1, %v13495_v24  ;;  %v8105_v53 = vld [vmem:[%s5824_s5 + $0xf8] sm:$0xff]  ;;  %v13496_v31 = vld [vmem:[#allocation97_spill] sm:$0xff]  ;;  %v1803_v28 = vadd.f32 %v7998_v26, %v1788_v37  ;;  %v13499_v39 = vld [vmem:[#allocation28_spill] sm:$0xff] }
 0x196   : > { %v1990_v11 = vadd.f32 %v13496_v31, %v1975_v13  ;;  %v13498_v2 = vld [vmem:[#allocation26_spill] sm:$0xff]  ;;  %v1782_v63 = vmul.f32 %v8043_v47, %v13499_v39  ;;  %v1504_v4 = vmul.f32 %v7886_v9, %v13475_v6  ;;  %v13501_v8 = vld [vmem:[#allocation81_spill] sm:$0xff]  ;;  %v1861_v49 = vrot.slane %v8105_v53, 7 }
 0x197   : > { %v1766_v27 = vmul.f32 %v7929_v34, %v13498_v2  ;;  %v1618_v62 = vadd.f32 %v1610_v45, %v1602_v38  ;;  %v13500_v24 = vld [vmem:[#allocation62_spill] sm:$0xff]  ;;  %v1819_v31 = vadd.f32 %v1811_v42, %v1803_v28  ;;  %v8125_v38 = vmul.f32 %v7982_v40, %v13477_v56  ;;  %v13503_v6 = vld [vmem:[#allocation37_spill] sm:$0xff] }
 0x198   : > { %v1519_v1 = vmul.f32 %v8007_v7, %v13500_v24  ;;  %v2005_v13 = vadd.f32 %v13501_v8, %v1990_v11  ;;  %v13502_v26 = vld [vmem:[#allocation30_spill] sm:$0xff]  ;;  %v1885_v45 = vrot.slane %v8105_v53, 1  ;;  %v1511_v9 = vadd.f32 %v13450_v17, %v1504_v4 }
 0x199   : > { %v1796_v37 = vmul.f32 %v7854_v43, %v13502_v26  ;;  %v1633_v29 = vadd.f32 %v1626_v23, %v1618_v62  ;;  %v1834_v8 = vadd.f32 %v8019_v35, %v1819_v31  ;;  %v8133_v43 = vmul.f32 %v8098_v19, %v13452_v14  ;;  %v13504_v35 = vld [vmem:[#allocation65_spill] sm:$0xff] }
 0x19a   : > { %v2021_v7 = vadd.f32 %v13503_v6, %v2005_v13  ;;  %v8137_v42 = vmul.f32 %v7903_v44, %v13372_v16  ;;  %v8141_v11 = vmul.f32 %v8030_v30, %v5970_v58  ;;  %v1527_v4 = vadd.f32 %v1519_v1, %v1511_v9  ;;  %v8153_v44 = vld [vmem:[%s5824_s5 + $0x80] sm:$0xff] }
 0x19b   : > { %v1712_v23 = vadd.f32 %v1704_v20, %v1633_v29  ;;  %v1549_v6 = vmul.f32 %v7851_v21, %v13402_v33  ;;  %v1914_v62 = vadd.f32 %v8024_v46, %v1834_v8  ;;  %v1877_v13 = vsel %vm305_vm0, 0.0, %v1861_v49  ;;  %v13505_v1 = vld [vmem:[#allocation67_spill] sm:$0xff] }
 0x19c   : > { %v2036_v28 = vadd.f32 %v13504_v35, %v2021_v7  ;;  %v8150_v31 = vmul.f32 %v7861_v22, %v13378_v15  ;;  %v8156_v29 = vsel %vm333_vm1, %v1885_v45, 0.0  ;;  %v1542_v9 = vadd.f32 %v1527_v4, %v13505_v1  ;;  %v8162_v7 = vld [vmem:[%s5824_s5 + $0x88] sm:$0xff] }
 0x19d   : > { %v1728_v20 = vadd.f32 %v1720_v57, %v1712_v23  ;;  %v1565_v21 = vmul.f32 %v7973_v25, %v13406_v61  ;;  %v1930_v46 = vadd.f32 %v8034_v48, %v1914_v62  ;;  %v8167_v49 = vmul.f32 %v1877_v13, %v13358_v60 }
 0x19e   : > { %5130 = vst [vmem:[%s6195_s6 + $0xa0] sm:$0xff] %v2036_v28  ;;  %v8171_v22 = vmul.f32 %v7989_v12, %v5993_v3  ;;  %v8175_v57 = vmul.f32 %v8105_v53, %v13359_v10  ;;  %v8179_v25 = vmul.f32 %v7918_v50, %v13381_v32  ;;  %v1557_v8 = vadd.f32 %v1549_v6, %v1542_v9  ;;  %v13508_v9 = vld [vmem:[#allocation17_spill] sm:$0xff] }
 0x19f   : > { %v1743_v45 = vadd.f32 %v1736_v54, %v1728_v20  ;;  %v2065_v23 = vrot.slane %v8153_v44, 7  ;;  %v1945_v48 = vadd.f32 %v8054_v36, %v1930_v46  ;;  %v8185_v4 = vmul.f32 %v8038_v41, %v6041_v0  ;;  %v13507_v20 = vld [vmem:[#allocation79_spill] sm:$0xff]  ;;  %v13509_v46 = vld [vmem:[#allocation104_spill] sm:$0xff] }
 0x1a0   : > { %v8189_v35 = vmul.f32 %v8156_v29, %v13485_v51  ;;  %v2066_v28 = vrot.slane %v8162_v7, 7  ;;  %v1573_v62 = vadd.f32 %v1565_v21, %v1557_v8  ;;  %v1595_v50 = vmul.f32 %v13488_v55, %v13356_v5  ;;  %v13512_v8 = vld [vmem:[#allocation43_spill] sm:$0xff] }
 0x1a1   : > { %v1758_v54 = vadd.f32 %v1750_v59, %v1743_v45  ;;  %v1611_v6 = vmul.f32 %v8081_v18, %v13487_v52  ;;  %v1960_v36 = vadd.f32 %v13507_v20, %v1945_v48  ;;  %v1705_v1 = vmul.f32 %v13509_v46, %v13508_v9  ;;  %v13510_v59 = vld [vmem:[#allocation80_spill] sm:$0xff]  ;;  %v13513_v20 = vld [vmem:[#allocation18_spill] sm:$0xff] }
 0x1a2   : > { %13506 = vst [vmem:[#allocation71_spill] sm:$0xff] %v8189_v35  ;;  %v8200_v10 = vsel %vm305_vm0, 0.0, %v2065_v23  ;;  %v8203_v51 = vsel %vm305_vm0, 0.0, %v2066_v28  ;;  %v1588_v21 = vadd.f32 %v1573_v62, %v13510_v59  ;;  %v13511_v45 = vld [vmem:[#allocation60_spill] sm:$0xff]  ;;  %v13515_v23 = vld [vmem:[#allocation23_spill] sm:$0xff]  ;;  %v8221_v62 = vmul.f32 %v7982_v40, %v13502_v26  ;;  %v13516_v59 = vld [vmem:[#allocation66_spill] sm:$0xff] }
 0x1a3   : > { %v1774_v60 = vadd.f32 %v1766_v27, %v1758_v54  ;;  %v2127_v55 = vmul.f32 %v8200_v10, %v13500_v24  ;;  %v2143_v18 = vmul.f32 %v8203_v51, %v13511_v45  ;;  %v1976_v48 = vadd.f32 %v13512_v8, %v1960_v36  ;;  %v13514_v35 = vld [vmem:[#allocation92_spill] sm:$0xff] }
 0x1a4   : > { %v1721_v46 = vmul.f32 %v13514_v35, %v13513_v20  ;;  %v1751_v9 = vmul.f32 %v7929_v34, %v13515_v23  ;;  %v8217_v27 = vmul.f32 %v8043_v47, %v13498_v2  ;;  %v1603_v54 = vadd.f32 %v1595_v50, %v1588_v21  ;;  %v13517_v8 = vld [vmem:[#allocation76_spill] sm:$0xff]  ;;  %v8237_v21 = vld [vmem:[%s5824_s5 + $0xc0] sm:$0xff] }
 0x1a5   : > { %v1789_v28 = vadd.f32 %v1782_v63, %v1774_v60  ;;  %v2135_v36 = vadd.f32 %v2127_v55, %v13516_v59  ;;  %v1991_v5 = vadd.f32 %v13517_v8, %v1976_v48  ;;  %v8227_v35 = vmul.f32 %v8098_v19, %v13477_v56  ;;  %v13518_v55 = vld [vmem:[#allocation82_spill] sm:$0xff]  ;;  %v8249_v59 = vld [vmem:[%s5824_s5 + $0xc8] sm:$0xff] }
 0x1a6   : > { %v8231_v34 = vmul.f32 %v8030_v30, %v13372_v16  ;;  %v2089_v60 = vrot.slane %v8153_v44, 1  ;;  %v1619_v63 = vadd.f32 %v1611_v6, %v1603_v54  ;;  %v2173_v40 = vmul.f32 %v8153_v44, %v13406_v61  ;;  %v13519_v6 = vld [vmem:[#allocation69_spill] sm:$0xff] }
 0x1a7   : > { %v1804_v47 = vadd.f32 %v1796_v37, %v1789_v28  ;;  %v2150_v50 = vadd.f32 %v2143_v18, %v2135_v36  ;;  %v2006_v48 = vadd.f32 %v13518_v55, %v1991_v5  ;;  %v8241_v8 = vmul.f32 %v1877_v13, %v5970_v58  ;;  %v13520_v28 = vld [vmem:[#allocation103_spill] sm:$0xff]  ;;  %v13522_v55 = vld [vmem:[#allocation49_spill] sm:$0xff] }
 0x1a8   : > { %v8245_v19 = vmul.f32 %v7989_v12, %v13378_v15  ;;  %v2090_v30 = vrot.slane %v8162_v7, 1  ;;  %v1634_v18 = vadd.f32 %v1619_v63, %v13519_v6  ;;  %v13521_v36 = vld [vmem:[#allocation15_spill] sm:$0xff]  ;;  %v8259_v12 = vmul.f32 %v8105_v53, %v5993_v3 }
 0x1a9   : > { %v1820_v37 = vadd.f32 %v8125_v38, %v1804_v47  ;;  %v2165_v54 = vadd.f32 %v2150_v50, %v13520_v28  ;;  %v2189_v5 = vmul.f32 %v8162_v7, %v13521_v36  ;;  %v2022_v13 = vadd.f32 %v13522_v55, %v2006_v48  ;;  %v13524_v28 = vld [vmem:[#allocation47_spill] sm:$0xff] }
 0x1aa   : > { %13523 = vst [vmem:[#allocation87_spill] sm:$0xff] %v8259_v12  ;;  %v8262_v15 = vsel %vm333_vm1, %v2089_v60, 0.0  ;;  %v2266_v16 = vrot.slane %v8237_v21, 7  ;;  %v1713_v47 = vadd.f32 %v1705_v1, %v1634_v18  ;;  %v2267_v50 = vrot.slane %v8249_v59, 7  ;;  %v13528_v18 = vld [vmem:[#allocation33_spill] sm:$0xff] }
 0x1ab   : > { %v1835_v38 = vadd.f32 %v8133_v43, %v1820_v37  ;;  %v2181_v63 = vadd.f32 %v2173_v40, %v2165_v54  ;;  %v2037_v6 = vadd.f32 %v13524_v28, %v2022_v13  ;;  %v8269_v48 = vsel %vm333_vm1, %v2090_v30, 0.0  ;;  %v13527_v30 = vld [vmem:[#allocation54_spill] sm:$0xff]  ;;  %v13529_v28 = vld [vmem:[#allocation68_spill] sm:$0xff] }
 0x1ac   : > { %v2290_v53 = vrot.slane %v8237_v21, 1  ;;  %v2291_v55 = vrot.slane %v8249_v59, 1  ;;  %v1729_v12 = vadd.f32 %v1721_v46, %v1713_v47  ;;  %v2219_v43 = vmul.f32 %v8262_v15, %v13487_v52 }
 0x1ad   : > { %v1915_v60 = vadd.f32 %v8137_v42, %v1835_v38  ;;  %v2196_v26 = vadd.f32 %v2189_v5, %v2181_v63  ;;  %5131 = vst [vmem:[%s6195_s6 + $0xa8] sm:$0xff] %v2037_v6  ;;  %v8279_v1 = vmul.f32 %v8038_v41, %v13381_v32  ;;  %v8283_v40 = vmul.f32 %v8156_v29, %v6041_v0  ;;  %v8297_v5 = vld [vmem:[%s5824_s5 + $0x90] sm:$0xff] }
 0x1ae   : > { %v2235_v37 = vmul.f32 %v8269_v48, %v13527_v30  ;;  %v8288_v42 = vsel %vm305_vm0, 0.0, %v2266_v16  ;;  %v1744_v6 = vadd.f32 %v1729_v12, %v13528_v18  ;;  %v8294_v41 = vsel %vm305_vm0, 0.0, %v2267_v50  ;;  %v13530_v38 = vld [vmem:[#allocation21_spill] sm:$0xff]  ;;  %v8313_v50 = vld [vmem:[%s5824_s5 + $0x100] sm:$0xff] }
 0x1af   : > { %13525 = vst [vmem:[#allocation46_spill] sm:$0xff] %v8279_v1  ;;  %13526 = vst [vmem:[#allocation75_spill] sm:$0xff] %v8283_v40  ;;  %v1931_v46 = vadd.f32 %v8141_v11, %v1915_v60  ;;  %v2211_v54 = vadd.f32 %v2196_v26, %v13529_v28  ;;  %v8300_v29 = vsel %vm333_vm1, %v2290_v53, 0.0  ;;  %v8303_v13 = vsel %vm333_vm1, %v2291_v55, 0.0  ;;  %v8316_v53 = vld [vmem:[%s5824_s5 + $0x108] sm:$0xff]  ;;  %v13531_v18 = vld [vmem:[#allocation53_spill] sm:$0xff] }
 0x1b0   : > { %v2329_v16 = vmul.f32 %v8288_v42, %v13513_v20  ;;  %v2345_v11 = vmul.f32 %v8294_v41, %v13530_v38  ;;  %v1759_v26 = vadd.f32 %v1751_v9, %v1744_v6  ;;  %v2375_v63 = vmul.f32 %v8237_v21, %v13498_v2 }
 0x1b1   : > { %v1946_v12 = vadd.f32 %v8167_v49, %v1931_v46  ;;  %v2227_v47 = vadd.f32 %v2219_v43, %v2211_v54  ;;  %v2391_v55 = vmul.f32 %v8249_v59, %v13499_v39  ;;  %v8322_v60 = vmul.f32 %v8300_v29, %v13477_v56 }
 0x1b2   : > { %v2067_v28 = vrot.slane %v8297_v5, 7  ;;  %v2113_v49 = vmul.f32 %v8200_v10, %v13531_v18  ;;  %v1775_v43 = vadd.f32 %v8217_v27, %v1759_v26  ;;  %v2128_v6 = vmul.f32 %v8203_v51, %v13500_v24  ;;  %v13532_v10 = vld [vmem:[#allocation25_spill] sm:$0xff] }
 0x1b3   : > { %v1961_v9 = vadd.f32 %v8150_v31, %v1946_v12  ;;  %v2242_v46 = vadd.f32 %v2235_v37, %v2227_v47  ;;  %v2469_v54 = vrot.slane %v8313_v50, 7  ;;  %v2470_v32 = vrot.slane %v8316_v53, 7  ;;  %v13533_v31 = vld [vmem:[#allocation22_spill] sm:$0xff] }
 0x1b4   : > { %v8334_v40 = vsel %vm305_vm0, 0.0, %v2067_v28  ;;  %v2120_v1 = vadd.f32 %v13450_v17, %v2113_v49  ;;  %v1790_v18 = vadd.f32 %v1775_v43, %v13532_v10  ;;  %v2493_v37 = vrot.slane %v8313_v50, 1 }
 0x1b5   : > { %v1977_v56 = vadd.f32 %v8171_v22, %v1961_v9  ;;  %v2321_v12 = vadd.f32 %v2242_v46, %v13533_v31  ;;  %v2144_v27 = vmul.f32 %v8334_v40, %v13511_v45  ;;  %v2494_v26 = vrot.slane %v8316_v53, 1 }
 0x1b6   : > { %v2136_v47 = vadd.f32 %v2128_v6, %v2120_v1  ;;  %v2158_v28 = vmul.f32 %v8153_v44, %v13402_v33  ;;  %v1805_v22 = vadd.f32 %v8221_v62, %v1790_v18  ;;  %v2437_v43 = vmul.f32 %v8303_v13, %v13452_v14  ;;  %v8365_v18 = vld [vmem:[%s5824_s5 + $0xd0] sm:$0xff] }
 0x1b7   : > { %v1992_v49 = vadd.f32 %v8175_v57, %v1977_v56  ;;  %v2337_v9 = vadd.f32 %v2329_v16, %v2321_v12  ;;  %v8351_v46 = vsel %vm305_vm0, 0.0, %v2469_v54  ;;  %v8354_v31 = vsel %vm305_vm0, 0.0, %v2470_v32  ;;  %13535 = vst [vmem:[#allocation89_spill] sm:$0xff] %v8365_v18  ;;  %v13537_v12 = vld [vmem:[#allocation27_spill] sm:$0xff] }
 0x1b8   : > { %v2151_v10 = vadd.f32 %v2144_v27, %v2136_v47  ;;  %v2174_v1 = vmul.f32 %v8162_v7, %v13406_v61  ;;  %v1821_v56 = vadd.f32 %v8227_v35, %v1805_v22  ;;  %v8362_v62 = vmul.f32 %v8313_v50, %v5993_v3  ;;  %v13536_v35 = vld [vmem:[#allocation40_spill] sm:$0xff]  ;;  %v13538_v22 = vld [vmem:[#allocation61_spill] sm:$0xff] }
 0x1b9   : > { %v2007_v44 = vadd.f32 %v8179_v25, %v1992_v49  ;;  %v2352_v57 = vadd.f32 %v2345_v11, %v2337_v9  ;;  %v8368_v16 = vsel %vm333_vm1, %v2493_v37, 0.0  ;;  %v8371_v32 = vsel %vm333_vm1, %v2494_v26, 0.0 }
 0x1ba   : > { %13534 = vst [vmem:[#allocation29_spill] sm:$0xff] %v8362_v62  ;;  %v2166_v6 = vadd.f32 %v2158_v28, %v2151_v10  ;;  %v2190_v54 = vmul.f32 %v8297_v5, %v13521_v36  ;;  %v1836_v11 = vadd.f32 %v1821_v56, %v13536_v35  ;;  %v2091_v47 = vrot.slane %v8297_v5, 1  ;;  %v13539_v28 = vld [vmem:[#allocation71_spill] sm:$0xff]  ;;  %v13540_v35 = vld [vmem:[#allocation41_spill] sm:$0xff] }
 0x1bb   : > { %v2023_v25 = vadd.f32 %v8185_v4, %v2007_v44  ;;  %v2367_v27 = vadd.f32 %v2352_v57, %v13537_v12  ;;  %v2532_v37 = vmul.f32 %v8351_v46, %v5970_v58  ;;  %v2204_v26 = vmul.f32 %v8262_v15, %v13538_v22  ;;  %v13541_v12 = vld [vmem:[#allocation50_spill] sm:$0xff] }
 0x1bc   : > { %v2182_v49 = vadd.f32 %v2174_v1, %v2166_v6  ;;  %v2268_v10 = vrot.slane %v8365_v18, 7  ;;  %v1916_v4 = vadd.f32 %v8231_v34, %v1836_v11  ;;  %v2292_v56 = vrot.slane %v8365_v18, 1  ;;  %v13543_v11 = vld [vmem:[#allocation58_spill] sm:$0xff] }
 0x1bd   : > { %v2038_v9 = vadd.f32 %v13539_v28, %v2023_v25  ;;  %v2383_v44 = vadd.f32 %v2375_v63, %v2367_v27  ;;  %v2548_v57 = vmul.f32 %v8354_v31, %v13540_v35  ;;  %v8391_v62 = vmul.f32 %v8316_v53, %v13541_v12  ;;  %v13545_v28 = vld [vmem:[#allocation17_spill] sm:$0xff] }
 0x1be   : > { %v2197_v1 = vadd.f32 %v2190_v54, %v2182_v49  ;;  %v2220_v15 = vmul.f32 %v8269_v48, %v13487_v52  ;;  %v1932_v6 = vadd.f32 %v8241_v8, %v1916_v4  ;;  %v8399_v34 = vmul.f32 %v8368_v16, %v6041_v0  ;;  %v13547_v4 = vld [vmem:[#allocation38_spill] sm:$0xff] }
 0x1bf   : > { %5132 = vst [vmem:[%s6195_s6 + $0xb0] sm:$0xff] %v2038_v9  ;;  %v2398_v25 = vadd.f32 %v2391_v55, %v2383_v44  ;;  %v8402_v63 = vsel %vm333_vm1, %v2091_v47, 0.0  ;;  %v8406_v27 = vmul.f32 %v8371_v32, %v13543_v11  ;;  %v2314_v8 = vmul.f32 %v8288_v42, %v13545_v28  ;;  %v13546_v55 = vld [vmem:[#allocation16_spill] sm:$0xff]  ;;  %v8421_v0 = vld [vmem:[%s5824_s5 + $0x98] sm:$0xff] }
 0x1c0   : > { %13542 = vst [vmem:[#allocation96_spill] sm:$0xff] %v8399_v34  ;;  %v2212_v54 = vadd.f32 %v2204_v26, %v2197_v1  ;;  %v2236_v49 = vmul.f32 %v8402_v63, %v13527_v30  ;;  %v1947_v9 = vadd.f32 %v1932_v6, %v13546_v55  ;;  %v8415_v34 = vsel %vm305_vm0, 0.0, %v2268_v10  ;;  %v8430_v6 = vld [vmem:[%s5824_s5 + $0x110] sm:$0xff] }
 0x1c1   : > { %13544 = vst [vmem:[#allocation85_spill] sm:$0xff] %v8406_v27  ;;  %v2413_v44 = vadd.f32 %v2398_v25, %v13547_v4  ;;  %13548 = vst [vmem:[#allocation95_spill] sm:$0xff] %v8415_v34  ;;  %v8418_v47 = vsel %vm333_vm1, %v2292_v56, 0.0  ;;  %v2330_v26 = vmul.f32 %v8294_v41, %v13513_v20  ;;  %v2346_v1 = vmul.f32 %v8415_v34, %v13530_v38  ;;  %v13549_v4 = vld [vmem:[#allocation30_spill] sm:$0xff]  ;;  %v13550_v34 = vld [vmem:[#allocation53_spill] sm:$0xff] }
 0x1c2   : > { %v2228_v27 = vadd.f32 %v2220_v15, %v2212_v54  ;;  %v2360_v42 = vmul.f32 %v8237_v21, %v13515_v23  ;;  %v1962_v10 = vadd.f32 %v8245_v19, %v1947_v9  ;;  %v2376_v56 = vmul.f32 %v8249_v59, %v13498_v2  ;;  %v13551_v23 = vld [vmem:[#allocation87_spill] sm:$0xff]  ;;  %v13552_v2 = vld [vmem:[#allocation34_spill] sm:$0xff] }
 0x1c3   : > { %v2429_v25 = vadd.f32 %v8322_v60, %v2413_v44  ;;  %v2392_v15 = vmul.f32 %v8365_v18, %v13499_v39  ;;  %v2406_v55 = vmul.f32 %v8300_v29, %v13549_v4  ;;  %v2068_v38 = vrot.slane %v8421_v0, 7  ;;  %v13553_v4 = vld [vmem:[#allocation19_spill] sm:$0xff] }
 0x1c4   : > { %v2243_v54 = vadd.f32 %v2236_v49, %v2228_v27  ;;  %v2114_v21 = vmul.f32 %v8203_v51, %v13550_v34  ;;  %v1978_v20 = vadd.f32 %v13551_v23, %v1962_v10  ;;  %v2471_v60 = vrot.slane %v8430_v6, 7  ;;  %v13554_v51 = vld [vmem:[#allocation51_spill] sm:$0xff] }
 0x1c5   : > { %v2444_v19 = vadd.f32 %v2437_v43, %v2429_v25  ;;  %v2129_v9 = vmul.f32 %v8334_v40, %v13500_v24  ;;  %v2422_v27 = vmul.f32 %v8303_v13, %v13552_v2  ;;  %v8450_v49 = vsel %vm305_vm0, 0.0, %v2068_v38 }
 0x1c6   : > { %v2322_v44 = vadd.f32 %v2314_v8, %v2243_v54  ;;  %v2121_v29 = vadd.f32 %v13450_v17, %v2114_v21  ;;  %v1993_v39 = vadd.f32 %v1978_v20, %v13553_v4  ;;  %v2495_v23 = vrot.slane %v8430_v6, 1  ;;  %v13555_v54 = vld [vmem:[#allocation46_spill] sm:$0xff] }
 0x1c7   : > { %v2524_v34 = vadd.f32 %v2444_v19, %v13554_v51  ;;  %v2145_v43 = vmul.f32 %v8450_v49, %v13511_v45  ;;  %v2438_v8 = vmul.f32 %v8418_v47, %v13452_v14  ;;  %v2159_v38 = vmul.f32 %v8162_v7, %v13402_v33  ;;  %v13556_v19 = vld [vmem:[#allocation39_spill] sm:$0xff] }
 0x1c8   : > { %v2338_v10 = vadd.f32 %v2330_v26, %v2322_v44  ;;  %v2137_v25 = vadd.f32 %v2129_v9, %v2121_v29  ;;  %v2008_v17 = vadd.f32 %v13555_v54, %v1993_v39  ;;  %v8464_v20 = vsel %vm305_vm0, 0.0, %v2471_v60  ;;  %v13557_v29 = vld [vmem:[#allocation75_spill] sm:$0xff] }
 0x1c9   : > { %v2540_v21 = vadd.f32 %v2532_v37, %v2524_v34  ;;  %v2517_v51 = vmul.f32 %v8351_v46, %v13556_v19  ;;  %v8470_v26 = vmul.f32 %v8354_v31, %v5970_v58  ;;  %v2175_v9 = vmul.f32 %v8297_v5, %v13406_v61  ;;  %v13558_v37 = vld [vmem:[#allocation44_spill] sm:$0xff]  ;;  %v8483_v46 = vld [vmem:[%s5824_s5 + $0xd8] sm:$0xff] }
 0x1ca   : > { %v2353_v4 = vadd.f32 %v2346_v1, %v2338_v10  ;;  %v2152_v44 = vadd.f32 %v2145_v43, %v2137_v25  ;;  %v2024_v7 = vadd.f32 %v13557_v29, %v2008_v17  ;;  %v8476_v39 = vsel %vm333_vm1, %v2495_v23, 0.0  ;;  %13559 = vst [vmem:[#allocation94_spill] sm:$0xff] %v8483_v46  ;;  %v13560_v25 = vld [vmem:[#allocation20_spill] sm:$0xff] }
 0x1cb   : > { %v2555_v33 = vadd.f32 %v2548_v57, %v2540_v21  ;;  %v8480_v34 = vmul.f32 %v8313_v50, %v13558_v37  ;;  %v2092_v60 = vrot.slane %v8421_v0, 1  ;;  %v2191_v10 = vmul.f32 %v8421_v0, %v13521_v36  ;;  %v13561_v57 = vld [vmem:[#allocation55_spill] sm:$0xff] }
 0x1cc   : > { %v2368_v1 = vadd.f32 %v2360_v42, %v2353_v4  ;;  %v2167_v43 = vadd.f32 %v2159_v38, %v2152_v44  ;;  %v2039_v54 = vadd.f32 %v2024_v7, %v13560_v25  ;;  %v8492_v23 = vmul.f32 %v8464_v20, %v13540_v35  ;;  %v13562_v44 = vld [vmem:[#allocation29_spill] sm:$0xff]  ;;  %v13564_v7 = vld [vmem:[#allocation52_spill] sm:$0xff] }
 0x1cd   : > { %v2570_v17 = vadd.f32 %v2555_v33, %v13561_v57  ;;  %v8496_v50 = vmul.f32 %v8316_v53, %v5993_v3  ;;  %v2205_v42 = vmul.f32 %v8269_v48, %v13538_v22  ;;  %v2269_v38 = vrot.slane %v8483_v46, 7 }
 0x1ce   : > { %v2384_v21 = vadd.f32 %v2376_v56, %v2368_v1  ;;  %v2183_v4 = vadd.f32 %v2175_v9, %v2167_v43  ;;  %5133 = vst [vmem:[%s6195_s6 + $0xb8] sm:$0xff] %v2039_v54  ;;  %v8505_v33 = vmul.f32 %v8430_v6, %v13541_v12  ;;  %v8509_v57 = vmul.f32 %v8368_v16, %v13564_v7 }
 0x1cf   : > { %v2586_v29 = vadd.f32 %v13562_v44, %v2570_v17  ;;  %v2293_v56 = vrot.slane %v8483_v46, 1  ;;  %v8513_v1 = vsel %vm333_vm1, %v2092_v60, 0.0  ;;  %v2221_v43 = vmul.f32 %v8402_v63, %v13487_v52  ;;  %v13567_v17 = vld [vmem:[#allocation56_spill] sm:$0xff]  ;;  %v13574_v52 = vld [vmem:[#allocation21_spill] sm:$0xff] }
 0x1d0   : > { %13563 = vst [vmem:[#allocation31_spill] sm:$0xff] %v8505_v33  ;;  %13565 = vst [vmem:[#allocation98_spill] sm:$0xff] %v8509_v57  ;;  %v2399_v9 = vadd.f32 %v2392_v15, %v2384_v21  ;;  %v2198_v48 = vadd.f32 %v2191_v10, %v2183_v4  ;;  %v8520_v44 = vmul.f32 %v8371_v32, %v13567_v17  ;;  %v8529_v10 = vsel %vm305_vm0, 0.0, %v2269_v38  ;;  %v8534_v4 = vld [vmem:[%s5824_s5 + $0xa0] sm:$0xff]  ;;  %v13572_v57 = vld [vmem:[#allocation18_spill] sm:$0xff] }
 0x1d1   : > { %13566 = vst [vmem:[#allocation73_spill] sm:$0xff] %v8513_v1  ;;  %v2601_v54 = vadd.f32 %v8391_v62, %v2586_v29  ;;  %v8524_v16 = vmul.f32 %v8476_v39, %v13543_v11  ;;  %v2237_v15 = vmul.f32 %v8513_v1, %v13527_v30  ;;  %13570 = vst [vmem:[#allocation24_spill] sm:$0xff] %v8529_v10  ;;  %v13571_v29 = vld [vmem:[#allocation59_spill] sm:$0xff]  ;;  %v13576_v30 = vld [vmem:[#allocation26_spill] sm:$0xff] }
 0x1d2   : > { %13568 = vst [vmem:[#allocation101_spill] sm:$0xff] %v8520_v44  ;;  %v2414_v60 = vadd.f32 %v2406_v55, %v2399_v9  ;;  %v2213_v21 = vadd.f32 %v2205_v42, %v2198_v48  ;;  %v2315_v62 = vmul.f32 %v8294_v41, %v13545_v28  ;;  %v8538_v44 = vsel %vm333_vm1, %v2293_v56, 0.0  ;;  %v13575_v38 = vld [vmem:[#allocation23_spill] sm:$0xff]  ;;  %v8549_v28 = vld [vmem:[%s5824_s5 + $0x118] sm:$0xff] }
 0x1d3   : > { %13569 = vst [vmem:[#allocation88_spill] sm:$0xff] %v8524_v16  ;;  %v2616_v25 = vadd.f32 %v2601_v54, %v13571_v29  ;;  %v13573_v16 = vld [vmem:[#allocation95_spill] sm:$0xff]  ;;  %v2347_v55 = vmul.f32 %v8529_v10, %v13574_v52  ;;  %v2361_v48 = vmul.f32 %v8249_v59, %v13575_v38  ;;  %v2377_v41 = vmul.f32 %v8365_v18, %v13576_v30  ;;  %v13577_v54 = vld [vmem:[#allocation96_spill] sm:$0xff]  ;;  %v13582_v18 = vld [vmem:[#allocation85_spill] sm:$0xff] }
 0x1d4   : > { %v2331_v33 = vmul.f32 %v13573_v16, %v13572_v57  ;;  %v2430_v42 = vadd.f32 %v2422_v27, %v2414_v60  ;;  %v2229_v9 = vadd.f32 %v2221_v43, %v2213_v21  ;;  %v13578_v29 = vld [vmem:[#allocation28_spill] sm:$0xff]  ;;  %v13579_v57 = vld [vmem:[#allocation30_spill] sm:$0xff]  ;;  %v2069_v27 = vrot.slane %v8534_v4, 7  ;;  %v13581_v60 = vld [vmem:[#allocation53_spill] sm:$0xff] }
 0x1d5   : > { %v2632_v56 = vadd.f32 %v13577_v54, %v2616_v25  ;;  %v2393_v1 = vmul.f32 %v8483_v46, %v13578_v29  ;;  %v8556_v52 = vmul.f32 %v8303_v13, %v13579_v57  ;;  %v2115_v21 = vmul.f32 %v8334_v40, %v13581_v60 }
 0x1d6   : > { %v2445_v43 = vadd.f32 %v2438_v8, %v2430_v42  ;;  %v2244_v59 = vadd.f32 %v2237_v15, %v2229_v9  ;;  %v2130_v30 = vmul.f32 %v8450_v49, %v13500_v24  ;;  %v2472_v54 = vrot.slane %v8549_v28, 7 }
 0x1d7   : > { %13580 = vst [vmem:[#allocation70_spill] sm:$0xff] %v8556_v52  ;;  %v2647_v25 = vadd.f32 %v13582_v18, %v2632_v56  ;;  %v2496_v29 = vrot.slane %v8549_v28, 1  ;;  %v8567_v46 = vsel %vm305_vm0, 0.0, %v2069_v27  ;;  %v8570_v52 = vld [vmem:[%s5851_s30] ss:$0 sm:$0xff]  ;;  %v2423_v18 = vmul.f32 %v8418_v47, %v13552_v2 }
 0x1d8   : > { %v2525_v13 = vadd.f32 %v2517_v51, %v2445_v43  ;;  %v2323_v57 = vadd.f32 %v2315_v62, %v2244_v59  ;;  %13583 = vst [vmem:[#allocation84_spill] sm:$0xff] %v8570_v52  ;;  %v2122_v8 = vadd.f32 %v8570_v52, %v2115_v21  ;;  %v2146_v40 = vmul.f32 %v8567_v46, %v13511_v45  ;;  %v13585_v27 = vld [vmem:[#allocation63_spill] sm:$0xff] }
 0x1d9   : > { %5158 = vst [vmem:[%s6195_s6 + $0xc0] sm:$0xff] %v2647_v25  ;;  %v8580_v15 = vmul.f32 %v8538_v44, %v13452_v14  ;;  %v8584_v51 = vmul.f32 %v8354_v31, %v13556_v19  ;;  %v8588_v62 = vmul.f32 %v8464_v20, %v5970_v58  ;;  %v2160_v43 = vmul.f32 %v8297_v5, %v13585_v27  ;;  %v8608_v5 = vld [vmem:[%s5824_s5 + $0xe0] sm:$0xff] }
 0x1da   : > { %v2541_v42 = vadd.f32 %v8470_v26, %v2525_v13  ;;  %v2339_v9 = vadd.f32 %v2331_v33, %v2323_v57  ;;  %v2138_v56 = vadd.f32 %v2130_v30, %v2122_v8  ;;  %v8594_v59 = vsel %vm305_vm0, 0.0, %v2472_v54  ;;  %13587 = vst [vmem:[#allocation48_spill] sm:$0xff] %v8608_v5 }
 0x1db   : > { %13584 = vst [vmem:[#allocation100_spill] sm:$0xff] %v8588_v62  ;;  %v8597_v21 = vsel %vm333_vm1, %v2496_v29, 0.0  ;;  %v8601_v31 = vmul.f32 %v8316_v53, %v13558_v37  ;;  %v2093_v25 = vrot.slane %v8534_v4, 1  ;;  %v2176_v30 = vmul.f32 %v8421_v0, %v13406_v61 }
 0x1dc   : > { %13586 = vst [vmem:[#allocation99_spill] sm:$0xff] %v8597_v21  ;;  %v2556_v62 = vadd.f32 %v8492_v23, %v2541_v42  ;;  %v2354_v26 = vadd.f32 %v2347_v55, %v2339_v9  ;;  %v2153_v57 = vadd.f32 %v2146_v40, %v2138_v56  ;;  %v8612_v33 = vmul.f32 %v8594_v59, %v13540_v35 }
 0x1dd   : > { %v8616_v29 = vmul.f32 %v8430_v6, %v5993_v3  ;;  %v8620_v53 = vmul.f32 %v8549_v28, %v13541_v12  ;;  %v8624_v23 = vmul.f32 %v8371_v32, %v13564_v7  ;;  %v2192_v8 = vmul.f32 %v8534_v4, %v13521_v36 }
 0x1de   : > { %v2571_v55 = vadd.f32 %v8480_v34, %v2556_v62  ;;  %v2369_v54 = vadd.f32 %v2361_v48, %v2354_v26  ;;  %v2168_v13 = vadd.f32 %v2160_v43, %v2153_v57  ;;  %v8631_v40 = vmul.f32 %v8476_v39, %v13567_v17  ;;  %v13594_v26 = vld [vmem:[#allocation42_spill] sm:$0xff]  ;;  %v13595_v57 = vld [vmem:[#allocation73_spill] sm:$0xff]  ;;  %v13598_v17 = vld [vmem:[#allocation31_spill] sm:$0xff] }
 0x1df   : > { %13588 = vst [vmem:[#allocation72_spill] sm:$0xff] %v8616_v29  ;;  %13589 = vst [vmem:[#allocation91_spill] sm:$0xff] %v8620_v53  ;;  %v8634_v42 = vsel %vm333_vm1, %v2093_v25, 0.0  ;;  %v2270_v9 = vrot.slane %v8608_v5, 7  ;;  %v2294_v32 = vrot.slane %v8608_v5, 1  ;;  %v2206_v56 = vmul.f32 %v8402_v63, %v13538_v22  ;;  %v13597_v53 = vld [vmem:[#allocation17_spill] sm:$0xff] }
 0x1e0   : > { %13590 = vst [vmem:[#allocation90_spill] sm:$0xff] %v8624_v23  ;;  %13591 = vst [vmem:[#allocation77_spill] sm:$0xff] %v8631_v40  ;;  %v2587_v34 = vadd.f32 %v8496_v50, %v2571_v55  ;;  %v2385_v48 = vadd.f32 %v2377_v41, %v2369_v54  ;;  %v2184_v62 = vadd.f32 %v2176_v30, %v2168_v13  ;;  %v13596_v40 = vld [vmem:[#allocation54_spill] sm:$0xff]  ;;  %v8655_v54 = vld [vmem:[%s5824_s5 + $0x120] sm:$0xff] }
 0x1e1   : > { %13592 = vst [vmem:[#allocation93_spill] sm:$0xff] %v8634_v42  ;;  %v8643_v43 = vmul.f32 %v8597_v21, %v13543_v11  ;;  %v2222_v25 = vmul.f32 %v13595_v57, %v13594_v26  ;;  %v2238_v23 = vmul.f32 %v8634_v42, %v13596_v40  ;;  %v2316_v29 = vmul.f32 %v13573_v16, %v13597_v53  ;;  %v13599_v55 = vld [vmem:[#allocation18_spill] sm:$0xff]  ;;  %v8658_v13 = vld [vmem:[%s5824_s5 + $0xa8] sm:$0xff]  ;;  %v13601_v40 = vld [vmem:[#allocation89_spill] sm:$0xff] }
 0x1e2   : > { %v2602_v50 = vadd.f32 %v13598_v17, %v2587_v34  ;;  %v2400_v41 = vadd.f32 %v2393_v1, %v2385_v48  ;;  %v2199_v30 = vadd.f32 %v2192_v8, %v2184_v62  ;;  %v2332_v63 = vmul.f32 %v8529_v10, %v13599_v55  ;;  %v13602_v53 = vld [vmem:[#allocation26_spill] sm:$0xff]  ;;  %v13606_v10 = vld [vmem:[#allocation28_spill] sm:$0xff] }
 0x1e3   : > { %13593 = vst [vmem:[#allocation36_spill] sm:$0xff] %v8643_v43  ;;  %v8661_v43 = vsel %vm305_vm0, 0.0, %v2270_v9  ;;  %v8664_v26 = vsel %vm333_vm1, %v2294_v32, 0.0  ;;  %v2362_v16 = vmul.f32 %v13601_v40, %v13575_v38  ;;  %v13603_v17 = vld [vmem:[#allocation94_spill] sm:$0xff]  ;;  %v8674_v42 = vmul.f32 %v8608_v5, %v13606_v10  ;;  %v13607_v9 = vld [vmem:[#allocation21_spill] sm:$0xff] }
 0x1e4   : > { %13600 = vst [vmem:[#allocation83_spill] sm:$0xff] %v8661_v43  ;;  %v2378_v1 = vmul.f32 %v13603_v17, %v13602_v53  ;;  %v13604_v8 = vld [vmem:[#allocation98_spill] sm:$0xff]  ;;  %v2214_v55 = vadd.f32 %v2206_v56, %v2199_v30  ;;  %v2348_v11 = vmul.f32 %v8661_v43, %v13607_v9  ;;  %v2473_v32 = vrot.slane %v8655_v54, 7  ;;  %v13608_v53 = vld [vmem:[#allocation101_spill] sm:$0xff] }
 0x1e5   : > { %v2617_v34 = vadd.f32 %v13604_v8, %v2602_v50  ;;  %v13605_v48 = vld [vmem:[#allocation70_spill] sm:$0xff]  ;;  %v2070_v21 = vrot.slane %v8658_v13, 7  ;;  %v2116_v40 = vmul.f32 %v8450_v49, %v13581_v60  ;;  %v2131_v56 = vmul.f32 %v8567_v46, %v13500_v24  ;;  %v13610_v49 = vld [vmem:[#allocation88_spill] sm:$0xff] }
 0x1e6   : > { %v2415_v62 = vadd.f32 %v13605_v48, %v2400_v41  ;;  %v2230_v41 = vadd.f32 %v2222_v25, %v2214_v55  ;;  %v13609_v30 = vld [vmem:[#allocation30_spill] sm:$0xff]  ;;  %v2497_v48 = vrot.slane %v8655_v54, 1  ;;  %v8700_v55 = vmul.f32 %v8538_v44, %v13552_v2 }
 0x1e7   : > { %v2633_v17 = vadd.f32 %v13608_v53, %v2617_v34  ;;  %v8687_v8 = vmul.f32 %v8418_v47, %v13609_v30  ;;  %v8691_v10 = vsel %vm305_vm0, 0.0, %v2070_v21  ;;  %v2123_v5 = vadd.f32 %v8570_v52, %v2116_v40 }
 0x1e8   : > { %v2431_v50 = vadd.f32 %v2423_v18, %v2415_v62  ;;  %v2245_v18 = vadd.f32 %v2238_v23, %v2230_v41  ;;  %v2147_v25 = vmul.f32 %v8691_v10, %v13511_v45  ;;  %v8704_v47 = vmul.f32 %v8664_v26, %v13452_v14  ;;  %v8733_v41 = vld [vmem:[%s5824_s5 + $0xe8] sm:$0xff] }
 0x1e9   : > { %v2648_v60 = vadd.f32 %v13610_v49, %v2633_v17  ;;  %v2139_v21 = vadd.f32 %v2131_v56, %v2123_v5  ;;  %v2161_v34 = vmul.f32 %v8421_v0, %v13585_v27  ;;  %v8711_v17 = vsel %vm305_vm0, 0.0, %v2473_v32  ;;  %13614 = vst [vmem:[#allocation57_spill] sm:$0xff] %v8733_v41 }
 0x1ea   : > { %v2446_v53 = vadd.f32 %v8580_v15, %v2431_v50  ;;  %v2324_v23 = vadd.f32 %v2316_v29, %v2245_v18  ;;  %v8715_v62 = vmul.f32 %v8464_v20, %v13556_v19  ;;  %v8719_v40 = vmul.f32 %v8594_v59, %v5970_v58 }
 0x1eb   : > { %5159 = vst [vmem:[%s6195_s6 + $0xc8] sm:$0xff] %v2648_v60  ;;  %v8723_v5 = vmul.f32 %v8430_v6, %v13558_v37  ;;  %v2154_v0 = vadd.f32 %v2147_v25, %v2139_v21  ;;  %v2177_v60 = vmul.f32 %v8534_v4, %v13406_v61  ;;  %v8729_v50 = vsel %vm333_vm1, %v2497_v48, 0.0 }
 0x1ec   : > { %v2526_v15 = vadd.f32 %v8584_v51, %v2446_v53  ;;  %v13612_v51 = vld [vmem:[#allocation100_spill] sm:$0xff]  ;;  %v2340_v32 = vadd.f32 %v2332_v63, %v2324_v23  ;;  %13613 = vst [vmem:[#allocation32_spill] sm:$0xff] %v8729_v50  ;;  %v2094_v20 = vrot.slane %v8658_v13, 1  ;;  %v8737_v56 = vmul.f32 %v8711_v17, %v13540_v35 }
 0x1ed   : > { %13611 = vst [vmem:[#allocation102_spill] sm:$0xff] %v8723_v5  ;;  %v8741_v6 = vmul.f32 %v8549_v28, %v5993_v3  ;;  %v2169_v49 = vadd.f32 %v2161_v34, %v2154_v0  ;;  %v2193_v53 = vmul.f32 %v8658_v13, %v13521_v36  ;;  %v8748_v18 = vmul.f32 %v8655_v54, %v13541_v12  ;;  %v13619_v0 = vld [vmem:[#allocation56_spill] sm:$0xff]  ;;  %v13629_v5 = vld [vmem:[#allocation17_spill] sm:$0xff] }
 0x1ee   : > { %v2542_v29 = vadd.f32 %v13612_v51, %v2526_v15  ;;  %13615 = vst [vmem:[#allocation78_spill] sm:$0xff] %v8737_v56  ;;  %v2355_v48 = vadd.f32 %v2348_v11, %v2340_v32  ;;  %v8752_v25 = vmul.f32 %v8476_v39, %v13564_v7  ;;  %v2207_v15 = vmul.f32 %v13595_v57, %v13538_v22  ;;  %v13620_v51 = vld [vmem:[#allocation99_spill] sm:$0xff]  ;;  %v13623_v39 = vld [vmem:[#allocation58_spill] sm:$0xff]  ;;  %v8780_v56 = vld [vmem:[%s5824_s5 + $0xb0] sm:$0xff] }
 0x1ef   : > { %13616 = vst [vmem:[#allocation74_spill] sm:$0xff] %v8741_v6  ;;  %13617 = vst [vmem:[#allocation86_spill] sm:$0xff] %v8748_v18  ;;  %v2185_v21 = vadd.f32 %v2177_v60, %v2169_v49  ;;  %v2271_v34 = vrot.slane %v8733_v41, 7  ;;  %v2295_v23 = vrot.slane %v8733_v41, 1  ;;  %v8764_v32 = vsel %vm333_vm1, %v2094_v20, 0.0  ;;  %v13625_v57 = vld [vmem:[#allocation42_spill] sm:$0xff] }
 0x1f0   : > { %v2557_v63 = vadd.f32 %v8612_v33, %v2542_v29  ;;  %13618 = vst [vmem:[#allocation97_spill] sm:$0xff] %v8752_v25  ;;  %v2370_v11 = vadd.f32 %v2362_v16, %v2355_v48  ;;  %v8761_v29 = vmul.f32 %v13620_v51, %v13619_v0  ;;  %13622 = vst [vmem:[#allocation37_spill] sm:$0xff] %v8764_v32  ;;  %v13626_v25 = vld [vmem:[#allocation93_spill] sm:$0xff]  ;;  %v13627_v6 = vld [vmem:[#allocation54_spill] sm:$0xff] }
 0x1f1   : > { %v8768_v60 = vmul.f32 %v8729_v50, %v13623_v39  ;;  %v2200_v49 = vadd.f32 %v2193_v53, %v2185_v21  ;;  %v2223_v18 = vmul.f32 %v13626_v25, %v13625_v57  ;;  %v13628_v16 = vld [vmem:[#allocation72_spill] sm:$0xff]  ;;  %v13631_v20 = vld [vmem:[#allocation18_spill] sm:$0xff]  ;;  %v8783_v53 = vsel %vm305_vm0, 0.0, %v2271_v34 }
 0x1f2   : > { %v2572_v33 = vadd.f32 %v8601_v31, %v2557_v63  ;;  %13621 = vst [vmem:[#allocation81_spill] sm:$0xff] %v8761_v29  ;;  %v2239_v31 = vmul.f32 %v8764_v32, %v13627_v6  ;;  %v2386_v48 = vadd.f32 %v2378_v1, %v2370_v11  ;;  %v13630_v29 = vld [vmem:[#allocation24_spill] sm:$0xff]  ;;  %v2333_v0 = vmul.f32 %v8661_v43, %v13631_v20  ;;  %v13632_v6 = vld [vmem:[#allocation94_spill] sm:$0xff] }
 0x1f3   : > { %13624 = vst [vmem:[#allocation65_spill] sm:$0xff] %v8768_v60  ;;  %v2317_v22 = vmul.f32 %v13630_v29, %v13629_v5  ;;  %v2215_v60 = vadd.f32 %v2207_v15, %v2200_v49  ;;  %v8786_v21 = vsel %vm333_vm1, %v2295_v23, 0.0  ;;  %v2363_v32 = vmul.f32 %v13632_v6, %v13575_v38  ;;  %v13635_v20 = vld [vmem:[#allocation48_spill] sm:$0xff] }
 0x1f4   : > { %v2588_v63 = vadd.f32 %v13628_v16, %v2572_v33  ;;  %v13633_v33 = vld [vmem:[#allocation91_spill] sm:$0xff]  ;;  %v2401_v11 = vadd.f32 %v8674_v42, %v2386_v48  ;;  %v2349_v29 = vmul.f32 %v8783_v53, %v13607_v9  ;;  %v13634_v16 = vld [vmem:[#allocation26_spill] sm:$0xff]  ;;  %v8797_v15 = vld [vmem:[%s5824_s5 + $0x128] sm:$0xff]  ;;  %v8803_v5 = vmul.f32 %v8538_v44, %v13609_v30 }
 0x1f5   : > { %v2379_v43 = vmul.f32 %v13635_v20, %v13634_v16  ;;  %v2231_v34 = vadd.f32 %v2223_v18, %v2215_v60  ;;  %v13636_v49 = vld [vmem:[#allocation28_spill] sm:$0xff]  ;;  %v2071_v6 = vrot.slane %v8780_v56, 7  ;;  %v2132_v16 = vmul.f32 %v8691_v10, %v13500_v24  ;;  %v13639_v30 = vld [vmem:[#allocation77_spill] sm:$0xff] }
 0x1f6   : > { %v2603_v1 = vadd.f32 %v13633_v33, %v2588_v63  ;;  %v2395_v23 = vmul.f32 %v8733_v41, %v13636_v49  ;;  %v13637_v63 = vld [vmem:[#allocation90_spill] sm:$0xff]  ;;  %v2416_v48 = vadd.f32 %v8687_v8, %v2401_v11  ;;  %v13638_v33 = vld [vmem:[#allocation53_spill] sm:$0xff]  ;;  %v2474_v60 = vrot.slane %v8797_v15, 7 }
 0x1f7   : > { %v2117_v38 = vmul.f32 %v8567_v46, %v13638_v33  ;;  %v2246_v18 = vadd.f32 %v2239_v31, %v2231_v34  ;;  %v2498_v49 = vrot.slane %v8797_v15, 1  ;;  %v8815_v44 = vsel %vm305_vm0, 0.0, %v2071_v6  ;;  %v13640_v6 = vld [vmem:[#allocation36_spill] sm:$0xff] }
 0x1f8   : > { %v2618_v42 = vadd.f32 %v13637_v63, %v2603_v1  ;;  %v2432_v1 = vadd.f32 %v8700_v55, %v2416_v48  ;;  %v2148_v46 = vmul.f32 %v8815_v44, %v13511_v45  ;;  %v2425_v31 = vmul.f32 %v8664_v26, %v13552_v2 }
 0x1f9   : > { %v2124_v8 = vadd.f32 %v8570_v52, %v2117_v38  ;;  %v2325_v11 = vadd.f32 %v2317_v22, %v2246_v18  ;;  %v8826_v34 = vmul.f32 %v8786_v21, %v13452_v14  ;;  %v2162_v22 = vmul.f32 %v8534_v4, %v13585_v27 }
 0x1fa   : > { %v2634_v41 = vadd.f32 %v13639_v30, %v2618_v42  ;;  %v8830_v30 = vmul.f32 %v8594_v59, %v13556_v19  ;;  %v2447_v38 = vadd.f32 %v8704_v47, %v2432_v1  ;;  %v8837_v48 = vsel %vm305_vm0, 0.0, %v2474_v60 }
 0x1fb   : > { %v2140_v63 = vadd.f32 %v2132_v16, %v2124_v8  ;;  %v2341_v42 = vadd.f32 %v2333_v0, %v2325_v11  ;;  %v8841_v18 = vmul.f32 %v8711_v17, %v5970_v58  ;;  %v8845_v59 = vmul.f32 %v8549_v28, %v13558_v37  ;;  %v8855_v0 = vld [vmem:[%s5824_s5 + $0xf0] sm:$0xff] }
 0x1fc   : > { %v2649_v55 = vadd.f32 %v13640_v6, %v2634_v41  ;;  %v2527_v41 = vadd.f32 %v8715_v62, %v2447_v38  ;;  %v8850_v47 = vsel %vm333_vm1, %v2498_v49, 0.0  ;;  %v2178_v4 = vmul.f32 %v8658_v13, %v13406_v61  ;;  %13642 = vst [vmem:[#allocation104_spill] sm:$0xff] %v8855_v0 }
 0x1fd   : > { %13641 = vst [vmem:[#allocation79_spill] sm:$0xff] %v8850_v47  ;;  %v2155_v16 = vadd.f32 %v2148_v46, %v2140_v63  ;;  %v2356_v60 = vadd.f32 %v2349_v29, %v2341_v42  ;;  %v8859_v1 = vmul.f32 %v8837_v48, %v13540_v35  ;;  %v8863_v28 = vmul.f32 %v8655_v54, %v5993_v3  ;;  %v13646_v63 = vld [vmem:[#allocation78_spill] sm:$0xff]  ;;  %v13647_v42 = vld [vmem:[#allocation56_spill] sm:$0xff] }
 0x1fe   : > { %5160 = vst [vmem:[%s6195_s6 + $0xd0] sm:$0xff] %v2649_v55  ;;  %v2095_v62 = vrot.slane %v8780_v56, 1  ;;  %v2543_v49 = vadd.f32 %v8719_v40, %v2527_v41  ;;  %v8869_v8 = vmul.f32 %v8797_v15, %v13541_v12  ;;  %v2194_v29 = vmul.f32 %v8780_v56, %v13521_v36 }
 0x1ff   : > { %13643 = vst [vmem:[#allocation43_spill] sm:$0xff] %v8863_v28  ;;  %v2170_v46 = vadd.f32 %v2162_v22, %v2155_v16  ;;  %v2371_v11 = vadd.f32 %v2363_v32, %v2356_v60  ;;  %v8875_v6 = vmul.f32 %v13620_v51, %v13564_v7  ;;  %v2272_v55 = vrot.slane %v8855_v0, 7  ;;  %v13649_v16 = vld [vmem:[#allocation61_spill] sm:$0xff] }
 0x200   : > { %13644 = vst [vmem:[#allocation92_spill] sm:$0xff] %v8869_v8  ;;  %v2296_v38 = vrot.slane %v8855_v0, 1  ;;  %v2558_v40 = vadd.f32 %v13646_v63, %v2543_v49  ;;  %v8882_v41 = vmul.f32 %v8729_v50, %v13647_v42  ;;  %v2208_v8 = vmul.f32 %v13626_v25, %v13649_v16  ;;  %v13653_v63 = vld [vmem:[#allocation102_spill] sm:$0xff]  ;;  %v13656_v25 = vld [vmem:[#allocation83_spill] sm:$0xff] }
 0x201   : > { %13645 = vst [vmem:[#allocation76_spill] sm:$0xff] %v8875_v6  ;;  %v2186_v22 = vadd.f32 %v2178_v4, %v2170_v46  ;;  %v2387_v32 = vadd.f32 %v2379_v43, %v2371_v11  ;;  %v8888_v60 = vmul.f32 %v8850_v47, %v13623_v39  ;;  %v8891_v51 = vsel %vm333_vm1, %v2095_v62, 0.0  ;;  %v13652_v6 = vld [vmem:[#allocation37_spill] sm:$0xff]  ;;  %v8901_v11 = vld [vmem:[%s5824_s5 + $0xb8] sm:$0xff] }
 0x202   : > { %13648 = vst [vmem:[#allocation82_spill] sm:$0xff] %v8882_v41  ;;  %13651 = vst [vmem:[#allocation47_spill] sm:$0xff] %v8891_v51  ;;  %v2224_v49 = vmul.f32 %v13652_v6, %v13625_v57  ;;  %v2573_v28 = vadd.f32 %v13653_v63, %v2558_v40  ;;  %v13654_v41 = vld [vmem:[#allocation54_spill] sm:$0xff]  ;;  %v13655_v46 = vld [vmem:[#allocation17_spill] sm:$0xff]  ;;  %v8907_v62 = vsel %vm333_vm1, %v2296_v38, 0.0 }
 0x203   : > { %13650 = vst [vmem:[#allocation49_spill] sm:$0xff] %v8888_v60  ;;  %v2201_v42 = vadd.f32 %v2194_v29, %v2186_v22  ;;  %v2240_v4 = vmul.f32 %v8891_v51, %v13654_v41  ;;  %v2318_v43 = vmul.f32 %v13656_v25, %v13655_v46  ;;  %v2402_v39 = vadd.f32 %v2395_v23, %v2387_v32  ;;  %v13658_v47 = vld [vmem:[#allocation18_spill] sm:$0xff]  ;;  %v13660_v41 = vld [vmem:[#allocation23_spill] sm:$0xff]  ;;  %v8917_v46 = vld [vmem:[%s5824_s5 + $0x130] sm:$0xff] }
 0x204   : > { %v8904_v60 = vsel %vm305_vm0, 0.0, %v2272_v55  ;;  %v2334_v57 = vmul.f32 %v8783_v53, %v13658_v47  ;;  %v13659_v40 = vld [vmem:[#allocation74_spill] sm:$0xff]  ;;  %v2364_v25 = vmul.f32 %v13635_v20, %v13660_v41  ;;  %v13662_v32 = vld [vmem:[#allocation57_spill] sm:$0xff]  ;;  %v13663_v51 = vld [vmem:[#allocation28_spill] sm:$0xff]  ;;  %v2072_v47 = vrot.slane %v8901_v11, 7 }
 0x205   : > { %13657 = vst [vmem:[#allocation71_spill] sm:$0xff] %v8904_v60  ;;  %v2589_v29 = vadd.f32 %v13659_v40, %v2573_v28  ;;  %v2216_v22 = vadd.f32 %v2208_v8, %v2201_v42  ;;  %v2350_v63 = vmul.f32 %v8904_v60, %v13607_v9  ;;  %v2417_v23 = vadd.f32 %v8803_v5, %v2402_v39  ;;  %v13661_v55 = vld [vmem:[#allocation26_spill] sm:$0xff] }
 0x206   : > { %v2380_v38 = vmul.f32 %v13662_v32, %v13661_v55  ;;  %v2396_v50 = vmul.f32 %v8855_v0, %v13663_v51  ;;  %v13664_v28 = vld [vmem:[#allocation86_spill] sm:$0xff]  ;;  %v2118_v20 = vmul.f32 %v8691_v10, %v13638_v33  ;;  %v8934_v5 = vmul.f32 %v8786_v21, %v13552_v2  ;;  %v13666_v0 = vld [vmem:[#allocation97_spill] sm:$0xff] }
 0x207   : > { %v2604_v8 = vadd.f32 %v13664_v28, %v2589_v29  ;;  %v2232_v42 = vadd.f32 %v2224_v49, %v2216_v22  ;;  %v13665_v40 = vld [vmem:[#allocation30_spill] sm:$0xff]  ;;  %v2433_v41 = vadd.f32 %v2425_v31, %v2417_v23  ;;  %v2475_v39 = vrot.slane %v8917_v46, 7  ;;  %v13667_v2 = vld [vmem:[#allocation81_spill] sm:$0xff] }
 0x208   : > { %v8928_v9 = vmul.f32 %v8664_v26, %v13665_v40  ;;  %v2133_v51 = vmul.f32 %v8815_v44, %v13500_v24  ;;  %v8941_v22 = vsel %vm305_vm0, 0.0, %v2072_v47  ;;  %v2125_v26 = vadd.f32 %v8570_v52, %v2118_v20 }
 0x209   : > { %v2619_v29 = vadd.f32 %v13666_v0, %v2604_v8  ;;  %v2247_v49 = vadd.f32 %v2240_v4, %v2232_v42  ;;  %v2448_v10 = vadd.f32 %v8826_v34, %v2433_v41  ;;  %v8947_v31 = vmul.f32 %v8907_v62, %v13452_v14 }
 0x20a   : > { %v2499_v23 = vrot.slane %v8917_v46, 1  ;;  %v2149_v28 = vmul.f32 %v8941_v22, %v13511_v45  ;;  %v2141_v47 = vadd.f32 %v2133_v51, %v2125_v26  ;;  %v2163_v8 = vmul.f32 %v8658_v13, %v13585_v27 }
 0x20b   : > { %v2635_v0 = vadd.f32 %v13667_v2, %v2619_v29  ;;  %v2326_v4 = vadd.f32 %v2318_v43, %v2247_v49  ;;  %v2528_v34 = vadd.f32 %v8830_v30, %v2448_v10  ;;  %v8957_v41 = vsel %vm305_vm0, 0.0, %v2475_v39  ;;  %v13668_v2 = vld [vmem:[#allocation65_spill] sm:$0xff]  ;;  %v8971_v49 = vld [vmem:[%s5824_s5 + $0xf8] sm:$0xff] }
 0x20c   : > { %v8961_v42 = vmul.f32 %v8711_v17, %v13556_v19  ;;  %v8965_v20 = vmul.f32 %v8837_v48, %v5970_v58  ;;  %v2156_v51 = vadd.f32 %v2149_v28, %v2141_v47  ;;  %v2179_v13 = vmul.f32 %v8780_v56, %v13406_v61 }
 0x20d   : > { %v2650_v43 = vadd.f32 %v13668_v2, %v2635_v0  ;;  %v2342_v29 = vadd.f32 %v2334_v57, %v2326_v4  ;;  %v2544_v30 = vadd.f32 %v8841_v18, %v2528_v34  ;;  %v8975_v39 = vsel %vm333_vm1, %v2499_v23, 0.0 }
 0x20e   : > { %v8979_v17 = vmul.f32 %v8957_v41, %v13540_v35  ;;  %v8983_v26 = vmul.f32 %v8655_v54, %v13558_v37  ;;  %v2096_v10 = vrot.slane %v8901_v11, 1  ;;  %v2171_v28 = vadd.f32 %v2163_v8, %v2156_v51  ;;  %v13675_v51 = vld [vmem:[#allocation79_spill] sm:$0xff] }
 0x20f   : > { %5161 = vst [vmem:[%s6195_s6 + $0xd8] sm:$0xff] %v2650_v43  ;;  %v2357_v57 = vadd.f32 %v2350_v63, %v2342_v29  ;;  %v2195_v0 = vmul.f32 %v8901_v11, %v13521_v36  ;;  %v2559_v18 = vadd.f32 %v8859_v1, %v2544_v30  ;;  %v8992_v23 = vmul.f32 %v8797_v15, %v5993_v3  ;;  %v13672_v1 = vld [vmem:[#allocation32_spill] sm:$0xff]  ;;  %v13677_v36 = vld [vmem:[#allocation58_spill] sm:$0xff] }
 0x210   : > { %13669 = vst [vmem:[#allocation87_spill] sm:$0xff] %v8983_v26  ;;  %v8996_v4 = vmul.f32 %v8917_v46, %v13541_v12  ;;  %v2273_v54 = vrot.slane %v8971_v49, 7  ;;  %v2187_v63 = vadd.f32 %v2179_v13, %v2171_v28  ;;  %v2209_v8 = vmul.f32 %v13652_v6, %v13649_v16  ;;  %v13674_v29 = vld [vmem:[#allocation56_spill] sm:$0xff]  ;;  %v13680_v28 = vld [vmem:[#allocation42_spill] sm:$0xff] }
 0x211   : > { %13670 = vst [vmem:[#allocation46_spill] sm:$0xff] %v8992_v23  ;;  %v2372_v47 = vadd.f32 %v2364_v25, %v2357_v57  ;;  %v2297_v34 = vrot.slane %v8971_v49, 1  ;;  %v2574_v2 = vadd.f32 %v8845_v59, %v2559_v18  ;;  %v9005_v43 = vmul.f32 %v13672_v1, %v13564_v7  ;;  %v13681_v59 = vld [vmem:[#allocation47_spill] sm:$0xff]  ;;  %v13683_v1 = vld [vmem:[#allocation54_spill] sm:$0xff] }
 0x212   : > { %13671 = vst [vmem:[#allocation75_spill] sm:$0xff] %v8996_v4  ;;  %v9009_v30 = vmul.f32 %v13675_v51, %v13674_v29  ;;  %v9013_v25 = vmul.f32 %v8975_v39, %v13677_v36  ;;  %v9016_v6 = vsel %vm333_vm1, %v2096_v10, 0.0  ;;  %v2202_v57 = vadd.f32 %v2195_v0, %v2187_v63  ;;  %v13682_v4 = vld [vmem:[#allocation43_spill] sm:$0xff]  ;;  %v13685_v0 = vld [vmem:[#allocation18_spill] sm:$0xff] }
 0x213   : > { %13673 = vst [vmem:[#allocation29_spill] sm:$0xff] %v9005_v43  ;;  %v2388_v13 = vadd.f32 %v2380_v38, %v2372_v47  ;;  %13679 = vst [vmem:[#allocation85_spill] sm:$0xff] %v9016_v6  ;;  %v2225_v18 = vmul.f32 %v13681_v59, %v13680_v28  ;;  %v2590_v23 = vadd.f32 %v13682_v4, %v2574_v2  ;;  %v9024_v45 = vsel %vm305_vm0, 0.0, %v2273_v54  ;;  %v9034_v63 = vld [vmem:[%s5824_s5 + $0x138] sm:$0xff]  ;;  %v13686_v4 = vld [vmem:[#allocation92_spill] sm:$0xff] }
 0x214   : > { %13676 = vst [vmem:[#allocation95_spill] sm:$0xff] %v9009_v30  ;;  %13678 = vst [vmem:[#allocation96_spill] sm:$0xff] %v9013_v25  ;;  %v2241_v43 = vmul.f32 %v9016_v6, %v13683_v1  ;;  %v13684_v30 = vld [vmem:[#allocation17_spill] sm:$0xff]  ;;  %v2217_v38 = vadd.f32 %v2209_v8, %v2202_v57  ;;  %v9029_v10 = vsel %vm333_vm1, %v2297_v34, 0.0  ;;  %v2335_v47 = vmul.f32 %v8904_v60, %v13685_v0  ;;  %v13688_v54 = vld [vmem:[#allocation23_spill] sm:$0xff] }
 0x215   : > { %v2319_v26 = vmul.f32 %v8783_v53, %v13684_v30  ;;  %v2403_v25 = vadd.f32 %v2396_v50, %v2388_v13  ;;  %v2605_v2 = vadd.f32 %v13686_v4, %v2590_v23  ;;  %v13687_v28 = vld [vmem:[#allocation21_spill] sm:$0xff]  ;;  %v2365_v6 = vmul.f32 %v13662_v32, %v13688_v54  ;;  %v13689_v53 = vld [vmem:[#allocation104_spill] sm:$0xff] }
 0x216   : > { %v2351_v1 = vmul.f32 %v9024_v45, %v13687_v28  ;;  %v2381_v50 = vmul.f32 %v13689_v53, %v13661_v55  ;;  %v2233_v34 = vadd.f32 %v2225_v18, %v2217_v38  ;;  %v13690_v13 = vld [vmem:[#allocation28_spill] sm:$0xff]  ;;  %v2119_v0 = vmul.f32 %v8815_v44, %v13638_v33  ;;  %v13692_v18 = vld [vmem:[#allocation82_spill] sm:$0xff] }
 0x217   : > { %v2418_v8 = vadd.f32 %v8928_v9, %v2403_v25  ;;  %v2397_v57 = vmul.f32 %v8971_v49, %v13690_v13  ;;  %v13691_v60 = vld [vmem:[#allocation76_spill] sm:$0xff]  ;;  %v2476_v4 = vrot.slane %v9034_v63, 7  ;;  %v2500_v28 = vrot.slane %v9034_v63, 1  ;;  %v13693_v44 = vld [vmem:[#allocation34_spill] sm:$0xff] }
 0x218   : > { %v2620_v23 = vadd.f32 %v13691_v60, %v2605_v2  ;;  %v2134_v32 = vmul.f32 %v8941_v22, %v13500_v24  ;;  %v2248_v53 = vadd.f32 %v2241_v43, %v2233_v34  ;;  %v2411_v9 = vmul.f32 %v8786_v21, %v13665_v40 }
 0x219   : > { %v2434_v55 = vadd.f32 %v8934_v5, %v2418_v8  ;;  %v2126_v25 = vadd.f32 %v8570_v52, %v2119_v0  ;;  %v9060_v60 = vmul.f32 %v8907_v62, %v13693_v44  ;;  %v9064_v2 = vmul.f32 %v9029_v10, %v13452_v14  ;;  %v13694_v8 = vld [vmem:[#allocation49_spill] sm:$0xff] }
 0x21a   : > { %v2636_v38 = vadd.f32 %v13692_v18, %v2620_v23  ;;  %v9068_v5 = vmul.f32 %v8837_v48, %v13556_v19  ;;  %v2327_v22 = vadd.f32 %v2319_v26, %v2248_v53  ;;  %v2164_v0 = vmul.f32 %v8780_v56, %v13585_v27  ;;  %v9087_v56 = vld [vmem:[%s5824_s5 + $0xc0] sm:$0xff]  ;;  %v9090_v53 = vld [vmem:[%s5824_s5 + $0xc8] sm:$0xff] }
 0x21b   : > { %v2449_v21 = vadd.f32 %v8947_v31, %v2434_v55  ;;  %v2142_v43 = vadd.f32 %v2134_v32, %v2126_v25  ;;  %v2492_v23 = vsel %vm305_vm0, 0.0, %v2476_v4  ;;  %v9076_v18 = vsel %vm333_vm1, %v2500_v28, 0.0  ;;  %v13695_v55 = vld [vmem:[#allocation67_spill] sm:$0xff] }
 0x21c   : > { %v2651_v34 = vadd.f32 %v13694_v8, %v2636_v38  ;;  %v9080_v14 = vmul.f32 %v8957_v41, %v5970_v58  ;;  %v2343_v52 = vadd.f32 %v2335_v47, %v2327_v22  ;;  %v2180_v26 = vmul.f32 %v8901_v11, %v13406_v61  ;;  %v13699_v8 = vld [vmem:[#allocation85_spill] sm:$0xff] }
 0x21d   : > { %v2529_v48 = vadd.f32 %v8961_v42, %v2449_v21  ;;  %v2157_v31 = vadd.f32 %v2142_v43, %v13695_v55  ;;  %v9094_v28 = vmul.f32 %v2492_v23, %v13540_v35  ;;  %v9098_v4 = vmul.f32 %v8797_v15, %v13558_v37 }
 0x21e   : > { %5162 = vst [vmem:[%s6195_s6 + $0xe0] sm:$0xff] %v2651_v34  ;;  %v9102_v42 = vmul.f32 %v8917_v46, %v5993_v3  ;;  %v9106_v47 = vmul.f32 %v9034_v63, %v13541_v12  ;;  %v2358_v32 = vadd.f32 %v2351_v1, %v2343_v52  ;;  %v9111_v25 = vmul.f32 %v13675_v51, %v13564_v7  ;;  %v13701_v12 = vld [vmem:[#allocation87_spill] sm:$0xff] }
 0x21f   : > { %v2545_v11 = vadd.f32 %v8965_v20, %v2529_v48  ;;  %v2172_v38 = vadd.f32 %v2164_v0, %v2157_v31  ;;  %v9115_v15 = vmul.f32 %v8975_v39, %v13674_v29  ;;  %v9119_v21 = vmul.f32 %v9076_v18, %v13677_v36  ;;  %v13698_v0 = vld [vmem:[#allocation42_spill] sm:$0xff]  ;;  %v13700_v48 = vld [vmem:[#allocation71_spill] sm:$0xff] }
 0x220   : > { %v2680_v22 = vrot.slane %v9087_v56, 7  ;;  %v2681_v43 = vrot.slane %v9090_v53, 7  ;;  %v2373_v52 = vadd.f32 %v2365_v6, %v2358_v32  ;;  %v2210_v51 = vmul.f32 %v13681_v59, %v13649_v16  ;;  %v13702_v6 = vld [vmem:[#allocation80_spill] sm:$0xff] }
 0x221   : > { %13696 = vst [vmem:[#allocation73_spill] sm:$0xff] %v9115_v15  ;;  %13697 = vst [vmem:[#allocation31_spill] sm:$0xff] %v9119_v21  ;;  %v2560_v20 = vadd.f32 %v8979_v17, %v2545_v11  ;;  %v2188_v1 = vadd.f32 %v2180_v26, %v2172_v38  ;;  %v2226_v34 = vmul.f32 %v13699_v8, %v13698_v0  ;;  %v13703_v11 = vld [vmem:[#allocation18_spill] sm:$0xff]  ;;  %v13704_v38 = vld [vmem:[#allocation104_spill] sm:$0xff]  ;;  %v2704_v21 = vrot.slane %v9087_v56, 1 }
 0x222   : > { %v2320_v31 = vmul.f32 %v13700_v48, %v13684_v30  ;;  %v9131_v55 = vsel %vm305_vm0, 0.0, %v2680_v22  ;;  %v9134_v36 = vsel %vm305_vm0, 0.0, %v2681_v43  ;;  %v2389_v17 = vadd.f32 %v2381_v50, %v2373_v52  ;;  %v13705_v22 = vld [vmem:[#allocation26_spill] sm:$0xff]  ;;  %v13706_v43 = vld [vmem:[#allocation60_spill] sm:$0xff] }
 0x223   : > { %v2575_v35 = vadd.f32 %v13701_v12, %v2560_v20  ;;  %v2203_v26 = vadd.f32 %v2188_v1, %v13702_v6  ;;  %v2742_v59 = vmul.f32 %v9131_v55, %v13500_v24  ;;  %v2336_v32 = vmul.f32 %v9024_v45, %v13703_v11  ;;  %v13707_v50 = vld [vmem:[#allocation46_spill] sm:$0xff] }
 0x224   : > { %v2366_v8 = vmul.f32 %v13704_v38, %v13688_v54  ;;  %v9146_v48 = vmul.f32 %v8971_v49, %v13705_v22  ;;  %v2758_v12 = vmul.f32 %v9134_v36, %v13706_v43  ;;  %v2404_v52 = vadd.f32 %v2397_v57, %v2389_v17  ;;  %v13708_v6 = vld [vmem:[#allocation66_spill] sm:$0xff]  ;;  %v13709_v54 = vld [vmem:[#allocation75_spill] sm:$0xff] }
 0x225   : > { %v2591_v20 = vadd.f32 %v13707_v50, %v2575_v35  ;;  %v2218_v1 = vadd.f32 %v2210_v51, %v2203_v26  ;;  %v2750_v30 = vadd.f32 %v2742_v59, %v13708_v6  ;;  %v9154_v45 = vmul.f32 %v8907_v62, %v13665_v40  ;;  %v9162_v51 = vld [vmem:[%s5824_s5 + $0x100] sm:$0xff] }
 0x226   : > { %v2705_v38 = vrot.slane %v9090_v53, 1  ;;  %v2788_v49 = vmul.f32 %v9087_v56, %v13406_v61  ;;  %v2419_v15 = vadd.f32 %v2411_v9, %v2404_v52  ;;  %v9166_v17 = vmul.f32 %v9029_v10, %v13693_v44  ;;  %v13710_v59 = vld [vmem:[#allocation15_spill] sm:$0xff]  ;;  %v9182_v10 = vld [vmem:[%s5824_s5 + $0x108] sm:$0xff] }
 0x227   : > { %v2606_v16 = vadd.f32 %v13709_v54, %v2591_v20  ;;  %v2234_v35 = vadd.f32 %v2226_v34, %v2218_v1  ;;  %v2765_v57 = vadd.f32 %v2758_v12, %v2750_v30  ;;  %v9170_v62 = vmul.f32 %v8957_v41, %v13556_v19  ;;  %v13711_v54 = vld [vmem:[#allocation29_spill] sm:$0xff]  ;;  %v13713_v20 = vld [vmem:[#allocation103_spill] sm:$0xff] }
 0x228   : > { %v9173_v26 = vmul.f32 %v2492_v23, %v5970_v58  ;;  %v2804_v50 = vmul.f32 %v9090_v53, %v13710_v59  ;;  %v2435_v30 = vadd.f32 %v9060_v60, %v2419_v15  ;;  %v13712_v34 = vld [vmem:[#allocation69_spill] sm:$0xff]  ;;  %v9186_v41 = vmul.f32 %v8917_v46, %v13558_v37 }
 0x229   : > { %v2621_v9 = vadd.f32 %v13711_v54, %v2606_v16  ;;  %v2249_v12 = vadd.f32 %v2234_v35, %v13712_v34  ;;  %v2780_v52 = vadd.f32 %v2765_v57, %v13713_v20  ;;  %v9189_v23 = vsel %vm333_vm1, %v2704_v21, 0.0  ;;  %v13714_v54 = vld [vmem:[#allocation95_spill] sm:$0xff]  ;;  %v13715_v34 = vld [vmem:[#allocation96_spill] sm:$0xff]  ;;  %v13724_v19 = vld [vmem:[#allocation25_spill] sm:$0xff] }
 0x22a   : > { %v9192_v1 = vsel %vm333_vm1, %v2705_v38, 0.0  ;;  %v2881_v16 = vrot.slane %v9162_v51, 7  ;;  %v2450_v15 = vadd.f32 %v9064_v2, %v2435_v30  ;;  %v2834_v20 = vmul.f32 %v9189_v23, %v13698_v0  ;;  %v13718_v30 = vld [vmem:[#allocation54_spill] sm:$0xff] }
 0x22b   : > { %v2637_v60 = vadd.f32 %v13714_v54, %v2621_v9  ;;  %v2328_v35 = vadd.f32 %v2320_v31, %v2249_v12  ;;  %v2796_v57 = vadd.f32 %v2788_v49, %v2780_v52  ;;  %v2882_v46 = vrot.slane %v9182_v10, 7 }
 0x22c   : > { %v2905_v21 = vrot.slane %v9162_v51, 1  ;;  %v2906_v38 = vrot.slane %v9182_v10, 1  ;;  %v2530_v37 = vadd.f32 %v9068_v5, %v2450_v15  ;;  %v9206_v2 = vmul.f32 %v9034_v63, %v5993_v3  ;;  %v13720_v63 = vld [vmem:[#allocation68_spill] sm:$0xff] }
 0x22d   : > { %v2652_v6 = vadd.f32 %v13715_v34, %v2637_v60  ;;  %v2344_v9 = vadd.f32 %v2336_v32, %v2328_v35  ;;  %v2811_v54 = vadd.f32 %v2804_v50, %v2796_v57  ;;  %v9210_v31 = vmul.f32 %v8975_v39, %v13564_v7  ;;  %v13719_v32 = vld [vmem:[#allocation33_spill] sm:$0xff] }
 0x22e   : > { %v9214_v49 = vmul.f32 %v9076_v18, %v13674_v29  ;;  %v2850_v34 = vmul.f32 %v9192_v1, %v13718_v30  ;;  %v2546_v5 = vadd.f32 %v9080_v14, %v2530_v37  ;;  %v9223_v52 = vsel %vm305_vm0, 0.0, %v2881_v16  ;;  %v9226_v39 = vld [vmem:[%s5824_s5 + $0xd0] sm:$0xff] }
 0x22f   : > { %13716 = vst [vmem:[#allocation89_spill] sm:$0xff] %v9210_v31  ;;  %5163 = vst [vmem:[%s6195_s6 + $0xe8] sm:$0xff] %v2652_v6  ;;  %v2359_v50 = vadd.f32 %v2344_v9, %v13719_v32  ;;  %v2826_v12 = vadd.f32 %v2811_v54, %v13720_v63  ;;  %v9229_v18 = vsel %vm305_vm0, 0.0, %v2882_v46  ;;  %v9232_v60 = vsel %vm333_vm1, %v2905_v21, 0.0  ;;  %v13723_v16 = vld [vmem:[#allocation21_spill] sm:$0xff]  ;;  %v9243_v9 = vld [vmem:[%s5824_s5 + $0x140] sm:$0xff] }
 0x230   : > { %13717 = vst [vmem:[#allocation98_spill] sm:$0xff] %v9214_v49  ;;  %13721 = vst [vmem:[#allocation70_spill] sm:$0xff] %v9226_v39  ;;  %v9235_v15 = vsel %vm333_vm1, %v2906_v38, 0.0  ;;  %v2944_v14 = vmul.f32 %v9223_v52, %v13703_v11  ;;  %v2561_v37 = vadd.f32 %v9094_v28, %v2546_v5  ;;  %v2960_v57 = vmul.f32 %v9229_v18, %v13723_v16  ;;  %v9246_v46 = vld [vmem:[%s5824_s5 + $0x148] sm:$0xff] }
 0x231   : > { %13722 = vst [vmem:[#allocation101_spill] sm:$0xff] %v9235_v15  ;;  %v2374_v6 = vadd.f32 %v2366_v8, %v2359_v50  ;;  %v2842_v35 = vadd.f32 %v2834_v20, %v2826_v12  ;;  %v2990_v21 = vmul.f32 %v9162_v51, %v13705_v22  ;;  %v3006_v38 = vmul.f32 %v9182_v10, %v13690_v13 }
 0x232   : > { %v9254_v54 = vmul.f32 %v9232_v60, %v13693_v44  ;;  %v2682_v28 = vrot.slane %v9226_v39, 7  ;;  %v2576_v8 = vadd.f32 %v9098_v4, %v2561_v37  ;;  %v2728_v50 = vmul.f32 %v9131_v55, %v13638_v33  ;;  %v13725_v37 = vld [vmem:[#allocation22_spill] sm:$0xff] }
 0x233   : > { %v2390_v20 = vadd.f32 %v9146_v48, %v2374_v6  ;;  %v2857_v5 = vadd.f32 %v2850_v34, %v2842_v35  ;;  %v3084_v12 = vrot.slane %v9243_v9, 7  ;;  %v3085_v63 = vrot.slane %v9246_v46, 7  ;;  %v13726_v34 = vld [vmem:[#allocation84_spill] sm:$0xff]  ;;  %v13727_v35 = vld [vmem:[#allocation35_spill] sm:$0xff] }
 0x234   : > { %v9264_v32 = vsel %vm305_vm0, 0.0, %v2682_v28  ;;  %v2743_v7 = vmul.f32 %v9134_v36, %v13500_v24  ;;  %v2592_v49 = vadd.f32 %v9102_v42, %v2576_v8  ;;  %v2735_v6 = vadd.f32 %v13726_v34, %v2728_v50 }
 0x235   : > { %v2405_v4 = vadd.f32 %v2390_v20, %v13724_v19  ;;  %v2936_v48 = vadd.f32 %v2857_v5, %v13725_v37  ;;  %v9274_v55 = vmul.f32 %v9235_v15, %v13727_v35  ;;  %v3108_v31 = vrot.slane %v9243_v9, 1 }
 0x236   : > { %v2759_v28 = vmul.f32 %v9264_v32, %v13706_v43  ;;  %v2773_v44 = vmul.f32 %v9087_v56, %v13585_v27  ;;  %v2607_v42 = vadd.f32 %v9106_v47, %v2592_v49  ;;  %v2751_v5 = vadd.f32 %v2743_v7, %v2735_v6 }
 0x237   : > { %v2420_v8 = vadd.f32 %v9154_v45, %v2405_v4  ;;  %v2952_v20 = vadd.f32 %v2944_v14, %v2936_v48  ;;  %v9284_v50 = vsel %vm305_vm0, 0.0, %v3084_v12  ;;  %v9287_v37 = vsel %vm305_vm0, 0.0, %v3085_v63  ;;  %v9295_v45 = vld [vmem:[%s5824_s5 + $0x110] sm:$0xff]  ;;  %v13730_v48 = vld [vmem:[#allocation40_spill] sm:$0xff] }
 0x238   : > { %v3109_v19 = vrot.slane %v9246_v46, 1  ;;  %v2789_v35 = vmul.f32 %v9090_v53, %v13406_v61  ;;  %v2622_v43 = vadd.f32 %v9111_v25, %v2607_v42  ;;  %v2766_v49 = vadd.f32 %v2759_v28, %v2751_v5  ;;  %13728 = vst [vmem:[#allocation88_spill] sm:$0xff] %v9295_v45  ;;  %v13729_v4 = vld [vmem:[#allocation73_spill] sm:$0xff]  ;;  %v13733_v61 = vld [vmem:[#allocation31_spill] sm:$0xff] }
 0x239   : > { %v2436_v56 = vadd.f32 %v9166_v17, %v2420_v8  ;;  %v2967_v47 = vadd.f32 %v2960_v57, %v2952_v20  ;;  %v9298_v7 = vsel %vm333_vm1, %v3108_v31, 0.0  ;;  %v9302_v63 = vmul.f32 %v9284_v50, %v5970_v58  ;;  %v13731_v57 = vld [vmem:[#allocation27_spill] sm:$0xff]  ;;  %v13732_v42 = vld [vmem:[#allocation61_spill] sm:$0xff] }
 0x23a   : > { %v2706_v14 = vrot.slane %v9226_v39, 1  ;;  %v2805_v12 = vmul.f32 %v9226_v39, %v13710_v59  ;;  %v2638_v25 = vadd.f32 %v13729_v4, %v2622_v43  ;;  %v2781_v28 = vadd.f32 %v2773_v44, %v2766_v49  ;;  %v13735_v44 = vld [vmem:[#allocation50_spill] sm:$0xff] }
 0x23b   : > { %v2451_v17 = vadd.f32 %v2436_v56, %v13730_v48  ;;  %v2982_v6 = vadd.f32 %v2967_v47, %v13731_v57  ;;  %v9311_v31 = vsel %vm333_vm1, %v3109_v19, 0.0  ;;  %v2819_v8 = vmul.f32 %v9189_v23, %v13732_v42  ;;  %v13734_v56 = vld [vmem:[#allocation41_spill] sm:$0xff]  ;;  %v9358_v57 = vld [vmem:[%s5824_s5 + $0xd8] sm:$0xff] }
 0x23c   : > { %v2883_v20 = vrot.slane %v9295_v45, 7  ;;  %v2907_v5 = vrot.slane %v9295_v45, 1  ;;  %v2653_v59 = vadd.f32 %v13733_v61, %v2638_v25  ;;  %v2797_v39 = vadd.f32 %v2789_v35, %v2781_v28  ;;  %v13741_v48 = vld [vmem:[#allocation17_spill] sm:$0xff] }
 0x23d   : > { %v2531_v43 = vadd.f32 %v9170_v62, %v2451_v17  ;;  %v2998_v4 = vadd.f32 %v2990_v21, %v2982_v6  ;;  %v3163_v47 = vmul.f32 %v9287_v37, %v13734_v56  ;;  %v9323_v19 = vmul.f32 %v9243_v9, %v5993_v3  ;;  %v13737_v17 = vld [vmem:[#allocation58_spill] sm:$0xff] }
 0x23e   : > { %v9327_v23 = vmul.f32 %v9246_v46, %v13735_v44  ;;  %v9330_v49 = vsel %vm333_vm1, %v2706_v14, 0.0  ;;  %5164 = vst [vmem:[%s6195_s6 + $0xf0] sm:$0xff] %v2653_v59  ;;  %v2812_v21 = vadd.f32 %v2805_v12, %v2797_v39  ;;  %v2835_v35 = vmul.f32 %v9192_v1, %v13698_v0  ;;  %v13740_v39 = vld [vmem:[#allocation38_spill] sm:$0xff] }
 0x23f   : > { %v2547_v61 = vadd.f32 %v9173_v26, %v2531_v43  ;;  %v3013_v62 = vadd.f32 %v3006_v38, %v2998_v4  ;;  %v9338_v25 = vmul.f32 %v9298_v7, %v13674_v29  ;;  %v9342_v6 = vmul.f32 %v9311_v31, %v13737_v17  ;;  %v13739_v26 = vld [vmem:[#allocation16_spill] sm:$0xff]  ;;  %v9355_v4 = vld [vmem:[%s5824_s5 + $0x150] sm:$0xff] }
 0x240   : > { %v2851_v14 = vmul.f32 %v9330_v49, %v13718_v30  ;;  %v9347_v59 = vsel %vm305_vm0, 0.0, %v2883_v20  ;;  %v2827_v28 = vadd.f32 %v2819_v8, %v2812_v21  ;;  %v9352_v43 = vsel %vm333_vm1, %v2907_v5, 0.0 }
 0x241   : > { %13736 = vst [vmem:[#allocation100_spill] sm:$0xff] %v9338_v25  ;;  %13738 = vst [vmem:[#allocation99_spill] sm:$0xff] %v9342_v6  ;;  %v2562_v38 = vadd.f32 %v2547_v61, %v13739_v26  ;;  %v3028_v12 = vadd.f32 %v3013_v62, %v13740_v39  ;;  %v2929_v6 = vmul.f32 %v9223_v52, %v13741_v48  ;;  %v13742_v61 = vld [vmem:[#allocation23_spill] sm:$0xff]  ;;  %v3086_v26 = vrot.slane %v9355_v4, 7 }
 0x242   : > { %v2945_v25 = vmul.f32 %v9229_v18, %v13703_v11  ;;  %v2961_v20 = vmul.f32 %v9347_v59, %v13723_v16  ;;  %v2975_v62 = vmul.f32 %v9162_v51, %v13742_v61  ;;  %v2843_v21 = vadd.f32 %v2835_v35, %v2827_v28 }
 0x243   : > { %v2577_v8 = vadd.f32 %v9186_v41, %v2562_v38  ;;  %v3044_v5 = vadd.f32 %v9254_v54, %v3028_v12  ;;  %v2991_v39 = vmul.f32 %v9182_v10, %v13705_v22  ;;  %v3007_v52 = vmul.f32 %v9295_v45, %v13690_v13  ;;  %v13743_v12 = vld [vmem:[#allocation34_spill] sm:$0xff] }
 0x244   : > { %v2683_v11 = vrot.slane %v9358_v57, 7  ;;  %v2729_v16 = vmul.f32 %v9134_v36, %v13638_v33  ;;  %v2858_v38 = vadd.f32 %v2851_v14, %v2843_v21  ;;  %v2744_v54 = vmul.f32 %v9264_v32, %v13500_v24  ;;  %v13744_v33 = vld [vmem:[#allocation19_spill] sm:$0xff] }
 0x245   : > { %v2593_v51 = vadd.f32 %v9206_v2, %v2577_v8  ;;  %v3059_v41 = vadd.f32 %v9274_v55, %v3044_v5  ;;  %v3021_v35 = vmul.f32 %v9232_v60, %v13665_v40  ;;  %v9386_v28 = vmul.f32 %v9235_v15, %v13743_v12  ;;  %v13745_v8 = vld [vmem:[#allocation51_spill] sm:$0xff]  ;;  %v13746_v5 = vld [vmem:[#allocation60_spill] sm:$0xff] }
 0x246   : > { %v9389_v13 = vsel %vm305_vm0, 0.0, %v2683_v11  ;;  %v2736_v36 = vadd.f32 %v13726_v34, %v2729_v16  ;;  %v2937_v14 = vadd.f32 %v2929_v6, %v2858_v38  ;;  %v13747_v24 = vld [vmem:[#allocation35_spill] sm:$0xff]  ;;  %v3110_v12 = vrot.slane %v9355_v4, 1  ;;  %v13748_v16 = vld [vmem:[#allocation89_spill] sm:$0xff] }
 0x247   : > { %v2608_v2 = vadd.f32 %v2593_v51, %v13744_v33  ;;  %v3139_v55 = vadd.f32 %v3059_v41, %v13745_v8  ;;  %v2760_v21 = vmul.f32 %v9389_v13, %v13746_v5  ;;  %v9398_v60 = vmul.f32 %v9352_v43, %v13747_v24  ;;  %v13749_v38 = vld [vmem:[#allocation39_spill] sm:$0xff]  ;;  %v13751_v24 = vld [vmem:[#allocation70_spill] sm:$0xff] }
 0x248   : > { %v2752_v15 = vadd.f32 %v2744_v54, %v2736_v36  ;;  %v2774_v11 = vmul.f32 %v9090_v53, %v13585_v27  ;;  %v2953_v41 = vadd.f32 %v2945_v25, %v2937_v14  ;;  %v9406_v6 = vsel %vm305_vm0, 0.0, %v3086_v26  ;;  %v13750_v36 = vld [vmem:[#allocation64_spill] sm:$0xff]  ;;  %v13752_v27 = vld [vmem:[#allocation98_spill] sm:$0xff] }
 0x249   : > { %v2623_v34 = vadd.f32 %v13748_v16, %v2608_v2  ;;  %v3155_v51 = vadd.f32 %v9302_v63, %v3139_v55  ;;  %v9410_v8 = vmul.f32 %v9284_v50, %v13749_v38  ;;  %v9414_v33 = vmul.f32 %v9287_v37, %v5970_v58  ;;  %v13753_v25 = vld [vmem:[#allocation44_spill] sm:$0xff]  ;;  %v9424_v55 = vld [vmem:[%s5824_s5 + $0x118] sm:$0xff] }
 0x24a   : > { %v2767_v54 = vadd.f32 %v2760_v21, %v2752_v15  ;;  %v2790_v53 = vmul.f32 %v13751_v24, %v13750_v36  ;;  %v2968_v63 = vadd.f32 %v2961_v20, %v2953_v41  ;;  %v9421_v26 = vmul.f32 %v9243_v9, %v13753_v25  ;;  %v13755_v21 = vld [vmem:[#allocation15_spill] sm:$0xff] }
 0x24b   : > { %v2639_v2 = vadd.f32 %v13752_v27, %v2623_v34  ;;  %v3170_v16 = vadd.f32 %v3163_v47, %v3155_v51  ;;  %v9427_v50 = vsel %vm333_vm1, %v3110_v12, 0.0  ;;  %v9431_v15 = vmul.f32 %v9406_v6, %v13734_v56  ;;  %v13756_v47 = vld [vmem:[#allocation20_spill] sm:$0xff]  ;;  %v13757_v20 = vld [vmem:[#allocation55_spill] sm:$0xff] }
 0x24c   : > { %13754 = vst [vmem:[#allocation93_spill] sm:$0xff] %v9421_v26  ;;  %v2782_v14 = vadd.f32 %v2774_v11, %v2767_v54  ;;  %v2806_v27 = vmul.f32 %v9358_v57, %v13755_v21  ;;  %v2983_v41 = vadd.f32 %v2975_v62, %v2968_v63  ;;  %v2707_v9 = vrot.slane %v9358_v57, 1  ;;  %v13759_v63 = vld [vmem:[#allocation52_spill] sm:$0xff] }
 0x24d   : > { %v2654_v34 = vadd.f32 %v2639_v2, %v13756_v47  ;;  %v3185_v51 = vadd.f32 %v3170_v16, %v13757_v20  ;;  %v9440_v26 = vmul.f32 %v9246_v46, %v5993_v3  ;;  %v2820_v56 = vmul.f32 %v9192_v1, %v13732_v42 }
 0x24e   : > { %v2798_v12 = vadd.f32 %v2790_v53, %v2782_v14  ;;  %v2884_v11 = vrot.slane %v9424_v55, 7  ;;  %v2999_v2 = vadd.f32 %v2991_v39, %v2983_v41  ;;  %v9449_v62 = vmul.f32 %v9355_v4, %v13735_v44 }
 0x24f   : > { %5165 = vst [vmem:[%s6195_s6 + $0xf8] sm:$0xff] %v2654_v34  ;;  %v3201_v54 = vadd.f32 %v9323_v19, %v3185_v51  ;;  %v2908_v16 = vrot.slane %v9424_v55, 1  ;;  %v9454_v20 = vmul.f32 %v9298_v7, %v13759_v63  ;;  %v9458_v1 = vmul.f32 %v9311_v31, %v13674_v29 }
 0x250   : > { %13758 = vst [vmem:[#allocation72_spill] sm:$0xff] %v9449_v62  ;;  %v2813_v53 = vadd.f32 %v2806_v27, %v2798_v12  ;;  %v2836_v19 = vmul.f32 %v9330_v49, %v13698_v0  ;;  %v3014_v14 = vadd.f32 %v3007_v52, %v2999_v2  ;;  %v9465_v34 = vmul.f32 %v9427_v50, %v13737_v17  ;;  %v9478_v12 = vld [vmem:[%s5824_s5 + $0xe0] sm:$0xff]  ;;  %v13769_v62 = vld [vmem:[#allocation53_spill] sm:$0xff] }
 0x251   : > { %13760 = vst [vmem:[#allocation24_spill] sm:$0xff] %v9454_v20  ;;  %13761 = vst [vmem:[#allocation94_spill] sm:$0xff] %v9458_v1  ;;  %v3216_v39 = vadd.f32 %v9327_v23, %v3201_v54  ;;  %v9468_v51 = vsel %vm333_vm1, %v2707_v9, 0.0  ;;  %v9473_v47 = vsel %vm305_vm0, 0.0, %v2884_v11  ;;  %v2930_v27 = vmul.f32 %v9229_v18, %v13741_v48  ;;  %v13764_v23 = vld [vmem:[#allocation59_spill] sm:$0xff]  ;;  %v13765_v9 = vld [vmem:[#allocation18_spill] sm:$0xff] }
 0x252   : > { %13762 = vst [vmem:[#allocation91_spill] sm:$0xff] %v9465_v34  ;;  %v2828_v7 = vadd.f32 %v2820_v56, %v2813_v53  ;;  %v2852_v41 = vmul.f32 %v9468_v51, %v13718_v30  ;;  %13763 = vst [vmem:[#allocation48_spill] sm:$0xff] %v9473_v47  ;;  %v3029_v54 = vadd.f32 %v3021_v35, %v3014_v14  ;;  %v9482_v2 = vsel %vm333_vm1, %v2908_v16, 0.0  ;;  %v9487_v53 = vld [vmem:[%s5824_s5 + $0x158] sm:$0xff]  ;;  %v13766_v1 = vld [vmem:[#allocation21_spill] sm:$0xff] }
 0x253   : > { %v3231_v52 = vadd.f32 %v3216_v39, %v13764_v23  ;;  %v2946_v56 = vmul.f32 %v9347_v59, %v13765_v9  ;;  %v2962_v11 = vmul.f32 %v9473_v47, %v13766_v1  ;;  %v2976_v18 = vmul.f32 %v9182_v10, %v13742_v61  ;;  %v13767_v35 = vld [vmem:[#allocation100_spill] sm:$0xff]  ;;  %v13770_v61 = vld [vmem:[#allocation62_spill] sm:$0xff] }
 0x254   : > { %v2844_v34 = vadd.f32 %v2836_v19, %v2828_v7  ;;  %v2992_v39 = vmul.f32 %v9295_v45, %v13705_v22  ;;  %v3045_v16 = vadd.f32 %v9386_v28, %v3029_v54  ;;  %v13768_v23 = vld [vmem:[#allocation28_spill] sm:$0xff]  ;;  %v2684_v19 = vrot.slane %v9478_v12, 7  ;;  %v13771_v22 = vld [vmem:[#allocation99_spill] sm:$0xff] }
 0x255   : > { %v3247_v14 = vadd.f32 %v13767_v35, %v3231_v52  ;;  %v3008_v20 = vmul.f32 %v9424_v55, %v13768_v23  ;;  %v3087_v1 = vrot.slane %v9487_v53, 7  ;;  %v2730_v10 = vmul.f32 %v9264_v32, %v13769_v62  ;;  %v9514_v23 = vld [vmem:[%s5851_s30] ss:$0 sm:$0xff] }
 0x256   : > { %v2859_v7 = vadd.f32 %v2852_v41, %v2844_v34  ;;  %v2745_v47 = vmul.f32 %v9389_v13, %v13770_v61  ;;  %v3060_v52 = vadd.f32 %v9398_v60, %v3045_v16  ;;  %v3111_v28 = vrot.slane %v9487_v53, 1  ;;  %v13773_v34 = vld [vmem:[#allocation101_spill] sm:$0xff]  ;;  %13774 = vst [vmem:[#allocation77_spill] sm:$0xff] %v9514_v23  ;;  %v13775_v60 = vld [vmem:[#allocation34_spill] sm:$0xff]  ;;  %v13776_v16 = vld [vmem:[#allocation35_spill] sm:$0xff] }
 0x257   : > { %v3262_v45 = vadd.f32 %v13771_v22, %v3247_v14  ;;  %v9509_v54 = vsel %vm305_vm0, 0.0, %v2684_v19  ;;  %v3022_v41 = vmul.f32 %v13773_v34, %v13665_v40  ;;  %v2737_v32 = vadd.f32 %v9514_v23, %v2730_v10 }
 0x258   : > { %13772 = vst [vmem:[#allocation90_spill] sm:$0xff] %v9509_v54  ;;  %v2938_v35 = vadd.f32 %v2930_v27, %v2859_v7  ;;  %v2761_v61 = vmul.f32 %v9509_v54, %v13746_v5  ;;  %v3140_v22 = vadd.f32 %v9410_v8, %v3060_v52  ;;  %v3038_v14 = vmul.f32 %v9352_v43, %v13775_v60 }
 0x259   : > { %5190 = vst [vmem:[%s6195_s6 + $0x100] sm:$0xff] %v3262_v45  ;;  %v3054_v27 = vmul.f32 %v9482_v2, %v13776_v16  ;;  %v9527_v19 = vmul.f32 %v9287_v37, %v13749_v38  ;;  %v9531_v10 = vmul.f32 %v9406_v6, %v5970_v58  ;;  %v2753_v34 = vadd.f32 %v2745_v47, %v2737_v32  ;;  %v13778_v45 = vld [vmem:[#allocation63_spill] sm:$0xff] }
 0x25a   : > { %v2954_v7 = vadd.f32 %v2946_v56, %v2938_v35  ;;  %v2775_v8 = vmul.f32 %v13751_v24, %v13778_v45  ;;  %v3156_v52 = vadd.f32 %v9414_v33, %v3140_v22  ;;  %v9537_v5 = vsel %vm305_vm0, 0.0, %v3087_v1  ;;  %v9550_v24 = vld [vmem:[%s5824_s5 + $0x120] sm:$0xff]  ;;  %v13780_v1 = vld [vmem:[#allocation41_spill] sm:$0xff] }
 0x25b   : > { %13777 = vst [vmem:[#allocation36_spill] sm:$0xff] %v9531_v10  ;;  %v9540_v16 = vsel %vm333_vm1, %v3111_v28, 0.0  ;;  %v9544_v37 = vmul.f32 %v9246_v46, %v13753_v25  ;;  %v2708_v35 = vrot.slane %v9478_v12, 1  ;;  %v2768_v10 = vadd.f32 %v2761_v61, %v2753_v34  ;;  %13779 = vst [vmem:[#allocation78_spill] sm:$0xff] %v9550_v24 }
 0x25c   : > { %v2969_v56 = vadd.f32 %v2962_v11, %v2954_v7  ;;  %v2791_v47 = vmul.f32 %v9358_v57, %v13750_v36  ;;  %v3171_v33 = vadd.f32 %v9431_v15, %v3156_v52  ;;  %v9555_v32 = vmul.f32 %v9537_v5, %v13780_v1  ;;  %v13784_v7 = vld [vmem:[#allocation93_spill] sm:$0xff] }
 0x25d   : > { %v9559_v28 = vmul.f32 %v9355_v4, %v5993_v3  ;;  %v9563_v46 = vmul.f32 %v9487_v53, %v13735_v44  ;;  %v9567_v11 = vmul.f32 %v9311_v31, %v13759_v63  ;;  %v2783_v22 = vadd.f32 %v2775_v8, %v2768_v10 }
 0x25e   : > { %v2984_v61 = vadd.f32 %v2976_v18, %v2969_v56  ;;  %v2807_v15 = vmul.f32 %v9478_v12, %v13755_v21  ;;  %v3186_v34 = vadd.f32 %v13784_v7, %v3171_v33  ;;  %v9574_v52 = vmul.f32 %v9427_v50, %v13674_v29 }
 0x25f   : > { %13781 = vst [vmem:[#allocation37_spill] sm:$0xff] %v9559_v28  ;;  %13782 = vst [vmem:[#allocation102_spill] sm:$0xff] %v9563_v46  ;;  %v2885_v28 = vrot.slane %v9550_v24, 7  ;;  %v2909_v46 = vrot.slane %v9550_v24, 1  ;;  %v9579_v56 = vsel %vm333_vm1, %v2708_v35, 0.0  ;;  %v2799_v31 = vadd.f32 %v2791_v47, %v2783_v22 }
 0x260   : > { %13783 = vst [vmem:[#allocation83_spill] sm:$0xff] %v9567_v11  ;;  %13785 = vst [vmem:[#allocation74_spill] sm:$0xff] %v9574_v52  ;;  %v3000_v18 = vadd.f32 %v2992_v39, %v2984_v61  ;;  %v2821_v10 = vmul.f32 %v9330_v49, %v13732_v42  ;;  %v3202_v8 = vadd.f32 %v9440_v26, %v3186_v34  ;;  %v13788_v49 = vld [vmem:[#allocation48_spill] sm:$0xff] }
 0x261   : > { %13786 = vst [vmem:[#allocation57_spill] sm:$0xff] %v9579_v56  ;;  %v9586_v33 = vmul.f32 %v9540_v16, %v13737_v17  ;;  %v2837_v7 = vmul.f32 %v9468_v51, %v13698_v0  ;;  %v2853_v39 = vmul.f32 %v9579_v56, %v13718_v30  ;;  %v2814_v35 = vadd.f32 %v2807_v15, %v2799_v31  ;;  %v9597_v26 = vld [vmem:[%s5824_s5 + $0xe8] sm:$0xff]  ;;  %v13790_v0 = vld [vmem:[#allocation23_spill] sm:$0xff]  ;;  %v13792_v31 = vld [vmem:[#allocation21_spill] sm:$0xff] }
 0x262   : > { %v3015_v61 = vadd.f32 %v3008_v20, %v3000_v18  ;;  %v2931_v47 = vmul.f32 %v9347_v59, %v13741_v48  ;;  %v2947_v22 = vmul.f32 %v13788_v49, %v13765_v9  ;;  %v13789_v34 = vld [vmem:[#allocation72_spill] sm:$0xff]  ;;  %v9604_v11 = vsel %vm333_vm1, %v2909_v46, 0.0  ;;  %v13793_v48 = vld [vmem:[#allocation26_spill] sm:$0xff]  ;;  %v9613_v49 = vld [vmem:[%s5824_s5 + $0x160] sm:$0xff] }
 0x263   : > { %13787 = vst [vmem:[#allocation86_spill] sm:$0xff] %v9586_v33  ;;  %v3217_v52 = vadd.f32 %v13789_v34, %v3202_v8  ;;  %v9601_v33 = vsel %vm305_vm0, 0.0, %v2885_v28  ;;  %v13791_v30 = vld [vmem:[#allocation88_spill] sm:$0xff]  ;;  %v2829_v18 = vadd.f32 %v2821_v10, %v2814_v35  ;;  %v2993_v9 = vmul.f32 %v9424_v55, %v13793_v48  ;;  %v13797_v35 = vld [vmem:[#allocation62_spill] sm:$0xff] }
 0x264   : > { %v2977_v20 = vmul.f32 %v13791_v30, %v13790_v0  ;;  %v3030_v15 = vadd.f32 %v3022_v41, %v3015_v61  ;;  %v2963_v59 = vmul.f32 %v9601_v33, %v13792_v31  ;;  %v13794_v8 = vld [vmem:[#allocation24_spill] sm:$0xff]  ;;  %v9622_v46 = vmul.f32 %v9352_v43, %v13665_v40  ;;  %v13798_v48 = vld [vmem:[#allocation94_spill] sm:$0xff] }
 0x265   : > { %v3232_v34 = vadd.f32 %v13794_v8, %v3217_v52  ;;  %v13795_v28 = vld [vmem:[#allocation28_spill] sm:$0xff]  ;;  %v2685_v30 = vrot.slane %v9597_v26, 7  ;;  %v2845_v10 = vadd.f32 %v2837_v7, %v2829_v18  ;;  %v2731_v61 = vmul.f32 %v9389_v13, %v13769_v62 }
 0x266   : > { %v9618_v56 = vmul.f32 %v9550_v24, %v13795_v28  ;;  %13796 = vst [vmem:[#allocation97_spill] sm:$0xff] %v9622_v46  ;;  %v3046_v41 = vadd.f32 %v3038_v14, %v3030_v15  ;;  %v2746_v31 = vmul.f32 %v9509_v54, %v13797_v35  ;;  %v9632_v8 = vmul.f32 %v9482_v2, %v13775_v60  ;;  %v13800_v13 = vld [vmem:[#allocation60_spill] sm:$0xff]  ;;  %v13801_v35 = vld [vmem:[#allocation91_spill] sm:$0xff] }
 0x267   : > { %v3248_v52 = vadd.f32 %v13798_v48, %v3232_v34  ;;  %v3088_v43 = vrot.slane %v9613_v49, 7  ;;  %v9636_v46 = vsel %vm305_vm0, 0.0, %v2685_v30  ;;  %v2860_v7 = vadd.f32 %v2853_v39, %v2845_v10  ;;  %v13802_v48 = vld [vmem:[#allocation35_spill] sm:$0xff] }
 0x268   : > { %13799 = vst [vmem:[#allocation81_spill] sm:$0xff] %v9632_v8  ;;  %v3061_v14 = vadd.f32 %v3054_v27, %v3046_v41  ;;  %v2738_v15 = vadd.f32 %v9514_v23, %v2731_v61  ;;  %v2762_v18 = vmul.f32 %v9636_v46, %v13800_v13  ;;  %v9644_v34 = vmul.f32 %v9604_v11, %v13802_v48 }
 0x269   : > { %v3263_v54 = vadd.f32 %v13801_v35, %v3248_v52  ;;  %v3112_v8 = vrot.slane %v9613_v49, 1  ;;  %v9649_v30 = vmul.f32 %v9406_v6, %v13749_v38  ;;  %v2939_v39 = vadd.f32 %v2931_v47, %v2860_v7 }
 0x26a   : > { %v3141_v27 = vadd.f32 %v9527_v19, %v3061_v14  ;;  %v2754_v41 = vadd.f32 %v2746_v31, %v2738_v15  ;;  %v2776_v10 = vmul.f32 %v9358_v57, %v13778_v45  ;;  %v9656_v61 = vsel %vm305_vm0, 0.0, %v3088_v43  ;;  %v13804_v19 = vld [vmem:[#allocation36_spill] sm:$0xff] }
 0x26b   : > { %5191 = vst [vmem:[%s6195_s6 + $0x108] sm:$0xff] %v3263_v54  ;;  %v9660_v35 = vmul.f32 %v9537_v5, %v5970_v58  ;;  %v9664_v52 = vmul.f32 %v9355_v4, %v13753_v25  ;;  %v2709_v6 = vrot.slane %v9597_v26, 1  ;;  %v2955_v31 = vadd.f32 %v2947_v22, %v2939_v39  ;;  %v9671_v54 = vld [vmem:[%s5824_s5 + $0x128] sm:$0xff] }
 0x26c   : > { %v3157_v47 = vadd.f32 %v13804_v19, %v3141_v27  ;;  %v2769_v14 = vadd.f32 %v2762_v18, %v2754_v41  ;;  %v2792_v57 = vmul.f32 %v9478_v12, %v13750_v36  ;;  %13805 = vst [vmem:[#allocation32_spill] sm:$0xff] %v9671_v54  ;;  %v9674_v43 = vsel %vm333_vm1, %v3112_v8, 0.0 }
 0x26d   : > { %13803 = vst [vmem:[#allocation65_spill] sm:$0xff] %v9664_v52  ;;  %v9678_v7 = vmul.f32 %v9656_v61, %v13780_v1  ;;  %v9682_v4 = vmul.f32 %v9487_v53, %v5993_v3  ;;  %v9686_v22 = vmul.f32 %v9613_v49, %v13735_v44  ;;  %v2970_v18 = vadd.f32 %v2963_v59, %v2955_v31  ;;  %v13813_v31 = vld [vmem:[#allocation57_spill] sm:$0xff] }
 0x26e   : > { %v3172_v15 = vadd.f32 %v9555_v32, %v3157_v47  ;;  %v2784_v27 = vadd.f32 %v2776_v10, %v2769_v14  ;;  %v2808_v8 = vmul.f32 %v9597_v26, %v13755_v21  ;;  %v9693_v39 = vmul.f32 %v9427_v50, %v13759_v63 }
 0x26f   : > { %13806 = vst [vmem:[#allocation79_spill] sm:$0xff] %v9682_v4  ;;  %13807 = vst [vmem:[#allocation47_spill] sm:$0xff] %v9686_v22  ;;  %v9696_v41 = vsel %vm333_vm1, %v2709_v6, 0.0  ;;  %v2886_v19 = vrot.slane %v9671_v54, 7  ;;  %v2910_v4 = vrot.slane %v9671_v54, 1  ;;  %v2985_v32 = vadd.f32 %v2977_v20, %v2970_v18  ;;  %v13812_v6 = vld [vmem:[#allocation42_spill] sm:$0xff] }
 0x270   : > { %13808 = vst [vmem:[#allocation43_spill] sm:$0xff] %v9693_v39  ;;  %13809 = vst [vmem:[#allocation92_spill] sm:$0xff] %v9696_v41  ;;  %v3187_v22 = vadd.f32 %v9544_v37, %v3172_v15  ;;  %v2800_v59 = vadd.f32 %v2792_v57, %v2784_v27  ;;  %v2822_v10 = vmul.f32 %v9468_v51, %v13732_v42  ;;  %v13814_v39 = vld [vmem:[#allocation54_spill] sm:$0xff]  ;;  %v13815_v20 = vld [vmem:[#allocation37_spill] sm:$0xff] }
 0x271   : > { %v9705_v47 = vmul.f32 %v9540_v16, %v13674_v29  ;;  %v9709_v50 = vmul.f32 %v9674_v43, %v13737_v17  ;;  %v2838_v14 = vmul.f32 %v13813_v31, %v13812_v6  ;;  %v2854_v37 = vmul.f32 %v9696_v41, %v13814_v39  ;;  %v13816_v51 = vld [vmem:[#allocation17_spill] sm:$0xff]  ;;  %v13817_v27 = vld [vmem:[#allocation48_spill] sm:$0xff]  ;;  %v13819_v17 = vld [vmem:[#allocation18_spill] sm:$0xff] }
 0x272   : > { %v3203_v57 = vadd.f32 %v13815_v20, %v3187_v22  ;;  %v3001_v15 = vadd.f32 %v2993_v9, %v2985_v32  ;;  %v2815_v18 = vadd.f32 %v2808_v8, %v2800_v59  ;;  %v2932_v52 = vmul.f32 %v13817_v27, %v13816_v51  ;;  %v9719_v29 = vld [vmem:[%s5824_s5 + $0xf0] sm:$0xff]  ;;  %v13820_v22 = vld [vmem:[#allocation102_spill] sm:$0xff]  ;;  %v9736_v27 = vld [vmem:[%s5824_s5 + $0x168] sm:$0xff] }
 0x273   : > { %13810 = vst [vmem:[#allocation76_spill] sm:$0xff] %v9705_v47  ;;  %13811 = vst [vmem:[#allocation82_spill] sm:$0xff] %v9709_v50  ;;  %v9722_v47 = vsel %vm305_vm0, 0.0, %v2886_v19  ;;  %v9725_v50 = vsel %vm333_vm1, %v2910_v4, 0.0  ;;  %v2948_v6 = vmul.f32 %v9601_v33, %v13819_v17  ;;  %v2978_v39 = vmul.f32 %v9424_v55, %v13790_v0  ;;  %v13821_v59 = vld [vmem:[#allocation26_spill] sm:$0xff]  ;;  %v13822_v19 = vld [vmem:[#allocation21_spill] sm:$0xff] }
 0x274   : > { %13818 = vst [vmem:[#allocation49_spill] sm:$0xff] %v9725_v50  ;;  %v3218_v9 = vadd.f32 %v13820_v22, %v3203_v57  ;;  %v3016_v8 = vadd.f32 %v9618_v56, %v3001_v15  ;;  %v2830_v32 = vadd.f32 %v2822_v10, %v2815_v18  ;;  %v2994_v20 = vmul.f32 %v9550_v24, %v13821_v59  ;;  %v13824_v56 = vld [vmem:[#allocation83_spill] sm:$0xff]  ;;  %v13825_v15 = vld [vmem:[#allocation97_spill] sm:$0xff]  ;;  %v13826_v59 = vld [vmem:[#allocation90_spill] sm:$0xff] }
 0x275   : > { %v2964_v4 = vmul.f32 %v9722_v47, %v13822_v19  ;;  %v9742_v51 = vmul.f32 %v9671_v54, %v13795_v28  ;;  %v9746_v55 = vmul.f32 %v9482_v2, %v13665_v40  ;;  %v2686_v57 = vrot.slane %v9719_v29, 7  ;;  %v13828_v2 = vld [vmem:[#allocation62_spill] sm:$0xff] }
 0x276   : > { %v3233_v10 = vadd.f32 %v13824_v56, %v3218_v9  ;;  %v3031_v18 = vadd.f32 %v13825_v15, %v3016_v8  ;;  %v2846_v22 = vadd.f32 %v2838_v14, %v2830_v32  ;;  %v2732_v24 = vmul.f32 %v13826_v59, %v13769_v62  ;;  %v13830_v56 = vld [vmem:[#allocation81_spill] sm:$0xff] }
 0x277   : > { %13823 = vst [vmem:[#allocation85_spill] sm:$0xff] %v9746_v55  ;;  %v9755_v19 = vmul.f32 %v9604_v11, %v13775_v60  ;;  %v3089_v28 = vrot.slane %v9736_v27, 7  ;;  %v9759_v54 = vsel %vm305_vm0, 0.0, %v2686_v57  ;;  %v2747_v40 = vmul.f32 %v9636_v46, %v13828_v2  ;;  %v13829_v55 = vld [vmem:[#allocation74_spill] sm:$0xff] }
 0x278   : > { %v3249_v9 = vadd.f32 %v13829_v55, %v3233_v10  ;;  %v3047_v14 = vadd.f32 %v13830_v56, %v3031_v18  ;;  %v2861_v8 = vadd.f32 %v2854_v37, %v2846_v22  ;;  %v2739_v32 = vadd.f32 %v9514_v23, %v2732_v24  ;;  %v13832_v55 = vld [vmem:[#allocation86_spill] sm:$0xff] }
 0x279   : > { %13827 = vst [vmem:[#allocation71_spill] sm:$0xff] %v9755_v19  ;;  %v9768_v59 = vmul.f32 %v9725_v50, %v13802_v48  ;;  %v3113_v15 = vrot.slane %v9736_v27, 1  ;;  %v2763_v57 = vmul.f32 %v9759_v54, %v13800_v13  ;;  %v2777_v19 = vmul.f32 %v9478_v12, %v13778_v45 }
 0x27a   : > { %v3264_v10 = vadd.f32 %v13832_v55, %v3249_v9  ;;  %v3062_v18 = vadd.f32 %v9644_v34, %v3047_v14  ;;  %v2940_v37 = vadd.f32 %v2932_v52, %v2861_v8  ;;  %v2755_v22 = vadd.f32 %v2747_v40, %v2739_v32  ;;  %v9797_v9 = vld [vmem:[%s5824_s5 + $0x130] sm:$0xff] }
 0x27b   : > { %13831 = vst [vmem:[#allocation87_spill] sm:$0xff] %v9768_v59  ;;  %v9778_v24 = vsel %vm305_vm0, 0.0, %v3089_v28  ;;  %v9782_v56 = vmul.f32 %v9537_v5, %v13749_v38  ;;  %v9786_v59 = vmul.f32 %v9656_v61, %v5970_v58  ;;  %v9790_v12 = vmul.f32 %v9487_v53, %v13753_v25  ;;  %13834 = vst [vmem:[#allocation46_spill] sm:$0xff] %v9797_v9 }
 0x27c   : > { %5192 = vst [vmem:[%s6195_s6 + $0x110] sm:$0xff] %v3264_v10  ;;  %v3142_v34 = vadd.f32 %v9649_v30, %v3062_v18  ;;  %v2956_v52 = vadd.f32 %v2948_v6, %v2940_v37  ;;  %v2770_v40 = vadd.f32 %v2763_v57, %v2755_v22  ;;  %v2793_v28 = vmul.f32 %v9597_v26, %v13750_v36  ;;  %v13838_v22 = vld [vmem:[#allocation56_spill] sm:$0xff] }
 0x27d   : > { %13833 = vst [vmem:[#allocation104_spill] sm:$0xff] %v9790_v12  ;;  %v9800_v5 = vsel %vm333_vm1, %v3113_v15, 0.0  ;;  %v9804_v14 = vmul.f32 %v9778_v24, %v13780_v1  ;;  %v9808_v53 = vmul.f32 %v9613_v49, %v5993_v3  ;;  %v2710_v30 = vrot.slane %v9719_v29, 1  ;;  %v13851_v12 = vld [vmem:[#allocation32_spill] sm:$0xff] }
 0x27e   : > { %v3158_v6 = vadd.f32 %v9660_v35, %v3142_v34  ;;  %v2971_v8 = vadd.f32 %v2964_v4, %v2956_v52  ;;  %v2785_v32 = vadd.f32 %v2777_v19, %v2770_v40  ;;  %v2809_v57 = vmul.f32 %v9719_v29, %v13755_v21  ;;  %v13840_v52 = vld [vmem:[#allocation58_spill] sm:$0xff] }
 0x27f   : > { %13835 = vst [vmem:[#allocation75_spill] sm:$0xff] %v9808_v53  ;;  %v9816_v15 = vmul.f32 %v9736_v27, %v13735_v44  ;;  %v9820_v55 = vmul.f32 %v9540_v16, %v13759_v63  ;;  %v2887_v10 = vrot.slane %v9797_v9, 7  ;;  %v2911_v18 = vrot.slane %v9797_v9, 1 }
 0x280   : > { %v3173_v35 = vadd.f32 %v9678_v7, %v3158_v6  ;;  %v2986_v4 = vadd.f32 %v2978_v39, %v2971_v8  ;;  %v2801_v19 = vadd.f32 %v2793_v28, %v2785_v32  ;;  %v2823_v37 = vmul.f32 %v13813_v31, %v13732_v42  ;;  %v13844_v39 = vld [vmem:[#allocation65_spill] sm:$0xff]  ;;  %v13845_v31 = vld [vmem:[#allocation54_spill] sm:$0xff] }
 0x281   : > { %13836 = vst [vmem:[#allocation29_spill] sm:$0xff] %v9816_v15  ;;  %13837 = vst [vmem:[#allocation95_spill] sm:$0xff] %v9820_v55  ;;  %v9829_v34 = vmul.f32 %v9674_v43, %v13838_v22  ;;  %v9833_v40 = vmul.f32 %v9800_v5, %v13840_v52  ;;  %v9836_v16 = vsel %vm333_vm1, %v2710_v30, 0.0  ;;  %v13843_v55 = vld [vmem:[#allocation42_spill] sm:$0xff]  ;;  %v13846_v30 = vld [vmem:[#allocation17_spill] sm:$0xff] }
 0x282   : > { %13842 = vst [vmem:[#allocation73_spill] sm:$0xff] %v9836_v16  ;;  %v2839_v7 = vmul.f32 %v9696_v41, %v13843_v55  ;;  %v3188_v28 = vadd.f32 %v13844_v39, %v3173_v35  ;;  %v3002_v6 = vadd.f32 %v2994_v20, %v2986_v4  ;;  %v2816_v8 = vadd.f32 %v2809_v57, %v2801_v19  ;;  %v9844_v15 = vld [vmem:[%s5824_s5 + $0xf8] sm:$0xff]  ;;  %v13847_v35 = vld [vmem:[#allocation79_spill] sm:$0xff] }
 0x283   : > { %13839 = vst [vmem:[#allocation96_spill] sm:$0xff] %v9829_v34  ;;  %13841 = vst [vmem:[#allocation84_spill] sm:$0xff] %v9833_v40  ;;  %v2855_v32 = vmul.f32 %v9836_v16, %v13845_v31  ;;  %v9847_v34 = vsel %vm305_vm0, 0.0, %v2887_v10  ;;  %v9850_v40 = vsel %vm333_vm1, %v2911_v18, 0.0  ;;  %v2933_v53 = vmul.f32 %v9601_v33, %v13846_v30  ;;  %v13848_v19 = vld [vmem:[#allocation78_spill] sm:$0xff]  ;;  %v9861_v31 = vld [vmem:[%s5824_s5 + $0x170] sm:$0xff] }
 0x284   : > { %v2949_v55 = vmul.f32 %v9722_v47, %v13819_v17  ;;  %v3204_v20 = vadd.f32 %v13847_v35, %v3188_v28  ;;  %v3017_v57 = vadd.f32 %v9742_v51, %v3002_v6  ;;  %v2831_v4 = vadd.f32 %v2823_v37, %v2816_v8  ;;  %v13849_v10 = vld [vmem:[#allocation21_spill] sm:$0xff]  ;;  %v13850_v16 = vld [vmem:[#allocation26_spill] sm:$0xff]  ;;  %v13852_v33 = vld [vmem:[#allocation28_spill] sm:$0xff] }
 0x285   : > { %v2979_v39 = vmul.f32 %v13848_v19, %v13790_v0  ;;  %v2965_v18 = vmul.f32 %v9847_v34, %v13849_v10  ;;  %v2995_v41 = vmul.f32 %v13851_v12, %v13850_v16  ;;  %v3011_v30 = vmul.f32 %v9797_v9, %v13852_v33  ;;  %v13853_v28 = vld [vmem:[#allocation47_spill] sm:$0xff]  ;;  %v13854_v51 = vld [vmem:[#allocation85_spill] sm:$0xff]  ;;  %v13855_v8 = vld [vmem:[#allocation30_spill] sm:$0xff] }
 0x286   : > { %v2687_v17 = vrot.slane %v9844_v15, 7  ;;  %v3219_v35 = vadd.f32 %v13853_v28, %v3204_v20  ;;  %v3032_v37 = vadd.f32 %v13854_v51, %v3017_v57  ;;  %v2847_v6 = vadd.f32 %v2839_v7, %v2831_v4  ;;  %v13856_v20 = vld [vmem:[#allocation43_spill] sm:$0xff] }
 0x287   : > { %v9874_v19 = vmul.f32 %v9604_v11, %v13855_v8  ;;  %v9878_v0 = vmul.f32 %v9725_v50, %v13775_v60  ;;  %v3090_v16 = vrot.slane %v9861_v31, 7  ;;  %v2733_v33 = vmul.f32 %v9636_v46, %v13769_v62  ;;  %v13857_v57 = vld [vmem:[#allocation71_spill] sm:$0xff]  ;;  %v13858_v8 = vld [vmem:[#allocation76_spill] sm:$0xff] }
 0x288   : > { %v2748_v9 = vmul.f32 %v9759_v54, %v13828_v2  ;;  %v3234_v28 = vadd.f32 %v13856_v20, %v3219_v35  ;;  %v3048_v7 = vadd.f32 %v13857_v57, %v3032_v37  ;;  %v2862_v4 = vadd.f32 %v2855_v32, %v2847_v6  ;;  %v13859_v20 = vld [vmem:[#allocation87_spill] sm:$0xff] }
 0x289   : > { %v9888_v11 = vsel %vm305_vm0, 0.0, %v2687_v17  ;;  %v9892_v51 = vmul.f32 %v9850_v40, %v13802_v48  ;;  %v3114_v60 = vrot.slane %v9861_v31, 1  ;;  %v2740_v46 = vadd.f32 %v9514_v23, %v2733_v33 }
 0x28a   : > { %v2764_v50 = vmul.f32 %v9888_v11, %v13800_v13  ;;  %v3250_v35 = vadd.f32 %v13858_v8, %v3234_v28  ;;  %v3063_v37 = vadd.f32 %v13859_v20, %v3048_v7  ;;  %v2941_v32 = vadd.f32 %v2933_v53, %v2862_v4  ;;  %v13861_v28 = vld [vmem:[#allocation82_spill] sm:$0xff] }
 0x28b   : > { %v9902_v17 = vmul.f32 %v9656_v61, %v13749_v38  ;;  %v9906_v6 = vmul.f32 %v9778_v24, %v5970_v58  ;;  %v9910_v33 = vmul.f32 %v9613_v49, %v13753_v25  ;;  %v2756_v57 = vadd.f32 %v2748_v9, %v2740_v46  ;;  %v9920_v20 = vld [vmem:[%s5824_s5 + $0x138] sm:$0xff] }
 0x28c   : > { %v2778_v8 = vmul.f32 %v9597_v26, %v13778_v45  ;;  %v3265_v7 = vadd.f32 %v13861_v28, %v3250_v35  ;;  %v3143_v53 = vadd.f32 %v9782_v56, %v3063_v37  ;;  %v2957_v4 = vadd.f32 %v2949_v55, %v2941_v32  ;;  %13862 = vst [vmem:[#allocation89_spill] sm:$0xff] %v9920_v20 }
 0x28d   : > { %13860 = vst [vmem:[#allocation31_spill] sm:$0xff] %v9910_v33  ;;  %v9917_v61 = vsel %vm305_vm0, 0.0, %v3090_v16  ;;  %v9923_v13 = vsel %vm333_vm1, %v3114_v60, 0.0  ;;  %v9927_v49 = vmul.f32 %v9736_v27, %v5993_v3  ;;  %v2771_v9 = vadd.f32 %v2764_v50, %v2756_v57  ;;  %v13877_v33 = vld [vmem:[#allocation26_spill] sm:$0xff] }
 0x28e   : > { %v2794_v26 = vmul.f32 %v9719_v29, %v13750_v36  ;;  %5193 = vst [vmem:[%s6195_s6 + $0x118] sm:$0xff] %v3265_v7  ;;  %v3159_v56 = vadd.f32 %v9786_v59, %v3143_v53  ;;  %v2972_v55 = vadd.f32 %v2965_v18, %v2957_v4  ;;  %v9935_v16 = vmul.f32 %v9861_v31, %v13735_v44  ;;  %v13868_v53 = vld [vmem:[#allocation92_spill] sm:$0xff] }
 0x28f   : > { %13863 = vst [vmem:[#allocation70_spill] sm:$0xff] %v9927_v49  ;;  %v2711_v46 = vrot.slane %v9844_v15, 1  ;;  %v9940_v60 = vmul.f32 %v9917_v61, %v13780_v1  ;;  %v2786_v35 = vadd.f32 %v2778_v8, %v2771_v9  ;;  %v2810_v50 = vmul.f32 %v9844_v15, %v13755_v21 }
 0x290   : > { %13864 = vst [vmem:[#allocation98_spill] sm:$0xff] %v9935_v16  ;;  %v2888_v37 = vrot.slane %v9920_v20, 7  ;;  %v3174_v32 = vadd.f32 %v9804_v14, %v3159_v56  ;;  %v2987_v59 = vadd.f32 %v2979_v39, %v2972_v55  ;;  %v9948_v18 = vmul.f32 %v9674_v43, %v13759_v63  ;;  %v13869_v39 = vld [vmem:[#allocation104_spill] sm:$0xff]  ;;  %v13870_v56 = vld [vmem:[#allocation42_spill] sm:$0xff]  ;;  %v13871_v55 = vld [vmem:[#allocation73_spill] sm:$0xff] }
 0x291   : > { %v2912_v57 = vrot.slane %v9920_v20, 1  ;;  %v9953_v28 = vmul.f32 %v9800_v5, %v13838_v22  ;;  %v9957_v8 = vmul.f32 %v9923_v13, %v13840_v52  ;;  %v2802_v7 = vadd.f32 %v2794_v26, %v2786_v35  ;;  %v13873_v26 = vld [vmem:[#allocation17_spill] sm:$0xff] }
 0x292   : > { %13865 = vst [vmem:[#allocation100_spill] sm:$0xff] %v9948_v18  ;;  %v2824_v14 = vmul.f32 %v13868_v53, %v13732_v42  ;;  %v3189_v4 = vadd.f32 %v13869_v39, %v3174_v32  ;;  %v3003_v9 = vadd.f32 %v2995_v41, %v2987_v59  ;;  %v9963_v43 = vsel %vm333_vm1, %v2711_v46, 0.0  ;;  %v13874_v53 = vld [vmem:[#allocation75_spill] sm:$0xff]  ;;  %v13875_v46 = vld [vmem:[#allocation18_spill] sm:$0xff] }
 0x293   : > { %13866 = vst [vmem:[#allocation99_spill] sm:$0xff] %v9953_v28  ;;  %13867 = vst [vmem:[#allocation101_spill] sm:$0xff] %v9957_v8  ;;  %v2840_v21 = vmul.f32 %v13871_v55, %v13870_v56  ;;  %v2817_v18 = vadd.f32 %v2810_v50, %v2802_v7  ;;  %v13872_v28 = vld [vmem:[#allocation54_spill] sm:$0xff]  ;;  %v9970_v49 = vsel %vm305_vm0, 0.0, %v2888_v37  ;;  %v2934_v35 = vmul.f32 %v9722_v47, %v13873_v26  ;;  %v13876_v37 = vld [vmem:[#allocation23_spill] sm:$0xff] }
 0x294   : > { %v2856_v16 = vmul.f32 %v9963_v43, %v13872_v28  ;;  %v3205_v8 = vadd.f32 %v13874_v53, %v3189_v4  ;;  %v3018_v32 = vadd.f32 %v3011_v30, %v3003_v9  ;;  %v9976_v41 = vsel %vm333_vm1, %v2912_v57, 0.0  ;;  %v9981_v39 = vld [vmem:[%s5824_s5 + $0x178] sm:$0xff]  ;;  %v13879_v4 = vld [vmem:[#allocation29_spill] sm:$0xff]  ;;  %v13880_v9 = vld [vmem:[#allocation28_spill] sm:$0xff] }
 0x295   : > { %v2950_v59 = vmul.f32 %v9847_v34, %v13875_v46  ;;  %v2832_v50 = vadd.f32 %v2824_v14, %v2817_v18  ;;  %v2966_v7 = vmul.f32 %v9970_v49, %v13849_v10  ;;  %v2980_v28 = vmul.f32 %v13851_v12, %v13876_v37  ;;  %v13878_v47 = vld [vmem:[#allocation46_spill] sm:$0xff]  ;;  %v13881_v37 = vld [vmem:[#allocation95_spill] sm:$0xff] }
 0x296   : > { %v2996_v26 = vmul.f32 %v13878_v47, %v13877_v33  ;;  %v3220_v30 = vadd.f32 %v13879_v4, %v3205_v8  ;;  %v3033_v57 = vadd.f32 %v9874_v19, %v3018_v32  ;;  %v3012_v53 = vmul.f32 %v9920_v20, %v13880_v9  ;;  %v13882_v4 = vld [vmem:[#allocation30_spill] sm:$0xff]  ;;  %v13883_v19 = vld [vmem:[#allocation49_spill] sm:$0xff] }
 0x297   : > { %v2734_v46 = vmul.f32 %v9759_v54, %v13769_v62  ;;  %v2848_v18 = vadd.f32 %v2840_v21, %v2832_v50  ;;  %v3091_v14 = vrot.slane %v9981_v39, 7  ;;  %v3115_v10 = vrot.slane %v9981_v39, 1  ;;  %v13884_v47 = vld [vmem:[#allocation34_spill] sm:$0xff] }
 0x298   : > { %v2749_v12 = vmul.f32 %v9888_v11, %v13828_v2  ;;  %v3235_v33 = vadd.f32 %v13881_v37, %v3220_v30  ;;  %v3049_v8 = vadd.f32 %v9878_v0, %v3033_v57  ;;  %v3026_v32 = vmul.f32 %v13883_v19, %v13882_v4  ;;  %v13885_v0 = vld [vmem:[#allocation96_spill] sm:$0xff] }
 0x299   : > { %v2741_v9 = vadd.f32 %v9514_v23, %v2734_v46  ;;  %v2863_v20 = vadd.f32 %v2856_v16, %v2848_v18  ;;  %v10006_v21 = vmul.f32 %v9850_v40, %v13884_v47  ;;  %v10010_v54 = vmul.f32 %v9976_v41, %v13802_v48 }
 0x29a   : > { %v10014_v11 = vmul.f32 %v9778_v24, %v13749_v38  ;;  %v3251_v50 = vadd.f32 %v13885_v0, %v3235_v33  ;;  %v3064_v37 = vadd.f32 %v9892_v51, %v3049_v8  ;;  %v2779_v16 = vmul.f32 %v9719_v29, %v13778_v45  ;;  %v13886_v24 = vld [vmem:[#allocation84_spill] sm:$0xff]  ;;  %v13887_v51 = vld [vmem:[#allocation67_spill] sm:$0xff] }
 0x29b   : > { %v2757_v46 = vadd.f32 %v2749_v12, %v2741_v9  ;;  %v2942_v30 = vadd.f32 %v2934_v35, %v2863_v20  ;;  %v3107_v57 = vsel %vm305_vm0, 0.0, %v3091_v14  ;;  %v10022_v18 = vsel %vm333_vm1, %v3115_v10, 0.0  ;;  %v10034_v29 = vld [vmem:[%s5824_s5 + $0x100] sm:$0xff]  ;;  %v10037_v20 = vld [vmem:[%s5824_s5 + $0x108] sm:$0xff] }
 0x29c   : > { %v10026_v19 = vmul.f32 %v9917_v61, %v5970_v58  ;;  %v3266_v48 = vadd.f32 %v13886_v24, %v3251_v50  ;;  %v3144_v33 = vadd.f32 %v9902_v17, %v3064_v37  ;;  %v2795_v12 = vmul.f32 %v9844_v15, %v13750_v36  ;;  %v13889_v24 = vld [vmem:[#allocation17_spill] sm:$0xff] }
 0x29d   : > { %v2772_v9 = vadd.f32 %v2757_v46, %v13887_v51  ;;  %v2958_v35 = vadd.f32 %v2950_v59, %v2942_v30  ;;  %v10040_v10 = vmul.f32 %v3107_v57, %v13780_v1  ;;  %v10044_v14 = vmul.f32 %v9736_v27, %v13753_v25 }
 0x29e   : > { %v10048_v17 = vmul.f32 %v9861_v31, %v5993_v3  ;;  %5194 = vst [vmem:[%s6195_s6 + $0x120] sm:$0xff] %v3266_v48  ;;  %v3160_v8 = vadd.f32 %v9906_v6, %v3144_v33  ;;  %v10054_v15 = vmul.f32 %v9981_v39, %v13735_v44  ;;  %v10058_v59 = vmul.f32 %v9800_v5, %v13759_v63  ;;  %v13896_v44 = vld [vmem:[#allocation70_spill] sm:$0xff] }
 0x29f   : > { %v2787_v0 = vadd.f32 %v2779_v16, %v2772_v9  ;;  %v2973_v50 = vadd.f32 %v2966_v7, %v2958_v35  ;;  %v10062_v27 = vmul.f32 %v9923_v13, %v13838_v22  ;;  %v3295_v37 = vrot.slane %v10034_v29, 7  ;;  %v13890_v35 = vld [vmem:[#allocation31_spill] sm:$0xff] }
 0x2a0   : > { %v3296_v48 = vrot.slane %v10037_v20, 7  ;;  %v3175_v6 = vadd.f32 %v9940_v60, %v3160_v8  ;;  %v10069_v46 = vmul.f32 %v10022_v18, %v13840_v52  ;;  %v2825_v5 = vmul.f32 %v13871_v55, %v13732_v42  ;;  %v13891_v8 = vld [vmem:[#allocation80_spill] sm:$0xff] }
 0x2a1   : > { %v2803_v30 = vadd.f32 %v2795_v12, %v2787_v0  ;;  %v2988_v16 = vadd.f32 %v2980_v28, %v2973_v50  ;;  %v2841_v7 = vmul.f32 %v9963_v43, %v13870_v56  ;;  %v2935_v33 = vmul.f32 %v9847_v34, %v13889_v24  ;;  %v13892_v12 = vld [vmem:[#allocation18_spill] sm:$0xff]  ;;  %v13893_v0 = vld [vmem:[#allocation23_spill] sm:$0xff]  ;;  %v13895_v24 = vld [vmem:[#allocation60_spill] sm:$0xff] }
 0x2a2   : > { %13888 = vst [vmem:[#allocation63_spill] sm:$0xff] %v10069_v46  ;;  %v10078_v9 = vsel %vm305_vm0, 0.0, %v3295_v37  ;;  %v3190_v60 = vadd.f32 %v13890_v35, %v3175_v6  ;;  %v10083_v52 = vsel %vm305_vm0, 0.0, %v3296_v48  ;;  %v2951_v43 = vmul.f32 %v9970_v49, %v13892_v12  ;;  %v13894_v50 = vld [vmem:[#allocation46_spill] sm:$0xff]  ;;  %v13898_v48 = vld [vmem:[#allocation89_spill] sm:$0xff] }
 0x2a3   : > { %v2818_v51 = vadd.f32 %v2803_v30, %v13891_v8  ;;  %v3357_v55 = vmul.f32 %v10078_v9, %v13828_v2  ;;  %v3004_v28 = vadd.f32 %v2996_v26, %v2988_v16  ;;  %v2981_v34 = vmul.f32 %v13894_v50, %v13893_v0  ;;  %v13897_v35 = vld [vmem:[#allocation26_spill] sm:$0xff] }
 0x2a4   : > { %v3373_v37 = vmul.f32 %v10083_v52, %v13895_v24  ;;  %v3206_v6 = vadd.f32 %v13896_v44, %v3190_v60  ;;  %v2997_v8 = vmul.f32 %v13898_v48, %v13897_v35  ;;  %v13899_v46 = vld [vmem:[#allocation66_spill] sm:$0xff]  ;;  %v10099_v26 = vmul.f32 %v9850_v40, %v13882_v4 }
 0x2a5   : > { %v2833_v30 = vadd.f32 %v2825_v5, %v2818_v51  ;;  %v3365_v42 = vadd.f32 %v3357_v55, %v13899_v46  ;;  %v3019_v1 = vadd.f32 %v3012_v53, %v3004_v28  ;;  %v10103_v49 = vmul.f32 %v9976_v41, %v13884_v47  ;;  %v13900_v44 = vld [vmem:[#allocation98_spill] sm:$0xff]  ;;  %v10121_v28 = vld [vmem:[%s5824_s5 + $0x140] sm:$0xff] }
 0x2a6   : > { %v3319_v16 = vrot.slane %v10034_v29, 1  ;;  %v3221_v60 = vadd.f32 %v13900_v44, %v3206_v6  ;;  %v3403_v50 = vmul.f32 %v10034_v29, %v13750_v36  ;;  %v10111_v53 = vmul.f32 %v9917_v61, %v13749_v38  ;;  %v13901_v6 = vld [vmem:[#allocation100_spill] sm:$0xff] }
 0x2a7   : > { %v2849_v51 = vadd.f32 %v2841_v7, %v2833_v30  ;;  %v3380_v5 = vadd.f32 %v3373_v37, %v3365_v42  ;;  %v3034_v55 = vadd.f32 %v3026_v32, %v3019_v1  ;;  %v10114_v40 = vmul.f32 %v3107_v57, %v5970_v58  ;;  %v13902_v42 = vld [vmem:[#allocation69_spill] sm:$0xff]  ;;  %v13903_v30 = vld [vmem:[#allocation103_spill] sm:$0xff]  ;;  %v10129_v61 = vld [vmem:[%s5824_s5 + $0x148] sm:$0xff] }
 0x2a8   : > { %v10118_v41 = vmul.f32 %v9861_v31, %v13753_v25  ;;  %v3236_v7 = vadd.f32 %v13901_v6, %v3221_v60  ;;  %v13904_v1 = vld [vmem:[#allocation15_spill] sm:$0xff]  ;;  %v10134_v44 = vmul.f32 %v9981_v39, %v5993_v3  ;;  %v3320_v31 = vrot.slane %v10037_v20, 1  ;;  %v13907_v25 = vld [vmem:[#allocation101_spill] sm:$0xff] }
 0x2a9   : > { %v2864_v37 = vadd.f32 %v2849_v51, %v13902_v42  ;;  %v3395_v48 = vadd.f32 %v3380_v5, %v13903_v30  ;;  %v3419_v32 = vmul.f32 %v10037_v20, %v13904_v1  ;;  %v3050_v57 = vadd.f32 %v10006_v21, %v3034_v55  ;;  %v13906_v60 = vld [vmem:[#allocation99_spill] sm:$0xff] }
 0x2aa   : > { %13905 = vst [vmem:[#allocation93_spill] sm:$0xff] %v10134_v44  ;;  %v10138_v46 = vsel %vm333_vm1, %v3319_v16, 0.0  ;;  %v3252_v51 = vadd.f32 %v13906_v60, %v3236_v7  ;;  %v3496_v42 = vrot.slane %v10121_v28, 7  ;;  %v3497_v21 = vrot.slane %v10129_v61, 7 }
 0x2ab   : > { %v2943_v5 = vadd.f32 %v2935_v33, %v2864_v37  ;;  %v3411_v6 = vadd.f32 %v3403_v50, %v3395_v48  ;;  %v3065_v30 = vadd.f32 %v10010_v54, %v3050_v57  ;;  %v3520_v39 = vrot.slane %v10121_v28, 1  ;;  %v13911_v48 = vld [vmem:[#allocation68_spill] sm:$0xff]  ;;  %v13912_v57 = vld [vmem:[#allocation54_spill] sm:$0xff] }
 0x2ac   : > { %v3521_v55 = vrot.slane %v10129_v61, 1  ;;  %v3267_v38 = vadd.f32 %v13907_v25, %v3252_v51  ;;  %v3449_v7 = vmul.f32 %v10138_v46, %v13870_v56  ;;  %v10152_v50 = vmul.f32 %v9923_v13, %v13759_v63  ;;  %v13910_v25 = vld [vmem:[#allocation33_spill] sm:$0xff] }
 0x2ad   : > { %v2959_v16 = vadd.f32 %v2951_v43, %v2943_v5  ;;  %v3426_v44 = vadd.f32 %v3419_v32, %v3411_v6  ;;  %v3145_v33 = vadd.f32 %v10014_v11, %v3065_v30  ;;  %v10156_v54 = vmul.f32 %v10022_v18, %v13838_v22  ;;  %v10170_v30 = vld [vmem:[%s5824_s5 + $0x110] sm:$0xff] }
 0x2ae   : > { %13908 = vst [vmem:[#allocation72_spill] sm:$0xff] %v10152_v50  ;;  %v10159_v37 = vsel %vm333_vm1, %v3320_v31, 0.0  ;;  %5195 = vst [vmem:[%s6195_s6 + $0x128] sm:$0xff] %v3267_v38  ;;  %v10167_v13 = vsel %vm305_vm0, 0.0, %v3496_v42  ;;  %v10174_v60 = vsel %vm305_vm0, 0.0, %v3497_v21  ;;  %v10177_v31 = vsel %vm333_vm1, %v3520_v39, 0.0 }
 0x2af   : > { %13909 = vst [vmem:[#allocation88_spill] sm:$0xff] %v10156_v54  ;;  %v2974_v43 = vadd.f32 %v2959_v16, %v13910_v25  ;;  %v3441_v32 = vadd.f32 %v3426_v44, %v13911_v48  ;;  %v3465_v11 = vmul.f32 %v10159_v37, %v13912_v57  ;;  %v3161_v18 = vadd.f32 %v10026_v19, %v3145_v33  ;;  %v13914_v42 = vld [vmem:[#allocation21_spill] sm:$0xff]  ;;  %v10187_v16 = vld [vmem:[%s5824_s5 + $0x180] sm:$0xff]  ;;  %v10190_v19 = vld [vmem:[%s5824_s5 + $0x188] sm:$0xff] }
 0x2b0   : > { %v10180_v38 = vsel %vm333_vm1, %v3521_v55, 0.0  ;;  %v3559_v5 = vmul.f32 %v10167_v13, %v13892_v12  ;;  %v3575_v6 = vmul.f32 %v10174_v60, %v13914_v42  ;;  %v3605_v39 = vmul.f32 %v10121_v28, %v13897_v35  ;;  %v13915_v33 = vld [vmem:[#allocation28_spill] sm:$0xff]  ;;  %v13916_v54 = vld [vmem:[#allocation25_spill] sm:$0xff] }
 0x2b1   : > { %13913 = vst [vmem:[#allocation24_spill] sm:$0xff] %v10180_v38  ;;  %v2989_v44 = vadd.f32 %v2981_v34, %v2974_v43  ;;  %v3457_v51 = vadd.f32 %v3449_v7, %v3441_v32  ;;  %v3176_v21 = vadd.f32 %v10040_v10, %v3161_v18  ;;  %v3621_v55 = vmul.f32 %v10129_v61, %v13915_v33 }
 0x2b2   : > { %v3297_v34 = vrot.slane %v10170_v30, 7  ;;  %v10200_v32 = vmul.f32 %v10177_v31, %v13884_v47  ;;  %v3343_v25 = vmul.f32 %v10078_v9, %v13769_v62  ;;  %v3699_v10 = vrot.slane %v10187_v16, 7  ;;  %v13918_v47 = vld [vmem:[#allocation35_spill] sm:$0xff] }
 0x2b3   : > { %v3005_v7 = vadd.f32 %v2997_v8, %v2989_v44  ;;  %v3472_v43 = vadd.f32 %v3465_v11, %v3457_v51  ;;  %v3191_v48 = vadd.f32 %v10044_v14, %v3176_v21  ;;  %v3700_v18 = vrot.slane %v10190_v19, 7  ;;  %v13917_v8 = vld [vmem:[#allocation22_spill] sm:$0xff] }
 0x2b4   : > { %v3358_v63 = vmul.f32 %v10083_v52, %v13828_v2  ;;  %v10212_v44 = vsel %vm305_vm0, 0.0, %v3297_v34  ;;  %v3350_v51 = vadd.f32 %v9514_v23, %v3343_v25  ;;  %v10218_v14 = vmul.f32 %v10180_v38, %v13918_v47 }
 0x2b5   : > { %v3020_v50 = vadd.f32 %v3005_v7, %v13916_v54  ;;  %v3551_v11 = vadd.f32 %v3472_v43, %v13917_v8  ;;  %v3207_v9 = vadd.f32 %v10048_v17, %v3191_v48  ;;  %v3723_v21 = vrot.slane %v10187_v16, 1 }
 0x2b6   : > { %v3374_v2 = vmul.f32 %v10212_v44, %v13895_v24  ;;  %v3366_v54 = vadd.f32 %v3358_v63, %v3350_v51  ;;  %v3388_v34 = vmul.f32 %v10034_v29, %v13778_v45  ;;  %v10228_v17 = vsel %vm305_vm0, 0.0, %v3699_v10  ;;  %v10247_v10 = vld [vmem:[%s5824_s5 + $0x150] sm:$0xff] }
 0x2b7   : > { %v3035_v7 = vadd.f32 %v10099_v26, %v3020_v50  ;;  %v3567_v43 = vadd.f32 %v3559_v5, %v3551_v11  ;;  %v3222_v25 = vadd.f32 %v10054_v15, %v3207_v9  ;;  %v10231_v48 = vsel %vm305_vm0, 0.0, %v3700_v18  ;;  %13919 = vst [vmem:[#allocation94_spill] sm:$0xff] %v10247_v10  ;;  %v13920_v18 = vld [vmem:[#allocation40_spill] sm:$0xff]  ;;  %v13922_v9 = vld [vmem:[#allocation41_spill] sm:$0xff] }
 0x2b8   : > { %v3724_v8 = vrot.slane %v10190_v19, 1  ;;  %v3381_v26 = vadd.f32 %v3374_v2, %v3366_v54  ;;  %v3404_v63 = vmul.f32 %v10037_v20, %v13750_v36  ;;  %v10239_v29 = vsel %vm333_vm1, %v3723_v21, 0.0 }
 0x2b9   : > { %v3051_v24 = vadd.f32 %v10103_v49, %v3035_v7  ;;  %v3582_v23 = vadd.f32 %v3575_v6, %v3567_v43  ;;  %v3237_v50 = vadd.f32 %v10058_v59, %v3222_v25  ;;  %v10243_v15 = vmul.f32 %v10228_v17, %v5970_v58  ;;  %v13921_v6 = vld [vmem:[#allocation27_spill] sm:$0xff]  ;;  %v13923_v7 = vld [vmem:[#allocation61_spill] sm:$0xff] }
 0x2ba   : > { %v3321_v5 = vrot.slane %v10170_v30, 1  ;;  %v3396_v54 = vadd.f32 %v3388_v34, %v3381_v26  ;;  %v3420_v11 = vmul.f32 %v10170_v30, %v13904_v1  ;;  %v10255_v51 = vsel %vm333_vm1, %v3724_v8, 0.0  ;;  %v13924_v26 = vld [vmem:[#allocation63_spill] sm:$0xff] }
 0x2bb   : > { %v3066_v49 = vadd.f32 %v3051_v24, %v13920_v18  ;;  %v3597_v2 = vadd.f32 %v3582_v23, %v13921_v6  ;;  %v3253_v59 = vadd.f32 %v10062_v27, %v3237_v50  ;;  %v3778_v21 = vmul.f32 %v10231_v48, %v13922_v9 }
 0x2bc   : > { %v3434_v43 = vmul.f32 %v10138_v46, %v13923_v7  ;;  %v3412_v23 = vadd.f32 %v3404_v63, %v3396_v54  ;;  %v3498_v34 = vrot.slane %v10247_v10, 7  ;;  %v10266_v27 = vmul.f32 %v10187_v16, %v5993_v3  ;;  %v13925_v63 = vld [vmem:[#allocation50_spill] sm:$0xff] }
 0x2bd   : > { %v3146_v24 = vadd.f32 %v10111_v53, %v3066_v49  ;;  %v3613_v25 = vadd.f32 %v3605_v39, %v3597_v2  ;;  %v3268_v18 = vadd.f32 %v13924_v26, %v3253_v59  ;;  %v10269_v8 = vsel %vm333_vm1, %v3321_v5, 0.0  ;;  %v13927_v5 = vld [vmem:[#allocation58_spill] sm:$0xff] }
 0x2be   : > { %v3522_v50 = vrot.slane %v10247_v10, 1  ;;  %v3427_v53 = vadd.f32 %v3420_v11, %v3412_v23  ;;  %v3450_v39 = vmul.f32 %v10159_v37, %v13870_v56  ;;  %v10278_v49 = vmul.f32 %v10190_v19, %v13925_v63  ;;  %v13930_v59 = vld [vmem:[#allocation38_spill] sm:$0xff] }
 0x2bf   : > { %v3162_v46 = vadd.f32 %v10114_v40, %v3146_v24  ;;  %v3628_v6 = vadd.f32 %v3621_v55, %v3613_v25  ;;  %5196 = vst [vmem:[%s6195_s6 + $0x130] sm:$0xff] %v3268_v18  ;;  %v10282_v2 = vmul.f32 %v10239_v29, %v13838_v22  ;;  %v10286_v54 = vmul.f32 %v10255_v51, %v13927_v5  ;;  %v13929_v55 = vld [vmem:[#allocation16_spill] sm:$0xff]  ;;  %v10296_v23 = vld [vmem:[%s5824_s5 + $0x118] sm:$0xff] }
 0x2c0   : > { %v3466_v40 = vmul.f32 %v10269_v8, %v13912_v57  ;;  %v3442_v18 = vadd.f32 %v3434_v43, %v3427_v53  ;;  %v10293_v25 = vsel %vm305_vm0, 0.0, %v3498_v34  ;;  %v10299_v26 = vsel %vm333_vm1, %v3522_v50, 0.0 }
 0x2c1   : > { %13926 = vst [vmem:[#allocation91_spill] sm:$0xff] %v10282_v2  ;;  %13928 = vst [vmem:[#allocation36_spill] sm:$0xff] %v10286_v54  ;;  %v3177_v11 = vadd.f32 %v3162_v46, %v13929_v55  ;;  %v3643_v24 = vadd.f32 %v3628_v6, %v13930_v59  ;;  %v13933_v2 = vld [vmem:[#allocation17_spill] sm:$0xff]  ;;  %v3560_v57 = vmul.f32 %v10174_v60, %v13892_v12  ;;  %v3298_v59 = vrot.slane %v10296_v23, 7 }
 0x2c2   : > { %13931 = vst [vmem:[#allocation57_spill] sm:$0xff] %v10293_v25  ;;  %13932 = vst [vmem:[#allocation37_spill] sm:$0xff] %v10299_v26  ;;  %v3544_v54 = vmul.f32 %v10167_v13, %v13933_v2  ;;  %v3576_v46 = vmul.f32 %v10293_v25, %v13914_v42  ;;  %v3458_v34 = vadd.f32 %v3450_v39, %v3442_v18  ;;  %v13934_v42 = vld [vmem:[#allocation93_spill] sm:$0xff] }
 0x2c3   : > { %v3192_v6 = vadd.f32 %v10118_v41, %v3177_v11  ;;  %v3659_v43 = vadd.f32 %v10200_v32, %v3643_v24  ;;  %v3590_v53 = vmul.f32 %v10121_v28, %v13893_v0  ;;  %v3606_v50 = vmul.f32 %v10129_v61, %v13897_v35  ;;  %v10321_v39 = vld [vmem:[%s5824_s5 + $0x190] sm:$0xff]  ;;  %v13935_v11 = vld [vmem:[#allocation34_spill] sm:$0xff] }
 0x2c4   : > { %v3622_v13 = vmul.f32 %v10247_v10, %v13915_v33  ;;  %v3636_v55 = vmul.f32 %v10177_v31, %v13882_v4  ;;  %v3473_v32 = vadd.f32 %v3466_v40, %v3458_v34  ;;  %v3344_v28 = vmul.f32 %v10083_v52, %v13769_v62  ;;  %v13938_v40 = vld [vmem:[#allocation19_spill] sm:$0xff]  ;;  %v13940_v52 = vld [vmem:[#allocation77_spill] sm:$0xff] }
 0x2c5   : > { %v3208_v25 = vadd.f32 %v13934_v42, %v3192_v6  ;;  %v3674_v41 = vadd.f32 %v10218_v14, %v3659_v43  ;;  %v10327_v24 = vmul.f32 %v10180_v38, %v13935_v11  ;;  %v10331_v18 = vmul.f32 %v10299_v26, %v13918_v47  ;;  %v13937_v42 = vld [vmem:[#allocation62_spill] sm:$0xff]  ;;  %v13939_v43 = vld [vmem:[#allocation51_spill] sm:$0xff]  ;;  %v13941_v47 = vld [vmem:[#allocation60_spill] sm:$0xff] }
 0x2c6   : > { %v10334_v31 = vsel %vm305_vm0, 0.0, %v3298_v59  ;;  %v3359_v14 = vmul.f32 %v10212_v44, %v13937_v42  ;;  %v3552_v4 = vadd.f32 %v3544_v54, %v3473_v32  ;;  %v3351_v62 = vadd.f32 %v13940_v52, %v3344_v28  ;;  %v13943_v54 = vld [vmem:[#allocation39_spill] sm:$0xff]  ;;  %v13944_v52 = vld [vmem:[#allocation44_spill] sm:$0xff] }
 0x2c7   : > { %13936 = vst [vmem:[#allocation48_spill] sm:$0xff] %v10331_v18  ;;  %v3223_v6 = vadd.f32 %v3208_v25, %v13938_v40  ;;  %v3754_v34 = vadd.f32 %v3674_v41, %v13939_v43  ;;  %v3701_v11 = vrot.slane %v10321_v39, 7  ;;  %v3725_v38 = vrot.slane %v10321_v39, 1  ;;  %v13942_v18 = vld [vmem:[#allocation72_spill] sm:$0xff] }
 0x2c8   : > { %v3375_v26 = vmul.f32 %v10334_v31, %v13941_v47  ;;  %v3389_v59 = vmul.f32 %v10037_v20, %v13778_v45  ;;  %v3568_v40 = vadd.f32 %v3560_v57, %v3552_v4  ;;  %v3367_v41 = vadd.f32 %v3359_v14, %v3351_v62  ;;  %v10365_v57 = vld [vmem:[%s5824_s5 + $0x158] sm:$0xff] }
 0x2c9   : > { %v3238_v42 = vadd.f32 %v13942_v18, %v3223_v6  ;;  %v3770_v25 = vadd.f32 %v10243_v15, %v3754_v34  ;;  %v10351_v32 = vmul.f32 %v10228_v17, %v13943_v54  ;;  %v10355_v28 = vmul.f32 %v10231_v48, %v5970_v58  ;;  %v13946_v18 = vld [vmem:[#allocation88_spill] sm:$0xff]  ;;  %13947 = vst [vmem:[#allocation83_spill] sm:$0xff] %v10365_v57 }
 0x2ca   : > { %v10359_v43 = vmul.f32 %v10187_v16, %v13944_v52  ;;  %v3405_v20 = vmul.f32 %v10170_v30, %v13750_v36  ;;  %v3583_v62 = vadd.f32 %v3576_v46, %v3568_v40  ;;  %v3382_v4 = vadd.f32 %v3375_v26, %v3367_v41 }
 0x2cb   : > { %v3254_v6 = vadd.f32 %v13946_v18, %v3238_v42  ;;  %v3785_v15 = vadd.f32 %v3778_v21, %v3770_v25  ;;  %v10368_v17 = vsel %vm305_vm0, 0.0, %v3701_v11  ;;  %v10371_v14 = vsel %vm333_vm1, %v3725_v38, 0.0  ;;  %v13949_v42 = vld [vmem:[#allocation55_spill] sm:$0xff] }
 0x2cc   : > { %13945 = vst [vmem:[#allocation102_spill] sm:$0xff] %v10359_v43  ;;  %v3322_v16 = vrot.slane %v10296_v23, 1  ;;  %v3421_v34 = vmul.f32 %v10296_v23, %v13904_v1  ;;  %v13948_v43 = vld [vmem:[#allocation20_spill] sm:$0xff]  ;;  %v3598_v25 = vadd.f32 %v3590_v53, %v3583_v62  ;;  %v3397_v46 = vadd.f32 %v3389_v59, %v3382_v4 }
 0x2cd   : > { %v3269_v36 = vadd.f32 %v3254_v6, %v13948_v43  ;;  %v3800_v21 = vadd.f32 %v3785_v15, %v13949_v42  ;;  %v10380_v26 = vmul.f32 %v10368_v17, %v13922_v9  ;;  %v10384_v11 = vmul.f32 %v10190_v19, %v5993_v3  ;;  %v13951_v15 = vld [vmem:[#allocation52_spill] sm:$0xff]  ;;  %v13958_v43 = vld [vmem:[#allocation59_spill] sm:$0xff]  ;;  %v13959_v42 = vld [vmem:[#allocation57_spill] sm:$0xff] }
 0x2ce   : > { %v3499_v38 = vrot.slane %v10365_v57, 7  ;;  %v3523_v40 = vrot.slane %v10365_v57, 1  ;;  %v3614_v18 = vadd.f32 %v3606_v50, %v3598_v25  ;;  %v3413_v6 = vadd.f32 %v3405_v20, %v3397_v46 }
 0x2cf   : > { %5197 = vst [vmem:[%s6195_s6 + $0x138] sm:$0xff] %v3269_v36  ;;  %v3816_v41 = vadd.f32 %v10266_v27, %v3800_v21  ;;  %v3435_v53 = vmul.f32 %v10159_v37, %v13923_v7  ;;  %v10394_v59 = vmul.f32 %v10321_v39, %v13925_v63  ;;  %v10398_v62 = vmul.f32 %v10239_v29, %v13951_v15  ;;  %v13956_v29 = vld [vmem:[#allocation54_spill] sm:$0xff] }
 0x2d0   : > { %v10402_v36 = vmul.f32 %v10255_v51, %v13838_v22  ;;  %v10405_v27 = vsel %vm333_vm1, %v3322_v16, 0.0  ;;  %v3629_v37 = vadd.f32 %v3622_v13, %v3614_v18  ;;  %v3428_v20 = vadd.f32 %v3421_v34, %v3413_v6  ;;  %v10426_v18 = vld [vmem:[%s5824_s5 + $0x198] sm:$0xff]  ;;  %v10429_v6 = vld [vmem:[%s5824_s5 + $0x120] sm:$0xff] }
 0x2d1   : > { %13950 = vst [vmem:[#allocation97_spill] sm:$0xff] %v10394_v59  ;;  %13952 = vst [vmem:[#allocation90_spill] sm:$0xff] %v10398_v62  ;;  %v3831_v50 = vadd.f32 %v10278_v49, %v3816_v41  ;;  %v3451_v4 = vmul.f32 %v10269_v8, %v13870_v56  ;;  %v10412_v21 = vmul.f32 %v10371_v14, %v13927_v5  ;;  %v10417_v46 = vsel %vm305_vm0, 0.0, %v3499_v38 }
 0x2d2   : > { %13953 = vst [vmem:[#allocation74_spill] sm:$0xff] %v10402_v36  ;;  %13954 = vst [vmem:[#allocation81_spill] sm:$0xff] %v10405_v27  ;;  %v3467_v25 = vmul.f32 %v10405_v27, %v13956_v29  ;;  %v10420_v16 = vsel %vm333_vm1, %v3523_v40, 0.0  ;;  %v3644_v13 = vadd.f32 %v3636_v55, %v3629_v37  ;;  %v3443_v34 = vadd.f32 %v3435_v53, %v3428_v20  ;;  %v13960_v36 = vld [vmem:[#allocation21_spill] sm:$0xff]  ;;  %v13961_v53 = vld [vmem:[#allocation91_spill] sm:$0xff] }
 0x2d3   : > { %13955 = vst [vmem:[#allocation86_spill] sm:$0xff] %v10412_v21  ;;  %13957 = vst [vmem:[#allocation65_spill] sm:$0xff] %v10417_v46  ;;  %v3846_v49 = vadd.f32 %v3831_v50, %v13958_v43  ;;  %v3545_v41 = vmul.f32 %v10174_v60, %v13933_v2  ;;  %v3561_v21 = vmul.f32 %v13959_v42, %v13892_v12  ;;  %v3702_v43 = vrot.slane %v10426_v18, 7 }
 0x2d4   : > { %v3577_v38 = vmul.f32 %v10417_v46, %v13960_v36  ;;  %v3591_v40 = vmul.f32 %v10129_v61, %v13893_v0  ;;  %v3607_v55 = vmul.f32 %v10247_v10, %v13897_v35  ;;  %v3660_v60 = vadd.f32 %v10327_v24, %v3644_v13  ;;  %v13962_v36 = vld [vmem:[#allocation53_spill] sm:$0xff]  ;;  %v13963_v0 = vld [vmem:[#allocation62_spill] sm:$0xff]  ;;  %v13964_v10 = vld [vmem:[#allocation36_spill] sm:$0xff] }
 0x2d5   : > { %v3862_v50 = vadd.f32 %v13961_v53, %v3846_v49  ;;  %v3459_v37 = vadd.f32 %v3451_v4, %v3443_v34  ;;  %v3623_v20 = vmul.f32 %v10365_v57, %v13915_v33  ;;  %v3299_v62 = vrot.slane %v10429_v6, 7  ;;  %v13965_v49 = vld [vmem:[#allocation48_spill] sm:$0xff]  ;;  %v13966_v13 = vld [vmem:[#allocation30_spill] sm:$0xff]  ;;  %v13969_v46 = vld [vmem:[#allocation37_spill] sm:$0xff] }
 0x2d6   : > { %v3345_v61 = vmul.f32 %v10212_v44, %v13962_v36  ;;  %v3360_v35 = vmul.f32 %v10334_v31, %v13963_v0  ;;  %v3675_v53 = vadd.f32 %v13965_v49, %v3660_v60  ;;  %v3726_v4 = vrot.slane %v10426_v18, 1  ;;  %v13967_v34 = vld [vmem:[#allocation24_spill] sm:$0xff]  ;;  %v13968_v57 = vld [vmem:[#allocation34_spill] sm:$0xff]  ;;  %v10462_v44 = vld [vmem:[%s5851_s30] ss:$0 sm:$0xff] }
 0x2d7   : > { %v3877_v59 = vadd.f32 %v13964_v10, %v3862_v50  ;;  %v3474_v24 = vadd.f32 %v3467_v25, %v3459_v37  ;;  %v3637_v33 = vmul.f32 %v13967_v34, %v13966_v13  ;;  %v10456_v12 = vmul.f32 %v13969_v46, %v13968_v57  ;;  %v13971_v50 = vld [vmem:[#allocation35_spill] sm:$0xff] }
 0x2d8   : > { %v10459_v42 = vsel %vm305_vm0, 0.0, %v3299_v62  ;;  %v3352_v0 = vadd.f32 %v10462_v44, %v3345_v61  ;;  %v3755_v10 = vadd.f32 %v10351_v32, %v3675_v53  ;;  %v10469_v60 = vmul.f32 %v10420_v16, %v13971_v50 }
 0x2d9   : > { %13970 = vst [vmem:[#allocation79_spill] sm:$0xff] %v10459_v42  ;;  %5222 = vst [vmem:[%s6195_s6 + $0x140] sm:$0xff] %v3877_v59  ;;  %v3553_v25 = vadd.f32 %v3545_v41, %v3474_v24  ;;  %v3376_v37 = vmul.f32 %v10459_v42, %v13941_v47  ;;  %v10474_v49 = vsel %vm305_vm0, 0.0, %v3702_v43  ;;  %v10478_v62 = vmul.f32 %v10231_v48, %v13943_v54 }
 0x2da   : > { %v3368_v61 = vadd.f32 %v3360_v35, %v3352_v0  ;;  %v3390_v32 = vmul.f32 %v10170_v30, %v13778_v45  ;;  %v3771_v59 = vadd.f32 %v10355_v28, %v3755_v10  ;;  %v10484_v53 = vsel %vm333_vm1, %v3726_v4, 0.0  ;;  %v13973_v30 = vld [vmem:[#allocation64_spill] sm:$0xff]  ;;  %v10501_v28 = vld [vmem:[%s5824_s5 + $0x160] sm:$0xff] }
 0x2db   : > { %v3569_v41 = vadd.f32 %v3561_v21, %v3553_v25  ;;  %v10488_v24 = vmul.f32 %v10368_v17, %v5970_v58  ;;  %v10492_v43 = vmul.f32 %v10474_v49, %v13922_v9  ;;  %v10496_v0 = vmul.f32 %v10190_v19, %v13944_v52 }
 0x2dc   : > { %v3383_v35 = vadd.f32 %v3376_v37, %v3368_v61  ;;  %v3406_v48 = vmul.f32 %v10296_v23, %v13973_v30  ;;  %v3786_v21 = vadd.f32 %v10380_v26, %v3771_v59  ;;  %v10506_v34 = vmul.f32 %v10321_v39, %v5993_v3  ;;  %v13977_v26 = vld [vmem:[#allocation102_spill] sm:$0xff] }
 0x2dd   : > { %13972 = vst [vmem:[#allocation78_spill] sm:$0xff] %v10496_v0  ;;  %v3584_v4 = vadd.f32 %v3577_v38, %v3569_v41  ;;  %v3323_v10 = vrot.slane %v10429_v6, 1  ;;  %v10511_v25 = vmul.f32 %v10426_v18, %v13925_v63  ;;  %v10515_v19 = vmul.f32 %v10255_v51, %v13951_v15  ;;  %v10545_v0 = vld [vmem:[%s5824_s5 + $0x128] sm:$0xff] }
 0x2de   : > { %13974 = vst [vmem:[#allocation32_spill] sm:$0xff] %v10506_v34  ;;  %v3398_v37 = vadd.f32 %v3390_v32, %v3383_v35  ;;  %v3422_v61 = vmul.f32 %v10429_v6, %v13904_v1  ;;  %v3801_v38 = vadd.f32 %v13977_v26, %v3786_v21  ;;  %v10522_v41 = vmul.f32 %v10371_v14, %v13838_v22 }
 0x2df   : > { %13975 = vst [vmem:[#allocation47_spill] sm:$0xff] %v10511_v25  ;;  %13976 = vst [vmem:[#allocation85_spill] sm:$0xff] %v10515_v19  ;;  %v3599_v59 = vadd.f32 %v3591_v40, %v3584_v4  ;;  %v3500_v34 = vrot.slane %v10501_v28, 7  ;;  %v10527_v25 = vmul.f32 %v10484_v53, %v13927_v5  ;;  %v3436_v32 = vmul.f32 %v10269_v8, %v13923_v7  ;;  %v13982_v19 = vld [vmem:[#allocation18_spill] sm:$0xff]  ;;  %v13983_v8 = vld [vmem:[#allocation65_spill] sm:$0xff] }
 0x2e0   : > { %13978 = vst [vmem:[#allocation43_spill] sm:$0xff] %v10522_v41  ;;  %v3414_v51 = vadd.f32 %v3406_v48, %v3398_v37  ;;  %v3524_v35 = vrot.slane %v10501_v28, 1  ;;  %v3817_v21 = vadd.f32 %v10384_v11, %v3801_v38  ;;  %v10534_v4 = vsel %vm333_vm1, %v3323_v10, 0.0  ;;  %v13981_v48 = vld [vmem:[#allocation57_spill] sm:$0xff] }
 0x2e1   : > { %13979 = vst [vmem:[#allocation71_spill] sm:$0xff] %v10527_v25  ;;  %v3615_v40 = vadd.f32 %v3607_v55, %v3599_v59  ;;  %13980 = vst [vmem:[#allocation76_spill] sm:$0xff] %v10534_v4  ;;  %v3452_v26 = vmul.f32 %v10405_v27, %v13870_v56  ;;  %v3468_v25 = vmul.f32 %v10534_v4, %v13956_v29  ;;  %v13984_v11 = vld [vmem:[#allocation97_spill] sm:$0xff]  ;;  %v10549_v10 = vsel %vm305_vm0, 0.0, %v3500_v34  ;;  %v13986_v59 = vld [vmem:[#allocation23_spill] sm:$0xff] }
 0x2e2   : > { %v3429_v41 = vadd.f32 %v3422_v61, %v3414_v51  ;;  %v3546_v37 = vmul.f32 %v13981_v48, %v13933_v2  ;;  %v3562_v5 = vmul.f32 %v13983_v8, %v13982_v19  ;;  %v3832_v55 = vadd.f32 %v13984_v11, %v3817_v21  ;;  %13985 = vst [vmem:[#allocation87_spill] sm:$0xff] %v10549_v10  ;;  %v13987_v56 = vld [vmem:[#allocation94_spill] sm:$0xff]  ;;  %v10554_v51 = vld [vmem:[%s5824_s5 + $0x1a0] sm:$0xff]  ;;  %v13988_v48 = vld [vmem:[#allocation21_spill] sm:$0xff] }
 0x2e3   : > { %v3630_v38 = vadd.f32 %v3623_v20, %v3615_v40  ;;  %v3592_v61 = vmul.f32 %v13987_v56, %v13986_v59  ;;  %v10557_v4 = vsel %vm333_vm1, %v3524_v35, 0.0  ;;  %v3578_v19 = vmul.f32 %v10549_v10, %v13988_v48  ;;  %v13989_v8 = vld [vmem:[#allocation26_spill] sm:$0xff]  ;;  %v13990_v2 = vld [vmem:[#allocation83_spill] sm:$0xff]  ;;  %v13992_v34 = vld [vmem:[#allocation28_spill] sm:$0xff] }
 0x2e4   : > { %v3444_v29 = vadd.f32 %v3436_v32, %v3429_v41  ;;  %v3608_v27 = vmul.f32 %v13990_v2, %v13989_v8  ;;  %v13991_v21 = vld [vmem:[#allocation90_spill] sm:$0xff]  ;;  %v3624_v11 = vmul.f32 %v10501_v28, %v13992_v34  ;;  %v3300_v56 = vrot.slane %v10545_v0, 7 }
 0x2e5   : > { %v3847_v20 = vadd.f32 %v13991_v21, %v3832_v55  ;;  %v3645_v40 = vadd.f32 %v3637_v33, %v3630_v38  ;;  %v3703_v41 = vrot.slane %v10554_v51, 7  ;;  %v3346_v32 = vmul.f32 %v10334_v31, %v13962_v36  ;;  %v13993_v35 = vld [vmem:[#allocation62_spill] sm:$0xff] }
 0x2e6   : > { %v3460_v59 = vadd.f32 %v3452_v26, %v3444_v29  ;;  %v3361_v48 = vmul.f32 %v10459_v42, %v13993_v35  ;;  %v13994_v10 = vld [vmem:[#allocation74_spill] sm:$0xff]  ;;  %v3727_v33 = vrot.slane %v10554_v51, 1  ;;  %v10576_v38 = vsel %vm305_vm0, 0.0, %v3300_v56 }
 0x2e7   : > { %v3863_v7 = vadd.f32 %v13994_v10, %v3847_v20  ;;  %v3661_v55 = vadd.f32 %v10456_v12, %v3645_v40  ;;  %v3638_v29 = vmul.f32 %v13969_v46, %v13966_v13  ;;  %v3353_v26 = vadd.f32 %v10462_v44, %v3346_v32  ;;  %v13995_v35 = vld [vmem:[#allocation86_spill] sm:$0xff] }
 0x2e8   : > { %v3475_v21 = vadd.f32 %v3468_v25, %v3460_v59  ;;  %v3377_v31 = vmul.f32 %v10576_v38, %v13941_v47  ;;  %v3654_v12 = vmul.f32 %v10420_v16, %v13968_v57  ;;  %v10589_v20 = vmul.f32 %v10557_v4, %v13971_v50 }
 0x2e9   : > { %v3878_v42 = vadd.f32 %v13995_v35, %v3863_v7  ;;  %v3676_v10 = vadd.f32 %v10469_v60, %v3661_v55  ;;  %v10593_v46 = vmul.f32 %v10368_v17, %v13943_v54  ;;  %v3369_v59 = vadd.f32 %v3361_v48, %v3353_v26 }
 0x2ea   : > { %v3554_v25 = vadd.f32 %v3546_v37, %v3475_v21  ;;  %v3391_v40 = vmul.f32 %v10296_v23, %v13778_v45  ;;  %v10600_v60 = vsel %vm305_vm0, 0.0, %v3703_v41  ;;  %v10603_v56 = vsel %vm333_vm1, %v3727_v33, 0.0 }
 0x2eb   : > { %5223 = vst [vmem:[%s6195_s6 + $0x148] sm:$0xff] %v3878_v42  ;;  %v3756_v7 = vadd.f32 %v10478_v62, %v3676_v10  ;;  %13996 = vst [vmem:[#allocation82_spill] sm:$0xff] %v10603_v56  ;;  %v10607_v37 = vmul.f32 %v10474_v49, %v5970_v58  ;;  %v10611_v17 = vmul.f32 %v10321_v39, %v13944_v52  ;;  %v10616_v42 = vld [vmem:[%s5824_s5 + $0x168] sm:$0xff] }
 0x2ec   : > { %v3570_v32 = vadd.f32 %v3562_v5, %v3554_v25  ;;  %v3384_v48 = vadd.f32 %v3377_v31, %v3369_v59  ;;  %v3407_v23 = vmul.f32 %v10429_v6, %v13973_v30  ;;  %13998 = vst [vmem:[#allocation104_spill] sm:$0xff] %v10616_v42  ;;  %v10621_v41 = vmul.f32 %v10600_v60, %v13922_v9 }
 0x2ed   : > { %13997 = vst [vmem:[#allocation92_spill] sm:$0xff] %v10611_v17  ;;  %v3772_v62 = vadd.f32 %v10488_v24, %v3756_v7  ;;  %v10625_v35 = vmul.f32 %v10426_v18, %v5993_v3  ;;  %v3324_v5 = vrot.slane %v10545_v0, 1  ;;  %v10630_v55 = vmul.f32 %v10554_v51, %v13925_v63  ;;  %v14004_v7 = vld [vmem:[#allocation81_spill] sm:$0xff] }
 0x2ee   : > { %v3585_v39 = vadd.f32 %v3578_v19, %v3570_v32  ;;  %v3399_v33 = vadd.f32 %v3391_v40, %v3384_v48  ;;  %v3423_v21 = vmul.f32 %v10545_v0, %v13904_v1  ;;  %v10637_v26 = vmul.f32 %v10371_v14, %v13951_v15  ;;  %v14003_v40 = vld [vmem:[#allocation61_spill] sm:$0xff]  ;;  %v14005_v48 = vld [vmem:[#allocation78_spill] sm:$0xff] }
 0x2ef   : > { %13999 = vst [vmem:[#allocation73_spill] sm:$0xff] %v10625_v35  ;;  %14000 = vst [vmem:[#allocation75_spill] sm:$0xff] %v10630_v55  ;;  %v3787_v24 = vadd.f32 %v10492_v43, %v3772_v62  ;;  %v3501_v31 = vrot.slane %v10616_v42, 7  ;;  %v3525_v10 = vrot.slane %v10616_v42, 1  ;;  %v10643_v25 = vmul.f32 %v10484_v53, %v13838_v22  ;;  %v14006_v62 = vld [vmem:[#allocation58_spill] sm:$0xff] }
 0x2f0   : > { %14001 = vst [vmem:[#allocation29_spill] sm:$0xff] %v10637_v26  ;;  %v3600_v19 = vadd.f32 %v3592_v61, %v3585_v39  ;;  %v3415_v59 = vadd.f32 %v3407_v23, %v3399_v33  ;;  %v3437_v32 = vmul.f32 %v14004_v7, %v14003_v40  ;;  %v10650_v55 = vmul.f32 %v10603_v56, %v14006_v62  ;;  %v14009_v26 = vld [vmem:[#allocation42_spill] sm:$0xff]  ;;  %v14010_v61 = vld [vmem:[#allocation76_spill] sm:$0xff]  ;;  %v14012_v33 = vld [vmem:[#allocation17_spill] sm:$0xff] }
 0x2f1   : > { %14002 = vst [vmem:[#allocation95_spill] sm:$0xff] %v10643_v25  ;;  %v3802_v43 = vadd.f32 %v14005_v48, %v3787_v24  ;;  %v10653_v14 = vsel %vm333_vm1, %v3324_v5, 0.0  ;;  %v3453_v39 = vmul.f32 %v14010_v61, %v14009_v26  ;;  %v14011_v25 = vld [vmem:[#allocation54_spill] sm:$0xff]  ;;  %v14013_v7 = vld [vmem:[#allocation65_spill] sm:$0xff]  ;;  %v14014_v48 = vld [vmem:[#allocation32_spill] sm:$0xff]  ;;  %v10669_v5 = vsel %vm333_vm1, %v3525_v10, 0.0 }
 0x2f2   : > { %14007 = vst [vmem:[#allocation49_spill] sm:$0xff] %v10650_v55  ;;  %14008 = vst [vmem:[#allocation96_spill] sm:$0xff] %v10653_v14  ;;  %v3616_v35 = vadd.f32 %v3608_v27, %v3600_v19  ;;  %v3430_v17 = vadd.f32 %v3423_v21, %v3415_v59  ;;  %v3469_v23 = vmul.f32 %v10653_v14, %v14011_v25  ;;  %v10662_v24 = vld [vmem:[%s5824_s5 + $0x130] sm:$0xff]  ;;  %v10666_v55 = vsel %vm305_vm0, 0.0, %v3501_v31  ;;  %v14016_v56 = vld [vmem:[#allocation18_spill] sm:$0xff] }
 0x2f3   : > { %v3547_v22 = vmul.f32 %v14013_v7, %v14012_v33  ;;  %v3818_v62 = vadd.f32 %v14014_v48, %v3802_v43  ;;  %14015 = vst [vmem:[#allocation84_spill] sm:$0xff] %v10666_v55  ;;  %v14017_v26 = vld [vmem:[#allocation87_spill] sm:$0xff]  ;;  %v14018_v59 = vld [vmem:[#allocation21_spill] sm:$0xff]  ;;  %v10678_v33 = vld [vmem:[%s5824_s5 + $0x1a8] sm:$0xff]  ;;  %v3609_v31 = vmul.f32 %v10501_v28, %v13989_v8  ;;  %v3625_v10 = vmul.f32 %v10616_v42, %v13992_v34 }
 0x2f4   : > { %v3563_v27 = vmul.f32 %v14017_v26, %v14016_v56  ;;  %v3631_v21 = vadd.f32 %v3624_v11, %v3616_v35  ;;  %v3445_v19 = vadd.f32 %v3437_v32, %v3430_v17  ;;  %v3579_v25 = vmul.f32 %v10666_v55, %v14018_v59  ;;  %v14019_v14 = vld [vmem:[#allocation23_spill] sm:$0xff]  ;;  %v14022_v59 = vld [vmem:[#allocation85_spill] sm:$0xff]  ;;  %v14023_v34 = vld [vmem:[#allocation62_spill] sm:$0xff] }
 0x2f5   : > { %v3593_v7 = vmul.f32 %v13990_v2, %v14019_v14  ;;  %v14020_v43 = vld [vmem:[#allocation47_spill] sm:$0xff]  ;;  %v3301_v56 = vrot.slane %v10662_v24, 7  ;;  %v10688_v35 = vmul.f32 %v10420_v16, %v13966_v13  ;;  %v3362_v42 = vmul.f32 %v10576_v38, %v14023_v34 }
 0x2f6   : > { %v3833_v48 = vadd.f32 %v14020_v43, %v3818_v62  ;;  %v3646_v11 = vadd.f32 %v3638_v29, %v3631_v21  ;;  %v3461_v17 = vadd.f32 %v3453_v39, %v3445_v19  ;;  %v14021_v2 = vld [vmem:[#allocation79_spill] sm:$0xff]  ;;  %v10695_v62 = vmul.f32 %v10557_v4, %v13968_v57 }
 0x2f7   : > { %v3347_v32 = vmul.f32 %v14021_v2, %v13962_v36  ;;  %v3704_v43 = vrot.slane %v10678_v33, 7  ;;  %v10701_v21 = vsel %vm305_vm0, 0.0, %v3301_v56  ;;  %v14024_v19 = vld [vmem:[#allocation43_spill] sm:$0xff] }
 0x2f8   : > { %v3848_v14 = vadd.f32 %v14022_v59, %v3833_v48  ;;  %v3662_v29 = vadd.f32 %v3654_v12, %v3646_v11  ;;  %v3476_v39 = vadd.f32 %v3469_v23, %v3461_v17  ;;  %v10707_v59 = vmul.f32 %v10669_v5, %v13971_v50  ;;  %v14025_v17 = vld [vmem:[#allocation71_spill] sm:$0xff] }
 0x2f9   : > { %v3354_v16 = vadd.f32 %v10462_v44, %v3347_v32  ;;  %v3728_v48 = vrot.slane %v10678_v33, 1  ;;  %v3378_v57 = vmul.f32 %v10701_v21, %v13941_v47  ;;  %v3392_v11 = vmul.f32 %v10429_v6, %v13778_v45 }
 0x2fa   : > { %v3864_v2 = vadd.f32 %v14024_v19, %v3848_v14  ;;  %v3677_v12 = vadd.f32 %v10589_v20, %v3662_v29  ;;  %v3555_v23 = vadd.f32 %v3547_v22, %v3476_v39  ;;  %v10717_v32 = vsel %vm305_vm0, 0.0, %v3704_v43  ;;  %v10731_v29 = vld [vmem:[%s5824_s5 + $0x170] sm:$0xff] }
 0x2fb   : > { %v3370_v56 = vadd.f32 %v3362_v42, %v3354_v16  ;;  %v10721_v19 = vmul.f32 %v10474_v49, %v13943_v54  ;;  %v10725_v50 = vmul.f32 %v10600_v60, %v5970_v58  ;;  %v3408_v6 = vmul.f32 %v10545_v0, %v13973_v30  ;;  %14026 = vst [vmem:[#allocation31_spill] sm:$0xff] %v10731_v29 }
 0x2fc   : > { %v3879_v14 = vadd.f32 %v14025_v17, %v3864_v2  ;;  %v3757_v20 = vadd.f32 %v10593_v46, %v3677_v12  ;;  %v3571_v22 = vadd.f32 %v3563_v27, %v3555_v23  ;;  %v10735_v43 = vsel %vm333_vm1, %v3728_v48, 0.0  ;;  %v14031_v17 = vld [vmem:[#allocation56_spill] sm:$0xff] }
 0x2fd   : > { %v3385_v42 = vadd.f32 %v3378_v57, %v3370_v56  ;;  %v10739_v49 = vmul.f32 %v10717_v32, %v13922_v9  ;;  %v10743_v39 = vmul.f32 %v10426_v18, %v13944_v52  ;;  %v3325_v46 = vrot.slane %v10662_v24, 1 }
 0x2fe   : > { %5224 = vst [vmem:[%s6195_s6 + $0x150] sm:$0xff] %v3879_v14  ;;  %v3773_v57 = vadd.f32 %v10607_v37, %v3757_v20  ;;  %v3586_v27 = vadd.f32 %v3579_v25, %v3571_v22  ;;  %v3424_v2 = vmul.f32 %v10662_v24, %v13904_v1  ;;  %v10751_v48 = vmul.f32 %v10554_v51, %v5993_v3  ;;  %v14032_v14 = vld [vmem:[#allocation82_spill] sm:$0xff] }
 0x2ff   : > { %14027 = vst [vmem:[#allocation46_spill] sm:$0xff] %v10743_v39  ;;  %v3400_v16 = vadd.f32 %v3392_v11, %v3385_v42  ;;  %v10755_v12 = vmul.f32 %v10678_v33, %v13925_v63  ;;  %v10759_v18 = vmul.f32 %v10484_v53, %v13951_v15  ;;  %v3502_v23 = vrot.slane %v10731_v29, 7  ;;  %v14034_v22 = vld [vmem:[#allocation58_spill] sm:$0xff] }
 0x300   : > { %14028 = vst [vmem:[#allocation70_spill] sm:$0xff] %v10751_v48  ;;  %v3788_v37 = vadd.f32 %v10621_v41, %v3773_v57  ;;  %v3601_v25 = vadd.f32 %v3593_v7, %v3586_v27  ;;  %v3438_v11 = vmul.f32 %v14010_v61, %v14003_v40  ;;  %v10767_v20 = vmul.f32 %v14032_v14, %v14031_v17  ;;  %v14037_v57 = vld [vmem:[#allocation92_spill] sm:$0xff]  ;;  %v10790_v40 = vld [vmem:[%s5824_s5 + $0x138] sm:$0xff] }
 0x301   : > { %14029 = vst [vmem:[#allocation89_spill] sm:$0xff] %v10755_v12  ;;  %14030 = vst [vmem:[#allocation98_spill] sm:$0xff] %v10759_v18  ;;  %v3416_v56 = vadd.f32 %v3408_v6, %v3400_v16  ;;  %v10771_v42 = vmul.f32 %v10735_v43, %v14034_v22  ;;  %v10774_v53 = vsel %vm333_vm1, %v3325_v46, 0.0  ;;  %v3526_v41 = vrot.slane %v10731_v29, 1  ;;  %v14038_v16 = vld [vmem:[#allocation42_spill] sm:$0xff]  ;;  %v14039_v61 = vld [vmem:[#allocation96_spill] sm:$0xff] }
 0x302   : > { %14033 = vst [vmem:[#allocation100_spill] sm:$0xff] %v10767_v20  ;;  %14036 = vst [vmem:[#allocation101_spill] sm:$0xff] %v10774_v53  ;;  %v3803_v7 = vadd.f32 %v14037_v57, %v3788_v37  ;;  %v3617_v6 = vadd.f32 %v3609_v31, %v3601_v25  ;;  %v3454_v18 = vmul.f32 %v14039_v61, %v14038_v16  ;;  %v14040_v12 = vld [vmem:[#allocation54_spill] sm:$0xff]  ;;  %v10783_v48 = vsel %vm305_vm0, 0.0, %v3502_v23  ;;  %v14043_v37 = vld [vmem:[#allocation73_spill] sm:$0xff] }
 0x303   : > { %14035 = vst [vmem:[#allocation99_spill] sm:$0xff] %v10771_v42  ;;  %v3431_v27 = vadd.f32 %v3424_v2, %v3416_v56  ;;  %v3470_v20 = vmul.f32 %v10774_v53, %v14040_v12  ;;  %v14041_v42 = vld [vmem:[#allocation17_spill] sm:$0xff]  ;;  %v14042_v46 = vld [vmem:[#allocation18_spill] sm:$0xff]  ;;  %v14044_v56 = vld [vmem:[#allocation23_spill] sm:$0xff]  ;;  %v10799_v23 = vsel %vm333_vm1, %v3526_v41, 0.0  ;;  %v10812_v41 = vmul.f32 %v10557_v4, %v13966_v13 }
 0x304   : > { %v3548_v22 = vmul.f32 %v14017_v26, %v14041_v42  ;;  %v3564_v39 = vmul.f32 %v10666_v55, %v14042_v46  ;;  %v3819_v31 = vadd.f32 %v14043_v37, %v3803_v7  ;;  %v3632_v2 = vadd.f32 %v3625_v10, %v3617_v6  ;;  %v10796_v16 = vld [vmem:[%s5824_s5 + $0x1b0] sm:$0xff]  ;;  %v14046_v42 = vld [vmem:[#allocation104_spill] sm:$0xff]  ;;  %v14048_v7 = vld [vmem:[#allocation75_spill] sm:$0xff] }
 0x305   : > { %v3446_v25 = vadd.f32 %v3438_v11, %v3431_v27  ;;  %v3594_v57 = vmul.f32 %v10501_v28, %v14044_v56  ;;  %v14045_v12 = vld [vmem:[#allocation21_spill] sm:$0xff]  ;;  %v3610_v46 = vmul.f32 %v14046_v42, %v13989_v8  ;;  %v14047_v55 = vld [vmem:[#allocation28_spill] sm:$0xff]  ;;  %v3302_v28 = vrot.slane %v10790_v40, 7  ;;  %v14051_v13 = vld [vmem:[#allocation95_spill] sm:$0xff] }
 0x306   : > { %v3580_v26 = vmul.f32 %v10783_v48, %v14045_v12  ;;  %v3626_v53 = vmul.f32 %v10731_v29, %v14047_v55  ;;  %v3834_v10 = vadd.f32 %v14048_v7, %v3819_v31  ;;  %v3647_v11 = vadd.f32 %v10688_v35, %v3632_v2  ;;  %v14049_v55 = vld [vmem:[#allocation29_spill] sm:$0xff]  ;;  %v14050_v2 = vld [vmem:[#allocation34_spill] sm:$0xff] }
 0x307   : > { %v3462_v6 = vadd.f32 %v3454_v18, %v3446_v25  ;;  %v3705_v27 = vrot.slane %v10796_v16, 7  ;;  %v3348_v37 = vmul.f32 %v10576_v38, %v13962_v36  ;;  %v3363_v8 = vmul.f32 %v10701_v21, %v14023_v34 }
 0x308   : > { %v3849_v29 = vadd.f32 %v14049_v55, %v3834_v10  ;;  %v3663_v31 = vadd.f32 %v10695_v62, %v3647_v11  ;;  %v10822_v18 = vsel %vm305_vm0, 0.0, %v3302_v28  ;;  %v10826_v4 = vmul.f32 %v10669_v5, %v14050_v2 }
 0x309   : > { %v3477_v35 = vadd.f32 %v3470_v20, %v3462_v6  ;;  %v3729_v25 = vrot.slane %v10796_v16, 1  ;;  %v3355_v7 = vadd.f32 %v10462_v44, %v3348_v37  ;;  %v3379_v38 = vmul.f32 %v10822_v18, %v13941_v47  ;;  %v14052_v20 = vld [vmem:[#allocation35_spill] sm:$0xff] }
 0x30a   : > { %v3865_v34 = vadd.f32 %v14051_v13, %v3849_v29  ;;  %v3678_v55 = vadd.f32 %v10707_v59, %v3663_v31  ;;  %v10836_v10 = vmul.f32 %v10799_v23, %v14052_v20  ;;  %v10840_v11 = vmul.f32 %v10600_v60, %v13943_v54  ;;  %v14053_v29 = vld [vmem:[#allocation49_spill] sm:$0xff] }
 0x30b   : > { %v3556_v62 = vadd.f32 %v3548_v22, %v3477_v35  ;;  %v10844_v6 = vmul.f32 %v10717_v32, %v5970_v58  ;;  %v3371_v28 = vadd.f32 %v3363_v8, %v3355_v7  ;;  %v3393_v13 = vmul.f32 %v10545_v0, %v13778_v45  ;;  %v10863_v0 = vld [vmem:[%s5824_s5 + $0x178] sm:$0xff] }
 0x30c   : > { %v3880_v59 = vadd.f32 %v14053_v29, %v3865_v34  ;;  %v3758_v22 = vadd.f32 %v10721_v19, %v3678_v55  ;;  %v10851_v31 = vsel %vm305_vm0, 0.0, %v3705_v27  ;;  %v10854_v35 = vsel %vm333_vm1, %v3729_v25, 0.0 }
 0x30d   : > { %v3572_v37 = vadd.f32 %v3564_v39, %v3556_v62  ;;  %v10858_v60 = vmul.f32 %v10554_v51, %v13944_v52  ;;  %v3386_v47 = vadd.f32 %v3379_v38, %v3371_v28  ;;  %v3409_v8 = vmul.f32 %v10662_v24, %v13973_v30 }
 0x30e   : > { %5225 = vst [vmem:[%s6195_s6 + $0x158] sm:$0xff] %v3880_v59  ;;  %v3774_v34 = vadd.f32 %v10725_v50, %v3758_v22  ;;  %v10869_v39 = vmul.f32 %v10678_v33, %v5993_v3  ;;  %v3326_v27 = vrot.slane %v10790_v40, 1  ;;  %v10874_v51 = vmul.f32 %v10851_v31, %v13922_v9  ;;  %v14059_v59 = vld [vmem:[#allocation61_spill] sm:$0xff]  ;;  %v14060_v22 = vld [vmem:[#allocation46_spill] sm:$0xff] }
 0x30f   : > { %14054 = vst [vmem:[#allocation63_spill] sm:$0xff] %v10858_v60  ;;  %v3587_v19 = vadd.f32 %v3580_v26, %v3572_v37  ;;  %v10878_v25 = vmul.f32 %v10796_v16, %v13925_v63  ;;  %v3401_v7 = vadd.f32 %v3393_v13, %v3386_v47  ;;  %v3425_v38 = vmul.f32 %v10790_v40, %v13904_v1  ;;  %v14064_v1 = vld [vmem:[#allocation42_spill] sm:$0xff] }
 0x310   : > { %14055 = vst [vmem:[#allocation93_spill] sm:$0xff] %v10869_v39  ;;  %v3789_v50 = vadd.f32 %v10739_v49, %v3774_v34  ;;  %v10885_v55 = vmul.f32 %v14032_v14, %v13951_v15  ;;  %v3503_v62 = vrot.slane %v10863_v0, 7  ;;  %v10890_v28 = vmul.f32 %v10735_v43, %v14031_v17  ;;  %v10910_v60 = vld [vmem:[%s5824_s5 + $0x1b8] sm:$0xff] }
 0x311   : > { %14056 = vst [vmem:[#allocation77_spill] sm:$0xff] %v10878_v25  ;;  %v3602_v26 = vadd.f32 %v3594_v57, %v3587_v19  ;;  %v3417_v29 = vadd.f32 %v3409_v8, %v3401_v7  ;;  %v3439_v47 = vmul.f32 %v14039_v61, %v14059_v59  ;;  %v3527_v13 = vrot.slane %v10863_v0, 1  ;;  %v14061_v57 = vld [vmem:[#allocation58_spill] sm:$0xff]  ;;  %v14067_v61 = vld [vmem:[#allocation17_spill] sm:$0xff]  ;;  %v14068_v25 = vld [vmem:[#allocation84_spill] sm:$0xff] }
 0x312   : > { %14057 = vst [vmem:[#allocation72_spill] sm:$0xff] %v10885_v55  ;;  %14058 = vst [vmem:[#allocation88_spill] sm:$0xff] %v10890_v28  ;;  %v3804_v49 = vadd.f32 %v14060_v22, %v3789_v50  ;;  %v10898_v34 = vmul.f32 %v10854_v35, %v14061_v57  ;;  %v10901_v14 = vsel %vm333_vm1, %v3326_v27, 0.0  ;;  %v14065_v55 = vld [vmem:[#allocation101_spill] sm:$0xff]  ;;  %v14066_v8 = vld [vmem:[#allocation54_spill] sm:$0xff]  ;;  %v3549_v39 = vmul.f32 %v14068_v25, %v14067_v61 }
 0x313   : > { %v3618_v37 = vadd.f32 %v3610_v46, %v3602_v26  ;;  %14063 = vst [vmem:[#allocation36_spill] sm:$0xff] %v10901_v14  ;;  %v3432_v19 = vadd.f32 %v3425_v38, %v3417_v29  ;;  %v3455_v28 = vmul.f32 %v14065_v55, %v14064_v1  ;;  %v3471_v7 = vmul.f32 %v10901_v14, %v14066_v8  ;;  %v14069_v46 = vld [vmem:[#allocation70_spill] sm:$0xff]  ;;  %v14072_v61 = vld [vmem:[#allocation89_spill] sm:$0xff] }
 0x314   : > { %14062 = vst [vmem:[#allocation91_spill] sm:$0xff] %v10898_v34  ;;  %v3820_v50 = vadd.f32 %v14069_v46, %v3804_v49  ;;  %v10914_v22 = vsel %vm305_vm0, 0.0, %v3503_v62  ;;  %v14071_v27 = vld [vmem:[#allocation18_spill] sm:$0xff]  ;;  %v10919_v34 = vsel %vm333_vm1, %v3527_v13, 0.0  ;;  %v3595_v25 = vmul.f32 %v14046_v42, %v14044_v56  ;;  %v14074_v62 = vld [vmem:[#allocation31_spill] sm:$0xff] }
 0x315   : > { %v3633_v26 = vadd.f32 %v3626_v53, %v3618_v37  ;;  %14070 = vst [vmem:[#allocation48_spill] sm:$0xff] %v10914_v22  ;;  %v3565_v38 = vmul.f32 %v10783_v48, %v14071_v27  ;;  %v3447_v29 = vadd.f32 %v3439_v47, %v3432_v19  ;;  %v3581_v8 = vmul.f32 %v10914_v22, %v14045_v12  ;;  %v14073_v49 = vld [vmem:[#allocation26_spill] sm:$0xff]  ;;  %v14075_v47 = vld [vmem:[#allocation28_spill] sm:$0xff] }
 0x316   : > { %v3835_v14 = vadd.f32 %v14072_v61, %v3820_v50  ;;  %v3611_v37 = vmul.f32 %v14074_v62, %v14073_v49  ;;  %v3706_v46 = vrot.slane %v10910_v60, 7  ;;  %v3627_v13 = vmul.f32 %v10863_v0, %v14075_v47  ;;  %v14076_v12 = vld [vmem:[#allocation62_spill] sm:$0xff] }
 0x317   : > { %v3648_v53 = vadd.f32 %v10812_v41, %v3633_v26  ;;  %v3463_v27 = vadd.f32 %v3455_v28, %v3447_v29  ;;  %v3349_v19 = vmul.f32 %v10701_v21, %v13962_v36  ;;  %v3364_v22 = vmul.f32 %v10822_v18, %v14076_v12  ;;  %v14077_v42 = vld [vmem:[#allocation98_spill] sm:$0xff] }
 0x318   : > { %v3850_v56 = vadd.f32 %v14077_v42, %v3835_v14  ;;  %v14078_v41 = vld [vmem:[#allocation30_spill] sm:$0xff]  ;;  %v3730_v26 = vrot.slane %v10910_v60, 1  ;;  %v10943_v28 = vmul.f32 %v10799_v23, %v14050_v2  ;;  %v10947_v21 = vmul.f32 %v10919_v34, %v14052_v20  ;;  %v14079_v14 = vld [vmem:[#allocation100_spill] sm:$0xff]  ;;  %v14080_v20 = vld [vmem:[#allocation99_spill] sm:$0xff] }
 0x319   : > { %v3664_v61 = vadd.f32 %v10826_v4, %v3648_v53  ;;  %v3641_v50 = vmul.f32 %v10669_v5, %v14078_v41  ;;  %v3478_v49 = vadd.f32 %v3471_v7, %v3463_v27  ;;  %v3356_v18 = vadd.f32 %v10462_v44, %v3349_v19 }
 0x31a   : > { %v3866_v4 = vadd.f32 %v14079_v14, %v3850_v56  ;;  %v3722_v5 = vsel %vm305_vm0, 0.0, %v3706_v46  ;;  %v10955_v7 = vmul.f32 %v10717_v32, %v13943_v54  ;;  %v10959_v53 = vmul.f32 %v10851_v31, %v5970_v58 }
 0x31b   : > { %v3679_v29 = vadd.f32 %v10836_v10, %v3664_v61  ;;  %v3557_v27 = vadd.f32 %v3549_v39, %v3478_v49  ;;  %v3372_v42 = vadd.f32 %v3364_v22, %v3356_v18  ;;  %v3394_v19 = vmul.f32 %v10662_v24, %v13778_v45  ;;  %v10973_v39 = vld [vmem:[%s5824_s5 + $0x140] sm:$0xff]  ;;  %v10976_v49 = vld [vmem:[%s5824_s5 + $0x148] sm:$0xff] }
 0x31c   : > { %v3881_v56 = vadd.f32 %v14080_v20, %v3866_v4  ;;  %v10966_v46 = vsel %vm333_vm1, %v3730_v26, 0.0  ;;  %v10970_v32 = vmul.f32 %v10678_v33, %v13944_v52  ;;  %v10979_v22 = vmul.f32 %v3722_v5, %v13922_v9  ;;  %v14081_v24 = vld [vmem:[#allocation67_spill] sm:$0xff]  ;;  %v14093_v9 = vld [vmem:[#allocation66_spill] sm:$0xff] }
 0x31d   : > { %v3759_v10 = vadd.f32 %v10840_v11, %v3679_v29  ;;  %v3573_v61 = vadd.f32 %v3565_v38, %v3557_v27  ;;  %v3387_v18 = vadd.f32 %v3372_v42, %v14081_v24  ;;  %v3410_v20 = vmul.f32 %v10790_v40, %v13973_v30 }
 0x31e   : > { %5226 = vst [vmem:[%s6195_s6 + $0x160] sm:$0xff] %v3881_v56  ;;  %v10988_v33 = vmul.f32 %v10796_v16, %v5993_v3  ;;  %v10992_v26 = vmul.f32 %v10910_v60, %v13925_v63  ;;  %v10996_v38 = vmul.f32 %v10735_v43, %v13951_v15  ;;  %v3910_v29 = vrot.slane %v10973_v39, 7 }
 0x31f   : > { %v3775_v11 = vadd.f32 %v10844_v6, %v3759_v10  ;;  %v3588_v14 = vadd.f32 %v3581_v8, %v3573_v61  ;;  %v3402_v4 = vadd.f32 %v3394_v19, %v3387_v18  ;;  %v3911_v40 = vrot.slane %v10976_v49, 7  ;;  %v14083_v19 = vld [vmem:[#allocation36_spill] sm:$0xff] }
 0x320   : > { %v11003_v27 = vmul.f32 %v10854_v35, %v14031_v17  ;;  %v11007_v42 = vmul.f32 %v10966_v46, %v14061_v57  ;;  %v3440_v43 = vmul.f32 %v14065_v55, %v14059_v59  ;;  %v3456_v10 = vmul.f32 %v14083_v19, %v14064_v1  ;;  %v14090_v59 = vld [vmem:[#allocation93_spill] sm:$0xff] }
 0x321   : > { %v3790_v6 = vadd.f32 %v10874_v51, %v3775_v11  ;;  %v3603_v56 = vadd.f32 %v3595_v25, %v3588_v14  ;;  %v3418_v8 = vadd.f32 %v3410_v20, %v3402_v4  ;;  %v11014_v61 = vsel %vm305_vm0, 0.0, %v3910_v29  ;;  %v14084_v51 = vld [vmem:[#allocation63_spill] sm:$0xff]  ;;  %v14085_v11 = vld [vmem:[#allocation17_spill] sm:$0xff]  ;;  %v14086_v25 = vld [vmem:[#allocation80_spill] sm:$0xff] }
 0x322   : > { %14082 = vst [vmem:[#allocation24_spill] sm:$0xff] %v11007_v42  ;;  %v3550_v24 = vmul.f32 %v10783_v48, %v14085_v11  ;;  %v11020_v63 = vsel %vm305_vm0, 0.0, %v3911_v40  ;;  %v3972_v57 = vmul.f32 %v11014_v61, %v14076_v12  ;;  %v14087_v14 = vld [vmem:[#allocation18_spill] sm:$0xff]  ;;  %v14088_v4 = vld [vmem:[#allocation48_spill] sm:$0xff] }
 0x323   : > { %v3805_v18 = vadd.f32 %v14084_v51, %v3790_v6  ;;  %v3619_v55 = vadd.f32 %v3611_v37, %v3603_v56  ;;  %v3433_v20 = vadd.f32 %v3418_v8, %v14086_v25  ;;  %v3566_v19 = vmul.f32 %v14088_v4, %v14087_v14  ;;  %v14089_v42 = vld [vmem:[#allocation60_spill] sm:$0xff]  ;;  %v14091_v51 = vld [vmem:[#allocation23_spill] sm:$0xff]  ;;  %v14092_v40 = vld [vmem:[#allocation26_spill] sm:$0xff] }
 0x324   : > { %v3988_v29 = vmul.f32 %v11020_v63, %v14089_v42  ;;  %v3596_v48 = vmul.f32 %v14074_v62, %v14091_v51  ;;  %v11034_v11 = vmul.f32 %v10863_v0, %v14092_v40  ;;  %v3980_v37 = vadd.f32 %v3972_v57, %v14093_v9 }
 0x325   : > { %v3821_v6 = vadd.f32 %v14090_v59, %v3805_v18  ;;  %v3634_v56 = vadd.f32 %v3627_v13, %v3619_v55  ;;  %v3448_v8 = vadd.f32 %v3440_v43, %v3433_v20  ;;  %v11039_v4 = vmul.f32 %v10799_v23, %v14078_v41  ;;  %v14094_v18 = vld [vmem:[#allocation77_spill] sm:$0xff]  ;;  %v11057_v55 = vld [vmem:[%s5824_s5 + $0x180] sm:$0xff] }
 0x326   : > { %v11043_v59 = vmul.f32 %v10919_v34, %v14050_v2  ;;  %v3934_v62 = vrot.slane %v10973_v39, 1  ;;  %v3995_v51 = vadd.f32 %v3988_v29, %v3980_v37  ;;  %v4018_v0 = vmul.f32 %v10973_v39, %v13973_v30  ;;  %v14095_v34 = vld [vmem:[#allocation72_spill] sm:$0xff]  ;;  %v14096_v29 = vld [vmem:[#allocation103_spill] sm:$0xff] }
 0x327   : > { %v3836_v25 = vadd.f32 %v14094_v18, %v3821_v6  ;;  %v3649_v57 = vadd.f32 %v3641_v50, %v3634_v56  ;;  %v3464_v13 = vadd.f32 %v3456_v10, %v3448_v8  ;;  %v11051_v43 = vmul.f32 %v10851_v31, %v13943_v54  ;;  %v14097_v18 = vld [vmem:[#allocation15_spill] sm:$0xff]  ;;  %v11068_v10 = vld [vmem:[%s5824_s5 + $0x188] sm:$0xff]  ;;  %v14098_v56 = vld [vmem:[#allocation69_spill] sm:$0xff] }
 0x328   : > { %v11054_v23 = vmul.f32 %v3722_v5, %v5970_v58  ;;  %v11062_v6 = vmul.f32 %v10796_v16, %v13944_v52  ;;  %v4010_v37 = vadd.f32 %v3995_v51, %v14096_v29  ;;  %v4034_v50 = vmul.f32 %v10976_v49, %v14097_v18 }
 0x329   : > { %v3851_v20 = vadd.f32 %v14095_v34, %v3836_v25  ;;  %v3665_v31 = vadd.f32 %v10943_v28, %v3649_v57  ;;  %v3479_v5 = vadd.f32 %v3464_v13, %v14098_v56  ;;  %v11074_v8 = vmul.f32 %v10910_v60, %v5993_v3  ;;  %v14099_v34 = vld [vmem:[#allocation88_spill] sm:$0xff]  ;;  %v14100_v60 = vld [vmem:[#allocation91_spill] sm:$0xff] }
 0x32a   : > { %v3935_v25 = vrot.slane %v10976_v49, 1  ;;  %v11079_v51 = vsel %vm333_vm1, %v3934_v62, 0.0  ;;  %v4026_v29 = vadd.f32 %v4018_v0, %v4010_v37  ;;  %v4111_v9 = vrot.slane %v11057_v55, 7 }
 0x32b   : > { %v3867_v16 = vadd.f32 %v14099_v34, %v3851_v20  ;;  %v3680_v52 = vadd.f32 %v10947_v21, %v3665_v31  ;;  %v3558_v28 = vadd.f32 %v3550_v24, %v3479_v5  ;;  %v4112_v57 = vrot.slane %v11068_v10, 7  ;;  %v14104_v5 = vld [vmem:[#allocation54_spill] sm:$0xff] }
 0x32c   : > { %v4135_v13 = vrot.slane %v11057_v55, 1  ;;  %v4041_v54 = vadd.f32 %v4034_v50, %v4026_v29  ;;  %v4064_v20 = vmul.f32 %v11079_v51, %v14064_v1  ;;  %v4136_v62 = vrot.slane %v11068_v10, 1  ;;  %v14103_v50 = vld [vmem:[#allocation68_spill] sm:$0xff] }
 0x32d   : > { %v3882_v56 = vadd.f32 %v14100_v60, %v3867_v16  ;;  %v3760_v0 = vadd.f32 %v10955_v7, %v3680_v52  ;;  %v3574_v37 = vadd.f32 %v3566_v19, %v3558_v28  ;;  %v11092_v21 = vmul.f32 %v10854_v35, %v13951_v15  ;;  %v14105_v7 = vld [vmem:[#allocation33_spill] sm:$0xff]  ;;  %v11127_v60 = vld [vmem:[%s5824_s5 + $0x1c0] sm:$0xff]  ;;  %v14108_v15 = vld [vmem:[#allocation22_spill] sm:$0xff] }
 0x32e   : > { %v11095_v24 = vsel %vm333_vm1, %v3935_v25, 0.0  ;;  %v11100_v29 = vmul.f32 %v10966_v46, %v14031_v17  ;;  %v4056_v31 = vadd.f32 %v4041_v54, %v14103_v50  ;;  %v11106_v52 = vsel %vm305_vm0, 0.0, %v4111_v9  ;;  %v11117_v46 = vld [vmem:[%s5824_s5 + $0x150] sm:$0xff] }
 0x32f   : > { %14101 = vst [vmem:[#allocation37_spill] sm:$0xff] %v11092_v21  ;;  %5227 = vst [vmem:[%s6195_s6 + $0x168] sm:$0xff] %v3882_v56  ;;  %v4080_v34 = vmul.f32 %v11095_v24, %v14104_v5  ;;  %v3776_v35 = vadd.f32 %v10959_v53, %v3760_v0  ;;  %v3589_v19 = vadd.f32 %v3574_v37, %v14105_v7  ;;  %v11111_v25 = vsel %vm305_vm0, 0.0, %v4112_v57  ;;  %v14107_v28 = vld [vmem:[#allocation21_spill] sm:$0xff]  ;;  %v11135_v37 = vld [vmem:[%s5824_s5 + $0x1c8] sm:$0xff] }
 0x330   : > { %14102 = vst [vmem:[#allocation102_spill] sm:$0xff] %v11100_v29  ;;  %v11114_v56 = vsel %vm333_vm1, %v4135_v13, 0.0  ;;  %v4072_v54 = vadd.f32 %v4064_v20, %v4056_v31  ;;  %v11120_v16 = vsel %vm333_vm1, %v4136_v62, 0.0  ;;  %v4174_v9 = vmul.f32 %v11106_v52, %v14087_v14 }
 0x331   : > { %14106 = vst [vmem:[#allocation57_spill] sm:$0xff] %v11120_v16  ;;  %v4190_v53 = vmul.f32 %v11111_v25, %v14107_v28  ;;  %v3791_v57 = vadd.f32 %v10979_v22, %v3776_v35  ;;  %v3604_v0 = vadd.f32 %v3596_v48, %v3589_v19  ;;  %v4220_v13 = vmul.f32 %v11057_v55, %v14092_v40 }
 0x332   : > { %v4236_v20 = vmul.f32 %v11068_v10, %v14075_v47  ;;  %v4087_v62 = vadd.f32 %v4080_v34, %v4072_v54  ;;  %v11139_v31 = vmul.f32 %v11114_v56, %v14050_v2  ;;  %v3912_v7 = vrot.slane %v11117_v46, 7  ;;  %v14109_v2 = vld [vmem:[#allocation25_spill] sm:$0xff] }
 0x333   : > { %v3958_v50 = vmul.f32 %v11014_v61, %v13962_v36  ;;  %v3806_v22 = vadd.f32 %v10970_v32, %v3791_v57  ;;  %v3620_v48 = vadd.f32 %v11034_v11, %v3604_v0  ;;  %v4314_v35 = vrot.slane %v11127_v60, 7 }
 0x334   : > { %v3973_v19 = vmul.f32 %v11020_v63, %v14076_v12  ;;  %v4166_v34 = vadd.f32 %v4087_v62, %v14108_v15  ;;  %v4315_v54 = vrot.slane %v11135_v37, 7  ;;  %v11152_v29 = vsel %vm305_vm0, 0.0, %v3912_v7 }
 0x335   : > { %v3965_v21 = vadd.f32 %v10462_v44, %v3958_v50  ;;  %v3822_v61 = vadd.f32 %v10988_v33, %v3806_v22  ;;  %v3635_v32 = vadd.f32 %v3620_v48, %v14109_v2  ;;  %v4338_v11 = vrot.slane %v11127_v60, 1  ;;  %v14110_v33 = vld [vmem:[#allocation35_spill] sm:$0xff] }
 0x336   : > { %v3989_v57 = vmul.f32 %v11152_v29, %v14089_v42  ;;  %v4182_v0 = vadd.f32 %v4174_v9, %v4166_v34  ;;  %v4339_v12 = vrot.slane %v11135_v37, 1  ;;  %v4003_v15 = vmul.f32 %v10973_v39, %v13778_v45 }
 0x337   : > { %v3981_v62 = vadd.f32 %v3973_v19, %v3965_v21  ;;  %v3837_v7 = vadd.f32 %v10992_v26, %v3822_v61  ;;  %v3650_v50 = vadd.f32 %v11039_v4, %v3635_v32  ;;  %v4282_v22 = vmul.f32 %v11120_v16, %v14110_v33 }
 0x338   : > { %v11168_v48 = vsel %vm305_vm0, 0.0, %v4314_v35  ;;  %v4197_v2 = vadd.f32 %v4190_v53, %v4182_v0  ;;  %v11171_v9 = vsel %vm305_vm0, 0.0, %v4315_v54  ;;  %v4019_v21 = vmul.f32 %v10976_v49, %v13973_v30  ;;  %v14112_v35 = vld [vmem:[#allocation27_spill] sm:$0xff] }
 0x339   : > { %v3996_v34 = vadd.f32 %v3989_v57, %v3981_v62  ;;  %v3852_v39 = vadd.f32 %v10996_v38, %v3837_v7  ;;  %v3666_v26 = vadd.f32 %v11043_v59, %v3650_v50  ;;  %v11178_v4 = vsel %vm333_vm1, %v4338_v11, 0.0  ;;  %v11191_v57 = vld [vmem:[%s5824_s5 + $0x190] sm:$0xff]  ;;  %v14114_v59 = vld [vmem:[#allocation40_spill] sm:$0xff] }
 0x33a   : > { %v11182_v19 = vmul.f32 %v11127_v60, %v5993_v3  ;;  %v4212_v53 = vadd.f32 %v4197_v2, %v14112_v35  ;;  %v11186_v54 = vsel %vm333_vm1, %v4339_v12, 0.0  ;;  %v4035_v32 = vmul.f32 %v11117_v46, %v14097_v18  ;;  %14113 = vst [vmem:[#allocation94_spill] sm:$0xff] %v11191_v57  ;;  %v14115_v7 = vld [vmem:[#allocation41_spill] sm:$0xff]  ;;  %v14117_v35 = vld [vmem:[#allocation24_spill] sm:$0xff]  ;;  %v14118_v3 = vld [vmem:[#allocation50_spill] sm:$0xff] }
 0x33b   : > { %v4011_v61 = vadd.f32 %v4003_v15, %v3996_v34  ;;  %v3868_v38 = vadd.f32 %v11003_v27, %v3852_v39  ;;  %v3681_v11 = vadd.f32 %v3666_v26, %v14114_v59  ;;  %v4377_v0 = vmul.f32 %v11168_v48, %v5970_v58  ;;  %v14116_v50 = vld [vmem:[#allocation61_spill] sm:$0xff] }
 0x33c   : > { %14111 = vst [vmem:[#allocation97_spill] sm:$0xff] %v11182_v19  ;;  %v3936_v62 = vrot.slane %v11117_v46, 1  ;;  %v4228_v2 = vadd.f32 %v4220_v13, %v4212_v53  ;;  %v4393_v12 = vmul.f32 %v11171_v9, %v14115_v7  ;;  %v4049_v34 = vmul.f32 %v11079_v51, %v14116_v50 }
 0x33d   : > { %v4027_v15 = vadd.f32 %v4019_v21, %v4011_v61  ;;  %v3883_v19 = vadd.f32 %v14117_v35, %v3868_v38  ;;  %v3761_v27 = vadd.f32 %v11051_v43, %v3681_v11  ;;  %v4113_v39 = vrot.slane %v11191_v57, 7  ;;  %v14120_v35 = vld [vmem:[#allocation58_spill] sm:$0xff] }
 0x33e   : > { %v4137_v26 = vrot.slane %v11191_v57, 1  ;;  %v4243_v59 = vadd.f32 %v4236_v20, %v4228_v2  ;;  %v11208_v13 = vmul.f32 %v11135_v37, %v14118_v3  ;;  %v4065_v21 = vmul.f32 %v11095_v24, %v14064_v1  ;;  %v14122_v38 = vld [vmem:[#allocation38_spill] sm:$0xff]  ;;  %v14123_v2 = vld [vmem:[#allocation17_spill] sm:$0xff] }
 0x33f   : > { %v4042_v53 = vadd.f32 %v4035_v32, %v4027_v15  ;;  %5228 = vst [vmem:[%s6195_s6 + $0x170] sm:$0xff] %v3883_v19  ;;  %v3777_v51 = vadd.f32 %v11054_v23, %v3761_v27  ;;  %v11216_v43 = vmul.f32 %v11178_v4, %v14031_v17  ;;  %v11220_v61 = vmul.f32 %v11186_v54, %v14120_v35  ;;  %v11231_v15 = vld [vmem:[%s5824_s5 + $0x158] sm:$0xff]  ;;  %v14124_v27 = vld [vmem:[#allocation16_spill] sm:$0xff] }
 0x340   : > { %v11223_v20 = vsel %vm333_vm1, %v3936_v62, 0.0  ;;  %v4258_v32 = vadd.f32 %v4243_v59, %v14122_v38  ;;  %v4159_v23 = vmul.f32 %v11106_v52, %v14123_v2  ;;  %v11235_v17 = vsel %vm305_vm0, 0.0, %v4113_v39  ;;  %v14127_v52 = vld [vmem:[#allocation23_spill] sm:$0xff]  ;;  %v11248_v2 = vld [vmem:[%s5824_s5 + $0x1d0] sm:$0xff] }
 0x341   : > { %14119 = vst [vmem:[#allocation83_spill] sm:$0xff] %v11216_v43  ;;  %14121 = vst [vmem:[#allocation90_spill] sm:$0xff] %v11220_v61  ;;  %v4057_v11 = vadd.f32 %v4049_v34, %v4042_v53  ;;  %v4081_v19 = vmul.f32 %v11223_v20, %v14104_v5  ;;  %v3792_v43 = vadd.f32 %v3777_v51, %v14124_v27  ;;  %v11238_v61 = vsel %vm333_vm1, %v4137_v26, 0.0 }
 0x342   : > { %14125 = vst [vmem:[#allocation74_spill] sm:$0xff] %v11235_v17  ;;  %14126 = vst [vmem:[#allocation86_spill] sm:$0xff] %v11238_v61  ;;  %v4175_v59 = vmul.f32 %v11111_v25, %v14087_v14  ;;  %v4274_v62 = vadd.f32 %v11139_v31, %v4258_v32  ;;  %v4191_v53 = vmul.f32 %v11235_v17, %v14107_v28  ;;  %v3913_v27 = vrot.slane %v11231_v15, 7 }
 0x343   : > { %v4073_v34 = vadd.f32 %v4065_v21, %v4057_v11  ;;  %v4205_v38 = vmul.f32 %v11057_v55, %v14127_v52  ;;  %v3807_v39 = vadd.f32 %v11062_v6, %v3792_v43  ;;  %v4221_v26 = vmul.f32 %v11068_v10, %v14092_v40  ;;  %v14128_v52 = vld [vmem:[#allocation34_spill] sm:$0xff] }
 0x344   : > { %v4237_v51 = vmul.f32 %v11191_v57, %v14075_v47  ;;  %v4289_v31 = vadd.f32 %v4282_v22, %v4274_v62  ;;  %v4251_v32 = vmul.f32 %v11114_v56, %v14078_v41  ;;  %v3959_v55 = vmul.f32 %v11020_v63, %v13962_v36  ;;  %v14129_v40 = vld [vmem:[#allocation62_spill] sm:$0xff]  ;;  %v14130_v57 = vld [vmem:[#allocation51_spill] sm:$0xff] }
 0x345   : > { %v4088_v21 = vadd.f32 %v4081_v19, %v4073_v34  ;;  %v3823_v11 = vadd.f32 %v11074_v8, %v3807_v39  ;;  %v11263_v6 = vmul.f32 %v11120_v16, %v14128_v52  ;;  %v4316_v43 = vrot.slane %v11248_v2, 7  ;;  %v14131_v63 = vld [vmem:[#allocation19_spill] sm:$0xff] }
 0x346   : > { %v3974_v47 = vmul.f32 %v11152_v29, %v14129_v40  ;;  %v4369_v22 = vadd.f32 %v4289_v31, %v14130_v57  ;;  %v11270_v62 = vsel %vm305_vm0, 0.0, %v3913_v27  ;;  %v3966_v56 = vadd.f32 %v10462_v44, %v3959_v55  ;;  %v14132_v31 = vld [vmem:[#allocation37_spill] sm:$0xff]  ;;  %v14134_v55 = vld [vmem:[#allocation39_spill] sm:$0xff] }
 0x347   : > { %v4167_v19 = vadd.f32 %v4159_v23, %v4088_v21  ;;  %v3838_v34 = vadd.f32 %v3823_v11, %v14131_v63  ;;  %v11276_v8 = vmul.f32 %v11238_v61, %v14110_v33  ;;  %v4340_v39 = vrot.slane %v11248_v2, 1 }
 0x348   : > { %v3990_v52 = vmul.f32 %v11270_v62, %v14089_v42  ;;  %v4385_v16 = vadd.f32 %v4377_v0, %v4369_v22  ;;  %v3982_v23 = vadd.f32 %v3974_v47, %v3966_v56  ;;  %v4004_v27 = vmul.f32 %v10976_v49, %v13778_v45  ;;  %v11298_v49 = vld [vmem:[%s5824_s5 + $0x198] sm:$0xff] }
 0x349   : > { %v4183_v57 = vadd.f32 %v4175_v59, %v4167_v19  ;;  %v3853_v44 = vadd.f32 %v14132_v31, %v3838_v34  ;;  %v11285_v21 = vsel %vm305_vm0, 0.0, %v4316_v43  ;;  %v11289_v11 = vmul.f32 %v11168_v48, %v14134_v55  ;;  %14135 = vst [vmem:[#allocation78_spill] sm:$0xff] %v11298_v49  ;;  %v14136_v22 = vld [vmem:[#allocation102_spill] sm:$0xff]  ;;  %v14138_v48 = vld [vmem:[#allocation44_spill] sm:$0xff] }
 0x34a   : > { %14133 = vst [vmem:[#allocation81_spill] sm:$0xff] %v11285_v21  ;;  %v11293_v63 = vmul.f32 %v11171_v9, %v5970_v58  ;;  %v4400_v33 = vadd.f32 %v4393_v12, %v4385_v16  ;;  %v3997_v59 = vadd.f32 %v3990_v52, %v3982_v23  ;;  %v4020_v47 = vmul.f32 %v11117_v46, %v13973_v30  ;;  %v14140_v16 = vld [vmem:[#allocation55_spill] sm:$0xff]  ;;  %v14141_v23 = vld [vmem:[#allocation20_spill] sm:$0xff] }
 0x34b   : > { %v4198_v0 = vadd.f32 %v4191_v53, %v4183_v57  ;;  %v3869_v19 = vadd.f32 %v14136_v22, %v3853_v44  ;;  %v11302_v43 = vsel %vm333_vm1, %v4340_v39, 0.0  ;;  %v11306_v56 = vmul.f32 %v11127_v60, %v14138_v48  ;;  %v14142_v39 = vld [vmem:[#allocation45_spill] sm:$0xff] }
 0x34c   : > { %14137 = vst [vmem:[#allocation76_spill] sm:$0xff] %v11302_v43  ;;  %v3937_v34 = vrot.slane %v11231_v15, 1  ;;  %v4415_v12 = vadd.f32 %v4400_v33, %v14140_v16  ;;  %v4012_v52 = vadd.f32 %v4004_v27, %v3997_v59  ;;  %v4036_v57 = vmul.f32 %v11231_v15, %v14097_v18  ;;  %v14145_v59 = vld [vmem:[#allocation52_spill] sm:$0xff] }
 0x34d   : > { %14139 = vst [vmem:[#allocation65_spill] sm:$0xff] %v11306_v56  ;;  %v4213_v53 = vadd.f32 %v4205_v38, %v4198_v0  ;;  %v3884_v31 = vadd.f32 %v3869_v19, %v14141_v23  ;;  %v11315_v44 = vmul.f32 %v11285_v21, %v14115_v7  ;;  %v11319_v22 = vmul.f32 %v11135_v37, %v14142_v39  ;;  %v14143_v56 = vld [vmem:[#allocation97_spill] sm:$0xff]  ;;  %v11358_v23 = vld [vmem:[%s5824_s5 + $0x1d8] sm:$0xff] }
 0x34e   : > { %v4114_v60 = vrot.slane %v11298_v49, 7  ;;  %v4431_v30 = vadd.f32 %v14143_v56, %v4415_v12  ;;  %v4028_v38 = vadd.f32 %v4020_v47, %v4012_v52  ;;  %v4050_v27 = vmul.f32 %v11095_v24, %v14116_v50 }
 0x34f   : > { %v4229_v33 = vadd.f32 %v4221_v26, %v4213_v53  ;;  %5229 = vst [vmem:[%s6195_s6 + $0x178] sm:$0xff] %v3884_v31  ;;  %v11328_v0 = vmul.f32 %v11248_v2, %v14118_v3  ;;  %v11332_v19 = vmul.f32 %v11178_v4, %v14145_v59  ;;  %v11335_v16 = vsel %vm333_vm1, %v3937_v34, 0.0  ;;  %v14147_v53 = vld [vmem:[#allocation56_spill] sm:$0xff] }
 0x350   : > { %v4138_v26 = vrot.slane %v11298_v49, 1  ;;  %v4446_v47 = vadd.f32 %v11208_v13, %v4431_v30  ;;  %v4043_v24 = vadd.f32 %v4036_v57, %v4028_v38  ;;  %v4066_v12 = vmul.f32 %v11223_v20, %v14064_v1  ;;  %v14151_v30 = vld [vmem:[#allocation59_spill] sm:$0xff] }
 0x351   : > { %14144 = vst [vmem:[#allocation32_spill] sm:$0xff] %v11328_v0  ;;  %14146 = vst [vmem:[#allocation87_spill] sm:$0xff] %v11332_v19  ;;  %v4244_v56 = vadd.f32 %v4237_v51, %v4229_v33  ;;  %v11343_v52 = vmul.f32 %v11186_v54, %v14147_v53  ;;  %v11347_v4 = vmul.f32 %v11302_v43, %v14120_v35  ;;  %v11352_v31 = vsel %vm305_vm0, 0.0, %v4114_v60  ;;  %v14152_v33 = vld [vmem:[#allocation17_spill] sm:$0xff]  ;;  %v14154_v0 = vld [vmem:[#allocation23_spill] sm:$0xff] }
 0x352   : > { %v4082_v34 = vmul.f32 %v11335_v16, %v14104_v5  ;;  %14150 = vst [vmem:[#allocation85_spill] sm:$0xff] %v11352_v31  ;;  %v4461_v13 = vadd.f32 %v4446_v47, %v14151_v30  ;;  %v4058_v57 = vadd.f32 %v4050_v27, %v4043_v24  ;;  %v4160_v38 = vmul.f32 %v11111_v25, %v14152_v33  ;;  %v14155_v27 = vld [vmem:[#allocation83_spill] sm:$0xff]  ;;  %v14156_v24 = vld [vmem:[#allocation26_spill] sm:$0xff]  ;;  %v14158_v33 = vld [vmem:[#allocation28_spill] sm:$0xff] }
 0x353   : > { %14148 = vst [vmem:[#allocation47_spill] sm:$0xff] %v11343_v52  ;;  %14149 = vst [vmem:[#allocation79_spill] sm:$0xff] %v11347_v4  ;;  %v4259_v51 = vadd.f32 %v4251_v32, %v4244_v56  ;;  %v11361_v52 = vld [vmem:[%s5824_s5 + $0x160] sm:$0xff]  ;;  %v11364_v19 = vsel %vm333_vm1, %v4138_v26, 0.0  ;;  %v4176_v4 = vmul.f32 %v11235_v17, %v14087_v14  ;;  %v4192_v60 = vmul.f32 %v11352_v31, %v14107_v28  ;;  %v14157_v30 = vld [vmem:[#allocation94_spill] sm:$0xff] }
 0x354   : > { %14153 = vst [vmem:[#allocation43_spill] sm:$0xff] %v11364_v19  ;;  %v4206_v32 = vmul.f32 %v11068_v10, %v14154_v0  ;;  %v4477_v47 = vadd.f32 %v14155_v27, %v4461_v13  ;;  %v4074_v56 = vadd.f32 %v4066_v12, %v4058_v57  ;;  %v4222_v26 = vmul.f32 %v14157_v30, %v14156_v24  ;;  %v14159_v0 = vld [vmem:[#allocation90_spill] sm:$0xff] }
 0x355   : > { %v4275_v25 = vadd.f32 %v11263_v6, %v4259_v51  ;;  %v4238_v5 = vmul.f32 %v11298_v49, %v14158_v33  ;;  %v4317_v14 = vrot.slane %v11358_v23, 7  ;;  %v3914_v28 = vrot.slane %v11361_v52, 7  ;;  %v14160_v51 = vld [vmem:[#allocation57_spill] sm:$0xff]  ;;  %v11393_v49 = vld [vmem:[%s5851_s30] ss:$0 sm:$0xff] }
 0x356   : > { %v3960_v10 = vmul.f32 %v11152_v29, %v13962_v36  ;;  %v4492_v31 = vadd.f32 %v14159_v0, %v4477_v47  ;;  %v4089_v6 = vadd.f32 %v4082_v34, %v4074_v56  ;;  %v3975_v12 = vmul.f32 %v11270_v62, %v14129_v40  ;;  %v14161_v34 = vld [vmem:[#allocation34_spill] sm:$0xff]  ;;  %v14162_v56 = vld [vmem:[#allocation35_spill] sm:$0xff] }
 0x357   : > { %v4290_v13 = vadd.f32 %v11276_v8, %v4275_v25  ;;  %v4252_v57 = vmul.f32 %v14160_v51, %v14078_v41  ;;  %v4341_v27 = vrot.slane %v11358_v23, 1  ;;  %v11390_v33 = vsel %vm305_vm0, 0.0, %v3914_v28 }
 0x358   : > { %v3967_v29 = vadd.f32 %v11393_v49, %v3960_v10  ;;  %5254 = vst [vmem:[%s6195_s6 + $0x180] sm:$0xff] %v4492_v31  ;;  %v4168_v8 = vadd.f32 %v4160_v38, %v4089_v6  ;;  %v4268_v47 = vmul.f32 %v11238_v61, %v14161_v34  ;;  %v3991_v25 = vmul.f32 %v11390_v33, %v14089_v42 }
 0x359   : > { %v4370_v0 = vadd.f32 %v11289_v11, %v4290_v13  ;;  %v11404_v51 = vmul.f32 %v11364_v19, %v14162_v56  ;;  %v11407_v28 = vsel %vm305_vm0, 0.0, %v4317_v14  ;;  %v4005_v31 = vmul.f32 %v11117_v46, %v13778_v45  ;;  %v14166_v46 = vld [vmem:[#allocation64_spill] sm:$0xff] }
 0x35a   : > { %14163 = vst [vmem:[#allocation71_spill] sm:$0xff] %v11407_v28  ;;  %v3983_v40 = vadd.f32 %v3975_v12, %v3967_v29  ;;  %v4184_v38 = vadd.f32 %v4176_v4, %v4168_v8  ;;  %v11414_v10 = vmul.f32 %v11171_v9, %v14134_v55  ;;  %v11418_v13 = vmul.f32 %v11285_v21, %v5970_v58  ;;  %v11430_v4 = vld [vmem:[%s5824_s5 + $0x1a0] sm:$0xff] }
 0x35b   : > { %v4386_v11 = vadd.f32 %v11293_v63, %v4370_v0  ;;  %v11421_v6 = vsel %vm333_vm1, %v4341_v27, 0.0  ;;  %v11425_v14 = vmul.f32 %v11135_v37, %v14138_v48  ;;  %v4021_v63 = vmul.f32 %v11231_v15, %v14166_v46  ;;  %14167 = vst [vmem:[#allocation96_spill] sm:$0xff] %v11430_v4 }
 0x35c   : > { %14164 = vst [vmem:[#allocation82_spill] sm:$0xff] %v11421_v6  ;;  %v3998_v12 = vadd.f32 %v3991_v25, %v3983_v40  ;;  %v4199_v29 = vadd.f32 %v4192_v60, %v4184_v38  ;;  %v11435_v0 = vmul.f32 %v11407_v28, %v14115_v7  ;;  %v3938_v27 = vrot.slane %v11361_v52, 1 }
 0x35d   : > { %14165 = vst [vmem:[#allocation92_spill] sm:$0xff] %v11425_v14  ;;  %v4401_v9 = vadd.f32 %v11315_v44, %v4386_v11  ;;  %v11440_v8 = vmul.f32 %v11248_v2, %v14142_v39  ;;  %v11444_v40 = vmul.f32 %v11358_v23, %v14118_v3  ;;  %v4037_v25 = vmul.f32 %v11361_v52, %v14097_v18  ;;  %v14170_v44 = vld [vmem:[#allocation65_spill] sm:$0xff] }
 0x35e   : > { %v4013_v37 = vadd.f32 %v4005_v31, %v3998_v12  ;;  %v4214_v11 = vadd.f32 %v4206_v32, %v4199_v29  ;;  %v11451_v38 = vmul.f32 %v11186_v54, %v14145_v59  ;;  %v4115_v14 = vrot.slane %v11430_v4, 7 }
 0x35f   : > { %14168 = vst [vmem:[#allocation73_spill] sm:$0xff] %v11440_v8  ;;  %14169 = vst [vmem:[#allocation104_spill] sm:$0xff] %v11444_v40  ;;  %v4416_v60 = vadd.f32 %v14170_v44, %v4401_v9  ;;  %v11456_v8 = vmul.f32 %v11302_v43, %v14147_v53  ;;  %v4051_v31 = vmul.f32 %v11223_v20, %v14116_v50  ;;  %v4139_v12 = vrot.slane %v11430_v4, 1  ;;  %v14180_v40 = vld [vmem:[#allocation85_spill] sm:$0xff] }
 0x360   : > { %14171 = vst [vmem:[#allocation75_spill] sm:$0xff] %v11451_v38  ;;  %v4029_v3 = vadd.f32 %v4021_v63, %v4013_v37  ;;  %v4230_v32 = vadd.f32 %v4222_v26, %v4214_v11  ;;  %v11464_v54 = vmul.f32 %v11421_v6, %v14120_v35  ;;  %v11467_v29 = vsel %vm333_vm1, %v3938_v27, 0.0  ;;  %v14175_v37 = vld [vmem:[#allocation54_spill] sm:$0xff]  ;;  %v11482_v35 = vld [vmem:[%s5824_s5 + $0x168] sm:$0xff] }
 0x361   : > { %14172 = vst [vmem:[#allocation29_spill] sm:$0xff] %v11456_v8  ;;  %v4432_v9 = vadd.f32 %v11319_v22, %v4416_v60  ;;  %14174 = vst [vmem:[#allocation49_spill] sm:$0xff] %v11467_v29  ;;  %v4067_v63 = vmul.f32 %v11335_v16, %v14064_v1  ;;  %v4083_v20 = vmul.f32 %v11467_v29, %v14175_v37  ;;  %v14176_v8 = vld [vmem:[#allocation17_spill] sm:$0xff]  ;;  %v14177_v22 = vld [vmem:[#allocation32_spill] sm:$0xff]  ;;  %v11477_v11 = vsel %vm305_vm0, 0.0, %v4115_v14 }
 0x362   : > { %14173 = vst [vmem:[#allocation95_spill] sm:$0xff] %v11464_v54  ;;  %v4044_v44 = vadd.f32 %v4037_v25, %v4029_v3  ;;  %v4161_v38 = vmul.f32 %v11235_v17, %v14176_v8  ;;  %v4245_v60 = vadd.f32 %v4238_v5, %v4230_v32  ;;  %14178 = vst [vmem:[#allocation46_spill] sm:$0xff] %v11477_v11  ;;  %v14179_v54 = vld [vmem:[#allocation18_spill] sm:$0xff]  ;;  %v11485_v25 = vsel %vm333_vm1, %v4139_v12, 0.0  ;;  %v14182_v1 = vld [vmem:[#allocation21_spill] sm:$0xff] }
 0x363   : > { %v4447_v26 = vadd.f32 %v14177_v22, %v4432_v9  ;;  %v4177_v27 = vmul.f32 %v14180_v40, %v14179_v54  ;;  %14181 = vst [vmem:[#allocation101_spill] sm:$0xff] %v11485_v25  ;;  %v4193_v37 = vmul.f32 %v11477_v11, %v14182_v1  ;;  %v14183_v29 = vld [vmem:[#allocation23_spill] sm:$0xff]  ;;  %v14186_v22 = vld [vmem:[#allocation78_spill] sm:$0xff]  ;;  %v14187_v40 = vld [vmem:[#allocation28_spill] sm:$0xff]  ;;  %v11501_v12 = vmul.f32 %v11238_v61, %v14078_v41 }
 0x364   : > { %v4059_v3 = vadd.f32 %v4051_v31, %v4044_v44  ;;  %v4207_v17 = vmul.f32 %v14157_v30, %v14183_v29  ;;  %v11492_v9 = vld [vmem:[%s5824_s5 + $0x1e0] sm:$0xff]  ;;  %v4260_v32 = vadd.f32 %v4252_v57, %v4245_v60  ;;  %v4223_v54 = vmul.f32 %v14186_v22, %v14156_v24  ;;  %v14189_v60 = vld [vmem:[#allocation62_spill] sm:$0xff] }
 0x365   : > { %14184 = vst [vmem:[#allocation84_spill] sm:$0xff] %v11492_v9  ;;  %v14185_v5 = vld [vmem:[#allocation87_spill] sm:$0xff]  ;;  %v4239_v31 = vmul.f32 %v11430_v4, %v14187_v40  ;;  %v3915_v1 = vrot.slane %v11482_v35, 7  ;;  %v3961_v30 = vmul.f32 %v11270_v62, %v13962_v36 }
 0x366   : > { %v4462_v14 = vadd.f32 %v14185_v5, %v4447_v26  ;;  %v4075_v44 = vadd.f32 %v4067_v63, %v4059_v3  ;;  %v14188_v29 = vld [vmem:[#allocation47_spill] sm:$0xff]  ;;  %v4276_v57 = vadd.f32 %v4268_v47, %v4260_v32  ;;  %v4318_v26 = vrot.slane %v11492_v9, 7 }
 0x367   : > { %v3976_v5 = vmul.f32 %v11390_v33, %v14189_v60  ;;  %v11512_v63 = vmul.f32 %v11364_v19, %v14161_v34  ;;  %v11515_v3 = vsel %vm305_vm0, 0.0, %v3915_v1  ;;  %v3968_v61 = vadd.f32 %v11393_v49, %v3961_v30  ;;  %v14190_v62 = vld [vmem:[#allocation79_spill] sm:$0xff] }
 0x368   : > { %v4478_v11 = vadd.f32 %v14188_v29, %v4462_v14  ;;  %v4090_v40 = vadd.f32 %v4083_v20, %v4075_v44  ;;  %v4291_v29 = vadd.f32 %v11404_v51, %v4276_v57  ;;  %v4342_v47 = vrot.slane %v11492_v9, 1 }
 0x369   : > { %v3992_v14 = vmul.f32 %v11515_v3, %v14089_v42  ;;  %v11525_v32 = vmul.f32 %v11485_v25, %v14162_v56  ;;  %v3984_v44 = vadd.f32 %v3976_v5, %v3968_v61  ;;  %v4006_v1 = vmul.f32 %v11231_v15, %v13778_v45 }
 0x36a   : > { %v4493_v36 = vadd.f32 %v14190_v62, %v4478_v11  ;;  %v4169_v20 = vadd.f32 %v4161_v38, %v4090_v40  ;;  %v4371_v11 = vadd.f32 %v11414_v10, %v4291_v29  ;;  %v11532_v51 = vsel %vm305_vm0, 0.0, %v4318_v26  ;;  %v11549_v10 = vld [vmem:[%s5824_s5 + $0x1a8] sm:$0xff] }
 0x36b   : > { %14191 = vst [vmem:[#allocation70_spill] sm:$0xff] %v11532_v51  ;;  %v11536_v30 = vmul.f32 %v11285_v21, %v14134_v55  ;;  %v11540_v40 = vmul.f32 %v11407_v28, %v5970_v58  ;;  %v11544_v61 = vmul.f32 %v11248_v2, %v14138_v48  ;;  %v3999_v15 = vadd.f32 %v3992_v14, %v3984_v44  ;;  %v14199_v21 = vld [vmem:[#allocation92_spill] sm:$0xff] }
 0x36c   : > { %5255 = vst [vmem:[%s6195_s6 + $0x188] sm:$0xff] %v4493_v36  ;;  %v4185_v38 = vadd.f32 %v4177_v27, %v4169_v20  ;;  %v4022_v36 = vmul.f32 %v11361_v52, %v14166_v46  ;;  %14193 = vst [vmem:[#allocation31_spill] sm:$0xff] %v11549_v10  ;;  %v4387_v57 = vadd.f32 %v11418_v13, %v4371_v11  ;;  %v11553_v26 = vsel %vm333_vm1, %v4342_v47, 0.0  ;;  %v14196_v20 = vld [vmem:[#allocation50_spill] sm:$0xff] }
 0x36d   : > { %14192 = vst [vmem:[#allocation89_spill] sm:$0xff] %v11544_v61  ;;  %14194 = vst [vmem:[#allocation98_spill] sm:$0xff] %v11553_v26  ;;  %v11557_v5 = vmul.f32 %v11532_v51, %v14115_v7  ;;  %v3939_v27 = vrot.slane %v11482_v35, 1  ;;  %v11562_v2 = vmul.f32 %v11358_v23, %v14142_v39  ;;  %v4014_v29 = vadd.f32 %v4006_v1, %v3999_v15 }
 0x36e   : > { %v4200_v62 = vadd.f32 %v4193_v37, %v4185_v38  ;;  %v4038_v14 = vmul.f32 %v11482_v35, %v14097_v18  ;;  %v4402_v13 = vadd.f32 %v11435_v0, %v4387_v57  ;;  %v11569_v47 = vmul.f32 %v11492_v9, %v14196_v20 }
 0x36f   : > { %14195 = vst [vmem:[#allocation100_spill] sm:$0xff] %v11562_v2  ;;  %v11573_v44 = vmul.f32 %v11302_v43, %v14145_v59  ;;  %v4116_v37 = vrot.slane %v11549_v10, 7  ;;  %v4030_v38 = vadd.f32 %v4022_v36, %v4014_v29  ;;  %v4052_v1 = vmul.f32 %v11335_v16, %v14116_v50  ;;  %v14205_v29 = vld [vmem:[#allocation49_spill] sm:$0xff]  ;;  %v14206_v2 = vld [vmem:[#allocation54_spill] sm:$0xff] }
 0x370   : > { %14197 = vst [vmem:[#allocation99_spill] sm:$0xff] %v11569_v47  ;;  %v4215_v11 = vadd.f32 %v4207_v17, %v4200_v62  ;;  %v4140_v15 = vrot.slane %v11549_v10, 1  ;;  %v4417_v0 = vadd.f32 %v14199_v21, %v4402_v13  ;;  %v11582_v57 = vmul.f32 %v11421_v6, %v14147_v53  ;;  %v14201_v47 = vld [vmem:[#allocation58_spill] sm:$0xff]  ;;  %v14207_v13 = vld [vmem:[#allocation73_spill] sm:$0xff] }
 0x371   : > { %14198 = vst [vmem:[#allocation36_spill] sm:$0xff] %v11573_v44  ;;  %v11586_v43 = vmul.f32 %v11553_v26, %v14201_v47  ;;  %v11589_v44 = vsel %vm333_vm1, %v3939_v27, 0.0  ;;  %v4045_v36 = vadd.f32 %v4038_v14, %v4030_v38  ;;  %v14204_v62 = vld [vmem:[#allocation42_spill] sm:$0xff]  ;;  %v14209_v50 = vld [vmem:[#allocation85_spill] sm:$0xff] }
 0x372   : > { %14200 = vst [vmem:[#allocation63_spill] sm:$0xff] %v11582_v57  ;;  %14203 = vst [vmem:[#allocation93_spill] sm:$0xff] %v11589_v44  ;;  %v4231_v17 = vadd.f32 %v4223_v54, %v4215_v11  ;;  %v4068_v16 = vmul.f32 %v14205_v29, %v14204_v62  ;;  %v4084_v21 = vmul.f32 %v11589_v44, %v14206_v2  ;;  %v11597_v57 = vsel %vm305_vm0, 0.0, %v4116_v37  ;;  %v14210_v47 = vld [vmem:[#allocation18_spill] sm:$0xff]  ;;  %v11604_v54 = vld [vmem:[%s5824_s5 + $0x170] sm:$0xff] }
 0x373   : > { %14202 = vst [vmem:[#allocation48_spill] sm:$0xff] %v11586_v43  ;;  %v4433_v61 = vadd.f32 %v14207_v13, %v4417_v0  ;;  %14208 = vst [vmem:[#allocation77_spill] sm:$0xff] %v11597_v57  ;;  %v4162_v43 = vmul.f32 %v14209_v50, %v14176_v8  ;;  %v14211_v27 = vld [vmem:[#allocation46_spill] sm:$0xff]  ;;  %v4060_v11 = vadd.f32 %v4052_v1, %v4045_v36  ;;  %v11607_v38 = vsel %vm333_vm1, %v4140_v15, 0.0  ;;  %v14213_v62 = vld [vmem:[#allocation23_spill] sm:$0xff] }
 0x374   : > { %v4178_v26 = vmul.f32 %v14211_v27, %v14210_v47  ;;  %v4246_v14 = vadd.f32 %v4239_v31, %v4231_v17  ;;  %14212 = vst [vmem:[#allocation72_spill] sm:$0xff] %v11607_v38  ;;  %v4208_v2 = vmul.f32 %v14186_v22, %v14213_v62  ;;  %v14214_v0 = vld [vmem:[#allocation104_spill] sm:$0xff]  ;;  %v14215_v37 = vld [vmem:[#allocation21_spill] sm:$0xff]  ;;  %v4224_v50 = vmul.f32 %v11430_v4, %v14156_v24  ;;  %v14218_v17 = vld [vmem:[#allocation75_spill] sm:$0xff] }
 0x375   : > { %v4448_v13 = vadd.f32 %v14214_v0, %v4433_v61  ;;  %v4194_v44 = vmul.f32 %v11597_v57, %v14215_v37  ;;  %v14216_v8 = vld [vmem:[#allocation28_spill] sm:$0xff]  ;;  %v4076_v1 = vadd.f32 %v4068_v16, %v4060_v11  ;;  %v11624_v15 = vmul.f32 %v11364_v19, %v14078_v41  ;;  %v14220_v22 = vld [vmem:[#allocation53_spill] sm:$0xff] }
 0x376   : > { %v4240_v47 = vmul.f32 %v11549_v10, %v14216_v8  ;;  %v11619_v27 = vld [vmem:[%s5824_s5 + $0x1e8] sm:$0xff]  ;;  %v4261_v31 = vadd.f32 %v11501_v12, %v4246_v14  ;;  %v3916_v61 = vrot.slane %v11604_v54, 7  ;;  %v11630_v0 = vmul.f32 %v11485_v25, %v14161_v34  ;;  %v14221_v19 = vld [vmem:[#allocation29_spill] sm:$0xff] }
 0x377   : > { %14217 = vst [vmem:[#allocation88_spill] sm:$0xff] %v11619_v27  ;;  %v4463_v36 = vadd.f32 %v14218_v17, %v4448_v13  ;;  %v3962_v8 = vmul.f32 %v11390_v33, %v14220_v22  ;;  %v3977_v10 = vmul.f32 %v11515_v3, %v14189_v60  ;;  %v4091_v16 = vadd.f32 %v4084_v21, %v4076_v1 }
 0x378   : > { %14219 = vst [vmem:[#allocation91_spill] sm:$0xff] %v11630_v0  ;;  %v4277_v12 = vadd.f32 %v11512_v63, %v4261_v31  ;;  %v4319_v14 = vrot.slane %v11619_v27, 7  ;;  %v11639_v11 = vsel %vm305_vm0, 0.0, %v3916_v61  ;;  %v4343_v17 = vrot.slane %v11619_v27, 1 }
 0x379   : > { %v4479_v13 = vadd.f32 %v14221_v19, %v4463_v36  ;;  %v3969_v34 = vadd.f32 %v11393_v49, %v3962_v8  ;;  %v3993_v33 = vmul.f32 %v11639_v11, %v14089_v42  ;;  %v4170_v60 = vadd.f32 %v4162_v43, %v4091_v16  ;;  %v14222_v19 = vld [vmem:[#allocation95_spill] sm:$0xff] }
 0x37a   : > { %v4292_v0 = vadd.f32 %v11525_v32, %v4277_v12  ;;  %v11649_v63 = vmul.f32 %v11607_v38, %v14162_v56  ;;  %v11653_v21 = vmul.f32 %v11407_v28, %v14134_v55  ;;  %v11658_v8 = vmul.f32 %v11532_v51, %v5970_v58  ;;  %v14234_v28 = vld [vmem:[#allocation61_spill] sm:$0xff] }
 0x37b   : > { %v4494_v31 = vadd.f32 %v14222_v19, %v4479_v13  ;;  %v3985_v1 = vadd.f32 %v3977_v10, %v3969_v34  ;;  %v4007_v32 = vmul.f32 %v11361_v52, %v13778_v45  ;;  %v4186_v61 = vadd.f32 %v4178_v26, %v4170_v60  ;;  %v11681_v60 = vld [vmem:[%s5824_s5 + $0x1b0] sm:$0xff]  ;;  %v14230_v19 = vld [vmem:[#allocation98_spill] sm:$0xff] }
 0x37c   : > { %v4372_v43 = vadd.f32 %v11536_v30, %v4292_v0  ;;  %v11664_v36 = vsel %vm305_vm0, 0.0, %v4319_v14  ;;  %v11668_v12 = vmul.f32 %v11358_v23, %v14138_v48  ;;  %v11672_v16 = vsel %vm333_vm1, %v4343_v17, 0.0  ;;  %14227 = vst [vmem:[#allocation39_spill] sm:$0xff] %v11681_v60 }
 0x37d   : > { %14223 = vst [vmem:[#allocation41_spill] sm:$0xff] %v11664_v36  ;;  %5256 = vst [vmem:[%s6195_s6 + $0x190] sm:$0xff] %v4494_v31  ;;  %v11676_v34 = vmul.f32 %v11492_v9, %v14142_v39  ;;  %v4000_v10 = vadd.f32 %v3993_v33, %v3985_v1  ;;  %v4023_v52 = vmul.f32 %v11482_v35, %v14166_v46  ;;  %v3940_v0 = vrot.slane %v11604_v54, 1 }
 0x37e   : > { %14224 = vst [vmem:[#allocation24_spill] sm:$0xff] %v11668_v12  ;;  %14225 = vst [vmem:[#allocation51_spill] sm:$0xff] %v11672_v16  ;;  %v4388_v30 = vadd.f32 %v11540_v40, %v4372_v43  ;;  %v4201_v26 = vadd.f32 %v4194_v44, %v4186_v61  ;;  %v11686_v23 = vmul.f32 %v11664_v36, %v14115_v7  ;;  %v4117_v1 = vrot.slane %v11681_v60, 7  ;;  %v14232_v43 = vld [vmem:[#allocation58_spill] sm:$0xff] }
 0x37f   : > { %14226 = vst [vmem:[#allocation37_spill] sm:$0xff] %v11676_v34  ;;  %v11691_v14 = vmul.f32 %v11619_v27, %v14196_v20  ;;  %v11695_v13 = vmul.f32 %v11421_v6, %v14145_v59  ;;  %v4015_v17 = vadd.f32 %v4007_v32, %v4000_v10  ;;  %v4039_v33 = vmul.f32 %v11604_v54, %v14097_v18  ;;  %v11725_v12 = vld [vmem:[%s5824_s5 + $0x178] sm:$0xff] }
 0x380   : > { %v4403_v40 = vadd.f32 %v11557_v5, %v4388_v30  ;;  %v4216_v44 = vadd.f32 %v4208_v2, %v4201_v26  ;;  %v11702_v31 = vmul.f32 %v14230_v19, %v14147_v53  ;;  %v11707_v61 = vmul.f32 %v11672_v16, %v14232_v43  ;;  %v14236_v26 = vld [vmem:[#allocation42_spill] sm:$0xff] }
 0x381   : > { %14228 = vst [vmem:[#allocation102_spill] sm:$0xff] %v11691_v14  ;;  %14229 = vst [vmem:[#allocation44_spill] sm:$0xff] %v11695_v13  ;;  %v4031_v6 = vadd.f32 %v4023_v52, %v4015_v17  ;;  %v4053_v32 = vmul.f32 %v14205_v29, %v14234_v28  ;;  %v4141_v10 = vrot.slane %v11681_v60, 1  ;;  %v14235_v13 = vld [vmem:[#allocation89_spill] sm:$0xff]  ;;  %v11714_v2 = vsel %vm333_vm1, %v3940_v0, 0.0  ;;  %v14238_v53 = vld [vmem:[#allocation54_spill] sm:$0xff] }
 0x382   : > { %14231 = vst [vmem:[#allocation55_spill] sm:$0xff] %v11702_v31  ;;  %14233 = vst [vmem:[#allocation45_spill] sm:$0xff] %v11707_v61  ;;  %v4418_v5 = vadd.f32 %v14235_v13, %v4403_v40  ;;  %v4232_v30 = vadd.f32 %v4224_v50, %v4216_v44  ;;  %v14237_v31 = vld [vmem:[#allocation93_spill] sm:$0xff]  ;;  %v4085_v61 = vmul.f32 %v11714_v2, %v14238_v53  ;;  %v14240_v17 = vld [vmem:[#allocation46_spill] sm:$0xff]  ;;  %v11729_v0 = vsel %vm305_vm0, 0.0, %v4117_v1 }
 0x383   : > { %v4069_v14 = vmul.f32 %v14237_v31, %v14236_v26  ;;  %v4046_v34 = vadd.f32 %v4039_v33, %v4031_v6  ;;  %v14239_v52 = vld [vmem:[#allocation17_spill] sm:$0xff]  ;;  %v14241_v29 = vld [vmem:[#allocation18_spill] sm:$0xff]  ;;  %v14242_v50 = vld [vmem:[#allocation100_spill] sm:$0xff]  ;;  %14243 = vst [vmem:[#allocation97_spill] sm:$0xff] %v11729_v0  ;;  %v4209_v6 = vmul.f32 %v11430_v4, %v14213_v62  ;;  %v11734_v44 = vsel %vm333_vm1, %v4141_v10, 0.0 }
 0x384   : > { %v4163_v43 = vmul.f32 %v14240_v17, %v14239_v52  ;;  %v4179_v16 = vmul.f32 %v11597_v57, %v14241_v29  ;;  %v4434_v13 = vadd.f32 %v14242_v50, %v4418_v5  ;;  %v4247_v40 = vadd.f32 %v4240_v47, %v4232_v30  ;;  %v14244_v29 = vld [vmem:[#allocation31_spill] sm:$0xff]  ;;  %v11741_v52 = vld [vmem:[%s5824_s5 + $0x1f0] sm:$0xff]  ;;  %v14247_v30 = vld [vmem:[#allocation28_spill] sm:$0xff] }
 0x385   : > { %v4061_v33 = vadd.f32 %v4053_v32, %v4046_v34  ;;  %v4195_v17 = vmul.f32 %v11729_v0, %v14215_v37  ;;  %v4225_v57 = vmul.f32 %v14244_v29, %v14156_v24  ;;  %14245 = vst [vmem:[#allocation52_spill] sm:$0xff] %v11741_v52  ;;  %v14246_v5 = vld [vmem:[#allocation99_spill] sm:$0xff]  ;;  %v4241_v50 = vmul.f32 %v11681_v60, %v14247_v30  ;;  %v14248_v24 = vld [vmem:[#allocation62_spill] sm:$0xff]  ;;  %v14249_v29 = vld [vmem:[#allocation36_spill] sm:$0xff] }
 0x386   : > { %v4449_v47 = vadd.f32 %v14246_v5, %v4434_v13  ;;  %v4262_v1 = vadd.f32 %v11624_v15, %v4247_v40  ;;  %v3917_v34 = vrot.slane %v11725_v12, 7  ;;  %v11750_v10 = vmul.f32 %v11485_v25, %v14078_v41  ;;  %v14250_v5 = vld [vmem:[#allocation91_spill] sm:$0xff] }
 0x387   : > { %v4077_v32 = vadd.f32 %v4069_v14, %v4061_v33  ;;  %v3963_v4 = vmul.f32 %v11515_v3, %v14220_v22  ;;  %v3978_v37 = vmul.f32 %v11639_v11, %v14248_v24  ;;  %v4320_v40 = vrot.slane %v11741_v52, 7  ;;  %v14251_v41 = vld [vmem:[#allocation63_spill] sm:$0xff] }
 0x388   : > { %v4464_v13 = vadd.f32 %v14249_v29, %v4449_v47  ;;  %v4278_v15 = vadd.f32 %v14250_v5, %v4262_v1  ;;  %v11760_v30 = vsel %vm305_vm0, 0.0, %v3917_v34  ;;  %v4344_v33 = vrot.slane %v11741_v52, 1  ;;  %v14252_v47 = vld [vmem:[#allocation34_spill] sm:$0xff] }
 0x389   : > { %v4092_v14 = vadd.f32 %v4085_v61, %v4077_v32  ;;  %v3970_v25 = vadd.f32 %v11393_v49, %v3963_v4  ;;  %v3994_v3 = vmul.f32 %v11760_v30, %v14089_v42  ;;  %v4271_v1 = vmul.f32 %v11607_v38, %v14252_v47 }
 0x38a   : > { %v4480_v22 = vadd.f32 %v14251_v41, %v4464_v13  ;;  %v4293_v29 = vadd.f32 %v11649_v63, %v4278_v15  ;;  %v11772_v34 = vmul.f32 %v11734_v44, %v14162_v56  ;;  %v11776_v4 = vmul.f32 %v11532_v51, %v14134_v55  ;;  %v14253_v13 = vld [vmem:[#allocation48_spill] sm:$0xff] }
 0x38b   : > { %v4171_v61 = vadd.f32 %v4163_v43, %v4092_v14  ;;  %v3986_v32 = vadd.f32 %v3978_v37, %v3970_v25  ;;  %v4008_v41 = vmul.f32 %v11482_v35, %v13778_v45  ;;  %v11783_v15 = vsel %vm305_vm0, 0.0, %v4320_v40  ;;  %v11795_v35 = vld [vmem:[%s5824_s5 + $0x1b8] sm:$0xff] }
 0x38c   : > { %v4495_v5 = vadd.f32 %v14253_v13, %v4480_v22  ;;  %v4373_v63 = vadd.f32 %v11653_v21, %v4293_v29  ;;  %v11787_v42 = vmul.f32 %v11664_v36, %v5970_v58  ;;  %v11790_v14 = vsel %vm333_vm1, %v4344_v33, 0.0  ;;  %14255 = vst [vmem:[#allocation83_spill] sm:$0xff] %v11795_v35 }
 0x38d   : > { %v4187_v43 = vadd.f32 %v4179_v16, %v4171_v61  ;;  %14254 = vst [vmem:[#allocation59_spill] sm:$0xff] %v11790_v14  ;;  %v4001_v51 = vadd.f32 %v3994_v3, %v3986_v32  ;;  %v4024_v25 = vmul.f32 %v11604_v54, %v14166_v46  ;;  %v11801_v37 = vmul.f32 %v11783_v15, %v14115_v7 }
 0x38e   : > { %5257 = vst [vmem:[%s6195_s6 + $0x198] sm:$0xff] %v4495_v5  ;;  %v4389_v22 = vadd.f32 %v11658_v8, %v4373_v63  ;;  %v11805_v21 = vmul.f32 %v11492_v9, %v14138_v48  ;;  %v3941_v16 = vrot.slane %v11725_v12, 1  ;;  %v11810_v33 = vmul.f32 %v11619_v27, %v14142_v39  ;;  %v14260_v63 = vld [vmem:[#allocation24_spill] sm:$0xff] }
 0x38f   : > { %v4202_v40 = vadd.f32 %v4195_v17, %v4187_v43  ;;  %v4016_v3 = vadd.f32 %v4008_v41, %v4001_v51  ;;  %v4040_v29 = vmul.f32 %v11725_v12, %v14097_v18  ;;  %v11817_v61 = vmul.f32 %v11741_v52, %v14196_v20  ;;  %v14264_v18 = vld [vmem:[#allocation58_spill] sm:$0xff] }
 0x390   : > { %14256 = vst [vmem:[#allocation94_spill] sm:$0xff] %v11805_v21  ;;  %14257 = vst [vmem:[#allocation90_spill] sm:$0xff] %v11810_v33  ;;  %v4404_v8 = vadd.f32 %v11686_v23, %v4389_v22  ;;  %v11821_v32 = vmul.f32 %v14230_v19, %v14145_v59  ;;  %v4118_v17 = vrot.slane %v11795_v35, 7  ;;  %v4054_v51 = vmul.f32 %v14237_v31, %v14234_v28  ;;  %v14261_v23 = vld [vmem:[#allocation56_spill] sm:$0xff]  ;;  %v14262_v22 = vld [vmem:[#allocation51_spill] sm:$0xff] }
 0x391   : > { %14258 = vst [vmem:[#allocation57_spill] sm:$0xff] %v11817_v61  ;;  %v4217_v13 = vadd.f32 %v4209_v6, %v4202_v40  ;;  %v4032_v5 = vadd.f32 %v4024_v25, %v4016_v3  ;;  %v4142_v41 = vrot.slane %v11795_v35, 1  ;;  %v11830_v9 = vmul.f32 %v14262_v22, %v14261_v23  ;;  %v14267_v3 = vld [vmem:[#allocation37_spill] sm:$0xff] }
 0x392   : > { %14259 = vst [vmem:[#allocation64_spill] sm:$0xff] %v11821_v32  ;;  %v4419_v43 = vadd.f32 %v14260_v63, %v4404_v8  ;;  %v11834_v19 = vmul.f32 %v11790_v14, %v14264_v18  ;;  %v11837_v32 = vsel %vm333_vm1, %v3941_v16, 0.0  ;;  %v4070_v31 = vmul.f32 %v11714_v2, %v14236_v26  ;;  %v14270_v61 = vld [vmem:[#allocation77_spill] sm:$0xff]  ;;  %v14276_v26 = vld [vmem:[#allocation26_spill] sm:$0xff] }
 0x393   : > { %14263 = vst [vmem:[#allocation65_spill] sm:$0xff] %v11830_v9  ;;  %14266 = vst [vmem:[#allocation87_spill] sm:$0xff] %v11837_v32  ;;  %v4233_v6 = vadd.f32 %v4225_v57, %v4217_v13  ;;  %v4047_v25 = vadd.f32 %v4040_v29, %v4032_v5  ;;  %v4086_v40 = vmul.f32 %v11837_v32, %v14238_v53  ;;  %v11845_v63 = vsel %vm305_vm0, 0.0, %v4118_v17  ;;  %v14269_v9 = vld [vmem:[#allocation17_spill] sm:$0xff]  ;;  %v14272_v13 = vld [vmem:[#allocation31_spill] sm:$0xff] }
 0x394   : > { %14265 = vst [vmem:[#allocation32_spill] sm:$0xff] %v11834_v19  ;;  %v4435_v8 = vadd.f32 %v14267_v3, %v4419_v43  ;;  %14268 = vst [vmem:[#allocation47_spill] sm:$0xff] %v11845_v63  ;;  %v4164_v33 = vmul.f32 %v14270_v61, %v14269_v9  ;;  %v14271_v19 = vld [vmem:[#allocation18_spill] sm:$0xff]  ;;  %v11852_v29 = vsel %vm333_vm1, %v4142_v41, 0.0  ;;  %v4210_v5 = vmul.f32 %v14272_v13, %v14213_v62  ;;  %v14275_v17 = vld [vmem:[#allocation21_spill] sm:$0xff] }
 0x395   : > { %v4180_v16 = vmul.f32 %v11729_v0, %v14271_v19  ;;  %v4248_v21 = vadd.f32 %v4241_v50, %v4233_v6  ;;  %v4062_v57 = vadd.f32 %v4054_v51, %v4047_v25  ;;  %v11857_v53 = vld [vmem:[%s5824_s5 + $0x1f8] sm:$0xff]  ;;  %v4196_v32 = vmul.f32 %v11845_v63, %v14275_v17  ;;  %v14277_v9 = vld [vmem:[#allocation28_spill] sm:$0xff]  ;;  %v14278_v6 = vld [vmem:[#allocation53_spill] sm:$0xff] }
 0x396   : > { %14273 = vst [vmem:[#allocation79_spill] sm:$0xff] %v11857_v53  ;;  %v14274_v43 = vld [vmem:[#allocation102_spill] sm:$0xff]  ;;  %v4226_v61 = vmul.f32 %v11681_v60, %v14276_v26  ;;  %v4242_v50 = vmul.f32 %v11795_v35, %v14277_v9  ;;  %v3964_v25 = vmul.f32 %v11639_v11, %v14278_v6  ;;  %v3979_v13 = vmul.f32 %v11760_v30, %v14248_v24  ;;  %v14279_v62 = vld [vmem:[#allocation44_spill] sm:$0xff]  ;;  %v14281_v30 = vld [vmem:[#allocation55_spill] sm:$0xff] }
 0x397   : > { %v4450_v3 = vadd.f32 %v14274_v43, %v4435_v8  ;;  %v4263_v51 = vadd.f32 %v11750_v10, %v4248_v21  ;;  %v4078_v41 = vadd.f32 %v4070_v31, %v4062_v57  ;;  %v14280_v43 = vld [vmem:[#allocation30_spill] sm:$0xff]  ;;  %v4321_v26 = vrot.slane %v11857_v53, 7 }
 0x398   : > { %v11874_v17 = vmul.f32 %v11607_v38, %v14280_v43  ;;  %v4345_v60 = vrot.slane %v11857_v53, 1  ;;  %v11880_v21 = vmul.f32 %v11734_v44, %v14252_v47  ;;  %v3971_v11 = vadd.f32 %v11393_v49, %v3964_v25  ;;  %v14282_v25 = vld [vmem:[#allocation45_spill] sm:$0xff] }
 0x399   : > { %v4465_v8 = vadd.f32 %v14279_v62, %v4450_v3  ;;  %v4279_v9 = vadd.f32 %v4271_v1, %v4263_v51  ;;  %v4093_v10 = vadd.f32 %v4086_v40, %v4078_v41  ;;  %v11886_v62 = vmul.f32 %v11852_v29, %v14162_v56  ;;  %v11911_v56 = vld [vmem:[%s5824_s5 + $0x180] sm:$0xff] }
 0x39a   : > { %v11890_v57 = vmul.f32 %v11664_v36, %v14134_v55  ;;  %v11894_v1 = vmul.f32 %v11783_v15, %v5970_v58  ;;  %v3987_v51 = vadd.f32 %v3979_v13, %v3971_v11  ;;  %v4009_v41 = vmul.f32 %v11604_v54, %v13778_v45 }
 0x39b   : > { %v4481_v31 = vadd.f32 %v14281_v30, %v4465_v8  ;;  %v4294_v40 = vadd.f32 %v11772_v34, %v4279_v9  ;;  %v4172_v3 = vadd.f32 %v4164_v33, %v4093_v10  ;;  %v11901_v30 = vsel %vm305_vm0, 0.0, %v4321_v26  ;;  %v14285_v33 = vld [vmem:[#allocation67_spill] sm:$0xff]  ;;  %v11918_v10 = vld [vmem:[%s5824_s5 + $0x188] sm:$0xff] }
 0x39c   : > { %14283 = vst [vmem:[#allocation50_spill] sm:$0xff] %v11901_v30  ;;  %v11904_v36 = vsel %vm333_vm1, %v4345_v60, 0.0  ;;  %v11908_v38 = vmul.f32 %v11619_v27, %v14138_v48  ;;  %v4002_v13 = vadd.f32 %v3987_v51, %v14285_v33  ;;  %v4025_v54 = vmul.f32 %v11725_v12, %v14166_v46 }
 0x39d   : > { %v4496_v8 = vadd.f32 %v14282_v25, %v4481_v31  ;;  %14284 = vst [vmem:[#allocation92_spill] sm:$0xff] %v11904_v36  ;;  %v4374_v9 = vadd.f32 %v11776_v4, %v4294_v40  ;;  %v4188_v34 = vadd.f32 %v4180_v16, %v4172_v3  ;;  %v11923_v60 = vmul.f32 %v11901_v30, %v14115_v7 }
 0x39e   : > { %v11927_v26 = vmul.f32 %v11741_v52, %v14142_v39  ;;  %v11931_v4 = vmul.f32 %v11857_v53, %v14196_v20  ;;  %v11935_v16 = vmul.f32 %v14262_v22, %v14145_v59  ;;  %v4017_v31 = vadd.f32 %v4009_v41, %v4002_v13  ;;  %v14292_v13 = vld [vmem:[#allocation17_spill] sm:$0xff] }
 0x39f   : > { %5258 = vst [vmem:[%s6195_s6 + $0x1a0] sm:$0xff] %v4496_v8  ;;  %v4390_v12 = vadd.f32 %v11787_v42, %v4374_v9  ;;  %v4203_v11 = vadd.f32 %v4196_v32, %v4188_v34  ;;  %v4525_v40 = vrot.slane %v11911_v56, 7  ;;  %v11941_v7 = vmul.f32 %v11790_v14, %v14261_v23  ;;  %v14290_v8 = vld [vmem:[#allocation42_spill] sm:$0xff]  ;;  %v14291_v9 = vld [vmem:[#allocation87_spill] sm:$0xff] }
 0x3a0   : > { %14286 = vst [vmem:[#allocation49_spill] sm:$0xff] %v11931_v4  ;;  %14287 = vst [vmem:[#allocation73_spill] sm:$0xff] %v11935_v16  ;;  %v11945_v3 = vmul.f32 %v11904_v36, %v14264_v18  ;;  %v4055_v20 = vmul.f32 %v11714_v2, %v14234_v28  ;;  %v4526_v51 = vrot.slane %v11918_v10, 7  ;;  %v4033_v32 = vadd.f32 %v4025_v54, %v4017_v31  ;;  %v14293_v2 = vld [vmem:[#allocation94_spill] sm:$0xff]  ;;  %v14297_v31 = vld [vmem:[#allocation39_spill] sm:$0xff] }
 0x3a1   : > { %14288 = vst [vmem:[#allocation104_spill] sm:$0xff] %v11941_v7  ;;  %v4405_v25 = vadd.f32 %v11801_v37, %v4390_v12  ;;  %v4218_v42 = vadd.f32 %v4210_v5, %v4203_v11  ;;  %v4541_v41 = vsel %vm305_vm0, 0.0, %v4525_v40  ;;  %v4071_v34 = vmul.f32 %v14291_v9, %v14290_v8  ;;  %v14294_v7 = vld [vmem:[#allocation80_spill] sm:$0xff]  ;;  %v14296_v11 = vld [vmem:[#allocation23_spill] sm:$0xff]  ;;  %v14298_v9 = vld [vmem:[#allocation26_spill] sm:$0xff] }
 0x3a2   : > { %14289 = vst [vmem:[#allocation75_spill] sm:$0xff] %v11945_v3  ;;  %v4165_v33 = vmul.f32 %v11729_v0, %v14292_v13  ;;  %v11957_v18 = vsel %vm305_vm0, 0.0, %v4526_v51  ;;  %v4587_v22 = vmul.f32 %v4541_v41, %v14248_v24  ;;  %v4048_v37 = vadd.f32 %v4033_v32, %v14294_v7  ;;  %v14295_v5 = vld [vmem:[#allocation60_spill] sm:$0xff]  ;;  %v14299_v0 = vld [vmem:[#allocation66_spill] sm:$0xff] }
 0x3a3   : > { %v4420_v27 = vadd.f32 %v14293_v2, %v4405_v25  ;;  %v4234_v3 = vadd.f32 %v4226_v61, %v4218_v42  ;;  %v4603_v54 = vmul.f32 %v11957_v18, %v14295_v5  ;;  %v4181_v12 = vmul.f32 %v11845_v63, %v14271_v19  ;;  %v14300_v16 = vld [vmem:[#allocation90_spill] sm:$0xff]  ;;  %v14301_v63 = vld [vmem:[#allocation57_spill] sm:$0xff] }
 0x3a4   : > { %v4211_v40 = vmul.f32 %v14297_v31, %v14296_v11  ;;  %v4227_v51 = vmul.f32 %v11795_v35, %v14298_v9  ;;  %v4595_v13 = vadd.f32 %v4587_v22, %v14299_v0  ;;  %v4063_v61 = vadd.f32 %v4055_v20, %v4048_v37  ;;  %v14302_v20 = vld [vmem:[#allocation103_spill] sm:$0xff] }
 0x3a5   : > { %v4436_v4 = vadd.f32 %v14300_v16, %v4420_v27  ;;  %v4249_v25 = vadd.f32 %v4242_v50, %v4234_v3  ;;  %v11974_v42 = vmul.f32 %v11734_v44, %v14280_v43  ;;  %v11978_v32 = vmul.f32 %v11852_v29, %v14252_v47  ;;  %v14303_v37 = vld [vmem:[#allocation15_spill] sm:$0xff] }
 0x3a6   : > { %v4549_v2 = vrot.slane %v11911_v56, 1  ;;  %v4610_v7 = vadd.f32 %v4603_v54, %v4595_v13  ;;  %v4633_v35 = vmul.f32 %v11911_v56, %v14166_v46  ;;  %v4079_v22 = vadd.f32 %v4071_v34, %v4063_v61  ;;  %v14305_v34 = vld [vmem:[#allocation69_spill] sm:$0xff] }
 0x3a7   : > { %v4451_v0 = vadd.f32 %v14301_v63, %v4436_v4  ;;  %v4264_v27 = vadd.f32 %v11874_v17, %v4249_v25  ;;  %v4550_v50 = vrot.slane %v11918_v10, 1  ;;  %v11988_v16 = vmul.f32 %v11783_v15, %v14134_v55  ;;  %v14304_v63 = vld [vmem:[#allocation64_spill] sm:$0xff] }
 0x3a8   : > { %v11992_v3 = vmul.f32 %v11901_v30, %v5970_v58  ;;  %v4625_v13 = vadd.f32 %v4610_v7, %v14302_v20  ;;  %v4649_v54 = vmul.f32 %v11918_v10, %v14303_v37  ;;  %v4094_v25 = vadd.f32 %v4079_v22, %v14305_v34  ;;  %v14311_v30 = vld [vmem:[#allocation33_spill] sm:$0xff] }
 0x3a9   : > { %v4466_v4 = vadd.f32 %v14304_v63, %v4451_v0  ;;  %v4280_v17 = vadd.f32 %v11880_v21, %v4264_v27  ;;  %v12002_v55 = vmul.f32 %v11741_v52, %v14138_v48  ;;  %v12006_v58 = vmul.f32 %v11857_v53, %v14142_v39  ;;  %v12014_v0 = vld [vmem:[%s5824_s5 + $0x1c0] sm:$0xff]  ;;  %v14306_v21 = vld [vmem:[#allocation65_spill] sm:$0xff]  ;;  %v12023_v53 = vld [vmem:[%s5824_s5 + $0x1c8] sm:$0xff] }
 0x3aa   : > { %v12010_v7 = vmul.f32 %v11790_v14, %v14145_v59  ;;  %v4565_v61 = vsel %vm333_vm1, %v4549_v2, 0.0  ;;  %v4641_v20 = vadd.f32 %v4633_v35, %v4625_v13  ;;  %v4173_v48 = vadd.f32 %v4165_v33, %v4094_v25  ;;  %v14307_v2 = vld [vmem:[#allocation32_spill] sm:$0xff]  ;;  %v14309_v25 = vld [vmem:[#allocation54_spill] sm:$0xff] }
 0x3ab   : > { %v4482_v27 = vadd.f32 %v14306_v21, %v4466_v4  ;;  %v4295_v22 = vadd.f32 %v11886_v62, %v4280_v17  ;;  %v12019_v63 = vsel %vm333_vm1, %v4550_v50, 0.0  ;;  %v4679_v34 = vmul.f32 %v4565_v61, %v14290_v8  ;;  %v14308_v17 = vld [vmem:[#allocation68_spill] sm:$0xff]  ;;  %v14310_v21 = vld [vmem:[#allocation74_spill] sm:$0xff] }
 0x3ac   : > { %v4656_v39 = vadd.f32 %v4649_v54, %v4641_v20  ;;  %v4573_v59 = vmul.f32 %v4541_v41, %v14278_v6  ;;  %v4588_v35 = vmul.f32 %v11957_v18, %v14248_v24  ;;  %v4189_v62 = vadd.f32 %v4181_v12, %v4173_v48 }
 0x3ad   : > { %v4497_v13 = vadd.f32 %v14307_v2, %v4482_v27  ;;  %v4375_v4 = vadd.f32 %v11890_v57, %v4295_v22  ;;  %v4726_v33 = vrot.slane %v12014_v0, 7  ;;  %v4695_v54 = vmul.f32 %v12019_v63, %v14309_v25 }
 0x3ae   : > { %v4671_v50 = vadd.f32 %v4656_v39, %v14308_v17  ;;  %v4580_v20 = vadd.f32 %v11393_v49, %v4573_v59  ;;  %v4604_v41 = vmul.f32 %v14310_v21, %v14295_v5  ;;  %v4204_v27 = vadd.f32 %v4189_v62, %v14311_v30 }
 0x3af   : > { %5259 = vst [vmem:[%s6195_s6 + $0x1a8] sm:$0xff] %v4497_v13  ;;  %v4391_v14 = vadd.f32 %v11894_v1, %v4375_v4  ;;  %v4727_v57 = vrot.slane %v12023_v53, 7  ;;  %v4750_v12 = vrot.slane %v12014_v0, 1  ;;  %v12044_v22 = vmul.f32 %v11904_v36, %v14261_v23  ;;  %v14322_v36 = vld [vmem:[#allocation40_spill] sm:$0xff] }
 0x3b0   : > { %v4687_v48 = vadd.f32 %v4679_v34, %v4671_v50  ;;  %v4596_v39 = vadd.f32 %v4588_v35, %v4580_v20  ;;  %v4618_v59 = vmul.f32 %v11911_v56, %v13778_v45  ;;  %v4219_v13 = vadd.f32 %v4211_v40, %v4204_v27  ;;  %v12065_v20 = vld [vmem:[%s5824_s5 + $0x190] sm:$0xff] }
 0x3b1   : > { %v4406_v2 = vadd.f32 %v11923_v60, %v4391_v14  ;;  %v4742_v1 = vsel %vm305_vm0, 0.0, %v4726_v33  ;;  %v4751_v4 = vrot.slane %v12023_v53, 1  ;;  %v4634_v23 = vmul.f32 %v11918_v10, %v14166_v46  ;;  %v14312_v60 = vld [vmem:[#allocation22_spill] sm:$0xff]  ;;  %v14313_v33 = vld [vmem:[#allocation21_spill] sm:$0xff] }
 0x3b2   : > { %v4702_v62 = vadd.f32 %v4695_v54, %v4687_v48  ;;  %v4789_v17 = vmul.f32 %v4742_v1, %v14271_v19  ;;  %v4611_v30 = vadd.f32 %v4604_v41, %v4596_v39  ;;  %v4235_v35 = vadd.f32 %v4227_v51, %v4219_v13  ;;  %v14314_v51 = vld [vmem:[#allocation25_spill] sm:$0xff] }
 0x3b3   : > { %v4421_v34 = vadd.f32 %v11908_v38, %v4406_v2  ;;  %v12056_v56 = vsel %vm305_vm0, 0.0, %v4727_v57  ;;  %v12059_v14 = vsel %vm333_vm1, %v4750_v12, 0.0  ;;  %v4650_v41 = vmul.f32 %v12065_v20, %v14303_v37 }
 0x3b4   : > { %v4781_v40 = vadd.f32 %v4702_v62, %v14312_v60  ;;  %v4805_v50 = vmul.f32 %v12056_v56, %v14313_v33  ;;  %v4626_v54 = vadd.f32 %v4618_v59, %v4611_v30  ;;  %v4250_v27 = vadd.f32 %v4235_v35, %v14314_v51  ;;  %v14315_v59 = vld [vmem:[#allocation49_spill] sm:$0xff] }
 0x3b5   : > { %v4437_v38 = vadd.f32 %v11927_v26, %v4421_v34  ;;  %v12072_v57 = vsel %vm333_vm1, %v4751_v4, 0.0  ;;  %v4574_v12 = vmul.f32 %v11957_v18, %v14278_v6  ;;  %v4664_v2 = vmul.f32 %v4565_v61, %v14234_v28  ;;  %v14316_v34 = vld [vmem:[#allocation85_spill] sm:$0xff] }
 0x3b6   : > { %v4797_v48 = vadd.f32 %v4789_v17, %v4781_v40  ;;  %v4642_v39 = vadd.f32 %v4634_v23, %v4626_v54  ;;  %v4589_v30 = vmul.f32 %v14310_v21, %v14248_v24  ;;  %v4265_v62 = vadd.f32 %v11974_v42, %v4250_v27  ;;  %v14317_v23 = vld [vmem:[#allocation73_spill] sm:$0xff] }
 0x3b7   : > { %v4452_v13 = vadd.f32 %v14315_v59, %v4437_v38  ;;  %v4581_v26 = vadd.f32 %v11393_v49, %v4574_v12  ;;  %v4605_v4 = vmul.f32 %v14316_v34, %v14295_v5  ;;  %v4835_v18 = vmul.f32 %v12014_v0, %v14298_v9  ;;  %v14318_v38 = vld [vmem:[#allocation27_spill] sm:$0xff]  ;;  %v14319_v12 = vld [vmem:[#allocation28_spill] sm:$0xff]  ;;  %v14320_v59 = vld [vmem:[#allocation86_spill] sm:$0xff] }
 0x3b8   : > { %v4812_v35 = vadd.f32 %v4805_v50, %v4797_v48  ;;  %v4657_v17 = vadd.f32 %v4650_v41, %v4642_v39  ;;  %v4680_v61 = vmul.f32 %v12019_v63, %v14290_v8  ;;  %v4281_v40 = vadd.f32 %v11978_v32, %v4265_v62  ;;  %v14321_v39 = vld [vmem:[#allocation104_spill] sm:$0xff] }
 0x3b9   : > { %v4467_v60 = vadd.f32 %v14317_v23, %v4452_v13  ;;  %v4597_v54 = vadd.f32 %v4589_v30, %v4581_v26  ;;  %v4619_v42 = vmul.f32 %v11918_v10, %v13778_v45  ;;  %v4851_v50 = vmul.f32 %v12023_v53, %v14319_v12  ;;  %v14323_v26 = vld [vmem:[#allocation17_spill] sm:$0xff] }
 0x3ba   : > { %v4827_v27 = vadd.f32 %v4812_v35, %v14318_v38  ;;  %v4672_v48 = vadd.f32 %v4664_v2, %v4657_v17  ;;  %v4696_v41 = vmul.f32 %v14320_v59, %v14309_v25  ;;  %v4296_v13 = vadd.f32 %v4281_v40, %v14322_v36  ;;  %v14324_v2 = vld [vmem:[#allocation75_spill] sm:$0xff] }
 0x3bb   : > { %v4483_v51 = vadd.f32 %v14321_v39, %v4467_v60  ;;  %v4612_v23 = vadd.f32 %v4605_v4, %v4597_v54  ;;  %v4635_v32 = vmul.f32 %v12065_v20, %v14166_v46  ;;  %v4881_v10 = vmul.f32 %v12059_v14, %v14252_v47  ;;  %v14325_v60 = vld [vmem:[#allocation78_spill] sm:$0xff]  ;;  %v14326_v4 = vld [vmem:[#allocation35_spill] sm:$0xff] }
 0x3bc   : > { %v4843_v30 = vadd.f32 %v4835_v18, %v4827_v27  ;;  %v4688_v62 = vadd.f32 %v4680_v61, %v4672_v48  ;;  %v4774_v35 = vmul.f32 %v4742_v1, %v14323_v26  ;;  %v4376_v38 = vadd.f32 %v11988_v16, %v4296_v13  ;;  %v14327_v1 = vld [vmem:[#allocation81_spill] sm:$0xff] }
 0x3bd   : > { %v4498_v17 = vadd.f32 %v14324_v2, %v4483_v51  ;;  %v4627_v52 = vadd.f32 %v4619_v42, %v4612_v23  ;;  %v4651_v39 = vmul.f32 %v14325_v60, %v14303_v37  ;;  %v4897_v54 = vmul.f32 %v12072_v57, %v14326_v4  ;;  %v14328_v42 = vld [vmem:[#allocation38_spill] sm:$0xff]  ;;  %v14329_v23 = vld [vmem:[#allocation16_spill] sm:$0xff] }
 0x3be   : > { %v4858_v40 = vadd.f32 %v4851_v50, %v4843_v30  ;;  %v4703_v36 = vadd.f32 %v4696_v41, %v4688_v62  ;;  %v4790_v18 = vmul.f32 %v12056_v56, %v14271_v19  ;;  %v4392_v61 = vadd.f32 %v11992_v3, %v4376_v38  ;;  %v14331_v38 = vld [vmem:[#allocation43_spill] sm:$0xff] }
 0x3bf   : > { %5260 = vst [vmem:[%s6195_s6 + $0x1b0] sm:$0xff] %v4498_v17  ;;  %v4806_v51 = vmul.f32 %v14327_v1, %v14313_v33  ;;  %v4643_v27 = vadd.f32 %v4635_v32, %v4627_v52  ;;  %v4665_v16 = vmul.f32 %v12019_v63, %v14234_v28  ;;  %v4820_v13 = vmul.f32 %v12014_v0, %v14296_v11  ;;  %v14330_v0 = vld [vmem:[#allocation46_spill] sm:$0xff] }
 0x3c0   : > { %v4873_v48 = vadd.f32 %v4858_v40, %v14328_v42  ;;  %v4782_v50 = vadd.f32 %v4774_v35, %v4703_v36  ;;  %v4575_v41 = vmul.f32 %v14310_v21, %v14278_v6  ;;  %v4407_v30 = vadd.f32 %v4392_v61, %v14329_v23 }
 0x3c1   : > { %v4658_v62 = vadd.f32 %v4651_v39, %v4643_v27  ;;  %v4681_v3 = vmul.f32 %v14320_v59, %v14290_v8  ;;  %v4590_v52 = vmul.f32 %v14316_v34, %v14248_v24  ;;  %v4606_v35 = vmul.f32 %v14330_v0, %v14295_v5  ;;  %v12140_v27 = vld [vmem:[%s5824_s5 + $0x1d0] sm:$0xff] }
 0x3c2   : > { %v4889_v63 = vadd.f32 %v4881_v10, %v4873_v48  ;;  %v4798_v32 = vadd.f32 %v4790_v18, %v4782_v50  ;;  %v4582_v36 = vadd.f32 %v11393_v49, %v4575_v41  ;;  %v4422_v21 = vadd.f32 %v12002_v55, %v4407_v30  ;;  %v5422_v50 = vld [vmem:[%s5824_s5 + $0x198] sm:$0xff]  ;;  %v14332_v41 = vld [vmem:[#allocation19_spill] sm:$0xff] }
 0x3c3   : > { %v4836_v2 = vmul.f32 %v12023_v53, %v14298_v9  ;;  %v4673_v17 = vadd.f32 %v4665_v16, %v4658_v62  ;;  %v4697_v60 = vmul.f32 %v14331_v38, %v14309_v25  ;;  %v4620_v18 = vmul.f32 %v12065_v20, %v13778_v45 }
 0x3c4   : > { %v4904_v39 = vadd.f32 %v4897_v54, %v4889_v63  ;;  %v4813_v40 = vadd.f32 %v4806_v51, %v4798_v32  ;;  %v4598_v10 = vadd.f32 %v4590_v52, %v4582_v36  ;;  %v4438_v61 = vadd.f32 %v12006_v58, %v4422_v21 }
 0x3c5   : > { %v4852_v55 = vmul.f32 %v12140_v27, %v14319_v12  ;;  %v4689_v42 = vadd.f32 %v4681_v3, %v4673_v17  ;;  %v4775_v16 = vmul.f32 %v12056_v56, %v14323_v26  ;;  %v4866_v54 = vmul.f32 %v12059_v14, %v14280_v43  ;;  %v14333_v56 = vld [vmem:[#allocation76_spill] sm:$0xff] }
 0x3c6   : > { %5278 = vst [vmem:[%s6195_s6 + $0x1c0] sm:$0xff] %v4904_v39  ;;  %v4828_v48 = vadd.f32 %v4820_v13, %v4813_v40  ;;  %v4613_v51 = vadd.f32 %v4606_v35, %v4598_v10  ;;  %v4636_v20 = vmul.f32 %v5422_v50, %v14166_v46  ;;  %v4453_v58 = vadd.f32 %v4438_v61, %v14332_v41  ;;  %v14334_v14 = vld [vmem:[#allocation96_spill] sm:$0xff]  ;;  %v14335_v35 = vld [vmem:[#allocation71_spill] sm:$0xff] }
 0x3c7   : > { %v4882_v23 = vmul.f32 %v12072_v57, %v14252_v47  ;;  %v4704_v30 = vadd.f32 %v4697_v60, %v4689_v42  ;;  %v4791_v62 = vmul.f32 %v14327_v1, %v14271_v19  ;;  %v4898_v13 = vmul.f32 %v14333_v56, %v14326_v4 }
 0x3c8   : > { %v4844_v3 = vadd.f32 %v4836_v2, %v4828_v48  ;;  %v4628_v52 = vadd.f32 %v4620_v18, %v4613_v51  ;;  %v4652_v63 = vmul.f32 %v14334_v14, %v14303_v37  ;;  %v4468_v32 = vadd.f32 %v12010_v7, %v4453_v58  ;;  %v14337_v48 = vld [vmem:[#allocation20_spill] sm:$0xff] }
 0x3c9   : > { %v4783_v36 = vadd.f32 %v4775_v16, %v4704_v30  ;;  %v4807_v21 = vmul.f32 %v14335_v35, %v14313_v33  ;;  %v4821_v17 = vmul.f32 %v12023_v53, %v14296_v11  ;;  %v4666_v2 = vmul.f32 %v14320_v59, %v14234_v28  ;;  %v14336_v59 = vld [vmem:[#allocation77_spill] sm:$0xff] }
 0x3ca   : > { %v4859_v60 = vadd.f32 %v4852_v55, %v4844_v3  ;;  %v4644_v39 = vadd.f32 %v4636_v20, %v4628_v52  ;;  %v4576_v40 = vmul.f32 %v14316_v34, %v14278_v6  ;;  %v4484_v10 = vadd.f32 %v12044_v22, %v4468_v32  ;;  %v14338_v20 = vld [vmem:[#allocation101_spill] sm:$0xff]  ;;  %v12185_v3 = vld [vmem:[%s5824_s5 + $0x1d8] sm:$0xff] }
 0x3cb   : > { %v4799_v18 = vadd.f32 %v4791_v62, %v4783_v36  ;;  %v4682_v7 = vmul.f32 %v14331_v38, %v14290_v8  ;;  %v4591_v61 = vmul.f32 %v14330_v0, %v14248_v24  ;;  %v4607_v16 = vmul.f32 %v14336_v59, %v14295_v5 }
 0x3cc   : > { %v4874_v53 = vadd.f32 %v4866_v54, %v4859_v60  ;;  %v4659_v55 = vadd.f32 %v4652_v63, %v4644_v39  ;;  %v4583_v42 = vadd.f32 %v11393_v49, %v4576_v40  ;;  %v4499_v34 = vadd.f32 %v4484_v10, %v14337_v48  ;;  %v14339_v40 = vld [vmem:[#allocation31_spill] sm:$0xff]  ;;  %v14341_v48 = vld [vmem:[#allocation82_spill] sm:$0xff] }
 0x3cd   : > { %v4814_v51 = vadd.f32 %v4807_v21, %v4799_v18  ;;  %v4837_v22 = vmul.f32 %v12140_v27, %v14298_v9  ;;  %v4698_v41 = vmul.f32 %v14338_v20, %v14309_v25  ;;  %v4621_v54 = vmul.f32 %v5422_v50, %v13778_v45  ;;  %v14340_v18 = vld [vmem:[#allocation70_spill] sm:$0xff] }
 0x3ce   : > { %v4890_v58 = vadd.f32 %v4882_v23, %v4874_v53  ;;  %v4674_v30 = vadd.f32 %v4666_v2, %v4659_v55  ;;  %v4599_v62 = vadd.f32 %v4591_v61, %v4583_v42  ;;  %5261 = vst [vmem:[%s6195_s6 + $0x1b8] sm:$0xff] %v4499_v34  ;;  %v4853_v52 = vmul.f32 %v12185_v3, %v14319_v12 }
 0x3cf   : > { %v4829_v49 = vadd.f32 %v4821_v17, %v4814_v51  ;;  %v4776_v63 = vmul.f32 %v14327_v1, %v14323_v26  ;;  %v4637_v23 = vmul.f32 %v14334_v14, %v14166_v46  ;;  %v4867_v50 = vmul.f32 %v12072_v57, %v14280_v43  ;;  %v12213_v51 = vld [vmem:[%s5851_s30] ss:$0 sm:$0xff] }
 0x3d0   : > { %v4905_v32 = vadd.f32 %v4898_v13, %v4890_v58  ;;  %v4690_v36 = vadd.f32 %v4682_v7, %v4674_v30  ;;  %v4614_v21 = vadd.f32 %v4607_v16, %v4599_v62  ;;  %v4792_v39 = vmul.f32 %v14335_v35, %v14271_v19 }
 0x3d1   : > { %v4845_v60 = vadd.f32 %v4837_v22, %v4829_v49  ;;  %v4653_v1 = vmul.f32 %v14339_v40, %v14303_v37  ;;  %v4883_v10 = vmul.f32 %v14333_v56, %v14252_v47  ;;  %v4808_v7 = vmul.f32 %v14340_v18, %v14313_v33 }
 0x3d2   : > { %5279 = vst [vmem:[%s6195_s6 + $0x1c8] sm:$0xff] %v4905_v32  ;;  %v4705_v17 = vadd.f32 %v4698_v41, %v4690_v36  ;;  %v4629_v2 = vadd.f32 %v4621_v54, %v4614_v21  ;;  %v4577_v57 = vmul.f32 %v14330_v0, %v14278_v6  ;;  %v4667_v55 = vmul.f32 %v14331_v38, %v14234_v28  ;;  %v14342_v41 = vld [vmem:[#allocation97_spill] sm:$0xff]  ;;  %v14343_v21 = vld [vmem:[#allocation72_spill] sm:$0xff] }
 0x3d3   : > { %v4860_v13 = vadd.f32 %v4853_v52, %v4845_v60  ;;  %v4592_v42 = vmul.f32 %v14336_v59, %v14248_v24  ;;  %v4899_v34 = vmul.f32 %v14341_v48, %v14326_v4  ;;  %v4608_v58 = vmul.f32 %v14342_v41, %v14295_v5 }
 0x3d4   : > { %v4784_v61 = vadd.f32 %v4776_v63, %v4705_v17  ;;  %v4645_v53 = vadd.f32 %v4637_v23, %v4629_v2  ;;  %v4584_v22 = vadd.f32 %v12213_v51, %v4577_v57  ;;  %v4822_v30 = vmul.f32 %v12140_v27, %v14296_v11 }
 0x3d5   : > { %v4875_v16 = vadd.f32 %v4867_v50, %v4860_v13  ;;  %v4683_v38 = vmul.f32 %v14338_v20, %v14290_v8  ;;  %v4622_v52 = vmul.f32 %v14334_v14, %v13778_v45  ;;  %v4838_v32 = vmul.f32 %v12185_v3, %v14298_v9 }
 0x3d6   : > { %v4800_v0 = vadd.f32 %v4792_v39, %v4784_v61  ;;  %v4660_v62 = vadd.f32 %v4653_v1, %v4645_v53  ;;  %v4600_v49 = vadd.f32 %v4592_v42, %v4584_v22  ;;  %v4699_v23 = vmul.f32 %v14343_v21, %v14309_v25  ;;  %v14344_v39 = vld [vmem:[#allocation84_spill] sm:$0xff] }
 0x3d7   : > { %v4891_v54 = vadd.f32 %v4883_v10, %v4875_v16  ;;  %v4638_v50 = vmul.f32 %v14339_v40, %v14166_v46  ;;  %v4854_v2 = vmul.f32 %v14344_v39, %v14319_v12  ;;  %v4777_v14 = vmul.f32 %v14335_v35, %v14323_v26 }
 0x3d8   : > { %v4815_v63 = vadd.f32 %v4808_v7, %v4800_v0  ;;  %v4675_v36 = vadd.f32 %v4667_v55, %v4660_v62  ;;  %v4615_v27 = vadd.f32 %v4608_v58, %v4600_v49  ;;  %v4868_v13 = vmul.f32 %v14333_v56, %v14280_v43  ;;  %v14345_v56 = vld [vmem:[#allocation41_spill] sm:$0xff] }
 0x3d9   : > { %v4906_v60 = vadd.f32 %v4899_v34, %v4891_v54  ;;  %v4793_v10 = vmul.f32 %v14340_v18, %v14271_v19  ;;  %v4654_v57 = vmul.f32 %v14297_v31, %v14303_v37  ;;  %v4578_v55 = vmul.f32 %v14336_v59, %v14278_v6  ;;  %v14346_v59 = vld [vmem:[#allocation47_spill] sm:$0xff] }
 0x3da   : > { %v4830_v17 = vadd.f32 %v4822_v30, %v4815_v63  ;;  %v4691_v1 = vadd.f32 %v4683_v38, %v4675_v36  ;;  %v4630_v7 = vadd.f32 %v4622_v52, %v4615_v27  ;;  %v4593_v42 = vmul.f32 %v14342_v41, %v14248_v24  ;;  %v14347_v38 = vld [vmem:[#allocation98_spill] sm:$0xff] }
 0x3db   : > { %5280 = vst [vmem:[%s6195_s6 + $0x1d0] sm:$0xff] %v4906_v60  ;;  %v4884_v35 = vmul.f32 %v14341_v48, %v14252_v47  ;;  %v4809_v16 = vmul.f32 %v14345_v56, %v14313_v33  ;;  %v4668_v22 = vmul.f32 %v14338_v20, %v14234_v28  ;;  %v4585_v30 = vadd.f32 %v12213_v51, %v4578_v55  ;;  %v5425_v60 = vld [vmem:[%s5824_s5 + $0x1e0] sm:$0xff] }
 0x3dc   : > { %v4846_v61 = vadd.f32 %v4838_v32, %v4830_v17  ;;  %v4706_v53 = vadd.f32 %v4699_v23, %v4691_v1  ;;  %v4646_v34 = vadd.f32 %v4638_v50, %v4630_v7  ;;  %v4609_v62 = vmul.f32 %v14346_v59, %v14295_v5  ;;  %v14348_v1 = vld [vmem:[#allocation88_spill] sm:$0xff] }
 0x3dd   : > { %v4900_v54 = vmul.f32 %v14347_v38, %v14326_v4  ;;  %v4823_v49 = vmul.f32 %v12185_v3, %v14296_v11  ;;  %v4684_v63 = vmul.f32 %v14343_v21, %v14290_v8  ;;  %v4601_v20 = vadd.f32 %v4593_v42, %v4585_v30 }
 0x3de   : > { %v4861_v58 = vadd.f32 %v4854_v2, %v4846_v61  ;;  %v4785_v0 = vadd.f32 %v4777_v14, %v4706_v53  ;;  %v4661_v52 = vadd.f32 %v4654_v57, %v4646_v34  ;;  %v4623_v23 = vmul.f32 %v14339_v40, %v13778_v45  ;;  %v14349_v61 = vld [vmem:[#allocation83_spill] sm:$0xff] }
 0x3df   : > { %v4839_v27 = vmul.f32 %v5425_v60, %v14298_v9  ;;  %v4700_v50 = vmul.f32 %v11734_v44, %v14309_v25  ;;  %v4616_v39 = vadd.f32 %v4609_v62, %v4601_v20  ;;  %v4639_v2 = vmul.f32 %v14297_v31, %v14166_v46 }
 0x3e0   : > { %v4876_v32 = vadd.f32 %v4868_v13, %v4861_v58  ;;  %v4801_v36 = vadd.f32 %v4793_v10, %v4785_v0  ;;  %v4676_v5 = vadd.f32 %v4668_v22, %v4661_v52  ;;  %v4855_v14 = vmul.f32 %v14348_v1, %v14319_v12  ;;  %v14350_v52 = vld [vmem:[#allocation51_spill] sm:$0xff] }
 0x3e1   : > { %v4778_v40 = vmul.f32 %v14340_v18, %v14323_v26  ;;  %v4631_v57 = vadd.f32 %v4623_v23, %v4616_v39  ;;  %v4655_v53 = vmul.f32 %v14349_v61, %v14303_v37  ;;  %v4794_v42 = vmul.f32 %v14345_v56, %v14271_v19  ;;  %v14351_v23 = vld [vmem:[#allocation67_spill] sm:$0xff] }
 0x3e2   : > { %v4892_v17 = vadd.f32 %v4884_v35, %v4876_v32  ;;  %v4816_v3 = vadd.f32 %v4809_v16, %v4801_v36  ;;  %v4692_v13 = vadd.f32 %v4684_v63, %v4676_v5  ;;  %v4579_v35 = vmul.f32 %v14342_v41, %v14278_v6 }
 0x3e3   : > { %v4594_v16 = vmul.f32 %v14346_v59, %v14248_v24  ;;  %v4869_v18 = vmul.f32 %v14341_v48, %v14280_v43  ;;  %v4647_v22 = vadd.f32 %v4639_v2, %v4631_v57  ;;  %v4669_v58 = vmul.f32 %v14343_v21, %v14234_v28 }
 0x3e4   : > { %v4907_v10 = vadd.f32 %v4900_v54, %v4892_v17  ;;  %v4831_v7 = vadd.f32 %v4823_v49, %v4816_v3  ;;  %v4707_v55 = vadd.f32 %v4700_v50, %v4692_v13  ;;  %v4810_v0 = vmul.f32 %v11783_v15, %v14313_v33  ;;  %v14352_v17 = vld [vmem:[#allocation52_spill] sm:$0xff] }
 0x3e5   : > { %v4586_v30 = vadd.f32 %v12213_v51, %v4579_v35  ;;  %v4885_v6 = vmul.f32 %v14347_v38, %v14252_v47  ;;  %v4662_v24 = vadd.f32 %v4655_v53, %v4647_v22  ;;  %v4685_v41 = vmul.f32 %v11734_v44, %v14290_v8 }
 0x3e6   : > { %5281 = vst [vmem:[%s6195_s6 + $0x1d8] sm:$0xff] %v4907_v10  ;;  %v4847_v34 = vadd.f32 %v4839_v27, %v4831_v7  ;;  %v4786_v37 = vadd.f32 %v4778_v40, %v4707_v55  ;;  %v4824_v48 = vmul.f32 %v5425_v60, %v14296_v11  ;;  %v4624_v21 = vmul.f32 %v14297_v31, %v13778_v45  ;;  %v14353_v7 = vld [vmem:[#allocation50_spill] sm:$0xff]  ;;  %v14354_v55 = vld [vmem:[#allocation80_spill] sm:$0xff] }
 0x3e7   : > { %v4602_v54 = vadd.f32 %v4594_v16, %v4586_v30  ;;  %v4901_v63 = vmul.f32 %v14350_v52, %v14326_v4  ;;  %v4677_v51 = vadd.f32 %v4669_v58, %v4662_v24  ;;  %v4701_v32 = vmul.f32 %v11852_v29, %v14309_v25 }
 0x3e8   : > { %v4862_v62 = vadd.f32 %v4855_v14, %v4847_v34  ;;  %v4802_v59 = vadd.f32 %v4794_v42, %v4786_v37  ;;  %v4840_v20 = vmul.f32 %v14348_v1, %v14298_v9  ;;  %v4640_v60 = vmul.f32 %v14349_v61, %v14166_v46 }
 0x3e9   : > { %v4617_v27 = vadd.f32 %v4602_v54, %v14351_v23  ;;  %v4693_v45 = vadd.f32 %v4685_v41, %v4677_v51  ;;  %v4779_v31 = vmul.f32 %v14345_v56, %v14323_v26  ;;  %v4856_v3 = vmul.f32 %v14352_v17, %v14319_v12 }
 0x3ea   : > { %v4877_v49 = vadd.f32 %v4869_v18, %v4862_v62  ;;  %v4817_v36 = vadd.f32 %v4810_v0, %v4802_v59  ;;  %v4795_v14 = vmul.f32 %v11783_v15, %v14271_v19  ;;  %v4870_v40 = vmul.f32 %v14347_v38, %v14280_v43  ;;  %v14357_v62 = vld [vmem:[#allocation69_spill] sm:$0xff] }
 0x3eb   : > { %v4632_v25 = vadd.f32 %v4624_v21, %v4617_v27  ;;  %v4708_v2 = vadd.f32 %v4701_v32, %v4693_v45  ;;  %v4670_v10 = vmul.f32 %v11734_v44, %v14234_v28  ;;  %v4811_v57 = vmul.f32 %v14353_v7, %v14313_v33  ;;  %v14355_v44 = vld [vmem:[#allocation59_spill] sm:$0xff]  ;;  %v14361_v27 = vld [vmem:[#allocation25_spill] sm:$0xff] }
 0x3ec   : > { %v4893_v5 = vadd.f32 %v4885_v6, %v4877_v49  ;;  %v4832_v50 = vadd.f32 %v4824_v48, %v4817_v36  ;;  %v4886_v53 = vmul.f32 %v14350_v52, %v14252_v47  ;;  %v4686_v35 = vmul.f32 %v11852_v29, %v14290_v8  ;;  %v14356_v8 = vld [vmem:[#allocation79_spill] sm:$0xff]  ;;  %v14359_v49 = vld [vmem:[#allocation92_spill] sm:$0xff] }
 0x3ed   : > { %v4648_v46 = vadd.f32 %v4640_v60, %v4632_v25  ;;  %v4787_v56 = vadd.f32 %v4779_v31, %v4708_v2  ;;  %v4825_v38 = vmul.f32 %v14348_v1, %v14296_v11  ;;  %v4902_v34 = vmul.f32 %v14355_v44, %v14326_v4 }
 0x3ee   : > { %v4908_v39 = vadd.f32 %v4901_v63, %v4893_v5  ;;  %v4848_v13 = vadd.f32 %v4840_v20, %v4832_v50  ;;  %v4841_v22 = vmul.f32 %v14352_v17, %v14298_v9  ;;  %v4780_v0 = vmul.f32 %v11783_v15, %v14323_v26  ;;  %v14360_v63 = vld [vmem:[#allocation33_spill] sm:$0xff] }
 0x3ef   : > { %v4663_v42 = vadd.f32 %v4648_v46, %v14354_v55  ;;  %v4803_v16 = vadd.f32 %v4795_v14, %v4787_v56  ;;  %v4857_v30 = vmul.f32 %v14356_v8, %v14319_v12  ;;  %v4796_v24 = vmul.f32 %v14353_v7, %v14271_v19 }
 0x3f0   : > { %5282 = vst [vmem:[%s6195_s6 + $0x1e0] sm:$0xff] %v4908_v39  ;;  %v4863_v61 = vadd.f32 %v4856_v3, %v4848_v13  ;;  %v4871_v59 = vmul.f32 %v14350_v52, %v14280_v43  ;;  %v4887_v26 = vmul.f32 %v14355_v44, %v14252_v47  ;;  %v4826_v54 = vmul.f32 %v14352_v17, %v14296_v11 }
 0x3f1   : > { %v4678_v18 = vadd.f32 %v4670_v10, %v4663_v42  ;;  %v4818_v33 = vadd.f32 %v4811_v57, %v4803_v16  ;;  %v4903_v19 = vmul.f32 %v14359_v49, %v14326_v4  ;;  %v4842_v52 = vmul.f32 %v14356_v8, %v14298_v9 }
 0x3f2   : > { %v4878_v28 = vadd.f32 %v4870_v40, %v4863_v61  ;;  %v4872_v11 = vmul.f32 %v14355_v44, %v14280_v43  ;;  %v4888_v60 = vmul.f32 %v14359_v49, %v14252_v47  ;;  %v14363_v43 = vld [vmem:[#allocation40_spill] sm:$0xff] }
 0x3f3   : > { %v4694_v37 = vadd.f32 %v4686_v35, %v4678_v18  ;;  %v4833_v29 = vadd.f32 %v4825_v38, %v4818_v33 }
 0x3f4   : > { %v4894_v58 = vadd.f32 %v4886_v53, %v4878_v28 }
 0x3f5   : > { %v4709_v6 = vadd.f32 %v4694_v37, %v14357_v62  ;;  %v4849_v41 = vadd.f32 %v4841_v22, %v4833_v29 }
 0x3f6   : > { %v4909_v1 = vadd.f32 %v4902_v34, %v4894_v58 }
 0x3f7   : > { %v4788_v48 = vadd.f32 %v4780_v0, %v4709_v6  ;;  %v4864_v15 = vadd.f32 %v4857_v30, %v4849_v41 }
 0x3f8   : > { %5283 = vst [vmem:[%s6195_s6 + $0x1e8] sm:$0xff] %v4909_v1 }
 0x3f9   : > { %v4804_v12 = vadd.f32 %v4796_v24, %v4788_v48  ;;  %v4879_v21 = vadd.f32 %v4871_v59, %v4864_v15 }
 0x3fb   : > { %v4819_v51 = vadd.f32 %v4804_v12, %v14360_v63  ;;  %v4895_v32 = vadd.f32 %v4887_v26, %v4879_v21 }
 0x3fd   : > { %v4834_v36 = vadd.f32 %v4826_v54, %v4819_v51  ;;  %v4910_v20 = vadd.f32 %v4903_v19, %v4895_v32 }
 0x3ff   : > { %v4850_v23 = vadd.f32 %v4842_v52, %v4834_v36  ;;  %5284 = vst [vmem:[%s6195_s6 + $0x1f0] sm:$0xff] %v4910_v20 }
 0x401   : > { %v4865_v4 = vadd.f32 %v4850_v23, %v14361_v27 }
 0x403   : > { %v4880_v9 = vadd.f32 %v4872_v11, %v4865_v4 }
 0x405   : > { %v4896_v5 = vadd.f32 %v4888_v60, %v4880_v9 }
 0x407   : > { %v4911_v45 = vadd.f32 %v4896_v5, %v14363_v43 }
 0x409   : > { %5285 = vst [vmem:[%s6195_s6 + $0x1f8] sm:$0xff] %v4911_v45 }
 0x40a   : > { %5495 = shalt.err (!%p5492_p2)
}
 0x40b   : > { %s5496_s30 = scalar_lea.hbm %s12359_s3, 8192  ;;  %s5500_s25 = scalar_lea.hbm %s14362_s10, 32768 }
 0x40c   : > { %p5497_p13 = scmp.ne.s32.totalorder %s12359_s3, %s5496_s30  ;;  %p5501_p9 = scmp.lt.s32.totalorder %s12359_s3, %s14362_s10 }
 0x40d   : > { %p5502_p10 = scmp.lt.s32.totalorder %s5500_s25, %s5496_s30 }
 0x40e   : > { %p5498_p5 = pnand %p5497_p13, %p5738_p11 }
 0x40f   : > { %p5503_p7 = por %p5502_p10, %p5501_p9 }
 0x410   : > { %p5499_p0 = pneg %p5498_p5 }
 0x412   : > { %p5504_p8 = pnand %p5503_p7, %p5499_p0 }
 0x414   : > { %5507 = shalt.err (!%p5504_p8)
}
 0x415   : > { %s5615_s5 = smov 128   ;;  %s5616_s15 = smov 256  }
 0x416   : > { %s5617_s28 = smov 8  }
 0x417   : > { %5295 = dma.vmem_to_hbm [thread:$0]  (%p5738_p11), %s12361_s29, 8192, %s12359_s3, %s4922_s18, %s5615_s5, %s5616_s15, %s5617_s28  }
 0x418 PF: > { %s14364_s4 = sld [smem:[#allocation11_spill]]  ;;  %p5309_p12 = scmp.ge.s32.totalorder %s5606_s22, 2 }
 0x419   : > { %p14365_p3 = scmp.ne.s32.totalorder %s12991_s8, 0 }
 0x41b   : > { %p5305_p1 = pnand %p5309_p12, %p14365_p3 }
 0x41d   : > { %p5306_p6 = pneg %p5305_p1 }
 0x41e   : > { %s4951_s24 = sand.u32 1, %s14364_s4  }
 0x41f   : > { %s4952_s12 = scalar_lea.sflag [#allocation4], %s4951_s24 }
 0x420   : > { %5561 = dma.done.wait (%p5306_p6), %s4952_s12, 8192  }
 0x421   : > { %5563 = vsyncadd (%p5306_p6), %s4952_s12, 4294959104  ;;  %s22_s22 = sadd.s32 1, %s5606_s22   ;;  %s14366_s7 = sld [smem:[#allocation13_spill]] }
 0x422   : > { %p19_p4 = scmp.ge.s32.totalorder %s22_s22, 6   ;;  %s14367_s27 = sld [smem:[#allocation14_spill]] }
 0x423   : > { %s14368_s12 = smov %s5570_s13  ;;  %s14369_s13 = smov %s5574_s14 }
 0x424   : > { %s14370_s14 = smov %s5785_s11  ;;  %s14371_s15 = smov %s5582_s16 }
 0x425   : > { %s14372_s16 = smov %s5586_s17  ;;  %s14373_s17 = smov %s5748_s9 }
 0x426   : > { %s14374_s18 = smov %s5598_s20  ;;  %s14375_s19 = smov %s5602_s21 }
 0x427   : > { %s14376_s20 = smov %s14366_s7  ;;  %21 = sbr.rel (!%p19_p4) target bundleno = 13 (0xd), region = 107 }
 0x428   : > { %s14377_s21 = smov %s14367_s27 }
 0x42c   :  { %4957 = vsyncpa [#allocation3], 1 }
 0x42d   :  { %4959 = vsyncpa [#allocation3 + $0x1], 1 }
 0x42e   :  { %4960 = vsyncpa [#allocation6], 1 }
 0x42f   :  { %4962 = vsyncpa [#allocation6 + $0x1], 1 }
 0x430   :  { %4963 = vsyncpa [#allocation4], 1 }
 0x431   :  { %4965 = vsyncpa [#allocation4 + $0x1], 1 }

</bundles_post_ra>
